<compile_context>
chip_gen: v7x
topology: tpu7x:2x2x1
jax: 0.10.0
libtpu: 0.0.40
codegen_flags: <defaults>
</compile_context>

<pallas_src>
import math

import jax
import jax.numpy as jnp
from jax.experimental import pallas as pl
from jax.experimental.pallas import tpu as pltpu

GROUPS = 32      # GroupNorm(num_groups=32, eps=1e-6, affine=True)
GN_EPS = 1e-6
_SUBLANE = 16    # bf16 sublane tile (also a multiple of the f32 tile of 8)


def _round_up(v, m):
    return (v + m - 1) // m * m


# ----------------------------------------------------------------------------
# Kernel: one batch element per grid step, NHWC layout (C on the 128-lane axis).
# ----------------------------------------------------------------------------
def resnet_block_kernel(x_ref, gavg_ref,
                        gn1_g_ref, gn1_b_ref, w1_ref, b1_ref,
                        gn2_g_ref, gn2_b_ref, w2_ref, b2_ref,
                        out_ref,
                        pad_ref):
    _, H, W, C = x_ref.shape
    Cout = out_ref.shape[3]
    HW = H * W
    Wp = pad_ref.shape[1]                   # sublane-aligned padded width
    cdt = pad_ref.dtype                     # MXU compute dtype (bf16)

    def silu(v):
        # TODO(synk): on v6e/v7x this SiLU could run in bf16 (bf16 VALU/EUP);
        # kept f32 for portability to v5e and numerical headroom.
        return v * jax.nn.sigmoid(v)

    def group_norm(h2d, gamma, beta):
        # Centered two-pass statistics in f32.  gavg_ref is a block-diagonal
        # (C, C) group-averaging matrix (pre-scaled by 1/(H*W*group_size)),
        # so one tiny matmul turns per-channel sums into per-channel group
        # means -- no per-step one-hot construction.
        s = jnp.sum(h2d, axis=0, keepdims=True)                            # (1, C)
        mean_c = jnp.dot(s, gavg_ref[...], preferred_element_type=jnp.float32)
        d = h2d - mean_c
        ss = jnp.sum(d * d, axis=0, keepdims=True)                         # (1, C)
        var_c = jnp.dot(ss, gavg_ref[...], preferred_element_type=jnp.float32)
        scale = jax.lax.rsqrt(var_c + GN_EPS) * gamma    # gamma folded into rsqrt
        return d * scale + beta

    # Zero only the halo + sublane-alignment padding of the shared padded
    # buffer; the interior is fully overwritten by each conv.  Done per grid
    # step (not under program_id==0) so it stays correct when the "parallel"
    # batch axis is sharded across TensorCores (each core owns its scratch).
    pad_ref[0:1, :, :] = jnp.zeros((1, Wp, C), cdt)
    pad_ref[H + 1:H + 2, :, :] = jnp.zeros((1, Wp, C), cdt)
    pad_ref[:, 0:1, :] = jnp.zeros((H + 2, 1, C), cdt)
    pad_ref[:, W + 1:Wp, :] = jnp.zeros((H + 2, Wp - W - 1, C), cdt)

    def conv3x3(h2d, w_ref, bias_row):
        # Row-slab 3x3 conv (no materialized im2col):
        #   for each kernel row dy, one contiguous bf16 MXU contraction
        #   (H*Wp, C) @ (C, 3*Cout) over the padded slab, then three
        #   column-shifted f32 adds select the dx taps.
        pad_ref[1:H + 1, 1:W + 1, :] = h2d.reshape(H, W, C).astype(cdt)
        acc = None
        for dy in range(3):
            # free reshape: Wp is a multiple of the bf16 sublane tile (16)
            slab = pad_ref[dy:dy + H, :, :].reshape(H * Wp, C)
            part = jnp.dot(slab, w_ref[dy], preferred_element_type=jnp.float32)
            acc = part if acc is None else acc + part
        t = acc.reshape(H, Wp, 3 * Cout)
        out = (t[:, 0:W, 0:Cout]
               + t[:, 1:W + 1, Cout:2 * Cout]
               + t[:, 2:W + 2, 2 * Cout:3 * Cout])
        return out.reshape(HW, Cout) + bias_row

    # norm1 -> SiLU -> conv1
    h = group_norm(x_ref[0].astype(jnp.float32).reshape(HW, C),
                   gn1_g_ref[...], gn1_b_ref[...])
    h = conv3x3(silu(h), w1_ref, b1_ref[...])

    # norm2 -> SiLU -> dropout -> conv2
    h = group_norm(h, gn2_g_ref[...], gn2_b_ref[...])
    # TODO(synk): nn.Dropout is the eval-mode identity here; stochastic
    # training-time dropout is not implemented.
    h = conv3x3(silu(h), w2_ref, b2_ref[...])

    # identity skip (in_channels == out_channels); re-read the resident input
    # block instead of keeping an f32 copy live across both convs.
    out_ref[0] = (x_ref[0].astype(jnp.float32)
                  + h.reshape(H, W, Cout)).astype(out_ref.dtype)


# ----------------------------------------------------------------------------
# Wrappers
# ----------------------------------------------------------------------------
def _vmem_limit_bytes():
    # Budget the scoped-VMEM limit per TPU generation instead of hard-coding
    # 64 MiB (v7x's entire physical per-core VMEM): ~48 MiB on v7x (64 MiB),
    # ~96 MiB on v5e/v6e (128 MiB), always leaving ~25% headroom for the
    # pipeline's double buffers and compiler temporaries.
    cap = None
    try:
        cap = getattr(pltpu.get_tpu_info(), "vmem_capacity_bytes", None)
    except Exception:
        cap = None
    if not cap:
        cap = 64 * 1024 * 1024          # conservative: smallest per-core VMEM
    return int(cap) * 3 // 4


def resnet_block_pallas_nhwc(x, p, compute_dtype=jnp.bfloat16):
    """x: (N, H, W, C) activations (f32 or bf16); p: dict with HWIO conv weights."""
    N, H, W, C = x.shape
    Cout = p["w1"].shape[-1]
    if Cout != C:
        # TODO(synk): conv_shortcut / nin_shortcut (in_channels != out_channels)
        # skip path is not implemented.
        raise NotImplementedError("resnet_block_pallas requires in == out channels")
    if C % GROUPS != 0:
        raise ValueError(f"channels ({C}) must be divisible by {GROUPS} for GroupNorm")

    f32 = jnp.float32
    Wp = _round_up(W + 2, _SUBLANE)

    # Block-diagonal group-averaging matrix: per-channel sums -> per-channel
    # group means, pre-scaled by 1/(H*W*group_size).  Built once per call.
    gsize = C // GROUPS
    gid = jnp.arange(C, dtype=jnp.int32) // gsize
    gavg = (gid[:, None] == gid[None, :]).astype(f32) / float(H * W * gsize)

    def slab_weights(w):
        # HWIO (3, 3, Cin, Cout) -> (3, Cin, 3*Cout) with [dy, ci, dx*Cout + co]
        return jnp.transpose(w, (0, 2, 1, 3)).reshape(
            3, w.shape[2], 3 * w.shape[3]).astype(compute_dtype)

    args = (
        x, gavg,
        p["gn1_g"].reshape(1, C).astype(f32), p["gn1_b"].reshape(1, C).astype(f32),
        slab_weights(p["w1"]), p["b1"].reshape(1, Cout).astype(f32),
        p["gn2_g"].reshape(1, Cout).astype(f32), p["gn2_b"].reshape(1, Cout).astype(f32),
        slab_weights(p["w2"]), p["b2"].reshape(1, Cout).astype(f32),
    )

    def const_spec(shape, buffers=None):
        rank = len(shape)
        idx = lambda n, _r=rank: (0,) * _r
        if buffers is None:
            return pl.BlockSpec(shape, idx)
        # constant-index operands are fetched once; single-buffer them so they
        # don't cost 2x VMEM (matters at C >= 256 against v7x's 64 MiB).
        return pl.BlockSpec(shape, idx, pipeline_mode=pl.Buffered(buffers))

    # TODO(synk): for large DDPM resolutions (H*W*C working sets of tens of
    # MiB) add a spatial row-tile grid axis (TILE_H rows + 1-row halo) with a
    # two-pass GroupNorm (stats pass, then normalize pass); whole-image steps
    # are kept here because GroupNorm statistics span the full H*W.
    out = pl.pallas_call(
        resnet_block_kernel,
        out_shape=jax.ShapeDtypeStruct((N, H, W, Cout), x.dtype),
        grid_spec=pltpu.PrefetchScalarGridSpec(
            num_scalar_prefetch=0,
            grid=(N,),
            in_specs=[
                pl.BlockSpec((1, H, W, C), lambda n: (n, 0, 0, 0)),     # x
                const_spec((C, C), buffers=1),                          # group-avg matrix
                const_spec((1, C)), const_spec((1, C)),                 # gn1 gamma/beta
                const_spec((3, C, 3 * Cout), buffers=1),                # conv1 slab weights
                const_spec((1, Cout)),                                  # conv1 bias
                const_spec((1, Cout)), const_spec((1, Cout)),           # gn2 gamma/beta
                const_spec((3, Cout, 3 * Cout), buffers=1),             # conv2 slab weights
                const_spec((1, Cout)),                                  # conv2 bias
            ],
            out_specs=pl.BlockSpec((1, H, W, Cout), lambda n: (n, 0, 0, 0)),
            scratch_shapes=[
                pltpu.VMEM((H + 2, Wp, C), compute_dtype),  # shared padded act buffer
            ],
        ),
        compiler_params=pltpu.CompilerParams(
            dimension_semantics=("parallel",),        # batch elements independent
            vmem_limit_bytes=_vmem_limit_bytes()),
    )(*args)
    return out


def resnet_block_pallas(x_nchw, p, compute_dtype=jnp.bfloat16):
    # Single NCHW<->NHWC transpose pair to match the PyTorch interface; in a
    # full network keep activations NHWC and call resnet_block_pallas_nhwc.
    x = jnp.transpose(x_nchw, (0, 2, 3, 1))
    out = resnet_block_pallas_nhwc(x, p, compute_dtype)
    return jnp.transpose(out, (0, 3, 1, 2))


# ----------------------------------------------------------------------------
# Pure-JAX reference (NCHW in / NCHW out).  `compute_dtype` controls the conv
# operand precision so the kernel's bf16 MXU path can be checked tightly.
# ----------------------------------------------------------------------------
def resnet_block_ref(x_nchw, p, compute_dtype=jnp.float32):
    x = jnp.transpose(x_nchw, (0, 2, 3, 1)).astype(jnp.float32)

    def silu(v):
        return v * jax.nn.sigmoid(v)

    def gn(h, gamma, beta):
        n, hh, ww, c = h.shape
        gsz = c // GROUPS
        hg = h.reshape(n, hh, ww, GROUPS, gsz)
        mean = hg.mean(axis=(1, 2, 4), keepdims=True)
        var = hg.var(axis=(1, 2, 4), keepdims=True)
        hn = ((hg - mean) * jax.lax.rsqrt(var + GN_EPS)).reshape(n, hh, ww, c)
        return hn * gamma + beta

    def conv3(h, w, b):
        out = jax.lax.conv_general_dilated(
            h.astype(compute_dtype), w.astype(compute_dtype),
            window_strides=(1, 1), padding=((1, 1), (1, 1)),
            dimension_numbers=("NHWC", "HWIO", "NHWC"),
            preferred_element_type=jnp.float32)
        return out + b

    h = conv3(silu(gn(x, p["gn1_g"], p["gn1_b"])), p["w1"], p["b1"])
    h = conv3(silu(gn(h, p["gn2_g"], p["gn2_b"])), p["w2"], p["b2"])
    out = x + h
    return jnp.transpose(out, (0, 3, 1, 2))


# ----------------------------------------------------------------------------
if __name__ == "__main__":
    # channels must be divisible by 32 (GroupNorm); 128 keeps the lane axis dense
    N, C, H, W = 2, 128, 16, 16
    Cout = C

    key = jax.random.PRNGKey(0)
    ks = jax.random.split(key, 9)

    params = dict(
        gn1_g=1.0 + 0.1 * jax.random.normal(ks[0], (C,), jnp.float32),
        gn1_b=0.1 * jax.random.normal(ks[1], (C,), jnp.float32),
        w1=jax.random.normal(ks[2], (3, 3, C, Cout), jnp.float32) / math.sqrt(9 * C),
        b1=0.01 * jax.random.normal(ks[3], (Cout,), jnp.float32),
        gn2_g=1.0 + 0.1 * jax.random.normal(ks[4], (Cout,), jnp.float32),
        gn2_b=0.1 * jax.random.normal(ks[5], (Cout,), jnp.float32),
        w2=jax.random.normal(ks[6], (3, 3, Cout, Cout), jnp.float32) / math.sqrt(9 * Cout),
        b2=0.01 * jax.random.normal(ks[7], (Cout,), jnp.float32),
    )
    x = jax.random.normal(ks[8], (N, C, H, W), jnp.float32)

    out = jax.block_until_ready(resnet_block_pallas(x, params))
    assert out.shape == (N, Cout, H, W)

    # tight check against a reference using the same bf16 conv-operand precision
    ref_bf16 = resnet_block_ref(x, params, compute_dtype=jnp.bfloat16)
    err_m = float(jnp.max(jnp.abs(out - ref_bf16)))
    assert err_m < 2.5e-2, f"mismatch vs bf16-matched reference: {err_m}"

    # loose sanity check against the full-f32 reference (bf16 rounding budget)
    ref_f32 = resnet_block_ref(x, params, compute_dtype=jnp.float32)
    err_f = float(jnp.max(jnp.abs(out - ref_f32)))
    assert err_f < 1e-1, f"mismatch vs f32 reference: {err_f}"

    # bf16 activations in / bf16 out (halves HBM traffic + x/out VMEM blocks)
    out_b = jax.block_until_ready(resnet_block_pallas(x.astype(jnp.bfloat16), params))
    assert out_b.dtype == jnp.bfloat16 and out_b.shape == (N, Cout, H, W)
    out_b32 = out_b.astype(jnp.float32)
    assert bool(jnp.isfinite(out_b32).all())
    err_b = float(jnp.max(jnp.abs(out_b32 - out)))
    assert err_b < 3e-1, f"bf16-activation path mismatch: {err_b}"

    print("KERNEL_OK")
</pallas_src>

<mosaic_0001>
module attributes {stable_mosaic.version = 11 : i64} {
  func.func @resnet_block_kernel(%arg0: i32, %arg1: memref<1x16x16x128xf32, #tpu.memory_space<vmem>>, %arg2: memref<128x128xf32, #tpu.memory_space<vmem>>, %arg3: memref<1x128xf32, #tpu.memory_space<vmem>>, %arg4: memref<1x128xf32, #tpu.memory_space<vmem>>, %arg5: memref<3x128x384xbf16, #tpu.memory_space<vmem>>, %arg6: memref<1x128xf32, #tpu.memory_space<vmem>>, %arg7: memref<1x128xf32, #tpu.memory_space<vmem>>, %arg8: memref<1x128xf32, #tpu.memory_space<vmem>>, %arg9: memref<3x128x384xbf16, #tpu.memory_space<vmem>>, %arg10: memref<1x128xf32, #tpu.memory_space<vmem>>, %arg11: memref<1x16x16x128xf32, #tpu.memory_space<vmem>>, %arg12: memref<18x32x128xbf16, #tpu.memory_space<vmem>>) attributes {dimension_semantics = [#tpu.dimension_semantics<parallel>], iteration_bounds = array<i64: 2>, scalar_prefetch = 0 : i64, scratch_operands = 1 : i64, tpu.core_type = #tpu.core_type<tc>, window_params = [{transform_indices = @transform_0, window_bounds = array<i64: 1, 16, 16, 128>}, {pipeline_mode = #tpu.pipeline_mode<synchronous>, transform_indices = @transform_1, window_bounds = array<i64: 128, 128>}, {pipeline_mode = #tpu.pipeline_mode<synchronous>, transform_indices = @transform_2, window_bounds = array<i64: 1, 128>}, {pipeline_mode = #tpu.pipeline_mode<synchronous>, transform_indices = @transform_3, window_bounds = array<i64: 1, 128>}, {pipeline_mode = #tpu.pipeline_mode<synchronous>, transform_indices = @transform_4, window_bounds = array<i64: 3, 128, 384>}, {pipeline_mode = #tpu.pipeline_mode<synchronous>, transform_indices = @transform_5, window_bounds = array<i64: 1, 128>}, {pipeline_mode = #tpu.pipeline_mode<synchronous>, transform_indices = @transform_6, window_bounds = array<i64: 1, 128>}, {pipeline_mode = #tpu.pipeline_mode<synchronous>, transform_indices = @transform_7, window_bounds = array<i64: 1, 128>}, {pipeline_mode = #tpu.pipeline_mode<synchronous>, transform_indices = @transform_8, window_bounds = array<i64: 3, 128, 384>}, {pipeline_mode = #tpu.pipeline_mode<synchronous>, transform_indices = @transform_9, window_bounds = array<i64: 1, 128>}, {transform_indices = @transform_10, window_bounds = array<i64: 1, 16, 16, 128>}]} {
    %cst = arith.constant 0.000000e+00 : bf16
    %0 = vector.broadcast %cst : bf16 to vector<1x32x128xbf16>
    %c0 = arith.constant 0 : index
    %c0_0 = arith.constant 0 : index
    %c0_1 = arith.constant 0 : index
    %1 = vector.load %arg12[%c0, %c0_0, %c0_1] : memref<18x32x128xbf16, #tpu.memory_space<vmem>>, vector<1x32x128xbf16>
    tpu.vector_store %arg12[%c0, %c0_0, %c0_1], %0 {strides = array<i32>} : memref<18x32x128xbf16, #tpu.memory_space<vmem>>, vector<1x32x128xbf16>,
    %cst_2 = arith.constant 0.000000e+00 : bf16
    %2 = vector.broadcast %cst_2 : bf16 to vector<1x32x128xbf16>
    %c17 = arith.constant 17 : index
    %c0_3 = arith.constant 0 : index
    %c0_4 = arith.constant 0 : index
    %3 = vector.load %arg12[%c17, %c0_3, %c0_4] : memref<18x32x128xbf16, #tpu.memory_space<vmem>>, vector<1x32x128xbf16>
    tpu.vector_store %arg12[%c17, %c0_3, %c0_4], %2 {strides = array<i32>} : memref<18x32x128xbf16, #tpu.memory_space<vmem>>, vector<1x32x128xbf16>,
    %cst_5 = arith.constant 0.000000e+00 : bf16
    %4 = vector.broadcast %cst_5 : bf16 to vector<18x1x128xbf16>
    %c0_6 = arith.constant 0 : index
    %c0_7 = arith.constant 0 : index
    %c0_8 = arith.constant 0 : index
    %5 = vector.load %arg12[%c0_6, %c0_7, %c0_8] : memref<18x32x128xbf16, #tpu.memory_space<vmem>>, vector<18x1x128xbf16>
    tpu.vector_store %arg12[%c0_6, %c0_7, %c0_8], %4 {strides = array<i32>} : memref<18x32x128xbf16, #tpu.memory_space<vmem>>, vector<18x1x128xbf16>,
    %cst_9 = arith.constant 0.000000e+00 : bf16
    %6 = vector.broadcast %cst_9 : bf16 to vector<18x15x128xbf16>
    %c0_10 = arith.constant 0 : index
    %c17_11 = arith.constant 17 : index
    %c0_12 = arith.constant 0 : index
    %7 = vector.load %arg12[%c0_10, %c17_11, %c0_12] : memref<18x32x128xbf16, #tpu.memory_space<vmem>>, vector<18x15x128xbf16>
    tpu.vector_store %arg12[%c0_10, %c17_11, %c0_12], %6 {strides = array<i32>} : memref<18x32x128xbf16, #tpu.memory_space<vmem>>, vector<18x15x128xbf16>,
    %c0_13 = arith.constant 0 : index
    %c0_14 = arith.constant 0 : index
    %c0_15 = arith.constant 0 : index
    %c0_16 = arith.constant 0 : index
    %8 = vector.load %arg1[%c0_13, %c0_14, %c0_15, %c0_16] : memref<1x16x16x128xf32, #tpu.memory_space<vmem>>, vector<1x16x16x128xf32>
    %9 = vector.shape_cast %8 : vector<1x16x16x128xf32> to vector<16x16x128xf32>
    %10 = vector.shape_cast %9 : vector<16x16x128xf32> to vector<256x128xf32>
    %c0_17 = arith.constant 0 : index
    %c0_18 = arith.constant 0 : index
    %11 = vector.load %arg3[%c0_17, %c0_18] : memref<1x128xf32, #tpu.memory_space<vmem>>, vector<1x128xf32>
    %c0_19 = arith.constant 0 : index
    %c0_20 = arith.constant 0 : index
    %12 = vector.load %arg4[%c0_19, %c0_20] : memref<1x128xf32, #tpu.memory_space<vmem>>, vector<1x128xf32>
    %cst_21 = arith.constant dense<0.000000e+00> : vector<128xf32>
    %13 = vector.multi_reduction <add>, %10, %cst_21 [0] : vector<256x128xf32> to vector<128xf32>
    %14 = vector.shape_cast %13 : vector<128xf32> to vector<1x128xf32>
    %c0_22 = arith.constant 0 : index
    %c0_23 = arith.constant 0 : index
    %15 = vector.load %arg2[%c0_22, %c0_23] : memref<128x128xf32, #tpu.memory_space<vmem>>, vector<128x128xf32>
    %cst_24 = arith.constant dense<0.000000e+00> : vector<1x128xf32>
    %16 = tpu.matmul %14, %15, %cst_24 {dimension_numbers = #tpu.dot_dimension_numbers<[1], [0], [0], [1], [0, 0, 1, 1], [], []>} : vector<1x128xf32>, vector<128x128xf32>, vector<1x128xf32> -> vector<1x128xf32>
    %17 = vector.broadcast %16 : vector<1x128xf32> to vector<256x128xf32>
    %18 = arith.subf %10, %17 : vector<256x128xf32>
    %19 = arith.mulf %18, %18 : vector<256x128xf32>
    %cst_25 = arith.constant dense<0.000000e+00> : vector<128xf32>
    %20 = vector.multi_reduction <add>, %19, %cst_25 [0] : vector<256x128xf32> to vector<128xf32>
    %21 = vector.shape_cast %20 : vector<128xf32> to vector<1x128xf32>
    %c0_26 = arith.constant 0 : index
    %c0_27 = arith.constant 0 : index
    %22 = vector.load %arg2[%c0_26, %c0_27] : memref<128x128xf32, #tpu.memory_space<vmem>>, vector<128x128xf32>
    %cst_28 = arith.constant dense<0.000000e+00> : vector<1x128xf32>
    %23 = tpu.matmul %21, %22, %cst_28 {dimension_numbers = #tpu.dot_dimension_numbers<[1], [0], [0], [1], [0, 0, 1, 1], [], []>} : vector<1x128xf32>, vector<128x128xf32>, vector<1x128xf32> -> vector<1x128xf32>
    %cst_29 = arith.constant 9.99999997E-7 : f32
    %24 = vector.broadcast %cst_29 : f32 to vector<1x128xf32>
    %25 = arith.addf %23, %24 : vector<1x128xf32>
    %26 = math.rsqrt %25 : vector<1x128xf32>
    %27 = arith.mulf %26, %11 : vector<1x128xf32>
    %28 = vector.broadcast %27 : vector<1x128xf32> to vector<256x128xf32>
    %29 = arith.mulf %18, %28 : vector<256x128xf32>
    %30 = vector.broadcast %12 : vector<1x128xf32> to vector<256x128xf32>
    %31 = arith.addf %29, %30 : vector<256x128xf32>
    %32 = arith.negf %31 : vector<256x128xf32>
    %33 = math.exp %32 : vector<256x128xf32>
    %cst_30 = arith.constant 1.000000e+00 : f32
    %34 = vector.broadcast %cst_30 : f32 to vector<256x128xf32>
    %35 = arith.addf %34, %33 : vector<256x128xf32>
    %36 = arith.divf %34, %35 : vector<256x128xf32>
    %37 = arith.mulf %31, %36 : vector<256x128xf32>
    %c0_31 = arith.constant 0 : index
    %c0_32 = arith.constant 0 : index
    %38 = vector.load %arg6[%c0_31, %c0_32] : memref<1x128xf32, #tpu.memory_space<vmem>>, vector<1x128xf32>
    %39 = vector.shape_cast %37 : vector<256x128xf32> to vector<16x16x128xf32>
    %40 = arith.truncf %39 : vector<16x16x128xf32> to vector<16x16x128xbf16>
    %c1 = arith.constant 1 : index
    %c1_33 = arith.constant 1 : index
    %c0_34 = arith.constant 0 : index
    %41 = vector.load %arg12[%c1, %c1_33, %c0_34] : memref<18x32x128xbf16, #tpu.memory_space<vmem>>, vector<16x16x128xbf16>
    tpu.vector_store %arg12[%c1, %c1_33, %c0_34], %40 {strides = array<i32>} : memref<18x32x128xbf16, #tpu.memory_space<vmem>>, vector<16x16x128xbf16>,
    %c0_35 = arith.constant 0 : index
    %c0_36 = arith.constant 0 : index
    %c0_37 = arith.constant 0 : index
    %42 = vector.load %arg12[%c0_35, %c0_36, %c0_37] : memref<18x32x128xbf16, #tpu.memory_space<vmem>>, vector<16x32x128xbf16>
    %43 = vector.shape_cast %42 : vector<16x32x128xbf16> to vector<512x128xbf16>
    %c0_38 = arith.constant 0 : index
    %c0_39 = arith.constant 0 : index
    %c0_40 = arith.constant 0 : index
    %44 = vector.load %arg5[%c0_38, %c0_39, %c0_40] : memref<3x128x384xbf16, #tpu.memory_space<vmem>>, vector<1x128x384xbf16>
    %45 = vector.shape_cast %44 : vector<1x128x384xbf16> to vector<128x384xbf16>
    %cst_41 = arith.constant dense<0.000000e+00> : vector<512x384xf32>
    %46 = tpu.matmul %43, %45, %cst_41 {dimension_numbers = #tpu.dot_dimension_numbers<[1], [0], [0], [1], [0, 0, 1, 1], [], []>} : vector<512x128xbf16>, vector<128x384xbf16>, vector<512x384xf32> -> vector<512x384xf32>
    %c1_42 = arith.constant 1 : index
    %c0_43 = arith.constant 0 : index
    %c0_44 = arith.constant 0 : index
    %47 = vector.load %arg12[%c1_42, %c0_43, %c0_44] : memref<18x32x128xbf16, #tpu.memory_space<vmem>>, vector<16x32x128xbf16>
    %48 = vector.shape_cast %47 : vector<16x32x128xbf16> to vector<512x128xbf16>
    %c1_45 = arith.constant 1 : index
    %c0_46 = arith.constant 0 : index
    %c0_47 = arith.constant 0 : index
    %49 = vector.load %arg5[%c1_45, %c0_46, %c0_47] : memref<3x128x384xbf16, #tpu.memory_space<vmem>>, vector<1x128x384xbf16>
    %50 = vector.shape_cast %49 : vector<1x128x384xbf16> to vector<128x384xbf16>
    %cst_48 = arith.constant dense<0.000000e+00> : vector<512x384xf32>
    %51 = tpu.matmul %48, %50, %cst_48 {dimension_numbers = #tpu.dot_dimension_numbers<[1], [0], [0], [1], [0, 0, 1, 1], [], []>} : vector<512x128xbf16>, vector<128x384xbf16>, vector<512x384xf32> -> vector<512x384xf32>
    %52 = arith.addf %46, %51 : vector<512x384xf32>
    %c2 = arith.constant 2 : index
    %c0_49 = arith.constant 0 : index
    %c0_50 = arith.constant 0 : index
    %53 = vector.load %arg12[%c2, %c0_49, %c0_50] : memref<18x32x128xbf16, #tpu.memory_space<vmem>>, vector<16x32x128xbf16>
    %54 = vector.shape_cast %53 : vector<16x32x128xbf16> to vector<512x128xbf16>
    %c2_51 = arith.constant 2 : index
    %c0_52 = arith.constant 0 : index
    %c0_53 = arith.constant 0 : index
    %55 = vector.load %arg5[%c2_51, %c0_52, %c0_53] : memref<3x128x384xbf16, #tpu.memory_space<vmem>>, vector<1x128x384xbf16>
    %56 = vector.shape_cast %55 : vector<1x128x384xbf16> to vector<128x384xbf16>
    %cst_54 = arith.constant dense<0.000000e+00> : vector<512x384xf32>
    %57 = tpu.matmul %54, %56, %cst_54 {dimension_numbers = #tpu.dot_dimension_numbers<[1], [0], [0], [1], [0, 0, 1, 1], [], []>} : vector<512x128xbf16>, vector<128x384xbf16>, vector<512x384xf32> -> vector<512x384xf32>
    %58 = arith.addf %52, %57 : vector<512x384xf32>
    %59 = vector.shape_cast %58 : vector<512x384xf32> to vector<16x32x384xf32>
    %60 = vector.extract_strided_slice %59 {offsets = [0, 0, 0], sizes = [16, 16, 128], strides = [1, 1, 1]} : vector<16x32x384xf32> to vector<16x16x128xf32>
    %61 = vector.extract_strided_slice %59 {offsets = [0, 1, 128], sizes = [16, 16, 128], strides = [1, 1, 1]} : vector<16x32x384xf32> to vector<16x16x128xf32>
    %62 = arith.addf %60, %61 : vector<16x16x128xf32>
    %63 = vector.extract_strided_slice %59 {offsets = [0, 2, 256], sizes = [16, 16, 128], strides = [1, 1, 1]} : vector<16x32x384xf32> to vector<16x16x128xf32>
    %64 = arith.addf %62, %63 : vector<16x16x128xf32>
    %65 = vector.shape_cast %64 : vector<16x16x128xf32> to vector<256x128xf32>
    %66 = vector.broadcast %38 : vector<1x128xf32> to vector<256x128xf32>
    %67 = arith.addf %65, %66 : vector<256x128xf32>
    %c0_55 = arith.constant 0 : index
    %c0_56 = arith.constant 0 : index
    %68 = vector.load %arg7[%c0_55, %c0_56] : memref<1x128xf32, #tpu.memory_space<vmem>>, vector<1x128xf32>
    %c0_57 = arith.constant 0 : index
    %c0_58 = arith.constant 0 : index
    %69 = vector.load %arg8[%c0_57, %c0_58] : memref<1x128xf32, #tpu.memory_space<vmem>>, vector<1x128xf32>
    %cst_59 = arith.constant dense<0.000000e+00> : vector<128xf32>
    %70 = vector.multi_reduction <add>, %67, %cst_59 [0] : vector<256x128xf32> to vector<128xf32>
    %71 = vector.shape_cast %70 : vector<128xf32> to vector<1x128xf32>
    %c0_60 = arith.constant 0 : index
    %c0_61 = arith.constant 0 : index
    %72 = vector.load %arg2[%c0_60, %c0_61] : memref<128x128xf32, #tpu.memory_space<vmem>>, vector<128x128xf32>
    %cst_62 = arith.constant dense<0.000000e+00> : vector<1x128xf32>
    %73 = tpu.matmul %71, %72, %cst_62 {dimension_numbers = #tpu.dot_dimension_numbers<[1], [0], [0], [1], [0, 0, 1, 1], [], []>} : vector<1x128xf32>, vector<128x128xf32>, vector<1x128xf32> -> vector<1x128xf32>
    %74 = vector.broadcast %73 : vector<1x128xf32> to vector<256x128xf32>
    %75 = arith.subf %67, %74 : vector<256x128xf32>
    %76 = arith.mulf %75, %75 : vector<256x128xf32>
    %cst_63 = arith.constant dense<0.000000e+00> : vector<128xf32>
    %77 = vector.multi_reduction <add>, %76, %cst_63 [0] : vector<256x128xf32> to vector<128xf32>
    %78 = vector.shape_cast %77 : vector<128xf32> to vector<1x128xf32>
    %c0_64 = arith.constant 0 : index
    %c0_65 = arith.constant 0 : index
    %79 = vector.load %arg2[%c0_64, %c0_65] : memref<128x128xf32, #tpu.memory_space<vmem>>, vector<128x128xf32>
    %cst_66 = arith.constant dense<0.000000e+00> : vector<1x128xf32>
    %80 = tpu.matmul %78, %79, %cst_66 {dimension_numbers = #tpu.dot_dimension_numbers<[1], [0], [0], [1], [0, 0, 1, 1], [], []>} : vector<1x128xf32>, vector<128x128xf32>, vector<1x128xf32> -> vector<1x128xf32>
    %cst_67 = arith.constant 9.99999997E-7 : f32
    %81 = vector.broadcast %cst_67 : f32 to vector<1x128xf32>
    %82 = arith.addf %80, %81 : vector<1x128xf32>
    %83 = math.rsqrt %82 : vector<1x128xf32>
    %84 = arith.mulf %83, %68 : vector<1x128xf32>
    %85 = vector.broadcast %84 : vector<1x128xf32> to vector<256x128xf32>
    %86 = arith.mulf %75, %85 : vector<256x128xf32>
    %87 = vector.broadcast %69 : vector<1x128xf32> to vector<256x128xf32>
    %88 = arith.addf %86, %87 : vector<256x128xf32>
    %89 = arith.negf %88 : vector<256x128xf32>
    %90 = math.exp %89 : vector<256x128xf32>
    %cst_68 = arith.constant 1.000000e+00 : f32
    %91 = vector.broadcast %cst_68 : f32 to vector<256x128xf32>
    %92 = arith.addf %91, %90 : vector<256x128xf32>
    %93 = arith.divf %91, %92 : vector<256x128xf32>
    %94 = arith.mulf %88, %93 : vector<256x128xf32>
    %c0_69 = arith.constant 0 : index
    %c0_70 = arith.constant 0 : index
    %95 = vector.load %arg10[%c0_69, %c0_70] : memref<1x128xf32, #tpu.memory_space<vmem>>, vector<1x128xf32>
    %96 = vector.shape_cast %94 : vector<256x128xf32> to vector<16x16x128xf32>
    %97 = arith.truncf %96 : vector<16x16x128xf32> to vector<16x16x128xbf16>
    %c1_71 = arith.constant 1 : index
    %c1_72 = arith.constant 1 : index
    %c0_73 = arith.constant 0 : index
    %98 = vector.load %arg12[%c1_71, %c1_72, %c0_73] : memref<18x32x128xbf16, #tpu.memory_space<vmem>>, vector<16x16x128xbf16>
    tpu.vector_store %arg12[%c1_71, %c1_72, %c0_73], %97 {strides = array<i32>} : memref<18x32x128xbf16, #tpu.memory_space<vmem>>, vector<16x16x128xbf16>,
    %c0_74 = arith.constant 0 : index
    %c0_75 = arith.constant 0 : index
    %c0_76 = arith.constant 0 : index
    %99 = vector.load %arg12[%c0_74, %c0_75, %c0_76] : memref<18x32x128xbf16, #tpu.memory_space<vmem>>, vector<16x32x128xbf16>
    %100 = vector.shape_cast %99 : vector<16x32x128xbf16> to vector<512x128xbf16>
    %c0_77 = arith.constant 0 : index
    %c0_78 = arith.constant 0 : index
    %c0_79 = arith.constant 0 : index
    %101 = vector.load %arg9[%c0_77, %c0_78, %c0_79] : memref<3x128x384xbf16, #tpu.memory_space<vmem>>, vector<1x128x384xbf16>
    %102 = vector.shape_cast %101 : vector<1x128x384xbf16> to vector<128x384xbf16>
    %cst_80 = arith.constant dense<0.000000e+00> : vector<512x384xf32>
    %103 = tpu.matmul %100, %102, %cst_80 {dimension_numbers = #tpu.dot_dimension_numbers<[1], [0], [0], [1], [0, 0, 1, 1], [], []>} : vector<512x128xbf16>, vector<128x384xbf16>, vector<512x384xf32> -> vector<512x384xf32>
    %c1_81 = arith.constant 1 : index
    %c0_82 = arith.constant 0 : index
    %c0_83 = arith.constant 0 : index
    %104 = vector.load %arg12[%c1_81, %c0_82, %c0_83] : memref<18x32x128xbf16, #tpu.memory_space<vmem>>, vector<16x32x128xbf16>
    %105 = vector.shape_cast %104 : vector<16x32x128xbf16> to vector<512x128xbf16>
    %c1_84 = arith.constant 1 : index
    %c0_85 = arith.constant 0 : index
    %c0_86 = arith.constant 0 : index
    %106 = vector.load %arg9[%c1_84, %c0_85, %c0_86] : memref<3x128x384xbf16, #tpu.memory_space<vmem>>, vector<1x128x384xbf16>
    %107 = vector.shape_cast %106 : vector<1x128x384xbf16> to vector<128x384xbf16>
    %cst_87 = arith.constant dense<0.000000e+00> : vector<512x384xf32>
    %108 = tpu.matmul %105, %107, %cst_87 {dimension_numbers = #tpu.dot_dimension_numbers<[1], [0], [0], [1], [0, 0, 1, 1], [], []>} : vector<512x128xbf16>, vector<128x384xbf16>, vector<512x384xf32> -> vector<512x384xf32>
    %109 = arith.addf %103, %108 : vector<512x384xf32>
    %c2_88 = arith.constant 2 : index
    %c0_89 = arith.constant 0 : index
    %c0_90 = arith.constant 0 : index
    %110 = vector.load %arg12[%c2_88, %c0_89, %c0_90] : memref<18x32x128xbf16, #tpu.memory_space<vmem>>, vector<16x32x128xbf16>
    %111 = vector.shape_cast %110 : vector<16x32x128xbf16> to vector<512x128xbf16>
    %c2_91 = arith.constant 2 : index
    %c0_92 = arith.constant 0 : index
    %c0_93 = arith.constant 0 : index
    %112 = vector.load %arg9[%c2_91, %c0_92, %c0_93] : memref<3x128x384xbf16, #tpu.memory_space<vmem>>, vector<1x128x384xbf16>
    %113 = vector.shape_cast %112 : vector<1x128x384xbf16> to vector<128x384xbf16>
    %cst_94 = arith.constant dense<0.000000e+00> : vector<512x384xf32>
    %114 = tpu.matmul %111, %113, %cst_94 {dimension_numbers = #tpu.dot_dimension_numbers<[1], [0], [0], [1], [0, 0, 1, 1], [], []>} : vector<512x128xbf16>, vector<128x384xbf16>, vector<512x384xf32> -> vector<512x384xf32>
    %115 = arith.addf %109, %114 : vector<512x384xf32>
    %116 = vector.shape_cast %115 : vector<512x384xf32> to vector<16x32x384xf32>
    %117 = vector.extract_strided_slice %116 {offsets = [0, 0, 0], sizes = [16, 16, 128], strides = [1, 1, 1]} : vector<16x32x384xf32> to vector<16x16x128xf32>
    %118 = vector.extract_strided_slice %116 {offsets = [0, 1, 128], sizes = [16, 16, 128], strides = [1, 1, 1]} : vector<16x32x384xf32> to vector<16x16x128xf32>
    %119 = arith.addf %117, %118 : vector<16x16x128xf32>
    %120 = vector.extract_strided_slice %116 {offsets = [0, 2, 256], sizes = [16, 16, 128], strides = [1, 1, 1]} : vector<16x32x384xf32> to vector<16x16x128xf32>
    %121 = arith.addf %119, %120 : vector<16x16x128xf32>
    %122 = vector.shape_cast %121 : vector<16x16x128xf32> to vector<256x128xf32>
    %123 = vector.broadcast %95 : vector<1x128xf32> to vector<256x128xf32>
    %124 = arith.addf %122, %123 : vector<256x128xf32>
    %c0_95 = arith.constant 0 : index
    %c0_96 = arith.constant 0 : index
    %c0_97 = arith.constant 0 : index
    %c0_98 = arith.constant 0 : index
    %125 = vector.load %arg1[%c0_95, %c0_96, %c0_97, %c0_98] : memref<1x16x16x128xf32, #tpu.memory_space<vmem>>, vector<1x16x16x128xf32>
    %126 = vector.shape_cast %125 : vector<1x16x16x128xf32> to vector<16x16x128xf32>
    %127 = vector.shape_cast %124 : vector<256x128xf32> to vector<16x16x128xf32>
    %128 = arith.addf %126, %127 : vector<16x16x128xf32>
    %c0_99 = arith.constant 0 : index
    %c0_100 = arith.constant 0 : index
    %c0_101 = arith.constant 0 : index
    %c0_102 = arith.constant 0 : index
    %129 = vector.load %arg11[%c0_99, %c0_100, %c0_101, %c0_102] : memref<1x16x16x128xf32, #tpu.memory_space<vmem>>, vector<1x16x16x128xf32>
    %130 = vector.shape_cast %129 : vector<1x16x16x128xf32> to vector<16x16x128xf32>
    %131 = vector.shape_cast %128 : vector<16x16x128xf32> to vector<1x16x16x128xf32>
    tpu.vector_store %arg11[%c0_99, %c0_100, %c0_101, %c0_102], %131 {strides = array<i32>} : memref<1x16x16x128xf32, #tpu.memory_space<vmem>>, vector<1x16x16x128xf32>,
    return
  }
  func.func @transform_0(%arg0: i32) -> (i32, i32, i32, i32) {
    %c0_i32 = arith.constant 0 : i32
    %c0_i32_0 = arith.constant 0 : i32
    %c0_i32_1 = arith.constant 0 : i32
    %c0_i32_2 = arith.constant 0 : i32
    return %arg0, %c0_i32, %c0_i32_0, %c0_i32_1 : i32, i32, i32, i32
  }
  func.func @transform_1(%arg0: i32) -> (i32, i32) {
    %c0_i32 = arith.constant 0 : i32
    %c0_i32_0 = arith.constant 0 : i32
    %c0_i32_1 = arith.constant 0 : i32
    return %c0_i32, %c0_i32_0 : i32, i32
  }
  func.func @transform_2(%arg0: i32) -> (i32, i32) {
    %c0_i32 = arith.constant 0 : i32
    %c0_i32_0 = arith.constant 0 : i32
    %c0_i32_1 = arith.constant 0 : i32
    return %c0_i32, %c0_i32_0 : i32, i32
  }
  func.func @transform_3(%arg0: i32) -> (i32, i32) {
    %c0_i32 = arith.constant 0 : i32
    %c0_i32_0 = arith.constant 0 : i32
    %c0_i32_1 = arith.constant 0 : i32
    return %c0_i32, %c0_i32_0 : i32, i32
  }
  func.func @transform_4(%arg0: i32) -> (i32, i32, i32) {
    %c0_i32 = arith.constant 0 : i32
    %c0_i32_0 = arith.constant 0 : i32
    %c0_i32_1 = arith.constant 0 : i32
    %c0_i32_2 = arith.constant 0 : i32
    return %c0_i32, %c0_i32_0, %c0_i32_1 : i32, i32, i32
  }
  func.func @transform_5(%arg0: i32) -> (i32, i32) {
    %c0_i32 = arith.constant 0 : i32
    %c0_i32_0 = arith.constant 0 : i32
    %c0_i32_1 = arith.constant 0 : i32
    return %c0_i32, %c0_i32_0 : i32, i32
  }
  func.func @transform_6(%arg0: i32) -> (i32, i32) {
    %c0_i32 = arith.constant 0 : i32
    %c0_i32_0 = arith.constant 0 : i32
    %c0_i32_1 = arith.constant 0 : i32
    return %c0_i32, %c0_i32_0 : i32, i32
  }
  func.func @transform_7(%arg0: i32) -> (i32, i32) {
    %c0_i32 = arith.constant 0 : i32
    %c0_i32_0 = arith.constant 0 : i32
    %c0_i32_1 = arith.constant 0 : i32
    return %c0_i32, %c0_i32_0 : i32, i32
  }
  func.func @transform_8(%arg0: i32) -> (i32, i32, i32) {
    %c0_i32 = arith.constant 0 : i32
    %c0_i32_0 = arith.constant 0 : i32
    %c0_i32_1 = arith.constant 0 : i32
    %c0_i32_2 = arith.constant 0 : i32
    return %c0_i32, %c0_i32_0, %c0_i32_1 : i32, i32, i32
  }
  func.func @transform_9(%arg0: i32) -> (i32, i32) {
    %c0_i32 = arith.constant 0 : i32
    %c0_i32_0 = arith.constant 0 : i32
    %c0_i32_1 = arith.constant 0 : i32
    return %c0_i32, %c0_i32_0 : i32, i32
  }
  func.func @transform_10(%arg0: i32) -> (i32, i32, i32, i32) {
    %c0_i32 = arith.constant 0 : i32
    %c0_i32_0 = arith.constant 0 : i32
    %c0_i32_1 = arith.constant 0 : i32
    %c0_i32_2 = arith.constant 0 : i32
    return %arg0, %c0_i32, %c0_i32_0, %c0_i32_1 : i32, i32, i32, i32
  }
}

</mosaic_0001>

<bundles_post_ra>
// kernel: tpu_custom_call.1
= control target key start
LH: loop header
LB: loop body
LE: loop exit
PB: predicated region body
PF: predicated region fallthrough
CT: control target
= control target key end

     0   :  { %s14480_s0 = inlined_call_operand.hbm [shape: f32[2,16,16,128], index: 0, kind: input, shape index: {}]   ;;  %s14481_s1 = inlined_call_operand.hbm [shape: f32[128,128], index: 1, kind: input, shape index: {}]   ;;  %s14482_s2 = inlined_call_operand.vmem [shape: f32[1,128], index: 2, kind: input, shape index: {}]   ;;  %s14483_s3 = inlined_call_operand.vmem [shape: f32[1,128], index: 3, kind: input, shape index: {}]   ;;  %s14484_s4 = inlined_call_operand.hbm [shape: bf16[3,128,384], index: 4, kind: input, shape index: {}]   ;;  %s14485_s5 = inlined_call_operand.vmem [shape: f32[1,128], index: 5, kind: input, shape index: {}]   ;;  %s14486_s6 = inlined_call_operand.vmem [shape: f32[1,128], index: 6, kind: input, shape index: {}]   ;;  %s14487_s7 = inlined_call_operand.vmem [shape: f32[1,128], index: 7, kind: input, shape index: {}]   ;;  %s14488_s8 = inlined_call_operand.hbm [shape: bf16[3,128,384], index: 8, kind: input, shape index: {}]   ;;  %s14489_s9 = inlined_call_operand.vmem [shape: f32[1,128], index: 9, kind: input, shape index: {}]   ;;  %s14490_s10 = inlined_call_operand.hbm [shape: f32[2,16,16,128], index: 10, kind: output, shape index: {}]  }
   0x1   :  { %14522 = sst [smem:[#allocation56_spill]] %s14481_s1 }
   0x2   :  { %14523 = sst [smem:[#allocation57_spill]] %s14489_s9 }
   0x3   :  { %14524 = sst [smem:[#allocation58_spill]] %s14490_s10 }
   0x4   :  { %15 = vsyncpa [#allocation4], 0 }
   0x5   :  { %17 = vsyncpa [#allocation4 + $0x1], 0 }
   0x6   :  { %18 = vsyncpa [#allocation7], 0 }
   0x7   :  { %19 = vsyncpa [#allocation10], 0 }
   0x8   :  { %20 = vsyncpa [#allocation5], 0 }
   0x9   :  { %22 = vsyncpa [#allocation5 + $0x1], 0  ;;  %s11045_s13 = smov 0   ;;  %s11047_s14 = smov 0  }
   0xa   :  { %s11049_s15 = smov 0   ;;  %s11051_s16 = smov 0  }
   0xb LB: > { %14525 = sst [smem:[#allocation16_spill]] %s10961_s13  ;;  %s11066_s17 = sadd.s32 4294967295, %s10973_s16   ;;  %s10973_s16 = sphi %s11051_s16, %s14658_s16   ;;  %s10969_s15 = sphi %s11049_s15, %s14657_s15   ;;  %s10965_s14 = sphi %s11047_s14, %s14656_s14   ;;  %s10961_s13 = sphi %s11045_s13, %s14655_s13  }
   0xc   : > { %s8227_s18 = sadd.s32 4294967294, %s10973_s16   ;;  %p48_p0 = scmp.ne.s32.totalorder %s10965_s14, %s10961_s13 }
   0xd   : > { %p14491_p1 = scmp.eq.s32.totalorder %s11066_s17, 0  ;;  %p267_p3 = scmp.eq.s32.totalorder %s8227_s18, 1 }
   0xe   : > { %p8228_p5 = scmp.ge.s32.totalorder %s10973_s16, 1  ;;  %p274_p7 = scmp.lt.s32.totalorder %s10973_s16, 3 }
   0xf   : > { %p11075_p4 = por %p14491_p1, %p48_p0  ;;  %p11080_p6 = por %p267_p3, %p48_p0 }
  0x10   : > { %p11085_p8 = pnand %p8228_p5, %p274_p7  ;;  %s10975_s22 = smov [#allocation6]  }
  0x11   : > { %s14526_s19 = scalar_select %p11075_p4, 1, 0 }
  0x12   : > { %s14527_s20 = scalar_select %p11080_p6, 1, 0 }
  0x13   : > { %s14529_s21 = scalar_select %p11085_p8, 1, 0 }
  0x14   : > { %14528 = sst [smem:[#allocation17_spill]] %s14527_s20  ;;  %s286_s23 = sshll.u32 %s10975_s22, 4  ;;  %s11089_s23 = int_to_ptr.vmem [resolvable:$true] %s286_s23 }
  0x15   : > { %p10237_p9 = pneg %p11085_p8  ;;  %s10976_s25 = smov [#allocation8]  }
  0x16   : > { %s305_s26 = sshll.u32 %s10976_s25, 4  ;;  %s14531_s1 = sld [smem:[#allocation56_spill]]  ;;  %s11100_s26 = int_to_ptr.vmem [resolvable:$true] %s305_s26 }
  0x17   : > { %p11096_p11 = pnand %p10237_p9, %p14491_p1 }
  0x19   : > { %p11110_p13 = pneg %p11096_p11 }
  0x1c   : > { %s10785_s29 = scalar_lea.hbm %s14531_s1, 2048 }
  0x1d   : > { %p10786_p12 = scmp.ne.s32.totalorder %s14531_s1, %s10785_s29  ;;  %p10792_p5 = scmp.lt.u32.totalorder %s10785_s29, %s14531_s1 }
  0x1f   : > { %p10788_p0 = pnand %p11110_p13, %p10786_p12 }
  0x21   : > { %p10789_p3 = pneg %p10788_p0 }
  0x23   : > { %p10794_p7 = pnand %p10792_p5, %p10789_p3 }
  0x25   : > { %10797 = shalt.err (!%p10794_p7)
}
  0x26   : > { %s10798_s25 = scalar_lea.vmem %s11089_s23, 2048  ;;  %p10806_p2 = scmp.lt.s32.totalorder %s11089_s23, %s11089_s23 }
  0x27   : > { %p10799_p9 = scmp.ne.s32.totalorder %s11089_s23, %s10798_s25  ;;  %p10807_p6 = scmp.lt.s32.totalorder %s10798_s25, %s10798_s25 }
  0x29   : > { %p10801_p10 = pnand %p10799_p9, %p11110_p13  ;;  %p10808_p12 = por %p10807_p6, %p10806_p2 }
  0x2b   : > { %p10802_p1 = pneg %p10801_p10 }
  0x2d   : > { %p10809_p0 = pnand %p10808_p12, %p10802_p1 }
  0x2f   : > { %10812 = shalt.err (!%p10809_p0)
}
  0x30   : > { %s14495_s27 = smov 128   ;;  %s14496_s28 = smov 8  }
  0x31   : > { %10240 = dma.hbm_to_vmem [thread:$0]  (!%p11096_p11), %s14531_s1, 2048, %s11089_s23, [#allocation7], %s14495_s27, %s14495_s27, %s14496_s28  }
  0x32   : > { %s10813_s22 = scalar_lea.hbm %s14484_s4, 9216 }
  0x33   : > { %p10814_p1 = scmp.ne.s32.totalorder %s14484_s4, %s10813_s22  ;;  %p10820_p10 = scmp.lt.u32.totalorder %s10813_s22, %s14484_s4 }
  0x35   : > { %p10816_p2 = pnand %p10814_p1, %p11110_p13 }
  0x37   : > { %p10817_p6 = pneg %p10816_p2 }
  0x39   : > { %p10822_p3 = pnand %p10820_p10, %p10817_p6 }
  0x3b   : > { %10825 = shalt.err (!%p10822_p3)
}
  0x3c   : > { %s10826_s23 = scalar_lea.vmem %s11100_s26, 9216  ;;  %p10834_p12 = scmp.lt.s32.totalorder %s11100_s26, %s11100_s26 }
  0x3d   : > { %p10827_p5 = scmp.ne.s32.totalorder %s11100_s26, %s10826_s23  ;;  %p10835_p0 = scmp.lt.s32.totalorder %s10826_s23, %s10826_s23 }
  0x3f   : > { %p10829_p7 = pnand %p10827_p5, %p11110_p13  ;;  %p10836_p1 = por %p10835_p0, %p10834_p12 }
  0x41   : > { %p10830_p9 = pneg %p10829_p7 }
  0x43   : > { %p10837_p2 = pnand %p10836_p1, %p10830_p9 }
  0x45   : > { %10840 = shalt.err (!%p10837_p2)
}
  0x46   : > { %s10979_s20 = smov 192   ;;  %s10980_s10 = smov 12  }
  0x47   : > { %10243 = dma.hbm_to_vmem [thread:$0]  (!%p11096_p11), %s14484_s4, 9216, %s11100_s26, [#allocation7], %s10979_s20, %s10979_s20, %s10980_s10  }
  0x48   : > { %s10981_s30 = smov [#allocation9]   ;;  %s11158_s18 = sadd.s32 1, %s10973_s16  }
  0x49   : > { %s327_s11 = sshll.u32 %s10981_s30, 4  ;;  %s10841_s23 = scalar_lea.hbm %s14488_s8, 9216  ;;  %s328_s11 = int_to_ptr.vmem [resolvable:$true] %s327_s11 }
  0x4a   : > { %p10842_p6 = scmp.ne.s32.totalorder %s14488_s8, %s10841_s23  ;;  %p10848_p5 = scmp.lt.u32.totalorder %s10841_s23, %s14488_s8 }
  0x4c   : > { %p10844_p10 = pnand %p10842_p6, %p11110_p13 }
  0x4e   : > { %p10845_p3 = pneg %p10844_p10 }
  0x50   : > { %p10850_p7 = pnand %p10848_p5, %p10845_p3 }
  0x52   : > { %10853 = shalt.err (!%p10850_p7)
}
  0x53   : > { %s10854_s26 = scalar_lea.vmem %s328_s11, 9216  ;;  %p10862_p1 = scmp.lt.s32.totalorder %s328_s11, %s328_s11 }
  0x54   : > { %p10855_p9 = scmp.ne.s32.totalorder %s328_s11, %s10854_s26  ;;  %p10863_p2 = scmp.lt.s32.totalorder %s10854_s26, %s10854_s26 }
  0x56   : > { %p10857_p12 = pnand %p10855_p9, %p11110_p13  ;;  %p10864_p4 = por %p10863_p2, %p10862_p1 }
  0x58   : > { %p10858_p0 = pneg %p10857_p12 }
  0x5a   : > { %p10865_p8 = pnand %p10864_p4, %p10858_p0 }
  0x5c   : > { %10868 = shalt.err (!%p10865_p8)
}
  0x5d   : > { %10246 = dma.hbm_to_vmem [thread:$0]  (!%p11096_p11), %s14488_s8, 9216, %s328_s11, [#allocation10], %s10979_s20, %s10979_s20, %s10980_s10  }
  0x5e   : > { %s32_s1 = ssub.s32 %s10973_s16, %s11158_s18  ;;  %s35_s9 = sadd.s32 1, %s10969_s15 }
  0x5f   : > { %p33_p4 = scmp.eq.s32.totalorder %s32_s1, 0  ;;  %p42_p8 = scmp.ne.s32.totalorder %s10969_s15, %s10965_s14 }
  0x60   : > { %p43_p13 = scmp.eq.s32.totalorder %s10973_s16, 0  ;;  %p10258_p6 = scmp.lt.s32.totalorder %s10973_s16, 2 }
  0x61   : > { %s11186_s24 = scalar_select %p33_p4, %s10969_s15, %s35_s9  }
  0x62   : > { %p44_p10 = por %p43_p13, %p42_p8  ;;  %p14533_p3 = scmp.eq.s32.totalorder %s11066_s17, 1 }
  0x63   : > { %s344_s13 = sand.u32 1, %s10969_s15   ;;  %s8459_s29 = sshll.u32 %s10973_s16, 12 }
  0x64   : > { %p11190_p5 = por %p14533_p3, %p42_p8  ;;  %s8233_s30 = sshll.u32 %s344_s13, 8 }
  0x65   : > { %s11199_s20 = scalar_lea.hbm %s14480_s0, %s8459_s29  ;;  %s348_s10 = scalar_lea.vmem [#allocation3], %s8233_s30 }
  0x66   : > { %s355_s11 = sshll.u32 %s348_s10, 4  ;;  %p11201_p11 = pnand %p10258_p6, %p44_p10  ;;  %s11205_s11 = int_to_ptr.vmem [resolvable:$true] %s355_s11 }
  0x67   : > { %s11207_s26 = scalar_lea.sflag [#allocation4], %s344_s13  ;;  %s10869_s27 = scalar_lea.hbm %s11199_s20, 4096 }
  0x68   : > { %p10870_p7 = scmp.ne.s32.totalorder %s11199_s20, %s10869_s27  ;;  %p10871_p9 = pneg %p11201_p11 }
  0x69   : > { %s10874_s9 = scalar_lea.hbm %s14480_s0, 8192  ;;  %p10875_p1 = scmp.lt.u32.totalorder %s11199_s20, %s14480_s0 }
  0x6a   : > { %p10872_p12 = pnand %p10871_p9, %p10870_p7  ;;  %p10876_p2 = scmp.lt.u32.totalorder %s10874_s9, %s10869_s27 }
  0x6b   : > { %p10878_p8 = scmp.lt.u32.totalorder %s10869_s27, %s11199_s20 }
  0x6c   : > { %p10873_p0 = pneg %p10872_p12  ;;  %p10877_p4 = por %p10876_p2, %p10875_p1 }
  0x6e   : > { %p10879_p13 = por %p10878_p8, %p10877_p4 }
  0x70   : > { %p10880_p6 = pnand %p10879_p13, %p10873_p0 }
  0x72   : > { %10883 = shalt.err (!%p10880_p6)
}
  0x73   : > { %s10884_s13 = scalar_lea.vmem %s11205_s11, 4096  ;;  %s10982_s22 = smov [#allocation3]  }
  0x74   : > { %p10885_p10 = scmp.ne.s32.totalorder %s11205_s11, %s10884_s13  ;;  %s10889_s25 = sshll.u32 %s10982_s22, 4  ;;  %s10890_s25 = int_to_ptr.vmem [resolvable:$false] %s10889_s25 }
  0x75   : > { %s10891_s10 = scalar_lea.vmem %s10890_s25, 8192  ;;  %p10892_p12 = scmp.lt.s32.totalorder %s11205_s11, %s10890_s25 }
  0x76   : > { %p10887_p3 = pnand %p10885_p10, %p10871_p9  ;;  %p10893_p1 = scmp.lt.s32.totalorder %s10891_s10, %s10884_s13 }
  0x78   : > { %p10888_p7 = pneg %p10887_p3  ;;  %p10894_p2 = por %p10893_p1, %p10892_p12 }
  0x7a   : > { %p10895_p4 = pnand %p10894_p2, %p10888_p7 }
  0x7c   : > { %10898 = shalt.err (!%p10895_p4)
}
  0x7d   : > { %s14536_s27 = smov 8   ;;  %s14537_s28 = smov 128  }
  0x7e   : > { %10250 = dma.hbm_to_vmem [thread:$0]  (!%p11201_p11), %s11199_s20, 4096, %s11205_s11, %s11207_s26, %s14537_s28, %s14537_s28, %s14536_s27  }
  0x7f   : > { %p14538_p9 = scmp.ne.s32.totalorder %s14529_s21, 0 }
  0x81   : > { %367 = sbr.rel (%p14538_p9) target bundleno = 3407 (0xd4f), region = 60 }
  0x88   : > { %s11241_s1 = sand.u32 1, %s10965_s14   ;;  %p14539_p0 = scmp.ne.s32.totalorder %s14526_s19, 0 }
  0x89   : > { %s8237_s9 = sshll.u32 %s11241_s1, 8  ;;  %s370_s29 = scalar_lea.sflag [#allocation4], %s11241_s1 }
  0x8a   : > { %s11247_s23 = scalar_lea.vmem [#allocation3], %s8237_s9 }
  0x8b   : > { %10944 = dma.done.wait (%p14539_p0), %s370_s29, 4096  }
  0x8c   : > { %10946 = vsyncadd (%p14539_p0), %s370_s29, 4294963200  ;;  %p14540_p11 = scmp.eq.s32.totalorder %s11066_s17, 0 }
  0x8e   : > { %10948 = dma.done.wait (%p14540_p11), [#allocation7], 11264   ;;  %p14541_p8 = pmov %p14540_p11 }
  0x90   : > { %10950 = vsyncadd (%p14541_p8), [#allocation7], 4294956032  ;;  %p14542_p13 = pmov %p14541_p8 }
  0x91   : > { %p14543_p6 = pmov %p14541_p8 }
  0x92   : > { %10952 = dma.done.wait (%p14542_p13), [#allocation10], 9216  }
  0x93   : > { %10954 = vsyncadd (%p14543_p6), [#allocation10], 4294958080  ;;  %v14501_v0 = vmov 0.0|0.0   ;;  %vm10984_vm0 = vmmov 0   ;;  %v14499_v1 = vmov 0.0   ;;  %v613_v2 = vld [vmem:[#allocation6] sm:$0xff] }
  0x94   : > { %9389 = vmatprep.subr.bf16.mxu0 %v14501_v0  ;;  %8801 = vmatprep.mubr.msk.f32.mxu0 %vm10984_vm0, %v14499_v1  ;;  %v614_v3 = vld [vmem:[#allocation6 + $0x8] sm:$0xff]  ;;  %v615_v4 = vld [vmem:[#allocation6 + $0x10] sm:$0xff]  ;;  %vm428_vm1 = vcmask 1040384   ;;  %vm429_vm2 = vsmask.f32 256  ;;  %v616_v6 = vld [vmem:[#allocation6 + $0x18] sm:$0xff] }
  0x95   : > { %9413 = vmatprep.subr.bf16.mxu1 %v14501_v0  ;;  %8836 = vmatprep.mubr.msk.f32.mxu1 %vm10984_vm0, %v14499_v1  ;;  %v9390_v5 = vpack.c.bf16 %v614_v3, %v613_v2  ;;  %vm485_vm3 = vcmask 1047552   ;;  %vm486_vm4 = vsmask.f32 7938  ;;  %v9393_v7 = vpack.c.bf16 %v616_v6, %v615_v4  ;;  %vm11267_vm5 = vmand %vm428_vm1, %vm429_vm2  ;;  %v617_v9 = vld [vmem:[#allocation6 + $0x20] sm:$0xff]  ;;  %v618_v10 = vld [vmem:[#allocation6 + $0x28] sm:$0xff]  ;;  %s14644_s29 = sld [smem:[#allocation57_spill]] }
  0x96   : > { %v14544_v8 = vmov 0  ;;  %vm11272_vm6 = vmand %vm485_vm3, %vm486_vm4  ;;  %v14547_v11 = vmov 0  ;;  %v473_v12 = vld [vmem:[#allocation2 + $0xe0] sm:$0x1]  ;;  %v476_v13 = vld [vmem:[#allocation2 + $0xf0] sm:$0x1]  ;;  %v9396_v19 = vpack.c.bf16 %v618_v10, %v617_v9 }
  0x97   : > { %9391 = vmatpush3.bf16.msra.mxu0 %v9390_v5  ;;  %v14545_v8 = vsel %vm11267_vm5, 4294967295, %v14544_v8  ;;  %9415 = vmatpush3.bf16.msra.mxu1 %v9390_v5  ;;  %v14548_v11 = vsel %vm11272_vm6, 4294967295, %v14547_v11  ;;  %v474_v14 = vsel %vm11267_vm5, 0, %v473_v12  ;;  %v477_v15 = vsel %vm11267_vm5, 0, %v476_v13  ;;  %v479_v16 = vld [vmem:[#allocation2 + $0x100] sm:$0x1] }
  0x98   : > { %14546 = vst [vmem:[#allocation18_spill] sm:$0xff] %v14545_v8  ;;  %9392 = vmatprep.subr.bf16.mxu0 %v14501_v0  ;;  %14549 = vst [vmem:[#allocation19_spill] sm:$0xff] %v14548_v11  ;;  %9416 = vmatprep.subr.bf16.mxu1 %v14501_v0  ;;  %v533_v17 = vld [vmem:[#allocation2 + $0xf8] sm:$0xff]  ;;  %v536_v18 = vld [vmem:[#allocation2 + $0x108] sm:$0xff]  ;;  %v480_v20 = vsel %vm11267_vm5, 0, %v479_v16  ;;  %vm4114_vm7 = vcmask 1045504  }
  0x99   : > { %475 = vst [vmem:[#allocation2 + $0xe0] sm:$0x1] %v474_v14  ;;  %478 = vst [vmem:[#allocation2 + $0xf0] sm:$0x1] %v477_v15  ;;  %v534_v21 = vsel %vm11272_vm6, 0, %v533_v17  ;;  %v537_v22 = vsel %vm11272_vm6, 0, %v536_v18 }
  0x9a   : > { %v11288_v23 = vld [vmem:[%s11247_s23] sm:$0xff]  ;;  %v11291_v24 = vld [vmem:[%s11247_s23 + $0x8] sm:$0xff]  ;;  %v11294_v25 = vld [vmem:[%s11247_s23 + $0x10] sm:$0xff]  ;;  %481 = vst [vmem:[#allocation2 + $0x100] sm:$0x1] %v480_v20  ;;  %vm3921_vm8 = vcmask 1046528  }
  0x9b   : > { %9394 = vmatpush3.bf16.msra.mxu0 %v9393_v7  ;;  %9418 = vmatpush3.bf16.msra.mxu1 %v9393_v7  ;;  %v619_v26 = vld [vmem:[#allocation6 + $0x30] sm:$0xff]  ;;  %v620_v27 = vld [vmem:[#allocation6 + $0x38] sm:$0xff]  ;;  %535 = vst [vmem:[#allocation2 + $0xf8] sm:$0xff] %v534_v21  ;;  %538 = vst [vmem:[#allocation2 + $0x108] sm:$0xff] %v537_v22  ;;  %v576_v28 = vadd.f32 %v11291_v24, %v11288_v23  ;;  %s14275_s19 = scalar_lea.vmem [#allocation11], %s8237_s9  ;;  %s8460_s9 = sshll.u32 %s11066_s17, 12 }
  0x9c   : > { %9395 = vmatprep.subr.bf16.mxu0 %v14501_v0  ;;  %9419 = vmatprep.subr.bf16.mxu1 %v14501_v0  ;;  %v11301_v29 = vld [vmem:[%s11247_s23 + $0x18] sm:$0xff]  ;;  %v9399_v31 = vpack.c.bf16 %v620_v27, %v619_v26  ;;  %v11305_v32 = vld [vmem:[%s11247_s23 + $0x20] sm:$0xff]  ;;  %v622_v34 = vld [vmem:[#allocation6 + $0x48] sm:$0xff]  ;;  %s8125_s21 = sshll.u32 %s14275_s19, 4  ;;  %s14650_s26 = sld [smem:[#allocation58_spill]]  ;;  %s14434_s21 = int_to_ptr.vmem [resolvable:$true] %s8125_s21 }
  0x9d   : > { %v577_v30 = vadd.f32 %v576_v28, %v11294_v25  ;;  %v621_v33 = vld [vmem:[#allocation6 + $0x40] sm:$0xff]  ;;  %v11311_v36 = vld [vmem:[%s11247_s23 + $0x28] sm:$0xff]  ;;  %v11315_v39 = vld [vmem:[%s11247_s23 + $0x30] sm:$0xff]  ;;  %s8112_s17 = scalar_lea.sflag [#allocation5], %s11241_s1  ;;  %s10987_s13 = smov [#allocation11]  }
  0x9e   : > { %v9402_v38 = vpack.c.bf16 %v622_v34, %v621_v33  ;;  %v623_v40 = vld [vmem:[#allocation6 + $0x50] sm:$0xff]  ;;  %v624_v41 = vld [vmem:[#allocation6 + $0x58] sm:$0xff]  ;;  %v625_v44 = vld [vmem:[#allocation6 + $0x60] sm:$0xff]  ;;  %s10903_s22 = sshll.u32 %s10987_s13, 4  ;;  %s10904_s22 = int_to_ptr.vmem [resolvable:$false] %s10903_s22 }
  0x9f   : > { %9397 = vmatpush3.bf16.msra.mxu0 %v9396_v19  ;;  %9421 = vmatpush3.bf16.msra.mxu1 %v9396_v19  ;;  %v578_v35 = vadd.f32 %v577_v30, %v11301_v29  ;;  %v11321_v43 = vld [vmem:[%s11247_s23 + $0x38] sm:$0xff]  ;;  %v626_v45 = vld [vmem:[#allocation6 + $0x68] sm:$0xff]  ;;  %v9405_v47 = vpack.c.bf16 %v624_v41, %v623_v40  ;;  %v11325_v48 = vld [vmem:[%s11247_s23 + $0x40] sm:$0xff]  ;;  %s10905_s25 = scalar_lea.vmem %s10904_s22, 8192  ;;  %p10906_p12 = scmp.lt.s32.totalorder %s14434_s21, %s10904_s22 }
  0xa0   : > { %9398 = vmatprep.subr.bf16.mxu0 %v14501_v0  ;;  %9422 = vmatprep.subr.bf16.mxu1 %v14501_v0  ;;  %v11328_v49 = vld [vmem:[%s11247_s23 + $0x48] sm:$0xff]  ;;  %v11334_v51 = vld [vmem:[%s11247_s23 + $0x50] sm:$0xff]  ;;  %v628_v53 = vld [vmem:[#allocation6 + $0x78] sm:$0xff]  ;;  %v9408_v55 = vpack.c.bf16 %v626_v45, %v625_v44 }
  0xa1   : > { %v579_v37 = vadd.f32 %v578_v35, %v11305_v32  ;;  %v627_v52 = vld [vmem:[#allocation6 + $0x70] sm:$0xff]  ;;  %v11338_v56 = vld [vmem:[%s11247_s23 + $0x58] sm:$0xff]  ;;  %v11344_v58 = vld [vmem:[%s11247_s23 + $0x60] sm:$0xff] }
  0xa2   : > { %v9411_v60 = vpack.c.bf16 %v628_v53, %v627_v52  ;;  %v11348_v61 = vld [vmem:[%s11247_s23 + $0x68] sm:$0xff]  ;;  %v11354_v63 = vld [vmem:[%s11247_s23 + $0x70] sm:$0xff]  ;;  %v11358_v3 = vld [vmem:[%s11247_s23 + $0x78] sm:$0xff]  ;;  %s14432_s30 = scalar_lea.hbm %s14650_s26, %s8460_s9 }
  0xa3   : > { %9400 = vmatpush3.bf16.msra.mxu0 %v9399_v31  ;;  %9424 = vmatpush3.bf16.msra.mxu1 %v9399_v31  ;;  %v580_v42 = vadd.f32 %v579_v37, %v11311_v36  ;;  %v11362_v5 = vld [vmem:[%s11247_s23 + $0x80] sm:$0xff]  ;;  %v11366_v7 = vld [vmem:[%s11247_s23 + $0x88] sm:$0xff]  ;;  %v11370_v10 = vld [vmem:[%s11247_s23 + $0x90] sm:$0xff] }
  0xa4   : > { %9401 = vmatprep.subr.bf16.mxu0 %v14501_v0  ;;  %9425 = vmatprep.subr.bf16.mxu1 %v14501_v0  ;;  %v11374_v13 = vld [vmem:[%s11247_s23 + $0x98] sm:$0xff]  ;;  %v11378_v15 = vld [vmem:[%s11247_s23 + $0xa0] sm:$0xff]  ;;  %v11382_v17 = vld [vmem:[%s11247_s23 + $0xa8] sm:$0xff] }
  0xa5   : > { %v581_v46 = vadd.f32 %v580_v42, %v11315_v39  ;;  %v11386_v19 = vld [vmem:[%s11247_s23 + $0xb0] sm:$0xff]  ;;  %v11390_v21 = vld [vmem:[%s11247_s23 + $0xb8] sm:$0xff]  ;;  %v11394_v26 = vld [vmem:[%s11247_s23 + $0xc0] sm:$0xff] }
  0xa6   : > { %v11398_v28 = vld [vmem:[%s11247_s23 + $0xc8] sm:$0xff]  ;;  %v11402_v31 = vld [vmem:[%s11247_s23 + $0xd0] sm:$0xff]  ;;  %v11406_v34 = vld [vmem:[%s11247_s23 + $0xd8] sm:$0xff] }
  0xa7   : > { %9403 = vmatpush3.bf16.msra.mxu0 %v9402_v38  ;;  %9427 = vmatpush3.bf16.msra.mxu1 %v9402_v38  ;;  %v582_v50 = vadd.f32 %v581_v46, %v11321_v43  ;;  %v11410_v37 = vld [vmem:[%s11247_s23 + $0xe0] sm:$0xff]  ;;  %v11414_v40 = vld [vmem:[%s11247_s23 + $0xe8] sm:$0xff]  ;;  %v11418_v42 = vld [vmem:[%s11247_s23 + $0xf0] sm:$0xff] }
  0xa8   : > { %9404 = vmatprep.subr.bf16.mxu0 %v14501_v0  ;;  %9428 = vmatprep.subr.bf16.mxu1 %v14501_v0  ;;  %v11422_v45 = vld [vmem:[%s11247_s23 + $0xf8] sm:$0xff] }
  0xa9   : > { %v583_v54 = vadd.f32 %v582_v50, %v11325_v48 }
  0xab   : > { %9406 = vmatpush3.bf16.msra.mxu0 %v9405_v47  ;;  %9430 = vmatpush3.bf16.msra.mxu1 %v9405_v47  ;;  %v584_v57 = vadd.f32 %v583_v54, %v11328_v49 }
  0xac   : > { %9407 = vmatprep.subr.bf16.mxu0 %v14501_v0  ;;  %9431 = vmatprep.subr.bf16.mxu1 %v14501_v0 }
  0xad   : > { %v585_v59 = vadd.f32 %v584_v57, %v11334_v51 }
  0xaf   : > { %9409 = vmatpush3.bf16.msra.mxu0 %v9408_v55  ;;  %9433 = vmatpush3.bf16.msra.mxu1 %v9408_v55  ;;  %v586_v62 = vadd.f32 %v585_v59, %v11338_v56 }
  0xb0   : > { %9410 = vmatprep.subr.bf16.mxu0 %v14501_v0  ;;  %9434 = vmatprep.subr.bf16.mxu1 %v14501_v0 }
  0xb1   : > { %v587_v2 = vadd.f32 %v586_v62, %v11344_v58 }
  0xb3   : > { %9412 = vmatpush3.bf16.msra.mxu0 %v9411_v60  ;;  %9436 = vmatpush3.bf16.msra.mxu1 %v9411_v60  ;;  %v588_v4 = vadd.f32 %v587_v2, %v11348_v61  ;;  %v699_v60 = vlaneseq }
  0xb5   : > { %v589_v6 = vadd.f32 %v588_v4, %v11354_v63  ;;  %v700_v62 = vshrl.u32 %v699_v60, 7 }
  0xb7   : > { %v590_v9 = vadd.f32 %v589_v6, %v11358_v3  ;;  %v11427_v6 = vsub.s32 0, %v700_v62 }
  0xb9   : > { %v591_v12 = vadd.f32 %v590_v9, %v11362_v5 }
  0xbb   : > { %v592_v14 = vadd.f32 %v591_v12, %v11366_v7 }
  0xbd   : > { %v593_v16 = vadd.f32 %v592_v14, %v11370_v10 }
  0xbf   : > { %v594_v18 = vadd.f32 %v593_v16, %v11374_v13 }
  0xc1   : > { %v595_v20 = vadd.f32 %v594_v18, %v11378_v15 }
  0xc3   : > { %v596_v22 = vadd.f32 %v595_v20, %v11382_v17 }
  0xc5   : > { %v597_v27 = vadd.f32 %v596_v22, %v11386_v19 }
  0xc7   : > { %v598_v30 = vadd.f32 %v597_v27, %v11390_v21 }
  0xc9   : > { %v599_v33 = vadd.f32 %v598_v30, %v11394_v26 }
  0xcb   : > { %v600_v35 = vadd.f32 %v599_v33, %v11398_v28 }
  0xcd   : > { %v601_v38 = vadd.f32 %v600_v35, %v11402_v31 }
  0xcf   : > { %v602_v41 = vadd.f32 %v601_v38, %v11406_v34 }
  0xd1   : > { %v603_v44 = vadd.f32 %v602_v41, %v11410_v37 }
  0xd3   : > { %v604_v46 = vadd.f32 %v603_v44, %v11414_v40 }
  0xd5   : > { %v605_v47 = vadd.f32 %v604_v46, %v11418_v42 }
  0xd7   : > { %v606_v50 = vadd.f32 %v605_v47, %v11422_v45 }
  0xd9   : > { %v607_v52 = vrot.slane %v606_v50, 4 }
  0xdb   : > { %v608_v53 = vadd.f32 %v607_v52, %v606_v50 }
  0xdd   : > { %v609_v54 = vrot.slane %v608_v53, 2 }
  0xdf   : > { %v610_v55 = vadd.f32 %v609_v54, %v608_v53 }
  0xe1   : > { %v611_v57 = vrot.slane %v610_v55, 1 }
  0xe3   : > { %v612_v59 = vadd.f32 %v611_v57, %v610_v55 }
  0xe5   : > { %8802 = vmatmul.mubr.f32.vlgmr.msra.gmra.mrb[0].mxu0 %v612_v59 }
 0x1b8   : > { %v695_v2 = vpop.f32.mrb[0].mxu0 }
 0x1b9   : > { %v8803_v4 = vpop.f32.mrb[1].mxu0  ;;  %v11430_v9 = vrot.slane %v695_v2, %v11427_v6 }
 0x1bb   : > { %v11434_v12 = vsub.f32 %v11288_v23, %v11430_v9  ;;  %v11438_v14 = vsub.f32 %v11291_v24, %v11430_v9  ;;  %v11442_v16 = vsub.f32 %v11294_v25, %v11430_v9  ;;  %v11450_v22 = vsub.f32 %v11301_v29, %v11430_v9 }
 0x1bc   : > { %v11454_v23 = vsub.f32 %v11305_v32, %v11430_v9  ;;  %v11460_v25 = vsub.f32 %v11311_v36, %v11430_v9  ;;  %v11466_v29 = vsub.f32 %v11315_v39, %v11430_v9  ;;  %v11472_v38 = vsub.f32 %v11321_v43, %v11430_v9 }
 0x1bd   : > { %v735_v18 = vmul.f32 %v11434_v12, %v11434_v12  ;;  %v736_v20 = vmul.f32 %v11438_v14, %v11438_v14  ;;  %v737_v24 = vmul.f32 %v11442_v16, %v11442_v16  ;;  %v738_v30 = vmul.f32 %v11450_v22, %v11450_v22 }
 0x1be   : > { %v739_v32 = vmul.f32 %v11454_v23, %v11454_v23  ;;  %v740_v36 = vmul.f32 %v11460_v25, %v11460_v25  ;;  %v11478_v44 = vsub.f32 %v11325_v48, %v11430_v9  ;;  %v741_v39 = vmul.f32 %v11466_v29, %v11466_v29 }
 0x1bf   : > { %v767_v27 = vadd.f32 %v736_v20, %v735_v18  ;;  %v11484_v47 = vsub.f32 %v11328_v49, %v11430_v9  ;;  %v742_v43 = vmul.f32 %v11472_v38, %v11472_v38  ;;  %v11490_v52 = vsub.f32 %v11334_v51, %v11430_v9 }
 0x1c0   : > { %v743_v48 = vmul.f32 %v11478_v44, %v11478_v44  ;;  %v11496_v54 = vsub.f32 %v11338_v56, %v11430_v9  ;;  %v11502_v57 = vsub.f32 %v11344_v58, %v11430_v9  ;;  %v11508_v60 = vsub.f32 %v11348_v61, %v11430_v9 }
 0x1c1   : > { %v768_v33 = vadd.f32 %v767_v27, %v737_v24  ;;  %v744_v49 = vmul.f32 %v11484_v47, %v11484_v47  ;;  %v745_v51 = vmul.f32 %v11490_v52, %v11490_v52  ;;  %v11514_v2 = vsub.f32 %v11354_v63, %v11430_v9 }
 0x1c2   : > { %v746_v56 = vmul.f32 %v11496_v54, %v11496_v54  ;;  %v747_v58 = vmul.f32 %v11502_v57, %v11502_v57  ;;  %v11520_v18 = vsub.f32 %v11358_v3, %v11430_v9  ;;  %v748_v61 = vmul.f32 %v11508_v60, %v11508_v60 }
 0x1c3   : > { %v769_v35 = vadd.f32 %v768_v33, %v738_v30  ;;  %v11526_v24 = vsub.f32 %v11362_v5, %v11430_v9  ;;  %v749_v63 = vmul.f32 %v11514_v2, %v11514_v2  ;;  %v11532_v30 = vsub.f32 %v11366_v7, %v11430_v9 }
 0x1c4   : > { %v750_v3 = vmul.f32 %v11520_v18, %v11520_v18 }
 0x1c5   : > { %v770_v41 = vadd.f32 %v769_v35, %v739_v32  ;;  %v11538_v32 = vsub.f32 %v11370_v10, %v11430_v9  ;;  %v751_v5 = vmul.f32 %v11526_v24, %v11526_v24  ;;  %v752_v7 = vmul.f32 %v11532_v30, %v11532_v30 }
 0x1c7   : > { %v771_v46 = vadd.f32 %v770_v41, %v740_v36  ;;  %v11544_v36 = vsub.f32 %v11374_v13, %v11430_v9  ;;  %v753_v10 = vmul.f32 %v11538_v32, %v11538_v32 }
 0x1c9   : > { %v772_v50 = vadd.f32 %v771_v46, %v741_v39  ;;  %v11550_v39 = vsub.f32 %v11378_v15, %v11430_v9  ;;  %v754_v13 = vmul.f32 %v11544_v36, %v11544_v36 }
 0x1cb   : > { %v773_v53 = vadd.f32 %v772_v50, %v742_v43  ;;  %v11556_v43 = vsub.f32 %v11382_v17, %v11430_v9  ;;  %v755_v15 = vmul.f32 %v11550_v39, %v11550_v39 }
 0x1cd   : > { %v774_v55 = vadd.f32 %v773_v53, %v743_v48  ;;  %v11562_v48 = vsub.f32 %v11386_v19, %v11430_v9  ;;  %v756_v17 = vmul.f32 %v11556_v43, %v11556_v43 }
 0x1cf   : > { %v775_v59 = vadd.f32 %v774_v55, %v744_v49  ;;  %v11568_v49 = vsub.f32 %v11390_v21, %v11430_v9  ;;  %v757_v19 = vmul.f32 %v11562_v48, %v11562_v48 }
 0x1d1   : > { %v776_v62 = vadd.f32 %v775_v59, %v745_v51  ;;  %v11574_v51 = vsub.f32 %v11394_v26, %v11430_v9  ;;  %v758_v21 = vmul.f32 %v11568_v49, %v11568_v49 }
 0x1d3   : > { %v777_v4 = vadd.f32 %v776_v62, %v746_v56  ;;  %v11580_v56 = vsub.f32 %v11398_v28, %v11430_v9  ;;  %v759_v26 = vmul.f32 %v11574_v51, %v11574_v51 }
 0x1d5   : > { %v778_v20 = vadd.f32 %v777_v4, %v747_v58  ;;  %v11586_v58 = vsub.f32 %v11402_v31, %v11430_v9  ;;  %v760_v28 = vmul.f32 %v11580_v56, %v11580_v56 }
 0x1d7   : > { %v779_v27 = vadd.f32 %v778_v20, %v748_v61  ;;  %v11592_v61 = vsub.f32 %v11406_v34, %v11430_v9  ;;  %v761_v31 = vmul.f32 %v11586_v58, %v11586_v58 }
 0x1d9   : > { %v780_v33 = vadd.f32 %v779_v27, %v749_v63  ;;  %v11598_v63 = vsub.f32 %v11410_v37, %v11430_v9  ;;  %v762_v34 = vmul.f32 %v11592_v61, %v11592_v61 }
 0x1db   : > { %v781_v35 = vadd.f32 %v780_v33, %v750_v3  ;;  %v11604_v3 = vsub.f32 %v11414_v40, %v11430_v9  ;;  %v763_v37 = vmul.f32 %v11598_v63, %v11598_v63 }
 0x1dd   : > { %v782_v41 = vadd.f32 %v781_v35, %v751_v5  ;;  %v11610_v5 = vsub.f32 %v11418_v42, %v11430_v9  ;;  %v764_v40 = vmul.f32 %v11604_v3, %v11604_v3 }
 0x1df   : > { %v783_v46 = vadd.f32 %v782_v41, %v752_v7  ;;  %v11616_v7 = vsub.f32 %v11422_v45, %v11430_v9  ;;  %v10310_v9 = vld [vmem:[#allocation8 + $0xc4] ss:$12 sps:$4 sm:$0xff]  }
 0x1e0   : > { %1689 = vmatprep.subr.bf16.mxu0 %v10310_v9  ;;  %v10342_v9 = vld [vmem:[#allocation8 + $0x4] ss:$12 sps:$4 sm:$0xff]  }
 0x1e1   : > { %v784_v50 = vadd.f32 %v783_v46, %v753_v10  ;;  %v765_v10 = vmul.f32 %v11610_v5, %v11610_v5  ;;  %v766_v42 = vmul.f32 %v11616_v7, %v11616_v7 }
 0x1e3   : > { %v785_v53 = vadd.f32 %v784_v50, %v754_v13 }
 0x1e5   : > { %v786_v55 = vadd.f32 %v785_v53, %v755_v15 }
 0x1e7   : > { %v787_v59 = vadd.f32 %v786_v55, %v756_v17 }
 0x1e9   : > { %v788_v62 = vadd.f32 %v787_v59, %v757_v19  ;;  %v10308_v59 = vld [vmem:[#allocation8 + $0xc0] ss:$12 sps:$4 sm:$0xff]  }
 0x1ea   : > { %1690 = vmatpush1.bf16.msra.mxu0 %v10308_v59  ;;  %v491_v59 = vld [vmem:[#allocation2 + $0x18] sm:$0xff] }
 0x1eb   : > { %v789_v4 = vadd.f32 %v788_v62, %v758_v21  ;;  %v10314_v21 = vld [vmem:[#allocation8 + $0xdc] ss:$12 sps:$4 sm:$0xff]   ;;  %v10312_v62 = vld [vmem:[#allocation8 + $0xd8] ss:$12 sps:$4 sm:$0xff]  }
 0x1ec   : > { %1691 = vmatprep.subr.bf16.mxu0 %v10314_v21  ;;  %v492_v21 = vsel %vm11272_vm6, 0, %v491_v59 }
 0x1ed   : > { %v790_v20 = vadd.f32 %v789_v4, %v759_v26  ;;  %v10311_v26 = vld [vmem:[#allocation8 + $0xc8] ss:$12 sps:$4 sm:$0xff]   ;;  %493 = vst [vmem:[#allocation2 + $0x18] sm:$0xff] %v492_v21 }
 0x1ee   : > { %1692 = vmatpush1.bf16.msra.mxu0 %v10312_v62  ;;  %8839 = vmatprep.subr.bf16.mxu1 %v10311_v26  ;;  %v10318_v4 = vld [vmem:[#allocation8 + $0xf4] ss:$12 sps:$4 sm:$0xff]  }
 0x1ef   : > { %v791_v27 = vadd.f32 %v790_v20, %v760_v28  ;;  %v10316_v28 = vld [vmem:[#allocation8 + $0xf0] ss:$12 sps:$4 sm:$0xff]   ;;  %v10315_v20 = vld [vmem:[#allocation8 + $0xe0] ss:$12 sps:$4 sm:$0xff]   ;;  %1693 = vmatprep.subr.bf16.mxu0 %v10318_v4 }
 0x1f0   : > { %v437_v62 = vld [vmem:[#allocation2 + $0x20] sm:$0x1]  ;;  %v494_v4 = vld [vmem:[#allocation2 + $0x28] sm:$0xff] }
 0x1f1   : > { %v792_v33 = vadd.f32 %v791_v27, %v761_v31  ;;  %v10322_v31 = vld [vmem:[#allocation8 + $0x10c] ss:$12 sps:$4 sm:$0xff]   ;;  %v10320_v27 = vld [vmem:[#allocation8 + $0x108] ss:$12 sps:$4 sm:$0xff]  }
 0x1f2   : > { %1694 = vmatpush1.bf16.msra.mxu0 %v10316_v28  ;;  %v495_v28 = vsel %vm11272_vm6, 0, %v494_v4 }
 0x1f3   : > { %v793_v35 = vadd.f32 %v792_v33, %v762_v34  ;;  %v10319_v34 = vld [vmem:[#allocation8 + $0xf8] ss:$12 sps:$4 sm:$0xff]   ;;  %1695 = vmatprep.subr.bf16.mxu0 %v10322_v31  ;;  %496 = vst [vmem:[#allocation2 + $0x28] sm:$0xff] %v495_v28  ;;  %v455_v28 = vld [vmem:[#allocation2 + $0x80] sm:$0x1] }
 0x1f4   : > { %v10326_v33 = vld [vmem:[#allocation8 + $0x124] ss:$12 sps:$4 sm:$0xff]  }
 0x1f5   : > { %v794_v41 = vadd.f32 %v793_v35, %v763_v37  ;;  %v10324_v37 = vld [vmem:[#allocation8 + $0x120] ss:$12 sps:$4 sm:$0xff]   ;;  %v10323_v35 = vld [vmem:[#allocation8 + $0x110] ss:$12 sps:$4 sm:$0xff]  }
 0x1f6   : > { %1696 = vmatpush1.bf16.msra.mxu0 %v10320_v27  ;;  %v497_v27 = vld [vmem:[#allocation2 + $0x38] sm:$0xff] }
 0x1f7   : > { %v795_v46 = vadd.f32 %v794_v41, %v764_v40  ;;  %1697 = vmatprep.subr.bf16.mxu0 %v10326_v33  ;;  %v10330_v40 = vld [vmem:[#allocation8 + $0x13c] ss:$12 sps:$4 sm:$0xff]   ;;  %v10328_v41 = vld [vmem:[#allocation8 + $0x138] ss:$12 sps:$4 sm:$0xff]   ;;  %v443_v33 = vld [vmem:[#allocation2 + $0x40] sm:$0x1] }
 0x1f9   : > { %v796_v13 = vadd.f32 %v795_v46, %v765_v10  ;;  %v10327_v10 = vld [vmem:[#allocation8 + $0x128] ss:$12 sps:$4 sm:$0xff]   ;;  %v434_v46 = vld [vmem:[#allocation2 + $0x10] sm:$0x1] }
 0x1fa   : > { %1698 = vmatpush1.bf16.msra.mxu0 %v10324_v37  ;;  %v444_v37 = vsel %vm11267_vm5, 0, %v443_v33  ;;  %v461_v33 = vld [vmem:[#allocation2 + $0xa0] sm:$0x1] }
 0x1fb   : > { %v797_v50 = vadd.f32 %v796_v13, %v766_v42  ;;  %1699 = vmatprep.subr.bf16.mxu0 %v10330_v40  ;;  %v10334_v42 = vld [vmem:[#allocation8 + $0x154] ss:$12 sps:$4 sm:$0xff]   ;;  %v435_v13 = vsel %vm11267_vm5, 0, %v434_v46  ;;  %445 = vst [vmem:[#allocation2 + $0x40] sm:$0x1] %v444_v37  ;;  %v503_v46 = vld [vmem:[#allocation2 + $0x58] sm:$0xff] }
 0x1fc   : > { %436 = vst [vmem:[#allocation2 + $0x10] sm:$0x1] %v435_v13  ;;  %v449_v13 = vld [vmem:[#allocation2 + $0x60] sm:$0x1]  ;;  %v462_v37 = vsel %vm11267_vm5, 0, %v461_v33 }
 0x1fd   : > { %v798_v15 = vrot.slane %v797_v50, 4  ;;  %463 = vst [vmem:[#allocation2 + $0xa0] sm:$0x1] %v462_v37 }
 0x1fe   : > { %1700 = vmatpush1.bf16.msra.mxu0 %v10328_v41  ;;  %v446_v41 = vld [vmem:[#allocation2 + $0x50] sm:$0x1] }
 0x1ff   : > { %v799_v53 = vadd.f32 %v798_v15, %v797_v50  ;;  %v10332_v50 = vld [vmem:[#allocation8 + $0x150] ss:$12 sps:$4 sm:$0xff]   ;;  %v10331_v15 = vld [vmem:[#allocation8 + $0x140] ss:$12 sps:$4 sm:$0xff]   ;;  %1701 = vmatprep.subr.bf16.mxu0 %v10334_v42  ;;  %v504_v42 = vsel %vm11272_vm6, 0, %v503_v46 }
 0x200   : > { %505 = vst [vmem:[#allocation2 + $0x58] sm:$0xff] %v504_v42 }
 0x201   : > { %v800_v17 = vrot.slane %v799_v53, 2 }
 0x202   : > { %1702 = vmatpush1.bf16.msra.mxu0 %v10332_v50  ;;  %v506_v50 = vld [vmem:[#allocation2 + $0x68] sm:$0xff] }
 0x203   : > { %v801_v55 = vadd.f32 %v800_v17, %v799_v53  ;;  %v10338_v53 = vld [vmem:[#allocation8 + $0x16c] ss:$12 sps:$4 sm:$0xff]   ;;  %v10336_v17 = vld [vmem:[#allocation8 + $0x168] ss:$12 sps:$4 sm:$0xff]  }
 0x204   : > { %1703 = vmatprep.subr.bf16.mxu0 %v10338_v53  ;;  %v507_v53 = vsel %vm11272_vm6, 0, %v506_v50  ;;  %v527_v50 = vld [vmem:[#allocation2 + $0xd8] sm:$0xff] }
 0x205   : > { %v802_v19 = vrot.slane %v801_v55, 1  ;;  %508 = vst [vmem:[#allocation2 + $0x68] sm:$0xff] %v507_v53  ;;  %v470_v53 = vld [vmem:[#allocation2 + $0xd0] sm:$0x1] }
 0x206   : > { %1704 = vmatpush1.bf16.msra.mxu0 %v10336_v17  ;;  %v509_v17 = vld [vmem:[#allocation2 + $0x78] sm:$0xff] }
 0x207   : > { %v803_v45 = vadd.f32 %v802_v19, %v801_v55  ;;  %v10335_v55 = vld [vmem:[#allocation8 + $0x158] ss:$12 sps:$4 sm:$0xff]   ;;  %v14503_v19 = vmov 0   ;;  %2395 = vmatprep.subr.bf16.mxu0 %v10342_v9  ;;  %v452_v9 = vld [vmem:[#allocation2 + $0x70] sm:$0x1]  ;;  %v510_v59 = vsel %vm11272_vm6, 0, %v509_v17 }
 0x208   : > { %1721 = vmatprep.mubr.bf16.mxu0 %v14503_v19  ;;  %423 = vst [vmem:[#allocation2] sm:$0xff] %v14503_v19  ;;  %426 = vst [vmem:[#allocation2 + $0x110] sm:$0xff] %v14503_v19  ;;  %v453_v4 = vsel %vm11267_vm5, 0, %v452_v9  ;;  %v528_v17 = vsel %vm11272_vm6, 0, %v527_v50 }
 0x209   : > { %8837 = vmatmul.mubr.f32.vlgmr.msra.gmra.mrb[0].mxu1 %v803_v45  ;;  %v10339_v45 = vld [vmem:[#allocation8 + $0x170] ss:$12 sps:$4 sm:$0xff]   ;;  %511 = vst [vmem:[#allocation2 + $0x78] sm:$0xff] %v510_v59  ;;  %454 = vst [vmem:[#allocation2 + $0x70] sm:$0x1] %v453_v4 }
 0x20a   : > { %8840 = vmatpush3.bf16.msra.mxu1 %v10311_v26  ;;  %v438_v26 = vsel %vm11267_vm5, 0, %v437_v62  ;;  %529 = vst [vmem:[#allocation2 + $0xd8] sm:$0xff] %v528_v17 }
 0x20b   : > { %8841 = vmatprep.subr.bf16.mxu1 %v10315_v20  ;;  %439 = vst [vmem:[#allocation2 + $0x20] sm:$0x1] %v438_v26  ;;  %v518_v26 = vld [vmem:[#allocation2 + $0xa8] sm:$0xff] }
 0x20e   : > { %8842 = vmatpush3.bf16.msra.mxu1 %v10315_v20  ;;  %v440_v20 = vld [vmem:[#allocation2 + $0x30] sm:$0x1] }
 0x20f   : > { %8843 = vmatprep.subr.bf16.mxu1 %v10319_v34  ;;  %v441_v31 = vsel %vm11267_vm5, 0, %v440_v20  ;;  %v458_v20 = vld [vmem:[#allocation2 + $0x90] sm:$0x1] }
 0x210   : > { %442 = vst [vmem:[#allocation2 + $0x30] sm:$0x1] %v441_v31  ;;  %v519_v31 = vsel %vm11272_vm6, 0, %v518_v26  ;;  %v574_v26 = vld [vmem:[%s14482_s2] sm:$0x1] }
 0x211   : > { %520 = vst [vmem:[#allocation2 + $0xa8] sm:$0xff] %v519_v31 }
 0x212   : > { %8844 = vmatpush3.bf16.msra.mxu1 %v10319_v34  ;;  %v498_v34 = vsel %vm11272_vm6, 0, %v497_v27  ;;  %v456_v27 = vsel %vm11267_vm5, 0, %v455_v28 }
 0x213   : > { %8845 = vmatprep.subr.bf16.mxu1 %v10323_v35  ;;  %499 = vst [vmem:[#allocation2 + $0x38] sm:$0xff] %v498_v34  ;;  %v459_v34 = vsel %vm11267_vm5, 0, %v458_v20  ;;  %457 = vst [vmem:[#allocation2 + $0x80] sm:$0x1] %v456_v27 }
 0x214   : > { %460 = vst [vmem:[#allocation2 + $0x90] sm:$0x1] %v459_v34  ;;  %v11694_v34 = vld [vmem:[%s14483_s3] ss:$0 sm:$0xff] }
 0x216   : > { %8846 = vmatpush3.bf16.msra.mxu1 %v10323_v35  ;;  %v500_v35 = vld [vmem:[#allocation2 + $0x48] sm:$0xff] }
 0x217   : > { %8847 = vmatprep.subr.bf16.mxu1 %v10327_v10  ;;  %v501_v40 = vsel %vm11272_vm6, 0, %v500_v35  ;;  %v464_v35 = vld [vmem:[#allocation2 + $0xb0] sm:$0x1] }
 0x218   : > { %502 = vst [vmem:[#allocation2 + $0x48] sm:$0xff] %v501_v40  ;;  %v521_v40 = vld [vmem:[#allocation2 + $0xb8] sm:$0xff] }
 0x219   : > { %v522_v46 = vsel %vm11272_vm6, 0, %v521_v40 }
 0x21a   : > { %8848 = vmatpush3.bf16.msra.mxu1 %v10327_v10  ;;  %v447_v10 = vsel %vm11267_vm5, 0, %v446_v41  ;;  %v467_v41 = vld [vmem:[#allocation2 + $0xc0] sm:$0x1]  ;;  %523 = vst [vmem:[#allocation2 + $0xb8] sm:$0xff] %v522_v46 }
 0x21b   : > { %8849 = vmatprep.subr.bf16.mxu1 %v10331_v15  ;;  %448 = vst [vmem:[#allocation2 + $0x50] sm:$0x1] %v447_v10  ;;  %v465_v10 = vsel %vm11267_vm5, 0, %v464_v35  ;;  %v468_v42 = vsel %vm11267_vm5, 0, %v467_v41 }
 0x21c   : > { %466 = vst [vmem:[#allocation2 + $0xb0] sm:$0x1] %v465_v10  ;;  %469 = vst [vmem:[#allocation2 + $0xc0] sm:$0x1] %v468_v42 }
 0x21e   : > { %8850 = vmatpush3.bf16.msra.mxu1 %v10331_v15  ;;  %v450_v15 = vsel %vm11267_vm5, 0, %v449_v13  ;;  %v524_v13 = vld [vmem:[#allocation2 + $0xc8] sm:$0xff] }
 0x21f   : > { %8851 = vmatprep.subr.bf16.mxu1 %v10335_v55  ;;  %451 = vst [vmem:[#allocation2 + $0x60] sm:$0x1] %v450_v15  ;;  %v525_v15 = vsel %vm11272_vm6, 0, %v524_v13 }
 0x220   : > { %526 = vst [vmem:[#allocation2 + $0xc8] sm:$0xff] %v525_v15 }
 0x222   : > { %8852 = vmatpush3.bf16.msra.mxu1 %v10335_v55  ;;  %v512_v55 = vld [vmem:[#allocation2 + $0x88] sm:$0xff] }
 0x223   : > { %8853 = vmatprep.subr.bf16.mxu1 %v10339_v45  ;;  %v513_v21 = vsel %vm11272_vm6, 0, %v512_v55  ;;  %v471_v55 = vsel %vm11267_vm5, 0, %v470_v53 }
 0x224   : > { %514 = vst [vmem:[#allocation2 + $0x88] sm:$0xff] %v513_v21  ;;  %472 = vst [vmem:[#allocation2 + $0xd0] sm:$0x1] %v471_v55 }
 0x226   : > { %8854 = vmatpush3.bf16.msra.mxu1 %v10339_v45  ;;  %v515_v45 = vld [vmem:[#allocation2 + $0x98] sm:$0xff] }
 0x227   : > { %v516_v62 = vsel %vm11272_vm6, 0, %v515_v45  ;;  %v530_v45 = vld [vmem:[#allocation2 + $0xe8] sm:$0xff] }
 0x228   : > { %517 = vst [vmem:[#allocation2 + $0x98] sm:$0xff] %v516_v62  ;;  %v531_v9 = vsel %vm11272_vm6, 0, %v530_v45 }
 0x229   : > { %532 = vst [vmem:[#allocation2 + $0xe8] sm:$0xff] %v531_v9 }
 0x2dc   : > { %v870_v59 = vpop.f32.mrb[0].mxu1 }
 0x2dd   : > { %v871_v21 = vadd.f32 1e-06, %v870_v59  ;;  %v8838_v62 = vpop.f32.mrb[1].mxu1 }
 0x2df   : > { %10500 = vrsqrt.f32 %v871_v21 }
 0x2e9   : > { %v10501_v4 = vpop.eup %10500 }
 0x2ea   : > { %v875_v28 = vmul.f32 %v10501_v4, %v574_v26 }
 0x2ec   : > { %v11685_v20 = vrot.slane %v875_v28, %v11427_v6 }
 0x2ee   : > { %v893_v31 = vmul.f32 %v11685_v20, %v11508_v60  ;;  %v894_v27 = vmul.f32 %v11685_v20, %v11514_v2  ;;  %v895_v33 = vmul.f32 %v11685_v20, %v11520_v18  ;;  %v896_v37 = vmul.f32 %v11685_v20, %v11526_v24 }
 0x2ef   : > { %v897_v35 = vmul.f32 %v11685_v20, %v11532_v30  ;;  %v898_v60 = vmul.f32 %v11685_v20, %v11538_v32  ;;  %v899_v41 = vmul.f32 %v11685_v20, %v11544_v36  ;;  %v900_v24 = vmul.f32 %v11685_v20, %v11550_v39 }
 0x2f0   : > { %v11705_v40 = vadd.f32 %v11694_v34, %v893_v31  ;;  %v11708_v2 = vadd.f32 %v11694_v34, %v894_v27  ;;  %v11713_v18 = vadd.f32 %v11694_v34, %v895_v33  ;;  %v11718_v30 = vadd.f32 %v11694_v34, %v896_v37 }
 0x2f1   : > { %v901_v32 = vmul.f32 %v11685_v20, %v11556_v43  ;;  %v11723_v10 = vadd.f32 %v11694_v34, %v897_v35  ;;  %v902_v46 = vmul.f32 %v11685_v20, %v11562_v48  ;;  %v11728_v36 = vadd.f32 %v11694_v34, %v898_v60 }
 0x2f2   : > { %v8256_v42 = vmul.f32 -1.442695, %v11705_v40  ;;  %v8257_v13 = vmul.f32 -1.442695, %v11708_v2  ;;  %v903_v39 = vmul.f32 %v11685_v20, %v11568_v49  ;;  %v11735_v50 = vadd.f32 %v11694_v34, %v899_v41 }
 0x2f3   : > { %v8258_v43 = vmul.f32 -1.442695, %v11713_v18  ;;  %v904_v15 = vmul.f32 %v11685_v20, %v11574_v51  ;;  %v11741_v48 = vadd.f32 %v11694_v34, %v900_v24  ;;  %v8259_v53 = vmul.f32 -1.442695, %v11718_v30 }
 0x2f4   : > { %v905_v17 = vmul.f32 %v11685_v20, %v11580_v56  ;;  %v11747_v55 = vadd.f32 %v11694_v34, %v901_v32  ;;  %10502 = vpow2.f32 %v8256_v42  ;;  %v8260_v49 = vmul.f32 -1.442695, %v11723_v10 }
 0x2f5   : > { %v906_v45 = vmul.f32 %v11685_v20, %v11586_v58  ;;  %v11753_v9 = vadd.f32 %v11694_v34, %v902_v46  ;;  %10504 = vpow2.f32 %v8257_v13  ;;  %v8261_v51 = vmul.f32 -1.442695, %v11728_v36 }
 0x2f6   : > { %v907_v59 = vmul.f32 %v11685_v20, %v11592_v61  ;;  %v11759_v56 = vadd.f32 %v11694_v34, %v903_v39  ;;  %10506 = vpow2.f32 %v8258_v43  ;;  %v8262_v21 = vmul.f32 -1.442695, %v11735_v50 }
 0x2f7   : > { %v908_v62 = vmul.f32 %v11685_v20, %v11598_v63  ;;  %v11765_v58 = vadd.f32 %v11694_v34, %v904_v15  ;;  %10508 = vpow2.f32 %v8259_v53  ;;  %v8263_v26 = vmul.f32 -1.442695, %v11741_v48 }
 0x2f8   : > { %v909_v4 = vmul.f32 %v11685_v20, %v11604_v3  ;;  %v11771_v61 = vadd.f32 %v11694_v34, %v905_v17  ;;  %10510 = vpow2.f32 %v8260_v49  ;;  %v8264_v28 = vmul.f32 -1.442695, %v11747_v55 }
 0x2f9   : > { %v910_v31 = vmul.f32 %v11685_v20, %v11610_v5  ;;  %v11777_v63 = vadd.f32 %v11694_v34, %v906_v45  ;;  %10512 = vpow2.f32 %v8261_v51  ;;  %v8265_v27 = vmul.f32 -1.442695, %v11753_v9 }
 0x2fa   : > { %v911_v33 = vmul.f32 %v11685_v20, %v11616_v7  ;;  %v11783_v3 = vadd.f32 %v11694_v34, %v907_v59  ;;  %10514 = vpow2.f32 %v8262_v21  ;;  %v8266_v37 = vmul.f32 -1.442695, %v11759_v56 }
 0x2fb   : > { %v11787_v35 = vadd.f32 %v11694_v34, %v908_v62  ;;  %10516 = vpow2.f32 %v8263_v26  ;;  %v8267_v5 = vmul.f32 -1.442695, %v11765_v58  ;;  %v11791_v60 = vadd.f32 %v11694_v34, %v909_v4 }
 0x2fc   : > { %10518 = vpow2.f32 %v8264_v28  ;;  %v8268_v41 = vmul.f32 -1.442695, %v11771_v61  ;;  %v11795_v7 = vadd.f32 %v11694_v34, %v910_v31  ;;  %v8269_v24 = vmul.f32 -1.442695, %v11777_v63 }
 0x2fd   : > { %10520 = vpow2.f32 %v8265_v27  ;;  %v11801_v46 = vadd.f32 %v11694_v34, %v911_v33  ;;  %v8270_v42 = vmul.f32 -1.442695, %v11783_v3  ;;  %v8271_v39 = vmul.f32 -1.442695, %v11787_v35 }
 0x2fe   : > { %v11798_v32 = vpop.eup %10502  ;;  %10522 = vpow2.f32 %v8266_v37  ;;  %v8272_v15 = vmul.f32 -1.442695, %v11791_v60  ;;  %v8273_v17 = vmul.f32 -1.442695, %v11795_v7  ;;  %v880_v49 = vmul.f32 %v11685_v20, %v11434_v12 }
 0x2ff   : > { %v10505_v13 = vpop.eup %10504  ;;  %10524 = vpow2.f32 %v8267_v5  ;;  %v881_v45 = vmul.f32 %v11685_v20, %v11438_v14  ;;  %v8274_v59 = vmul.f32 -1.442695, %v11801_v46  ;;  %v11814_v4 = vmul.f32 %v11685_v20, %v11496_v54 }
 0x300   : > { %v10507_v43 = vpop.eup %10506  ;;  %10526 = vpow2.f32 %v8268_v41  ;;  %v1060_v62 = vadd.f32 1.0, %v10505_v13  ;;  %v11817_v27 = vadd.f32 %v11694_v34, %v880_v49  ;;  %v882_v5 = vmul.f32 %v11685_v20, %v11442_v16 }
 0x301   : > { %v10509_v53 = vpop.eup %10508  ;;  %10528 = vpow2.f32 %v8269_v24  ;;  %v1061_v28 = vadd.f32 1.0, %v10507_v43  ;;  %v11820_v14 = vadd.f32 %v11694_v34, %v881_v45  ;;  %v883_v54 = vmul.f32 %v11685_v20, %v11450_v22 }
 0x302   : > { %v10511_v51 = vpop.eup %10510  ;;  %10530 = vpow2.f32 %v8270_v42  ;;  %v1062_v12 = vadd.f32 1.0, %v10509_v53  ;;  %v11828_v24 = vmul.f32 %v11685_v20, %v11502_v57  ;;  %v884_v13 = vmul.f32 %v11685_v20, %v11454_v23 }
 0x303   : > { %v10513_v21 = vpop.eup %10512  ;;  %10532 = vpow2.f32 %v8271_v39  ;;  %v1063_v37 = vadd.f32 1.0, %v10511_v51  ;;  %v886_v16 = vmul.f32 %v11685_v20, %v11466_v29  ;;  %v11837_v57 = vmul.f32 -1.442695, %v11817_v27 }
 0x304   : > { %v10515_v26 = vpop.eup %10514  ;;  %10534 = vpow2.f32 %v8272_v15  ;;  %v1064_v42 = vadd.f32 1.0, %v10513_v21  ;;  %v885_v15 = vmul.f32 %v11685_v20, %v11460_v25  ;;  %v11843_v45 = vadd.f32 %v11694_v34, %v882_v5 }
 0x305   : > { %v10517_v31 = vpop.eup %10516  ;;  %10536 = vpow2.f32 %v8273_v17  ;;  %v1065_v43 = vadd.f32 1.0, %v10515_v26  ;;  %v11840_v17 = vmul.f32 -1.442695, %v11820_v14  ;;  %v11846_v25 = vadd.f32 %v11694_v34, %v883_v54 }
 0x306   : > { %v10519_v33 = vpop.eup %10518  ;;  %10538 = vpow2.f32 %v8274_v59  ;;  %v1066_v53 = vadd.f32 1.0, %v10517_v31  ;;  %v11849_v59 = vadd.f32 %v11694_v34, %v884_v13  ;;  %v887_v21 = vmul.f32 %v11685_v20, %v11472_v38 }
 0x307   : > { %v10521_v41 = vpop.eup %10520  ;;  %10540 = vrcp.f32 %v1060_v62  ;;  %v1067_v23 = vadd.f32 1.0, %v10519_v33  ;;  %v11857_v31 = vadd.f32 %v11694_v34, %v886_v16  ;;  %v889_v5 = vmul.f32 %v11685_v20, %v11484_v47 }
 0x308   : > { %v10523_v39 = vpop.eup %10522  ;;  %10542 = vrcp.f32 %v1061_v28  ;;  %v1068_v29 = vadd.f32 1.0, %v10521_v41  ;;  %v11854_v28 = vadd.f32 %v11694_v34, %v885_v15  ;;  %v11864_v41 = vmul.f32 -1.442695, %v11843_v45 }
 0x309   : > { %v10525_v22 = vpop.eup %10524  ;;  %10544 = vrcp.f32 %v1062_v12  ;;  %v1069_v26 = vadd.f32 1.0, %v10523_v39 }
 0x30a   : > { %v10527_v49 = vpop.eup %10526  ;;  %10546 = vrcp.f32 %v1063_v37  ;;  %v1070_v33 = vadd.f32 1.0, %v10525_v22  ;;  %v888_v37 = vmul.f32 %v11685_v20, %v11478_v44  ;;  %v11873_v44 = vadd.f32 %v11694_v34, %v887_v21 }
 0x30b   : > { %v10529_v51 = vpop.eup %10528  ;;  %10548 = vrcp.f32 %v1064_v42  ;;  %v1071_v38 = vadd.f32 1.0, %v10527_v49  ;;  %v11867_v42 = vmul.f32 -1.442695, %v11846_v25  ;;  %v11876_v16 = vmul.f32 -1.442695, %v11854_v28 }
 0x30c   : > { %v10531_v62 = vpop.eup %10530  ;;  %10550 = vrcp.f32 %v1065_v43  ;;  %v1072_v39 = vadd.f32 1.0, %v10529_v51  ;;  %v11870_v43 = vmul.f32 -1.442695, %v11849_v59  ;;  %v11879_v22 = vmul.f32 -1.442695, %v11857_v31 }
 0x30d   : > { %v10533_v12 = vpop.eup %10532  ;;  %10552 = vrcp.f32 %v1066_v53  ;;  %v1073_v47 = vadd.f32 1.0, %v10531_v62  ;;  %v11885_v51 = vadd.f32 %v11694_v34, %v889_v5  ;;  %v890_v62 = vmul.f32 %v11685_v20, %v11490_v52 }
 0x30e   : > { %v10535_v54 = vpop.eup %10534  ;;  %10554 = vrcp.f32 %v1067_v23  ;;  %v1074_v49 = vadd.f32 1.0, %v10533_v12  ;;  %v11882_v23 = vadd.f32 %v11694_v34, %v888_v37 }
 0x30f   : > { %v10537_v13 = vpop.eup %10536  ;;  %10556 = vrcp.f32 %v1068_v29  ;;  %v1075_v21 = vadd.f32 1.0, %v10535_v54  ;;  %v11897_v54 = vadd.f32 %v11694_v34, %v11814_v4 }
 0x310   : > { %v10539_v15 = vpop.eup %10538  ;;  %10558 = vrcp.f32 %v1069_v26  ;;  %v1076_v0 = vadd.f32 1.0, %v10537_v13 }
 0x311   : > { %v10541_v53 = vpop.eup %10540  ;;  %10560 = vrcp.f32 %v1070_v33  ;;  %v11892_v33 = vmul.f32 -1.442695, %v11873_v44  ;;  %v1077_v19 = vadd.f32 1.0, %v10539_v15 }
 0x312   : > { %v10543_v29 = vpop.eup %10542  ;;  %10562 = vrcp.f32 %v1071_v38  ;;  %v1156_v26 = vmul.f32 %v10541_v53, %v11708_v2  ;;  %v11901_v2 = vmul.f32 -1.442695, %v11882_v23 }
 0x313   : > { %v10545_v1 = vpop.eup %10544  ;;  %10564 = vrcp.f32 %v1072_v39  ;;  %v1157_v12 = vmul.f32 %v10543_v29, %v11713_v18  ;;  %v11905_v39 = vmul.f32 -1.442695, %v11885_v51 }
 0x314   : > { %v10547_v37 = vpop.eup %10546  ;;  %10566 = vrcp.f32 %v1073_v47  ;;  %v1158_v5 = vmul.f32 %v10545_v1, %v11718_v30  ;;  %v11908_v1 = vadd.f32 %v11694_v34, %v890_v62 }
 0x315   : > { %v10549_v52 = vpop.eup %10548  ;;  %10568 = vrcp.f32 %v1074_v49  ;;  %v1159_v20 = vmul.f32 %v10547_v37, %v11723_v10  ;;  %v1182_v18 = vpack.c.bf16 %v1157_v12, %v1156_v26  ;;  %v11914_v49 = vadd.f32 %v11694_v34, %v11828_v24 }
 0x316   : > { %v10551_v38 = vpop.eup %10550  ;;  %10570 = vrcp.f32 %v1075_v21  ;;  %v1160_v13 = vmul.f32 %v10549_v52, %v11728_v36  ;;  %v1378_v52 = vld [vmem:[#allocation2 + $0x80] sm:$0xff] }
 0x317   : > { %v10553_v30 = vpop.eup %10552  ;;  %10572 = vrcp.f32 %v1076_v0  ;;  %v1161_v4 = vmul.f32 %v10551_v38, %v11735_v50  ;;  %v1183_v15 = vpack.c.bf16 %v1159_v20, %v1158_v5  ;;  %v1241_v10 = vshrl.u32 %v1182_v18, 16  ;;  %v1381_v50 = vld [vmem:[#allocation2 + $0x88] sm:$0x1] }
 0x318   : > { %v10555_v47 = vpop.eup %10554  ;;  %10574 = vrcp.f32 %v1077_v19  ;;  %v1162_v53 = vmul.f32 %v10553_v30, %v11741_v48  ;;  %v1244_v36 = vshll.u32 %v1182_v18, 16 }
 0x319   : > { %v10557_v29 = vpop.eup %10556  ;;  %v1163_v21 = vmul.f32 %v10555_v47, %v11747_v55  ;;  %v11917_v62 = vpack.c.bf16 %v1161_v4, %v1160_v13  ;;  %10576 = vpow2.f32 %v11837_v57  ;;  %v1243_v0 = vrot.slane %v1241_v10, 7 }
 0x31a   : > { %v10559_v26 = vpop.eup %10558  ;;  %v1164_v12 = vmul.f32 %v10557_v29, %v11753_v9  ;;  %10578 = vpow2.f32 %v11840_v17  ;;  %v1248_v19 = vshrl.u32 %v1183_v15, 16  ;;  %v1251_v48 = vshll.u32 %v1183_v15, 16 }
 0x31b   : > { %v10561_v37 = vpop.eup %10560  ;;  %v1165_v34 = vmul.f32 %v10559_v26, %v11759_v56  ;;  %v1185_v24 = vpack.c.bf16 %v1163_v21, %v1162_v53  ;;  %v1255_v5 = vshrl.u32 %v11917_v62, 16  ;;  %v1258_v55 = vshll.u32 %v11917_v62, 16 }
 0x31c   : > { %v10563_v20 = vpop.eup %10562  ;;  %v1166_v57 = vmul.f32 %v10561_v37, %v11765_v58  ;;  %10580 = vpow2.f32 %v11864_v41  ;;  %v1246_v18 = vor.u32 %v1244_v36, %v1243_v0  ;;  %v1382_v9 = vsel %vm11267_vm5, %v1243_v0, %v1381_v50 }
 0x31d   : > { %v10565_v17 = vpop.eup %10564  ;;  %v1167_v38 = vmul.f32 %v10563_v20, %v11771_v61  ;;  %v1186_v13 = vpack.c.bf16 %v1165_v34, %v1164_v12  ;;  %v1262_v56 = vshrl.u32 %v1185_v24, 16  ;;  %v1265_v30 = vshll.u32 %v1185_v24, 16  ;;  %1383 = vst [vmem:[#allocation2 + $0x88] sm:$0x1] %v1382_v9  ;;  %v1384_v20 = vld [vmem:[#allocation2 + $0x90] sm:$0xff] }
 0x31e   : > { %v10567_v4 = vpop.eup %10566  ;;  %v1168_v15 = vmul.f32 %v10565_v17, %v11777_v63  ;;  %10582 = vpow2.f32 %v11867_v42  ;;  %v11934_v58 = vsel %vm11272_vm6, %v1246_v18, %v1378_v52  ;;  %v11936_v41 = vrot.slane %v1248_v19, 7 }
 0x31f   : > { %v10569_v10 = vpop.eup %10568  ;;  %v1169_v47 = vmul.f32 %v10567_v4, %v11783_v3  ;;  %v1187_v53 = vpack.c.bf16 %v1167_v38, %v1166_v57  ;;  %v11939_v61 = vrot.slane %v1262_v56, 7  ;;  %v1269_v36 = vshrl.u32 %v1186_v13, 16  ;;  %1380 = vst [vmem:[#allocation2 + $0x80] sm:$0xff] %v11934_v58  ;;  %v1387_v56 = vld [vmem:[#allocation2 + $0x98] sm:$0x1]  ;;  %v1414_v4 = vld [vmem:[#allocation2 + $0xe0] sm:$0xff] }
 0x320   : > { %v10571_v29 = vpop.eup %10570  ;;  %v1170_v63 = vmul.f32 %v10569_v10, %v11787_v35  ;;  %v1272_v21 = vshll.u32 %v1186_v13, 16  ;;  %10584 = vpow2.f32 %v11870_v43  ;;  %v1253_v42 = vor.u32 %v1251_v48, %v11936_v41 }
 0x321   : > { %v10573_v0 = vpop.eup %10572  ;;  %v1171_v50 = vmul.f32 %v10571_v29, %v11791_v60  ;;  %v1188_v26 = vpack.c.bf16 %v1169_v47, %v1168_v15  ;;  %v11947_v3 = vor.u32 %v1265_v30, %v11939_v61  ;;  %v11949_v12 = vrot.slane %v1269_v36, 7  ;;  %v1423_v15 = vld [vmem:[#allocation2 + $0xf8] sm:$0x1] }
 0x322   : > { %v10575_v19 = vpop.eup %10574  ;;  %v1172_v37 = vmul.f32 %v10573_v0, %v11795_v7  ;;  %v1276_v34 = vshrl.u32 %v1187_v53, 16  ;;  %v1279_v24 = vshll.u32 %v1187_v53, 16  ;;  %10586 = vpow2.f32 %v11876_v16  ;;  %v11960_v7 = vld [vmem:[#allocation8 + $0x8] ss:$12 sps:$4 sm:$0xff]  }
 0x323   : > { %v10577_v35 = vpop.eup %10576  ;;  %v1173_v43 = vmul.f32 %v10575_v19, %v11801_v46  ;;  %v1189_v48 = vpack.c.bf16 %v1171_v50, %v1170_v63  ;;  %v11955_v52 = vor.u32 %v1272_v21, %v11949_v12  ;;  %v1283_v60 = vshrl.u32 %v1188_v26, 16  ;;  %8919 = vmatprep.subr.bf16.mxu1 %v11960_v7  ;;  %v1393_v21 = vld [vmem:[#allocation2 + $0xa8] sm:$0x1]  ;;  %v1420_v50 = vld [vmem:[#allocation2 + $0xf0] sm:$0xff] }
 0x324   : > { %v10579_v57 = vpop.eup %10578  ;;  %v11957_v18 = vrot.slane %v1276_v34, 7  ;;  %v1286_v9 = vshll.u32 %v1188_v26, 16  ;;  %v1046_v17 = vadd.f32 1.0, %v10577_v35  ;;  %10588 = vpow2.f32 %v11879_v22  ;;  %v1429_v26 = vld [vmem:[#allocation2 + $0x108] sm:$0x1] }
 0x325   : > { %v1190_v38 = vpack.c.bf16 %v1173_v43, %v1172_v37  ;;  %v11962_v16 = vrot.slane %v1283_v60, 7  ;;  %v1290_v13 = vshrl.u32 %v1189_v48, 16  ;;  %v1293_v46 = vshll.u32 %v1189_v48, 16  ;;  %v1390_v48 = vld [vmem:[#allocation2 + $0xa0] sm:$0xff]  ;;  %v1396_v60 = vld [vmem:[#allocation2 + $0xb0] sm:$0xff] }
 0x326   : > { %v10581_v30 = vpop.eup %10580  ;;  %v11965_v10 = vor.u32 %v1279_v24, %v11957_v18  ;;  %v1047_v47 = vadd.f32 1.0, %v10579_v57  ;;  %10590 = vrcp.f32 %v1046_v17  ;;  %v11969_v53 = vsel %vm11272_vm6, %v1253_v42, %v1384_v20  ;;  %v1399_v20 = vld [vmem:[#allocation2 + $0xb8] sm:$0x1] }
 0x327   : > { %v1288_v22 = vor.u32 %v1286_v9, %v11962_v16  ;;  %v1292_v36 = vrot.slane %v1290_v13, 7  ;;  %v1297_v29 = vshrl.u32 %v1190_v38, 16  ;;  %v1300_v63 = vshll.u32 %v1190_v38, 16  ;;  %1386 = vst [vmem:[#allocation2 + $0x90] sm:$0xff] %v11969_v53  ;;  %v1426_v9 = vld [vmem:[#allocation2 + $0x100] sm:$0xff] }
 0x328   : > { %v10583_v0 = vpop.eup %10582  ;;  %10592 = vrcp.f32 %v1047_v47  ;;  %v1048_v19 = vadd.f32 1.0, %v10581_v30  ;;  %v1388_v42 = vsel %vm11267_vm5, %v11936_v41, %v1387_v56  ;;  %v1257_v37 = vrot.slane %v1255_v5, 7  ;;  %v1402_v38 = vld [vmem:[#allocation2 + $0xc0] sm:$0xff]  ;;  %v1411_v47 = vld [vmem:[#allocation2 + $0xd8] sm:$0x1] }
 0x329   : > { %v1295_v34 = vor.u32 %v1293_v46, %v1292_v36  ;;  %v1299_v24 = vrot.slane %v1297_v29, 7  ;;  %v11981_v35 = vsel %vm11272_vm6, %v1288_v22, %v1414_v4  ;;  %v1424_v43 = vsel %vm11267_vm5, %v1292_v36, %v1423_v15  ;;  %1389 = vst [vmem:[#allocation2 + $0x98] sm:$0x1] %v1388_v42  ;;  %v1405_v4 = vld [vmem:[#allocation2 + $0xc8] sm:$0x1]  ;;  %v1408_v15 = vld [vmem:[#allocation2 + $0xd0] sm:$0xff] }
 0x32a   : > { %v10585_v57 = vpop.eup %10584  ;;  %1416 = vst [vmem:[#allocation2 + $0xe0] sm:$0xff] %v11981_v35  ;;  %1425 = vst [vmem:[#allocation2 + $0xf8] sm:$0x1] %v1424_v43  ;;  %v1049_v41 = vadd.f32 1.0, %v10583_v0  ;;  %10594 = vrcp.f32 %v1048_v19  ;;  %v1260_v5 = vor.u32 %v1258_v55, %v1257_v37  ;;  %v1394_v17 = vsel %vm11267_vm5, %v1257_v37, %v1393_v21  ;;  %v1417_v29 = vld [vmem:[#allocation2 + $0xe8] sm:$0x1] }
 0x32b   : > { %v1302_v13 = vor.u32 %v1300_v63, %v1299_v24  ;;  %v11992_v46 = vsel %vm11272_vm6, %v1295_v34, %v1420_v50  ;;  %v1430_v56 = vsel %vm11267_vm5, %v1299_v24, %v1429_v26  ;;  %v1050_v30 = vadd.f32 1.0, %v10585_v57  ;;  %1395 = vst [vmem:[#allocation2 + $0xa8] sm:$0x1] %v1394_v17 }
 0x32c   : > { %v10587_v22 = vpop.eup %10586  ;;  %1431 = vst [vmem:[#allocation2 + $0x108] sm:$0x1] %v1430_v56  ;;  %1422 = vst [vmem:[#allocation2 + $0xf0] sm:$0xff] %v11992_v46  ;;  %10596 = vrcp.f32 %v1049_v41  ;;  %v11999_v62 = vsel %vm11272_vm6, %v1260_v5, %v1390_v48  ;;  %v12004_v55 = vsel %vm11272_vm6, %v11947_v3, %v1396_v60  ;;  %v1400_v36 = vsel %vm11267_vm5, %v11939_v61, %v1399_v20 }
 0x32d   : > { %v1427_v63 = vsel %vm11272_vm6, %v1302_v13, %v1426_v9  ;;  %v1051_v21 = vadd.f32 1.0, %v10587_v22  ;;  %10598 = vrcp.f32 %v1050_v30  ;;  %1392 = vst [vmem:[#allocation2 + $0xa0] sm:$0xff] %v11999_v62  ;;  %1398 = vst [vmem:[#allocation2 + $0xb0] sm:$0xff] %v12004_v55  ;;  %v12016_v3 = vsel %vm11272_vm6, %v11955_v52, %v1402_v38  ;;  %v1339_v9 = vld [vmem:[#allocation2 + $0x18] sm:$0x1] }
 0x32e   : > { %1401 = vst [vmem:[#allocation2 + $0xb8] sm:$0x1] %v1400_v36  ;;  %v10589_v0 = vpop.eup %10588  ;;  %1428 = vst [vmem:[#allocation2 + $0x100] sm:$0xff] %v1427_v63  ;;  %10600 = vpow2.f32 %v11892_v33  ;;  %v1406_v61 = vsel %vm11267_vm5, %v11949_v12, %v1405_v4  ;;  %v12026_v50 = vsel %vm11272_vm6, %v11965_v10, %v1408_v15  ;;  %v1412_v52 = vsel %vm11267_vm5, %v11957_v18, %v1411_v47  ;;  %v10340_v30 = vld [vmem:[#allocation8] ss:$12 sps:$4 sm:$0xff]  }
 0x32f   : > { %1404 = vst [vmem:[#allocation2 + $0xc0] sm:$0xff] %v12016_v3  ;;  %10602 = vrcp.f32 %v1051_v21  ;;  %v8253_v26 = vmul.f32 -1.442695, %v11908_v1  ;;  %1407 = vst [vmem:[#allocation2 + $0xc8] sm:$0x1] %v1406_v61  ;;  %v1418_v33 = vsel %vm11267_vm5, %v11962_v16, %v1417_v29  ;;  %v1052_v24 = vadd.f32 1.0, %v10589_v0 }
 0x330   : > { %1410 = vst [vmem:[#allocation2 + $0xd0] sm:$0xff] %v12026_v50  ;;  %1413 = vst [vmem:[#allocation2 + $0xd8] sm:$0x1] %v1412_v52  ;;  %v10591_v12 = vpop.eup %10590  ;;  %10604 = vpow2.f32 %v11901_v2  ;;  %v8254_v10 = vmul.f32 -1.442695, %v11897_v54  ;;  %v1059_v60 = vadd.f32 1.0, %v11798_v32 }
 0x331   : > { %1419 = vst [vmem:[#allocation2 + $0xe8] sm:$0x1] %v1418_v33  ;;  %v1142_v19 = vmul.f32 %v10591_v12, %v11817_v27  ;;  %v8255_v18 = vmul.f32 -1.442695, %v11914_v49  ;;  %10606 = vpow2.f32 %v11905_v39  ;;  %v10345_v36 = vld [vmem:[#allocation8 + $0x1c] ss:$12 sps:$4 sm:$0xff]  }
 0x332   : > { %v10593_v42 = vpop.eup %10592  ;;  %10608 = vpow2.f32 %v8253_v26  ;;  %v1342_v52 = vld [vmem:[#allocation2 + $0x20] sm:$0xff] }
 0x333   : > { %v1143_v37 = vmul.f32 %v10593_v42, %v11820_v14  ;;  %10610 = vpow2.f32 %v8254_v10  ;;  %v431_v10 = vld [vmem:[#allocation2] sm:$0x1]  ;;  %v14551_v42 = vmov 0  }
 0x334   : > { %v10595_v34 = vpop.eup %10594  ;;  %10612 = vpow2.f32 %v8255_v18  ;;  %490 = vst [vmem:[#allocation2 + $0x8] sm:$0xff] %v14551_v42  ;;  %541 = vst [vmem:[#allocation2 + $0x118] sm:$0xff] %v14551_v42 }
 0x335   : > { %v1175_v16 = vpack.c.bf16 %v1143_v37, %v1142_v19  ;;  %v1144_v43 = vmul.f32 %v10595_v34, %v11843_v45  ;;  %10614 = vrcp.f32 %v1052_v24  ;;  %v1336_v45 = vld [vmem:[#allocation2 + $0x10] sm:$0xff]  ;;  %v1351_v34 = vld [vmem:[#allocation2 + $0x38] sm:$0x1] }
 0x336   : > { %v10597_v2 = vpop.eup %10596  ;;  %10616 = vrcp.f32 %v1059_v60  ;;  %v10343_v24 = vld [vmem:[#allocation8 + $0x18] ss:$12 sps:$4 sm:$0xff]   ;;  %v432_v60 = vsel %vm11267_vm5, 0, %v431_v10 }
 0x337   : > { %v10599_v48 = vpop.eup %10598  ;;  %v1192_v27 = vshrl.u32 %v1175_v16, 16  ;;  %v1145_v20 = vmul.f32 %v10597_v2, %v11846_v25  ;;  %v1195_v5 = vshll.u32 %v1175_v16, 16  ;;  %433 = vst [vmem:[#allocation2] sm:$0x1] %v432_v60  ;;  %v1360_v60 = vld [vmem:[#allocation2 + $0x50] sm:$0xff] }
 0x338   : > { %v10601_v57 = vpop.eup %10600  ;;  %v1146_v39 = vmul.f32 %v10599_v48, %v11849_v59  ;;  %v1345_v59 = vld [vmem:[#allocation2 + $0x28] sm:$0x1]  ;;  %v10348_v48 = vld [vmem:[#allocation8 + $0x34] ss:$12 sps:$4 sm:$0xff]  }
 0x339   : > { %v10603_v14 = vpop.eup %10602  ;;  %v1194_v41 = vrot.slane %v1192_v27, 7  ;;  %v1176_v17 = vpack.c.bf16 %v1145_v20, %v1144_v43  ;;  %v1053_v38 = vadd.f32 1.0, %v10601_v57  ;;  %v1348_v20 = vld [vmem:[#allocation2 + $0x30] sm:$0xff] }
 0x33a   : > { %v10605_v13 = vpop.eup %10604  ;;  %v1147_v56 = vmul.f32 %v10603_v14, %v11854_v28  ;;  %v10353_v14 = vld [vmem:[#allocation8 + $0x20] ss:$12 sps:$4 sm:$0xff]  }
 0x33b   : > { %v1197_v32 = vor.u32 %v1195_v5, %v1194_v41  ;;  %v1340_v25 = vsel %vm11267_vm5, %v1194_v41, %v1339_v9  ;;  %v1199_v4 = vshrl.u32 %v1176_v17, 16  ;;  %v10607_v15 = vpop.eup %10606  ;;  %10618 = vrcp.f32 %v1053_v38  ;;  %v10346_v5 = vld [vmem:[#allocation8 + $0x30] ss:$12 sps:$4 sm:$0xff]   ;;  %v10351_v38 = vld [vmem:[#allocation8 + $0x4c] ss:$12 sps:$4 sm:$0xff]  }
 0x33c   : > { %1341 = vst [vmem:[#allocation2 + $0x18] sm:$0x1] %v1340_v25  ;;  %v1177_v47 = vpack.c.bf16 %v1147_v56, %v1146_v39  ;;  %v1054_v22 = vadd.f32 1.0, %v10605_v13  ;;  %v10609_v29 = vpop.eup %10608  ;;  %v1202_v21 = vshll.u32 %v1176_v17, 16  ;;  %v1055_v0 = vadd.f32 1.0, %v10607_v15 }
 0x33d   : > { %v12051_v63 = vsel %vm11272_vm6, %v1197_v32, %v1336_v45  ;;  %v1201_v28 = vrot.slane %v1199_v4, 7  ;;  %v10611_v61 = vpop.eup %10610  ;;  %v1056_v12 = vadd.f32 1.0, %v10609_v29  ;;  %v12081_v32 = vld [vmem:[#allocation2 + $0x110] sm:$0xff] }
 0x33e   : > { %14550 = vst [vmem:[#allocation20_spill] sm:$0xff] %v12051_v63  ;;  %1722 = vmatmul.mubr.bf16.vlgmr.msra.gmra.mrb[4].mxu0 %v12051_v63  ;;  %8855 = vmatprep.mubr.bf16.mxu1 %v12051_v63  ;;  %v1206_v26 = vshrl.u32 %v1177_v47, 16  ;;  %v1209_v33 = vshll.u32 %v1177_v47, 16  ;;  %10620 = vrcp.f32 %v1054_v22  ;;  %v10613_v19 = vpop.eup %10612  ;;  %v1057_v16 = vadd.f32 1.0, %v10611_v61  ;;  %14552 = vst [vmem:[#allocation21_spill] sm:$0xff] %v12081_v32 }
 0x33f   : > { %2396 = vmatpush1.bf16.msra.mxu0 %v10340_v30  ;;  %v1204_v18 = vor.u32 %v1202_v21, %v1201_v28  ;;  %1731 = vmatprep.mubr.bf16.mxu0 %v14551_v42  ;;  %v1346_v37 = vsel %vm11267_vm5, %v1201_v28, %v1345_v59  ;;  %10622 = vrcp.f32 %v1055_v0  ;;  %v1058_v2 = vadd.f32 1.0, %v10613_v19  ;;  %v10615_v57 = vpop.eup %10614  ;;  %v10354_v30 = vld [vmem:[#allocation8 + $0x38] ss:$12 sps:$4 sm:$0xff]   ;;  %v10349_v4 = vld [vmem:[#allocation8 + $0x48] ss:$12 sps:$4 sm:$0xff]  }
 0x340   : > { %1347 = vst [vmem:[#allocation2 + $0x28] sm:$0x1] %v1346_v37  ;;  %v1208_v43 = vrot.slane %v1206_v26, 7  ;;  %2397 = vmatprep.subr.bf16.mxu0 %v10345_v36  ;;  %10624 = vrcp.f32 %v1056_v12  ;;  %v10617_v13 = vpop.eup %10616  ;;  %v1148_v45 = vmul.f32 %v10615_v57, %v11857_v31  ;;  %v10362_v59 = vld [vmem:[#allocation8 + $0x64] ss:$12 sps:$4 sm:$0xff]  }
 0x341   : > { %v12062_v27 = vsel %vm11272_vm6, %v1204_v18, %v1342_v52  ;;  %10626 = vrcp.f32 %v1057_v16  ;;  %v10355_v29 = vld [vmem:[#allocation8 + $0x50] ss:$12 sps:$4 sm:$0xff]   ;;  %v1155_v61 = vmul.f32 %v10617_v13, %v11705_v40  ;;  %v10360_v52 = vld [vmem:[#allocation8 + $0x60] ss:$12 sps:$4 sm:$0xff]   ;;  %v10356_v37 = vld [vmem:[#allocation8 + $0x68] ss:$12 sps:$4 sm:$0xff]  }
 0x342   : > { %1344 = vst [vmem:[#allocation2 + $0x20] sm:$0xff] %v12062_v27  ;;  %v1211_v9 = vor.u32 %v1209_v33, %v1208_v43  ;;  %v1352_v39 = vsel %vm11267_vm5, %v1208_v43, %v1351_v34  ;;  %10628 = vrcp.f32 %v1058_v2  ;;  %v1354_v40 = vld [vmem:[#allocation2 + $0x40] sm:$0xff] }
 0x343   : > { %v12069_v41 = vld [vmem:[#allocation2 + $0x18] sm:$0xff]  ;;  %1353 = vst [vmem:[#allocation2 + $0x38] sm:$0x1] %v1352_v39  ;;  %2398 = vmatpush1.bf16.msra.mxu0 %v10343_v24  ;;  %v10357_v13 = vld [vmem:[#allocation8 + $0x80] ss:$12 sps:$4 sm:$0xff]  }
 0x344   : > { %8856 = vmatmul.mubr.bf16.vlgmr.msra.gmra.mrb[4].mxu1 %v12069_v41  ;;  %v12074_v17 = vsel %vm11272_vm6, %v1211_v9, %v1348_v20  ;;  %2399 = vmatprep.subr.bf16.mxu0 %v10348_v48  ;;  %v1363_v24 = vld [vmem:[#allocation2 + $0x58] sm:$0x1]  ;;  %v1369_v20 = vld [vmem:[#allocation2 + $0x68] sm:$0x1] }
 0x345   : > { %8859 = vmatprep.mubr.bf16.mxu1 %v12062_v27  ;;  %1350 = vst [vmem:[#allocation2 + $0x30] sm:$0xff] %v12074_v17  ;;  %8920 = vmatpush3.bf16.msra.mxu1 %v11960_v7  ;;  %v10619_v56 = vpop.eup %10618 }
 0x346   : > { %1732 = vmatmul.mubr.bf16.gmra.mrb[8].mxu0 %v12069_v41  ;;  %8921 = vmatprep.subr.bf16.mxu1 %v10353_v14  ;;  %v1149_v25 = vmul.f32 %v10619_v56, %v11873_v44  ;;  %v1366_v56 = vld [vmem:[#allocation2 + $0x60] sm:$0xff] }
 0x347   : > { %1738 = vmatprep.mubr.bf16.mxu0 %v12081_v32  ;;  %2400 = vmatpush1.bf16.msra.mxu0 %v10346_v5  ;;  %v12087_v21 = vld [vmem:[#allocation2 + $0x28] sm:$0xff] }
 0x348   : > { %v10621_v15 = vpop.eup %10620  ;;  %2401 = vmatprep.subr.bf16.mxu0 %v10351_v38  ;;  %v1178_v31 = vpack.c.bf16 %v1149_v25, %v1148_v45  ;;  %v1375_v38 = vld [vmem:[#allocation2 + $0x78] sm:$0x1] }
 0x349   : > { %v10623_v47 = vpop.eup %10622  ;;  %v1150_v7 = vmul.f32 %v10621_v15, %v11882_v23  ;;  %8922 = vmatpush3.bf16.msra.mxu1 %v10353_v14  ;;  %v1357_v23 = vld [vmem:[#allocation2 + $0x48] sm:$0x1] }
 0x34a   : > { %v10625_v22 = vpop.eup %10624  ;;  %v1151_v36 = vmul.f32 %v10623_v47, %v11885_v51  ;;  %8923 = vmatprep.subr.bf16.mxu1 %v10354_v30  ;;  %v1213_v0 = vshrl.u32 %v1178_v31, 16  ;;  %v1216_v10 = vshll.u32 %v1178_v31, 16  ;;  %v12106_v45 = vld [vmem:[#allocation2 + $0x38] sm:$0xff]  ;;  %v1372_v47 = vld [vmem:[#allocation2 + $0x70] sm:$0xff] }
 0x34b   : > { %v10627_v28 = vpop.eup %10626  ;;  %v1152_v44 = vmul.f32 %v10625_v22, %v11908_v1  ;;  %2402 = vmatpush1.bf16.msra.mxu0 %v10349_v4 }
 0x34c   : > { %v10629_v26 = vpop.eup %10628  ;;  %8860 = vmatmul.mubr.bf16.gmra.mrb[8].mxu1 %v12087_v21  ;;  %v1179_v33 = vpack.c.bf16 %v1151_v36, %v1150_v7  ;;  %v1153_v12 = vmul.f32 %v10627_v28, %v11897_v54  ;;  %2403 = vmatprep.subr.bf16.mxu0 %v10362_v59  ;;  %v1215_v51 = vrot.slane %v1213_v0, 7  ;;  %v10358_v36 = vld [vmem:[#allocation8 + $0x98] ss:$12 sps:$4 sm:$0xff]   ;;  %v10359_v28 = vld [vmem:[#allocation8 + $0xb0] ss:$12 sps:$4 sm:$0xff]  }
 0x34d   : > { %8863 = vmatprep.mubr.bf16.mxu1 %v12074_v17  ;;  %v1154_v19 = vmul.f32 %v10629_v26, %v11914_v49  ;;  %8924 = vmatpush3.bf16.msra.mxu1 %v10354_v30 }
 0x34e   : > { %1739 = vmatmul.mubr.bf16.gmra.mrb[12].mxu0 %v12062_v27  ;;  %v1220_v1 = vshrl.u32 %v1179_v33, 16  ;;  %v1180_v18 = vpack.c.bf16 %v1153_v12, %v1152_v44  ;;  %8925 = vmatprep.subr.bf16.mxu1 %v10355_v29  ;;  %v1218_v34 = vor.u32 %v1216_v10, %v1215_v51  ;;  %v1358_v54 = vsel %vm11267_vm5, %v1215_v51, %v1357_v23  ;;  %v10363_v44 = vld [vmem:[#allocation8 + $0x78] ss:$12 sps:$4 sm:$0xff]   ;;  %v10366_v12 = vld [vmem:[#allocation8 + $0x90] ss:$12 sps:$4 sm:$0xff]  }
 0x34f   : > { %1748 = vmatprep.mubr.bf16.mxu0 %v12081_v32  ;;  %v1181_v16 = vpack.c.bf16 %v1155_v61, %v1154_v19  ;;  %2404 = vmatpush1.bf16.msra.mxu0 %v10360_v52  ;;  %1359 = vst [vmem:[#allocation2 + $0x48] sm:$0x1] %v1358_v54  ;;  %v1223_v49 = vshll.u32 %v1179_v33, 16  ;;  %v10365_v61 = vld [vmem:[#allocation8 + $0x7c] ss:$12 sps:$4 sm:$0xff]  }
 0x350   : > { %v1222_v43 = vrot.slane %v1220_v1, 7  ;;  %v1227_v2 = vshrl.u32 %v1180_v18, 16  ;;  %v12101_v48 = vsel %vm11272_vm6, %v1218_v34, %v1354_v40  ;;  %v1230_v5 = vshll.u32 %v1180_v18, 16  ;;  %2405 = vmatprep.subr.bf16.mxu0 %v10365_v61  ;;  %v12155_v33 = vld [vmem:[#allocation2 + $0x88] sm:$0xff]  ;;  %v10368_v51 = vld [vmem:[#allocation8 + $0x94] ss:$12 sps:$4 sm:$0xff]  }
 0x351   : > { %v1234_v57 = vshrl.u32 %v1181_v16, 16  ;;  %8926 = vmatpush3.bf16.msra.mxu1 %v10355_v29  ;;  %1356 = vst [vmem:[#allocation2 + $0x40] sm:$0xff] %v12101_v48  ;;  %v1237_v25 = vshll.u32 %v1181_v16, 16  ;;  %v12161_v10 = vld [vmem:[#allocation2 + $0x98] sm:$0xff]  ;;  %v12167_v19 = vld [vmem:[#allocation2 + $0xa8] sm:$0xff] }
 0x352   : > { %v1225_v9 = vor.u32 %v1223_v49, %v1222_v43  ;;  %v1364_v39 = vsel %vm11267_vm5, %v1222_v43, %v1363_v24  ;;  %v1229_v14 = vrot.slane %v1227_v2, 7  ;;  %8927 = vmatprep.subr.bf16.mxu1 %v10356_v37  ;;  %v12173_v40 = vld [vmem:[#allocation2 + $0xb8] sm:$0xff]  ;;  %v12179_v1 = vld [vmem:[#allocation2 + $0xc8] sm:$0xff]  ;;  %v12200_v43 = vld [vmem:[#allocation2 + $0x100] sm:$0xff] }
 0x353   : > { %1365 = vst [vmem:[#allocation2 + $0x58] sm:$0x1] %v1364_v39  ;;  %v1236_v30 = vrot.slane %v1234_v57, 7  ;;  %2406 = vmatpush1.bf16.msra.mxu0 %v10363_v44  ;;  %v10369_v18 = vld [vmem:[#allocation8 + $0xa8] ss:$12 sps:$4 sm:$0xff]   ;;  %v12185_v34 = vld [vmem:[#allocation2 + $0xd8] sm:$0xff] }
 0x354   : > { %8864 = vmatmul.mubr.bf16.gmra.mrb[12].mxu1 %v12106_v45  ;;  %v12111_v4 = vsel %vm11272_vm6, %v1225_v9, %v1360_v60  ;;  %v1232_v15 = vor.u32 %v1230_v5, %v1229_v14  ;;  %v1370_v59 = vsel %vm11267_vm5, %v1229_v14, %v1369_v20  ;;  %2407 = vmatprep.subr.bf16.mxu0 %v10368_v51  ;;  %v10372_v54 = vld [vmem:[#allocation8 + $0x188] ss:$12 sps:$4 sm:$0xff]   ;;  %v12197_v16 = vld [vmem:[#allocation2 + $0xf8] sm:$0xff]  ;;  %v12205_v49 = vld [vmem:[#allocation2] sm:$0xff] }
 0x355   : > { %8867 = vmatprep.mubr.bf16.mxu1 %v12101_v48  ;;  %1362 = vst [vmem:[#allocation2 + $0x50] sm:$0xff] %v12111_v4  ;;  %1371 = vst [vmem:[#allocation2 + $0x68] sm:$0x1] %v1370_v59  ;;  %v1239_v31 = vor.u32 %v1237_v25, %v1236_v30  ;;  %v1376_v7 = vsel %vm11267_vm5, %v1236_v30, %v1375_v38  ;;  %8928 = vmatpush3.bf16.msra.mxu1 %v10356_v37  ;;  %v10371_v37 = vld [vmem:[#allocation8 + $0xac] ss:$12 sps:$4 sm:$0xff]   ;;  %v12281_v25 = vld [vmem:[#allocation2 + $0x20] sm:$0xff] }
 0x356   : > { %1749 = vmatmul.mubr.bf16.gmra.mrb[16].mxu0 %v12087_v21  ;;  %v12122_v22 = vsel %vm11272_vm6, %v1232_v15, %v1366_v56  ;;  %1377 = vst [vmem:[#allocation2 + $0x78] sm:$0x1] %v1376_v7  ;;  %8929 = vmatprep.subr.bf16.mxu1 %v10357_v13  ;;  %v12131_v0 = vld [vmem:[#allocation2 + $0x48] sm:$0xff]  ;;  %v10382_v60 = vld [vmem:[#allocation8 + $0x184] ss:$12 sps:$4 sm:$0xff]  }
 0x357   : > { %1755 = vmatprep.mubr.bf16.mxu0 %v12081_v32  ;;  %1368 = vst [vmem:[#allocation2 + $0x60] sm:$0xff] %v12122_v22  ;;  %v12128_v29 = vsel %vm11272_vm6, %v1239_v31, %v1372_v47  ;;  %2408 = vmatpush1.bf16.msra.mxu0 %v10366_v12  ;;  %v12191_v24 = vld [vmem:[#allocation2 + $0xe8] sm:$0xff]  ;;  %v10374_v57 = vld [vmem:[#allocation8 + $0x1b8] ss:$12 sps:$4 sm:$0xff]   ;;  %v10375_v9 = vld [vmem:[#allocation8 + $0x1d0] ss:$12 sps:$4 sm:$0xff]  }
 0x358   : > { %1374 = vst [vmem:[#allocation2 + $0x70] sm:$0xff] %v12128_v29  ;;  %2409 = vmatprep.subr.bf16.mxu0 %v10371_v37  ;;  %v12207_v2 = vld [vmem:[#allocation2 + $0x108] sm:$0xff]  ;;  %v10378_v5 = vld [vmem:[#allocation8 + $0x218] ss:$12 sps:$4 sm:$0xff]   ;;  %v10379_v38 = vld [vmem:[#allocation8 + $0x230] ss:$12 sps:$4 sm:$0xff]  }
 0x359   : > { %8930 = vmatpush3.bf16.msra.mxu1 %v10357_v13  ;;  %v10373_v20 = vld [vmem:[#allocation8 + $0x1a0] ss:$12 sps:$4 sm:$0xff]   ;;  %v10376_v39 = vld [vmem:[#allocation8 + $0x1e8] ss:$12 sps:$4 sm:$0xff]   ;;  %v14553_v13 = vmov 0.0|0.0   ;;  %v12294_v12 = vld [vmem:[#allocation2 + $0x38] sm:$0xff] }
 0x35a   : > { %8931 = vmatprep.subr.bf16.mxu1 %v10358_v36  ;;  %v12137_v52 = vld [vmem:[#allocation2 + $0x58] sm:$0xff]  ;;  %v10377_v14 = vld [vmem:[#allocation8 + $0x200] ss:$12 sps:$4 sm:$0xff]   ;;  %v10389_v44 = vld [vmem:[#allocation8 + $0x1c8] ss:$12 sps:$4 sm:$0xff]  }
 0x35b   : > { %2410 = vmatpush1.bf16.msra.mxu0 %v10369_v18  ;;  %v10380_v30 = vld [vmem:[#allocation8 + $0x180] ss:$12 sps:$4 sm:$0xff]   ;;  %v10385_v15 = vld [vmem:[#allocation8 + $0x19c] ss:$12 sps:$4 sm:$0xff]   ;;  %v10383_v59 = vld [vmem:[#allocation8 + $0x198] ss:$12 sps:$4 sm:$0xff]  }
 0x35c   : > { %8868 = vmatmul.mubr.bf16.gmra.mrb[16].mxu1 %v12131_v0  ;;  %v12143_v26 = vld [vmem:[#allocation2 + $0x68] sm:$0xff]  ;;  %3167 = vmatprep.subr.bf16.mxu0 %v10382_v60  ;;  %v10388_v47 = vld [vmem:[#allocation8 + $0x1b4] ss:$12 sps:$4 sm:$0xff]   ;;  %v10386_v7 = vld [vmem:[#allocation8 + $0x1b0] ss:$12 sps:$4 sm:$0xff]  }
 0x35d   : > { %8871 = vmatprep.mubr.bf16.mxu1 %v12111_v4  ;;  %8932 = vmatpush3.bf16.msra.mxu1 %v10358_v36  ;;  %v12149_v23 = vld [vmem:[#allocation2 + $0x78] sm:$0xff]  ;;  %v12286_v31 = vld [vmem:[#allocation2 + $0x28] sm:$0xff]  ;;  %v12289_v36 = vld [vmem:[#allocation2 + $0x30] sm:$0xff] }
 0x35e   : > { %1756 = vmatmul.mubr.bf16.gmra.mrb[20].mxu0 %v12074_v17  ;;  %8933 = vmatprep.subr.bf16.mxu1 %v10359_v28  ;;  %v10394_v61 = vld [vmem:[#allocation8 + $0x1e4] ss:$12 sps:$4 sm:$0xff]   ;;  %v10392_v51 = vld [vmem:[#allocation8 + $0x1e0] ss:$12 sps:$4 sm:$0xff]   ;;  %v10397_v37 = vld [vmem:[#allocation8 + $0x1fc] ss:$12 sps:$4 sm:$0xff]  }
 0x35f   : > { %1765 = vmatprep.mubr.bf16.mxu0 %v12081_v32  ;;  %v10395_v18 = vld [vmem:[#allocation8 + $0x1f8] ss:$12 sps:$4 sm:$0xff]  }
 0x361   : > { %8934 = vmatpush3.bf16.msra.mxu1 %v10359_v28  ;;  %v10391_v28 = vld [vmem:[#allocation8 + $0x1cc] ss:$12 sps:$4 sm:$0xff]  }
 0x362   : > { %8999 = vmatprep.subr.bf16.mxu1 %v10372_v54 }
 0x364   : > { %8872 = vmatmul.mubr.bf16.gmra.mrb[20].mxu1 %v12137_v52 }
 0x365   : > { %8875 = vmatprep.mubr.bf16.mxu1 %v12122_v22 }
 0x366   : > { %1766 = vmatmul.mubr.bf16.gmra.mrb[24].mxu0 %v12106_v45 }
 0x367   : > { %1772 = vmatprep.mubr.bf16.mxu0 %v12081_v32 }
 0x36c   : > { %8876 = vmatmul.mubr.bf16.gmra.mrb[24].mxu1 %v12143_v26 }
 0x36d   : > { %8879 = vmatprep.mubr.bf16.mxu1 %v12128_v29 }
 0x36e   : > { %1773 = vmatmul.mubr.bf16.gmra.mrb[28].mxu0 %v12101_v48 }
 0x36f   : > { %1782 = vmatprep.mubr.bf16.mxu0 %v12081_v32 }
 0x374   : > { %8880 = vmatmul.mubr.bf16.gmra.mrb[28].mxu1 %v12149_v23 }
 0x375   : > { %8883 = vmatprep.mubr.bf16.mxu1 %v11934_v58 }
 0x376   : > { %1783 = vmatmul.mubr.bf16.gmra.mrb[32].mxu0 %v12131_v0 }
 0x377   : > { %1789 = vmatprep.mubr.bf16.mxu0 %v12081_v32 }
 0x37c   : > { %8884 = vmatmul.mubr.bf16.gmra.mrb[32].mxu1 %v12155_v33 }
 0x37d   : > { %8887 = vmatprep.mubr.bf16.mxu1 %v11969_v53 }
 0x37e   : > { %1790 = vmatmul.mubr.bf16.gmra.mrb[36].mxu0 %v12111_v4 }
 0x37f   : > { %1799 = vmatprep.mubr.bf16.mxu0 %v12081_v32 }
 0x384   : > { %8888 = vmatmul.mubr.bf16.gmra.mrb[36].mxu1 %v12161_v10 }
 0x385   : > { %8891 = vmatprep.mubr.bf16.mxu1 %v11999_v62 }
 0x386   : > { %1800 = vmatmul.mubr.bf16.gmra.mrb[40].mxu0 %v12137_v52 }
 0x387   : > { %1806 = vmatprep.mubr.bf16.mxu0 %v12081_v32 }
 0x38c   : > { %8892 = vmatmul.mubr.bf16.gmra.mrb[40].mxu1 %v12167_v19 }
 0x38d   : > { %8895 = vmatprep.mubr.bf16.mxu1 %v12004_v55 }
 0x38e   : > { %1807 = vmatmul.mubr.bf16.gmra.mrb[44].mxu0 %v12122_v22 }
 0x38f   : > { %1816 = vmatprep.mubr.bf16.mxu0 %v12081_v32 }
 0x394   : > { %8896 = vmatmul.mubr.bf16.gmra.mrb[44].mxu1 %v12173_v40 }
 0x395   : > { %8899 = vmatprep.mubr.bf16.mxu1 %v12016_v3 }
 0x396   : > { %1817 = vmatmul.mubr.bf16.gmra.mrb[48].mxu0 %v12143_v26 }
 0x397   : > { %1823 = vmatprep.mubr.bf16.mxu0 %v12081_v32 }
 0x39c   : > { %8900 = vmatmul.mubr.bf16.gmra.mrb[48].mxu1 %v12179_v1 }
 0x39d   : > { %8903 = vmatprep.mubr.bf16.mxu1 %v12026_v50 }
 0x39e   : > { %1824 = vmatmul.mubr.bf16.gmra.mrb[52].mxu0 %v12128_v29 }
 0x39f   : > { %1833 = vmatprep.mubr.bf16.mxu0 %v12081_v32 }
 0x3a4   : > { %8904 = vmatmul.mubr.bf16.gmra.mrb[52].mxu1 %v12185_v34 }
 0x3a5   : > { %8907 = vmatprep.mubr.bf16.mxu1 %v11981_v35 }
 0x3a6   : > { %1834 = vmatmul.mubr.bf16.gmra.mrb[56].mxu0 %v12149_v23 }
 0x3a7   : > { %1840 = vmatprep.mubr.bf16.mxu0 %v12081_v32 }
 0x3ac   : > { %8908 = vmatmul.mubr.bf16.gmra.mrb[56].mxu1 %v12191_v24 }
 0x3ad   : > { %8911 = vmatprep.mubr.bf16.mxu1 %v11992_v46 }
 0x3ae   : > { %1841 = vmatmul.mubr.bf16.gmra.mrb[60].mxu0 %v11934_v58 }
 0x3af   : > { %1850 = vmatprep.mubr.bf16.mxu0 %v12081_v32 }
 0x3b4   : > { %8912 = vmatmul.mubr.bf16.gmra.mrb[60].mxu1 %v12197_v16 }
 0x3b5   : > { %8915 = vmatprep.mubr.bf16.mxu1 %v12200_v43 }
 0x3b6   : > { %1851 = vmatmul.mubr.bf16.gmra.mrb[64].mxu0 %v12155_v33 }
 0x3b7   : > { %1857 = vmatprep.mubr.bf16.mxu0 %v12081_v32 }
 0x3bc   : > { %8916 = vmatmul.mubr.bf16.gmra.mrb[64].mxu1 %v12207_v2 }
 0x3bd   : > { %8935 = vmatprep.mubr.bf16.mxu1 %v12205_v49 }
 0x3be   : > { %1858 = vmatmul.mubr.bf16.gmra.mrb[68].mxu0 %v11969_v53 }
 0x3bf   : > { %1867 = vmatprep.mubr.bf16.mxu0 %v12081_v32 }
 0x3c4   : > { %8936 = vmatmul.mubr.bf16.vlgmr.msra.gmra.mrb[4].mxu1 %v14551_v42 }
 0x3c5   : > { %8939 = vmatprep.mubr.bf16.mxu1 %v12051_v63  ;;  %9000 = vmatpush3.bf16.msra.mxu1 %v10372_v54  ;;  %v14554_v54 = vmov 0.0  }
 0x3c6   : > { %1868 = vmatmul.mubr.bf16.gmra.mrb[72].mxu0 %v12161_v10  ;;  %9001 = vmatprep.subr.bf16.mxu1 %v10373_v20 }
 0x3c7   : > { %1874 = vmatprep.mubr.bf16.mxu0 %v12081_v32 }
 0x3c9   : > { %9002 = vmatpush3.bf16.msra.mxu1 %v10373_v20 }
 0x3ca   : > { %9003 = vmatprep.subr.bf16.mxu1 %v10374_v57 }
 0x3cc   : > { %8940 = vmatmul.mubr.bf16.gmra.mrb[8].mxu1 %v12069_v41 }
 0x3cd   : > { %8943 = vmatprep.mubr.bf16.mxu1 %v12062_v27  ;;  %9004 = vmatpush3.bf16.msra.mxu1 %v10374_v57 }
 0x3ce   : > { %1875 = vmatmul.mubr.bf16.gmra.mrb[76].mxu0 %v11999_v62  ;;  %9005 = vmatprep.subr.bf16.mxu1 %v10375_v9 }
 0x3cf   : > { %1884 = vmatprep.mubr.bf16.mxu0 %v12081_v32 }
 0x3d1   : > { %9006 = vmatpush3.bf16.msra.mxu1 %v10375_v9 }
 0x3d2   : > { %9007 = vmatprep.subr.bf16.mxu1 %v10376_v39 }
 0x3d4   : > { %8944 = vmatmul.mubr.bf16.gmra.mrb[12].mxu1 %v12087_v21 }
 0x3d5   : > { %8947 = vmatprep.mubr.bf16.mxu1 %v12074_v17  ;;  %9008 = vmatpush3.bf16.msra.mxu1 %v10376_v39 }
 0x3d6   : > { %1885 = vmatmul.mubr.bf16.gmra.mrb[80].mxu0 %v12167_v19  ;;  %9009 = vmatprep.subr.bf16.mxu1 %v10377_v14 }
 0x3d7   : > { %1891 = vmatprep.mubr.bf16.mxu0 %v12081_v32 }
 0x3d9   : > { %9010 = vmatpush3.bf16.msra.mxu1 %v10377_v14 }
 0x3da   : > { %9011 = vmatprep.subr.bf16.mxu1 %v10378_v5 }
 0x3dc   : > { %8948 = vmatmul.mubr.bf16.gmra.mrb[16].mxu1 %v12106_v45 }
 0x3dd   : > { %8951 = vmatprep.mubr.bf16.mxu1 %v12101_v48  ;;  %9012 = vmatpush3.bf16.msra.mxu1 %v10378_v5 }
 0x3de   : > { %1892 = vmatmul.mubr.bf16.gmra.mrb[84].mxu0 %v12004_v55  ;;  %9013 = vmatprep.subr.bf16.mxu1 %v10379_v38 }
 0x3df   : > { %1901 = vmatprep.mubr.bf16.mxu0 %v12081_v32 }
 0x3e1   : > { %9014 = vmatpush3.bf16.msra.mxu1 %v10379_v38 }
 0x3e2   : > { %9437 = vmatprep.subr.bf16.mxu1 %v14553_v13 }
 0x3e4   : > { %8952 = vmatmul.mubr.bf16.gmra.mrb[20].mxu1 %v12131_v0 }
 0x3e5   : > { %8955 = vmatprep.mubr.bf16.mxu1 %v12111_v4 }
 0x3e6   : > { %1902 = vmatmul.mubr.bf16.gmra.mrb[88].mxu0 %v12173_v40 }
 0x3e7   : > { %1908 = vmatprep.mubr.bf16.mxu0 %v12081_v32 }
 0x3ec   : > { %8956 = vmatmul.mubr.bf16.gmra.mrb[24].mxu1 %v12137_v52 }
 0x3ed   : > { %8959 = vmatprep.mubr.bf16.mxu1 %v12122_v22 }
 0x3ee   : > { %1909 = vmatmul.mubr.bf16.gmra.mrb[92].mxu0 %v12016_v3 }
 0x3ef   : > { %1918 = vmatprep.mubr.bf16.mxu0 %v12081_v32 }
 0x3f4   : > { %8960 = vmatmul.mubr.bf16.gmra.mrb[28].mxu1 %v12143_v26 }
 0x3f5   : > { %8963 = vmatprep.mubr.bf16.mxu1 %v12128_v29 }
 0x3f6   : > { %1919 = vmatmul.mubr.bf16.gmra.mrb[96].mxu0 %v12179_v1 }
 0x3f7   : > { %1925 = vmatprep.mubr.bf16.mxu0 %v12081_v32 }
 0x3fc   : > { %8964 = vmatmul.mubr.bf16.gmra.mrb[32].mxu1 %v12149_v23 }
 0x3fd   : > { %8967 = vmatprep.mubr.bf16.mxu1 %v11934_v58  ;;  %v12267_v58 = vld [vmem:[#allocation2 + $0xe0] sm:$0xff] }
 0x3fe   : > { %1926 = vmatmul.mubr.bf16.gmra.mrb[100].mxu0 %v12026_v50 }
 0x3ff   : > { %1935 = vmatprep.mubr.bf16.mxu0 %v12081_v32 }
 0x404   : > { %8968 = vmatmul.mubr.bf16.gmra.mrb[36].mxu1 %v12155_v33 }
 0x405   : > { %8971 = vmatprep.mubr.bf16.mxu1 %v11969_v53 }
 0x406   : > { %1936 = vmatmul.mubr.bf16.gmra.mrb[104].mxu0 %v12185_v34 }
 0x407   : > { %1942 = vmatprep.mubr.bf16.mxu0 %v12081_v32 }
 0x40c   : > { %8972 = vmatmul.mubr.bf16.gmra.mrb[40].mxu1 %v12161_v10 }
 0x40d   : > { %8975 = vmatprep.mubr.bf16.mxu1 %v11999_v62 }
 0x40e   : > { %1943 = vmatmul.mubr.bf16.gmra.mrb[108].mxu0 %v11981_v35  ;;  %v12273_v35 = vld [vmem:[#allocation2 + $0xf0] sm:$0xff] }
 0x40f   : > { %1952 = vmatprep.mubr.bf16.mxu0 %v12081_v32 }
 0x414   : > { %8976 = vmatmul.mubr.bf16.gmra.mrb[44].mxu1 %v12167_v19 }
 0x415   : > { %8979 = vmatprep.mubr.bf16.mxu1 %v12004_v55 }
 0x416   : > { %1953 = vmatmul.mubr.bf16.gmra.mrb[112].mxu0 %v12191_v24 }
 0x417   : > { %1959 = vmatprep.mubr.bf16.mxu0 %v12081_v32 }
 0x41c   : > { %8980 = vmatmul.mubr.bf16.gmra.mrb[48].mxu1 %v12173_v40 }
 0x41d   : > { %8983 = vmatprep.mubr.bf16.mxu1 %v12016_v3 }
 0x41e   : > { %1960 = vmatmul.mubr.bf16.gmra.mrb[116].mxu0 %v11992_v46  ;;  %v482_v46 = vld [vmem:[#allocation2 + $0x110] sm:$0x1] }
 0x41f   : > { %1969 = vmatprep.mubr.bf16.mxu0 %v12081_v32  ;;  %v483_v56 = vsel %vm11267_vm5, 0, %v482_v46 }
 0x420   : > { %484 = vst [vmem:[#allocation2 + $0x110] sm:$0x1] %v483_v56 }
 0x424   : > { %8984 = vmatmul.mubr.bf16.gmra.mrb[52].mxu1 %v12179_v1 }
 0x425   : > { %8987 = vmatprep.mubr.bf16.mxu1 %v12026_v50 }
 0x426   : > { %1970 = vmatmul.mubr.bf16.gmra.mrb[120].mxu0 %v12197_v16 }
 0x427   : > { %1976 = vmatprep.mubr.bf16.mxu0 %v12081_v32 }
 0x42c   : > { %8988 = vmatmul.mubr.bf16.gmra.mrb[56].mxu1 %v12185_v34 }
 0x42d   : > { %8991 = vmatprep.mubr.bf16.mxu1 %v12267_v58 }
 0x42e   : > { %1977 = vmatmul.mubr.bf16.gmra.mrb[124].mxu0 %v12200_v43 }
 0x42f   : > { %1986 = vmatprep.mubr.bf16.mxu0 %v12081_v32 }
 0x434   : > { %8992 = vmatmul.mubr.bf16.gmra.mrb[60].mxu1 %v12191_v24 }
 0x435   : > { %8995 = vmatprep.mubr.bf16.mxu1 %v12273_v35 }
 0x436   : > { %1987 = vmatmul.mubr.bf16.gmra.mrb[128].mxu0 %v12207_v2 }
 0x437   : > { %2427 = vmatprep.mubr.bf16.mxu0 %v12081_v32 }
 0x43c   : > { %8996 = vmatmul.mubr.bf16.gmra.mrb[64].mxu1 %v12197_v16 }
 0x43d   : > { %9015 = vmatprep.mubr.bf16.mxu1 %v12281_v25 }
 0x43e   : > { %2428 = vmatmul.mubr.bf16.vlgmr.msra.gmra.mrb[4].mxu0 %v12205_v49  ;;  %v12363_v49 = vld [vmem:[#allocation2 + $0x90] sm:$0xff] }
 0x43f   : > { %3168 = vmatpush1.bf16.msra.mxu0 %v10380_v30  ;;  %2437 = vmatprep.mubr.bf16.mxu0 %v12081_v32 }
 0x440   : > { %3169 = vmatprep.subr.bf16.mxu0 %v10385_v15 }
 0x443   : > { %3170 = vmatpush1.bf16.msra.mxu0 %v10383_v59 }
 0x444   : > { %9016 = vmatmul.mubr.bf16.vlgmr.msra.gmra.mrb[4].mxu1 %v12286_v31  ;;  %3171 = vmatprep.subr.bf16.mxu0 %v10388_v47 }
 0x445   : > { %9019 = vmatprep.mubr.bf16.mxu1 %v12289_v36 }
 0x446   : > { %2438 = vmatmul.mubr.bf16.gmra.mrb[8].mxu0 %v14551_v42 }
 0x447   : > { %2444 = vmatprep.mubr.bf16.mxu0 %v12081_v32  ;;  %3172 = vmatpush1.bf16.msra.mxu0 %v10386_v7 }
 0x448   : > { %3173 = vmatprep.subr.bf16.mxu0 %v10391_v28 }
 0x44b   : > { %3174 = vmatpush1.bf16.msra.mxu0 %v10389_v44 }
 0x44c   : > { %9020 = vmatmul.mubr.bf16.gmra.mrb[8].mxu1 %v12294_v12  ;;  %3175 = vmatprep.subr.bf16.mxu0 %v10394_v61 }
 0x44d   : > { %9023 = vmatprep.mubr.bf16.mxu1 %v12101_v48 }
 0x44e   : > { %2445 = vmatmul.mubr.bf16.gmra.mrb[12].mxu0 %v12051_v63 }
 0x44f   : > { %2454 = vmatprep.mubr.bf16.mxu0 %v12081_v32  ;;  %3176 = vmatpush1.bf16.msra.mxu0 %v10392_v51 }
 0x450   : > { %3177 = vmatprep.subr.bf16.mxu0 %v10397_v37 }
 0x453   : > { %3178 = vmatpush1.bf16.msra.mxu0 %v10395_v18 }
 0x454   : > { %9024 = vmatmul.mubr.bf16.gmra.mrb[12].mxu1 %v12131_v0 }
 0x455   : > { %9027 = vmatprep.mubr.bf16.mxu1 %v12111_v4 }
 0x456   : > { %2455 = vmatmul.mubr.bf16.gmra.mrb[16].mxu0 %v12069_v41  ;;  %v12313_v41 = vld [vmem:[#allocation2 + $0x80] sm:$0xff] }
 0x457   : > { %2461 = vmatprep.mubr.bf16.mxu0 %v12081_v32 }
 0x45c   : > { %9028 = vmatmul.mubr.bf16.gmra.mrb[16].mxu1 %v12137_v52 }
 0x45d   : > { %9031 = vmatprep.mubr.bf16.mxu1 %v12122_v22 }
 0x45e   : > { %2462 = vmatmul.mubr.bf16.gmra.mrb[20].mxu0 %v12062_v27  ;;  %v10398_v27 = vld [vmem:[#allocation8 + $0x210] ss:$12 sps:$4 sm:$0xff]  }
 0x45f   : > { %2471 = vmatprep.mubr.bf16.mxu0 %v12081_v32 }
 0x464   : > { %9032 = vmatmul.mubr.bf16.gmra.mrb[20].mxu1 %v12143_v26 }
 0x465   : > { %9035 = vmatprep.mubr.bf16.mxu1 %v12128_v29 }
 0x466   : > { %2472 = vmatmul.mubr.bf16.gmra.mrb[24].mxu0 %v12087_v21  ;;  %v10400_v21 = vld [vmem:[#allocation8 + $0x214] ss:$12 sps:$4 sm:$0xff]  }
 0x467   : > { %2478 = vmatprep.mubr.bf16.mxu0 %v12081_v32  ;;  %3179 = vmatprep.subr.bf16.mxu0 %v10400_v21 }
 0x468   : > { %3180 = vmatpush1.bf16.msra.mxu0 %v10398_v27 }
 0x46c   : > { %9036 = vmatmul.mubr.bf16.gmra.mrb[24].mxu1 %v12149_v23 }
 0x46d   : > { %9039 = vmatprep.mubr.bf16.mxu1 %v12313_v41 }
 0x46e   : > { %2479 = vmatmul.mubr.bf16.gmra.mrb[28].mxu0 %v12074_v17  ;;  %v10403_v17 = vld [vmem:[#allocation8 + $0x22c] ss:$12 sps:$4 sm:$0xff]  }
 0x46f   : > { %2488 = vmatprep.mubr.bf16.mxu0 %v12081_v32  ;;  %3181 = vmatprep.subr.bf16.mxu0 %v10403_v17 }
 0x474   : > { %9040 = vmatmul.mubr.bf16.gmra.mrb[28].mxu1 %v12155_v33 }
 0x475   : > { %9043 = vmatprep.mubr.bf16.mxu1 %v11969_v53  ;;  %v10401_v53 = vld [vmem:[#allocation8 + $0x228] ss:$12 sps:$4 sm:$0xff]  }
 0x476   : > { %2489 = vmatmul.mubr.bf16.gmra.mrb[32].mxu0 %v12106_v45  ;;  %v12350_v45 = vld [vmem:[#allocation2 + $0x110] sm:$0xff] }
 0x477   : > { %2495 = vmatprep.mubr.bf16.mxu0 %v12081_v32  ;;  %3182 = vmatpush1.bf16.msra.mxu0 %v10401_v53 }
 0x47c   : > { %9044 = vmatmul.mubr.bf16.gmra.mrb[32].mxu1 %v12161_v10 }
 0x47d   : > { %9047 = vmatprep.mubr.bf16.mxu1 %v11999_v62 }
 0x47e   : > { %2496 = vmatmul.mubr.bf16.gmra.mrb[36].mxu0 %v12101_v48 }
 0x47f   : > { %2505 = vmatprep.mubr.bf16.mxu0 %v12081_v32 }
 0x484   : > { %9048 = vmatmul.mubr.bf16.gmra.mrb[36].mxu1 %v12167_v19 }
 0x485   : > { %9051 = vmatprep.mubr.bf16.mxu1 %v12004_v55 }
 0x486   : > { %2506 = vmatmul.mubr.bf16.gmra.mrb[40].mxu0 %v12131_v0 }
 0x487   : > { %2512 = vmatprep.mubr.bf16.mxu0 %v12081_v32 }
 0x48c   : > { %9052 = vmatmul.mubr.bf16.gmra.mrb[40].mxu1 %v12173_v40 }
 0x48d   : > { %9055 = vmatprep.mubr.bf16.mxu1 %v12016_v3 }
 0x48e   : > { %2513 = vmatmul.mubr.bf16.gmra.mrb[44].mxu0 %v12111_v4 }
 0x48f   : > { %2522 = vmatprep.mubr.bf16.mxu0 %v12081_v32 }
 0x494   : > { %9056 = vmatmul.mubr.bf16.gmra.mrb[44].mxu1 %v12179_v1 }
 0x495   : > { %9059 = vmatprep.mubr.bf16.mxu1 %v12026_v50 }
 0x496   : > { %2523 = vmatmul.mubr.bf16.gmra.mrb[48].mxu0 %v12137_v52 }
 0x497   : > { %2529 = vmatprep.mubr.bf16.mxu0 %v12081_v32 }
 0x49c   : > { %9060 = vmatmul.mubr.bf16.gmra.mrb[48].mxu1 %v12185_v34 }
 0x49d   : > { %9063 = vmatprep.mubr.bf16.mxu1 %v12267_v58 }
 0x49e   : > { %2530 = vmatmul.mubr.bf16.gmra.mrb[52].mxu0 %v12122_v22 }
 0x49f   : > { %2539 = vmatprep.mubr.bf16.mxu0 %v12081_v32 }
 0x4a4   : > { %9064 = vmatmul.mubr.bf16.gmra.mrb[52].mxu1 %v12191_v24 }
 0x4a5   : > { %9067 = vmatprep.mubr.bf16.mxu1 %v12273_v35 }
 0x4a6   : > { %2540 = vmatmul.mubr.bf16.gmra.mrb[56].mxu0 %v12143_v26 }
 0x4a7   : > { %2546 = vmatprep.mubr.bf16.mxu0 %v12081_v32 }
 0x4ac   : > { %9068 = vmatmul.mubr.bf16.gmra.mrb[56].mxu1 %v12197_v16 }
 0x4ad   : > { %9071 = vmatprep.mubr.bf16.mxu1 %v12200_v43 }
 0x4ae   : > { %2547 = vmatmul.mubr.bf16.gmra.mrb[60].mxu0 %v12128_v29 }
 0x4af   : > { %2556 = vmatprep.mubr.bf16.mxu0 %v12081_v32 }
 0x4b4   : > { %9072 = vmatmul.mubr.bf16.gmra.mrb[60].mxu1 %v12207_v2 }
 0x4b5   : > { %9075 = vmatprep.mubr.bf16.mxu1 %v12350_v45 }
 0x4b6   : > { %2557 = vmatmul.mubr.bf16.gmra.mrb[64].mxu0 %v12149_v23 }
 0x4b7   : > { %2563 = vmatprep.mubr.bf16.mxu0 %v12081_v32 }
 0x4bc   : > { %9076 = vmatmul.mubr.bf16.gmra.mrb[64].mxu1 %v14551_v42 }
 0x4bd   : > { %9111 = vmatprep.mubr.msk.f32.mxu1 %vm10984_vm0, %v14554_v54 }
 0x4be   : > { %2564 = vmatmul.mubr.bf16.gmra.mrb[68].mxu0 %v12313_v41 }
 0x4bf   : > { %2573 = vmatprep.mubr.bf16.mxu0 %v12081_v32 }
 0x4c6   : > { %2574 = vmatmul.mubr.bf16.gmra.mrb[72].mxu0 %v12155_v33 }
 0x4c7   : > { %2580 = vmatprep.mubr.bf16.mxu0 %v12081_v32 }
 0x4ce   : > { %2581 = vmatmul.mubr.bf16.gmra.mrb[76].mxu0 %v12363_v49 }
 0x4cf   : > { %2590 = vmatprep.mubr.bf16.mxu0 %v12081_v32 }
 0x4d6   : > { %2591 = vmatmul.mubr.bf16.gmra.mrb[80].mxu0 %v12161_v10 }
 0x4d7   : > { %2597 = vmatprep.mubr.bf16.mxu0 %v12081_v32 }
 0x4de   : > { %2598 = vmatmul.mubr.bf16.gmra.mrb[84].mxu0 %v11999_v62 }
 0x4df   : > { %2607 = vmatprep.mubr.bf16.mxu0 %v12081_v32 }
 0x4e6   : > { %2608 = vmatmul.mubr.bf16.gmra.mrb[88].mxu0 %v12167_v19 }
 0x4e7   : > { %2614 = vmatprep.mubr.bf16.mxu0 %v12081_v32 }
 0x4ee   : > { %2615 = vmatmul.mubr.bf16.gmra.mrb[92].mxu0 %v12004_v55 }
 0x4ef   : > { %2624 = vmatprep.mubr.bf16.mxu0 %v12081_v32 }
 0x4f6   : > { %2625 = vmatmul.mubr.bf16.gmra.mrb[96].mxu0 %v12173_v40 }
 0x4f7   : > { %2631 = vmatprep.mubr.bf16.mxu0 %v12081_v32 }
 0x4fe   : > { %2632 = vmatmul.mubr.bf16.gmra.mrb[100].mxu0 %v12016_v3 }
 0x4ff   : > { %2641 = vmatprep.mubr.bf16.mxu0 %v12081_v32 }
 0x506   : > { %2642 = vmatmul.mubr.bf16.gmra.mrb[104].mxu0 %v12179_v1 }
 0x507   : > { %2648 = vmatprep.mubr.bf16.mxu0 %v12081_v32 }
 0x50e   : > { %2649 = vmatmul.mubr.bf16.gmra.mrb[108].mxu0 %v12026_v50 }
 0x50f   : > { %2658 = vmatprep.mubr.bf16.mxu0 %v12081_v32 }
 0x516   : > { %2659 = vmatmul.mubr.bf16.gmra.mrb[112].mxu0 %v12185_v34 }
 0x517   : > { %v9017_v62 = vpop.f32.mrb[4].mxu1  ;;  %2665 = vmatprep.mubr.bf16.mxu0 %v12081_v32 }
 0x518   : > { %v3506_v55 = vpop.f32.mrb[5].mxu1  ;;  %v4118_v3 = vrot.slane %v9017_v62, 2 }
 0x519   : > { %v9018_v42 = vpop.f32.mrb[6].mxu1  ;;  %v4115_v20 = vrot.slane %v3506_v55, 2 }
 0x51a   : > { %v3509_v60 = vpop.f32.mrb[7].mxu1 }
 0x51b   : > { %v4116_v57 = vrot.slane %v3509_v60, 2 }
 0x51d   : > { %v12386_v9 = vsel %vm4114_vm7, %v4115_v20, %v4116_v57  ;;  %v12389_v39 = vsel %vm4114_vm7, %v4116_v57, %v4118_v3 }
 0x51e   : > { %2666 = vmatmul.mubr.bf16.gmra.mrb[116].mxu0 %v12267_v58 }
 0x51f   : > { %v9021_v50 = vpop.f32.mrb[8].mxu1  ;;  %2675 = vmatprep.mubr.bf16.mxu0 %v12081_v32 }
 0x520   : > { %v3521_v14 = vpop.f32.mrb[9].mxu1  ;;  %v4123_v46 = vrot.slane %v9021_v50, 2 }
 0x521   : > { %v9022_v5 = vpop.f32.mrb[10].mxu1  ;;  %v4120_v56 = vrot.slane %v3521_v14, 2 }
 0x522   : > { %v3524_v38 = vpop.f32.mrb[11].mxu1 }
 0x523   : > { %v4121_v30 = vrot.slane %v3524_v38, 2 }
 0x525   : > { %v12394_v15 = vsel %vm4114_vm7, %v4120_v56, %v4121_v30  ;;  %v12397_v59 = vsel %vm4114_vm7, %v4121_v30, %v4123_v46 }
 0x526   : > { %2676 = vmatmul.mubr.bf16.gmra.mrb[120].mxu0 %v12191_v24 }
 0x527   : > { %v9025_v47 = vpop.f32.mrb[12].mxu1  ;;  %2682 = vmatprep.mubr.bf16.mxu0 %v12081_v32 }
 0x528   : > { %v3536_v7 = vpop.f32.mrb[13].mxu1  ;;  %v4128_v61 = vrot.slane %v9025_v47, 2 }
 0x529   : > { %v9026_v28 = vpop.f32.mrb[14].mxu1  ;;  %v4125_v51 = vrot.slane %v3536_v7, 2 }
 0x52a   : > { %v3539_v44 = vpop.f32.mrb[15].mxu1 }
 0x52b   : > { %v4126_v18 = vrot.slane %v3539_v44, 2 }
 0x52d   : > { %v12402_v37 = vsel %vm4114_vm7, %v4125_v51, %v4126_v18  ;;  %v12405_v27 = vsel %vm4114_vm7, %v4126_v18, %v4128_v61 }
 0x52e   : > { %2683 = vmatmul.mubr.bf16.gmra.mrb[124].mxu0 %v12273_v35 }
 0x52f   : > { %v9029_v21 = vpop.f32.mrb[16].mxu1  ;;  %2692 = vmatprep.mubr.bf16.mxu0 %v12081_v32 }
 0x530   : > { %v3551_v53 = vpop.f32.mrb[17].mxu1  ;;  %v4133_v55 = vrot.slane %v9029_v21, 2 }
 0x531   : > { %v9030_v17 = vpop.f32.mrb[18].mxu1  ;;  %v4130_v42 = vrot.slane %v3551_v53, 2 }
 0x532   : > { %v3554_v62 = vpop.f32.mrb[19].mxu1 }
 0x533   : > { %v4131_v60 = vrot.slane %v3554_v62, 2 }
 0x535   : > { %v12410_v3 = vsel %vm4114_vm7, %v4130_v42, %v4131_v60  ;;  %v12413_v20 = vsel %vm4114_vm7, %v4131_v60, %v4133_v55 }
 0x536   : > { %2693 = vmatmul.mubr.bf16.gmra.mrb[128].mxu0 %v12197_v16 }
 0x537   : > { %v9033_v57 = vpop.f32.mrb[20].mxu1  ;;  %3199 = vmatprep.mubr.bf16.mxu0 %v12081_v32 }
 0x538   : > { %v3566_v50 = vpop.f32.mrb[21].mxu1  ;;  %v4138_v38 = vrot.slane %v9033_v57, 2 }
 0x539   : > { %v9034_v14 = vpop.f32.mrb[22].mxu1  ;;  %v4135_v46 = vrot.slane %v3566_v50, 2 }
 0x53a   : > { %v3569_v5 = vpop.f32.mrb[23].mxu1 }
 0x53b   : > { %v4136_v56 = vrot.slane %v3569_v5, 2 }
 0x53d   : > { %v12418_v30 = vsel %vm4114_vm7, %v4135_v46, %v4136_v56  ;;  %v12421_v47 = vsel %vm4114_vm7, %v4136_v56, %v4138_v38 }
 0x53e   : > { %3200 = vmatmul.mubr.bf16.vlgmr.msra.gmra.mrb[4].mxu0 %v12281_v25 }
 0x53f   : > { %v9037_v7 = vpop.f32.mrb[24].mxu1  ;;  %3209 = vmatprep.mubr.bf16.mxu0 %v12081_v32 }
 0x540   : > { %v3581_v28 = vpop.f32.mrb[25].mxu1  ;;  %v4143_v51 = vrot.slane %v9037_v7, 2 }
 0x541   : > { %v9038_v44 = vpop.f32.mrb[26].mxu1  ;;  %v4140_v18 = vrot.slane %v3581_v28, 2 }
 0x542   : > { %v3584_v61 = vpop.f32.mrb[27].mxu1 }
 0x543   : > { %v4141_v21 = vrot.slane %v3584_v61, 2 }
 0x545   : > { %v12426_v53 = vsel %vm4114_vm7, %v4140_v18, %v4141_v21  ;;  %v12429_v17 = vsel %vm4114_vm7, %v4141_v21, %v4143_v51 }
 0x546   : > { %3210 = vmatmul.mubr.bf16.gmra.mrb[8].mxu0 %v12286_v31 }
 0x547   : > { %v9041_v62 = vpop.f32.mrb[28].mxu1  ;;  %3216 = vmatprep.mubr.bf16.mxu0 %v12081_v32 }
 0x548   : > { %v3596_v25 = vpop.f32.mrb[29].mxu1  ;;  %v4148_v60 = vrot.slane %v9041_v62, 2 }
 0x549   : > { %v9042_v55 = vpop.f32.mrb[30].mxu1  ;;  %v4145_v57 = vrot.slane %v3596_v25, 2 }
 0x54a   : > { %v3599_v42 = vpop.f32.mrb[31].mxu1 }
 0x54b   : > { %v4146_v50 = vrot.slane %v3599_v42, 2 }
 0x54d   : > { %v12434_v14 = vsel %vm4114_vm7, %v4145_v57, %v4146_v50  ;;  %v12437_v5 = vsel %vm4114_vm7, %v4146_v50, %v4148_v60 }
 0x54e   : > { %3217 = vmatmul.mubr.bf16.gmra.mrb[12].mxu0 %v12289_v36 }
 0x54f   : > { %v9045_v38 = vpop.f32.mrb[32].mxu1  ;;  %3226 = vmatprep.mubr.bf16.mxu0 %v12081_v32 }
 0x550   : > { %v3611_v31 = vpop.f32.mrb[33].mxu1  ;;  %v4153_v7 = vrot.slane %v9045_v38, 2 }
 0x551   : > { %v9046_v46 = vpop.f32.mrb[34].mxu1  ;;  %v4150_v28 = vrot.slane %v3611_v31, 2 }
 0x552   : > { %v3614_v56 = vpop.f32.mrb[35].mxu1 }
 0x553   : > { %v4151_v44 = vrot.slane %v3614_v56, 2 }
 0x555   : > { %v12442_v61 = vsel %vm4114_vm7, %v4150_v28, %v4151_v44  ;;  %v12445_v51 = vsel %vm4114_vm7, %v4151_v44, %v4153_v7 }
 0x556   : > { %3227 = vmatmul.mubr.bf16.gmra.mrb[16].mxu0 %v12294_v12 }
 0x557   : > { %v9049_v18 = vpop.f32.mrb[36].mxu1  ;;  %3233 = vmatprep.mubr.bf16.mxu0 %v12081_v32 }
 0x558   : > { %v3626_v36 = vpop.f32.mrb[37].mxu1  ;;  %v4158_v25 = vrot.slane %v9049_v18, 2 }
 0x559   : > { %v9050_v21 = vpop.f32.mrb[38].mxu1  ;;  %v4155_v55 = vrot.slane %v3626_v36, 2 }
 0x55a   : > { %v3629_v62 = vpop.f32.mrb[39].mxu1 }
 0x55b   : > { %v4156_v42 = vrot.slane %v3629_v62, 2 }
 0x55d   : > { %v12450_v60 = vsel %vm4114_vm7, %v4155_v55, %v4156_v42  ;;  %v12453_v57 = vsel %vm4114_vm7, %v4156_v42, %v4158_v25 }
 0x55e   : > { %3234 = vmatmul.mubr.bf16.gmra.mrb[20].mxu0 %v12101_v48 }
 0x55f   : > { %v9053_v50 = vpop.f32.mrb[40].mxu1  ;;  %3243 = vmatprep.mubr.bf16.mxu0 %v12081_v32 }
 0x560   : > { %v3641_v12 = vpop.f32.mrb[41].mxu1  ;;  %v4163_v46 = vrot.slane %v9053_v50, 2 }
 0x561   : > { %v9054_v38 = vpop.f32.mrb[42].mxu1  ;;  %v4160_v56 = vrot.slane %v3641_v12, 2 }
 0x562   : > { %v3644_v31 = vpop.f32.mrb[43].mxu1 }
 0x563   : > { %v4161_v7 = vrot.slane %v3644_v31, 2 }
 0x565   : > { %v12458_v28 = vsel %vm4114_vm7, %v4160_v56, %v4161_v7  ;;  %v12461_v44 = vsel %vm4114_vm7, %v4161_v7, %v4163_v46 }
 0x566   : > { %3244 = vmatmul.mubr.bf16.gmra.mrb[24].mxu0 %v12131_v0 }
 0x567   : > { %v9057_v18 = vpop.f32.mrb[44].mxu1  ;;  %3250 = vmatprep.mubr.bf16.mxu0 %v12081_v32 }
 0x568   : > { %v3656_v48 = vpop.f32.mrb[45].mxu1  ;;  %v4168_v62 = vrot.slane %v9057_v18, 2 }
 0x569   : > { %v9058_v36 = vpop.f32.mrb[46].mxu1  ;;  %v4165_v25 = vrot.slane %v3656_v48, 2 }
 0x56a   : > { %v3659_v21 = vpop.f32.mrb[47].mxu1 }
 0x56b   : > { %v4166_v55 = vrot.slane %v3659_v21, 2 }
 0x56d   : > { %v12466_v42 = vsel %vm4114_vm7, %v4165_v25, %v4166_v55  ;;  %v12469_v50 = vsel %vm4114_vm7, %v4166_v55, %v4168_v62 }
 0x56e   : > { %3251 = vmatmul.mubr.bf16.gmra.mrb[28].mxu0 %v12111_v4 }
 0x56f   : > { %v9061_v12 = vpop.f32.mrb[48].mxu1  ;;  %3260 = vmatprep.mubr.bf16.mxu0 %v12081_v32 }
 0x570   : > { %v3671_v0 = vpop.f32.mrb[49].mxu1  ;;  %v4173_v46 = vrot.slane %v9061_v12, 2 }
 0x571   : > { %v9062_v38 = vpop.f32.mrb[50].mxu1  ;;  %v4170_v56 = vrot.slane %v3671_v0, 2 }
 0x572   : > { %v3674_v31 = vpop.f32.mrb[51].mxu1 }
 0x573   : > { %v4171_v7 = vrot.slane %v3674_v31, 2 }
 0x575   : > { %v12474_v18 = vsel %vm4114_vm7, %v4170_v56, %v4171_v7  ;;  %v12477_v48 = vsel %vm4114_vm7, %v4171_v7, %v4173_v46 }
 0x576   : > { %3261 = vmatmul.mubr.bf16.gmra.mrb[32].mxu0 %v12137_v52 }
 0x577   : > { %v9065_v36 = vpop.f32.mrb[52].mxu1  ;;  %3267 = vmatprep.mubr.bf16.mxu0 %v12081_v32 }
 0x578   : > { %v3686_v4 = vpop.f32.mrb[53].mxu1  ;;  %v4178_v25 = vrot.slane %v9065_v36, 2 }
 0x579   : > { %v9066_v21 = vpop.f32.mrb[54].mxu1  ;;  %v4175_v55 = vrot.slane %v3686_v4, 2 }
 0x57a   : > { %v3689_v62 = vpop.f32.mrb[55].mxu1 }
 0x57b   : > { %v4176_v38 = vrot.slane %v3689_v62, 2 }
 0x57d   : > { %v12482_v12 = vsel %vm4114_vm7, %v4175_v55, %v4176_v38  ;;  %v12485_v0 = vsel %vm4114_vm7, %v4176_v38, %v4178_v25 }
 0x57e   : > { %3268 = vmatmul.mubr.bf16.gmra.mrb[36].mxu0 %v12122_v22 }
 0x57f   : > { %v9069_v31 = vpop.f32.mrb[56].mxu1  ;;  %3277 = vmatprep.mubr.bf16.mxu0 %v12081_v32 }
 0x580   : > { %v3701_v52 = vpop.f32.mrb[57].mxu1  ;;  %v4183_v7 = vrot.slane %v9069_v31, 2 }
 0x581   : > { %v9070_v46 = vpop.f32.mrb[58].mxu1  ;;  %v4180_v21 = vrot.slane %v3701_v52, 2 }
 0x582   : > { %v3704_v56 = vpop.f32.mrb[59].mxu1 }
 0x583   : > { %v4181_v8 = vrot.slane %v3704_v56, 2 }
 0x585   : > { %v12490_v36 = vsel %vm4114_vm7, %v4180_v21, %v4181_v8  ;;  %v12493_v4 = vsel %vm4114_vm7, %v4181_v8, %v4183_v7 }
 0x586   : > { %3278 = vmatmul.mubr.bf16.gmra.mrb[40].mxu0 %v12143_v26 }
 0x587   : > { %v9073_v62 = vpop.f32.mrb[60].mxu1  ;;  %3284 = vmatprep.mubr.bf16.mxu0 %v12081_v32 }
 0x588   : > { %v3716_v22 = vpop.f32.mrb[61].mxu1  ;;  %v4188_v38 = vrot.slane %v9073_v62, 2 }
 0x589   : > { %v9074_v25 = vpop.f32.mrb[62].mxu1  ;;  %v4185_v46 = vrot.slane %v3716_v22, 2 }
 0x58a   : > { %v3719_v55 = vpop.f32.mrb[63].mxu1 }
 0x58b   : > { %v4186_v11 = vrot.slane %v3719_v55, 2 }
 0x58d   : > { %v12498_v31 = vsel %vm4114_vm7, %v4185_v46, %v4186_v11  ;;  %v12501_v52 = vsel %vm4114_vm7, %v4186_v11, %v4188_v38  ;;  %v10763_v11 = vld [vmem:[#allocation2 + $0xa0] sm:$0xff] }
 0x58e   : > { %3285 = vmatmul.mubr.bf16.gmra.mrb[44].mxu0 %v12128_v29  ;;  %v10765_v29 = vld [vmem:[#allocation2 + $0xc0] sm:$0xff] }
 0x58f   : > { %v9077_v8 = vpop.f32.mrb[64].mxu1  ;;  %3294 = vmatprep.mubr.bf16.mxu0 %v12081_v32 }
 0x590   : > { %v3731_v26 = vpop.f32.mrb[65].mxu1  ;;  %v4193_v21 = vrot.slane %v9077_v8, 2 }
 0x591   : > { %v9078_v56 = vpop.f32.mrb[66].mxu1  ;;  %v4190_v25 = vrot.slane %v3731_v26, 2 }
 0x592   : > { %v3734_v7 = vpop.f32.mrb[67].mxu1 }
 0x593   : > { %v4191_v63 = vrot.slane %v3734_v7, 2 }
 0x595   : > { %v12506_v62 = vsel %vm4114_vm7, %v4190_v25, %v4191_v63  ;;  %v12509_v22 = vsel %vm4114_vm7, %v4191_v63, %v4193_v21  ;;  %v10764_v63 = vld [vmem:[#allocation2 + $0xb0] sm:$0xff] }
 0x596   : > { %3295 = vmatmul.mubr.bf16.gmra.mrb[48].mxu0 %v12149_v23  ;;  %v10766_v23 = vld [vmem:[#allocation2 + $0xd0] sm:$0xff] }
 0x597   : > { %3301 = vmatprep.mubr.bf16.mxu0 %v12081_v32 }
 0x59e   : > { %3302 = vmatmul.mubr.bf16.gmra.mrb[52].mxu0 %v12313_v41 }
 0x59f   : > { %3311 = vmatprep.mubr.bf16.mxu0 %v12081_v32 }
 0x5a6   : > { %3312 = vmatmul.mubr.bf16.gmra.mrb[56].mxu0 %v12155_v33 }
 0x5a7   : > { %3318 = vmatprep.mubr.bf16.mxu0 %v12081_v32 }
 0x5ae   : > { %3319 = vmatmul.mubr.bf16.gmra.mrb[60].mxu0 %v12363_v49 }
 0x5af   : > { %3328 = vmatprep.mubr.bf16.mxu0 %v12081_v32 }
 0x5b6   : > { %3329 = vmatmul.mubr.bf16.gmra.mrb[64].mxu0 %v12161_v10 }
 0x5b7   : > { %3335 = vmatprep.mubr.bf16.mxu0 %v12081_v32 }
 0x5be   : > { %3336 = vmatmul.mubr.bf16.gmra.mrb[68].mxu0 %v10763_v11  ;;  %v4337_v11 = vld [vmem:[#allocation6 + $0x8] sm:$0xff] }
 0x5bf   : > { %3345 = vmatprep.mubr.bf16.mxu0 %v12081_v32 }
 0x5c6   : > { %3346 = vmatmul.mubr.bf16.gmra.mrb[72].mxu0 %v12167_v19 }
 0x5c7   : > { %3352 = vmatprep.mubr.bf16.mxu0 %v12081_v32 }
 0x5ce   : > { %3353 = vmatmul.mubr.bf16.gmra.mrb[76].mxu0 %v10764_v63 }
 0x5cf   : > { %3362 = vmatprep.mubr.bf16.mxu0 %v12081_v32 }
 0x5d6   : > { %3363 = vmatmul.mubr.bf16.gmra.mrb[80].mxu0 %v12173_v40 }
 0x5d7   : > { %3369 = vmatprep.mubr.bf16.mxu0 %v12081_v32 }
 0x5de   : > { %3370 = vmatmul.mubr.bf16.gmra.mrb[84].mxu0 %v10765_v29 }
 0x5df   : > { %3379 = vmatprep.mubr.bf16.mxu0 %v12081_v32 }
 0x5e6   : > { %3380 = vmatmul.mubr.bf16.gmra.mrb[88].mxu0 %v12179_v1 }
 0x5e7   : > { %3386 = vmatprep.mubr.bf16.mxu0 %v12081_v32 }
 0x5ee   : > { %3387 = vmatmul.mubr.bf16.gmra.mrb[92].mxu0 %v10766_v23 }
 0x5ef   : > { %3396 = vmatprep.mubr.bf16.mxu0 %v12081_v32 }
 0x5f6   : > { %3397 = vmatmul.mubr.bf16.gmra.mrb[96].mxu0 %v12185_v34 }
 0x5f7   : > { %3403 = vmatprep.mubr.bf16.mxu0 %v12081_v32 }
 0x5fe   : > { %3404 = vmatmul.mubr.bf16.gmra.mrb[100].mxu0 %v12267_v58 }
 0x5ff   : > { %3413 = vmatprep.mubr.bf16.mxu0 %v12081_v32 }
 0x606   : > { %3414 = vmatmul.mubr.bf16.gmra.mrb[104].mxu0 %v12191_v24 }
 0x607   : > { %3420 = vmatprep.mubr.bf16.mxu0 %v12081_v32 }
 0x60e   : > { %3421 = vmatmul.mubr.bf16.gmra.mrb[108].mxu0 %v12273_v35 }
 0x60f   : > { %3430 = vmatprep.mubr.bf16.mxu0 %v12081_v32 }
 0x611   : > { %v3201_v33 = vpop.f32.mrb[4].mxu0 }
 0x612   : > { %v3203_v10 = vpop.f32.mrb[5].mxu0 }
 0x613   : > { %v3205_v19 = vpop.f32.mrb[6].mxu0  ;;  %v3922_v1 = vrot.slane %v3203_v10, 1 }
 0x614   : > { %v3207_v40 = vpop.f32.mrb[7].mxu0 }
 0x615   : > { %v3923_v34 = vrot.slane %v3207_v40, 1 }
 0x616   : > { %3431 = vmatmul.mubr.bf16.gmra.mrb[112].mxu0 %v12197_v16 }
 0x617   : > { %v3924_v58 = vsel %vm3921_vm8, %v3922_v1, %v3923_v34  ;;  %3437 = vmatprep.mubr.bf16.mxu0 %v12081_v32 }
 0x618   : > { %v4034_v24 = vadd.f32 %v3924_v58, %v3201_v33 }
 0x619   : > { %v3211_v41 = vpop.f32.mrb[8].mxu0 }
 0x61a   : > { %v12543_v49 = vadd.f32 %v12386_v9, %v4034_v24  ;;  %v3212_v35 = vpop.f32.mrb[9].mxu0  ;;  %v4336_v9 = vld [vmem:[#allocation6] sm:$0xff] }
 0x61b   : > { %v3925_v55 = vrot.slane %v3212_v35, 1  ;;  %v3214_v38 = vpop.f32.mrb[10].mxu0  ;;  %v12551_v23 = vpack.c.bf16 %v4337_v11, %v4336_v9 }
 0x61c   : > { %v3215_v46 = vpop.f32.mrb[11].mxu0 }
 0x61d   : > { %v3926_v8 = vsel %vm3921_vm8, %v3923_v34, %v3925_v55  ;;  %9439 = vmatpush3.bf16.msra.mxu1 %v12551_v23  ;;  %v4339_v46 = vld [vmem:[#allocation6 + $0x18] sm:$0xff] }
 0x61e   : > { %v4035_v26 = vadd.f32 %v3926_v8, %v3205_v19  ;;  %3438 = vmatmul.mubr.bf16.gmra.mrb[116].mxu0 %v12200_v43  ;;  %9440 = vmatprep.subr.bf16.mxu1 %v14553_v13 }
 0x61f   : > { %3447 = vmatprep.mubr.bf16.mxu0 %v12081_v32 }
 0x620   : > { %v12549_v16 = vadd.f32 %v12389_v39, %v4035_v26 }
 0x621   : > { %v3218_v56 = vpop.f32.mrb[12].mxu0 }
 0x622   : > { %v3220_v7 = vpop.f32.mrb[13].mxu0 }
 0x623   : > { %v3222_v21 = vpop.f32.mrb[14].mxu0  ;;  %v3927_v63 = vrot.slane %v3220_v7, 1  ;;  %v10767_v7 = vld [vmem:[#allocation2 + $0x8] sm:$0xff] }
 0x624   : > { %v3224_v25 = vpop.f32.mrb[15].mxu0 }
 0x625   : > { %v3928_v29 = vrot.slane %v3224_v25, 1 }
 0x626   : > { %3448 = vmatmul.mubr.bf16.gmra.mrb[120].mxu0 %v12207_v2 }
 0x627   : > { %v3929_v33 = vsel %vm3921_vm8, %v3927_v63, %v3928_v29  ;;  %3454 = vmatprep.mubr.bf16.mxu0 %v12081_v32 }
 0x628   : > { %v4036_v43 = vadd.f32 %v3929_v33, %v3218_v56 }
 0x629   : > { %v3228_v39 = vpop.f32.mrb[16].mxu0 }
 0x62a   : > { %v12559_v10 = vadd.f32 %v12394_v15, %v4036_v43  ;;  %v3229_v19 = vpop.f32.mrb[17].mxu0  ;;  %v4338_v15 = vld [vmem:[#allocation6 + $0x10] sm:$0xff] }
 0x62b   : > { %v3930_v40 = vrot.slane %v3229_v19, 1  ;;  %v3231_v1 = vpop.f32.mrb[18].mxu0  ;;  %v12567_v56 = vpack.c.bf16 %v4339_v46, %v4338_v15 }
 0x62c   : > { %v3232_v34 = vpop.f32.mrb[19].mxu0 }
 0x62d   : > { %v3931_v58 = vsel %vm3921_vm8, %v3928_v29, %v3930_v40  ;;  %9442 = vmatpush3.bf16.msra.mxu1 %v12567_v56 }
 0x62e   : > { %v4037_v2 = vadd.f32 %v3931_v58, %v3222_v21  ;;  %3455 = vmatmul.mubr.bf16.gmra.mrb[124].mxu0 %v12350_v45  ;;  %9443 = vmatprep.subr.bf16.mxu1 %v14553_v13  ;;  %v4340_v58 = vld [vmem:[#allocation6 + $0x20] sm:$0xff] }
 0x62f   : > { %3464 = vmatprep.mubr.bf16.mxu0 %v12081_v32 }
 0x630   : > { %v12565_v24 = vadd.f32 %v12397_v59, %v4037_v2  ;;  %v4341_v2 = vld [vmem:[#allocation6 + $0x28] sm:$0xff] }
 0x631   : > { %v3235_v41 = vpop.f32.mrb[20].mxu0 }
 0x632   : > { %v3237_v35 = vpop.f32.mrb[21].mxu0 }
 0x633   : > { %v3239_v55 = vpop.f32.mrb[22].mxu0  ;;  %v3932_v8 = vrot.slane %v3237_v35, 1 }
 0x634   : > { %v3241_v38 = vpop.f32.mrb[23].mxu0 }
 0x635   : > { %v3933_v26 = vrot.slane %v3241_v38, 1 }
 0x636   : > { %3465 = vmatmul.mubr.bf16.gmra.mrb[128].mxu0 %v10767_v7 }
 0x637   : > { %v3934_v21 = vsel %vm3921_vm8, %v3932_v8, %v3933_v26  ;;  %5442 = vmatprep.mubr.bf16.mxu0 %v12081_v32 }
 0x638   : > { %v4038_v45 = vadd.f32 %v3934_v21, %v3235_v41 }
 0x639   : > { %v3245_v59 = vpop.f32.mrb[24].mxu0 }
 0x63a   : > { %v12574_v25 = vadd.f32 %v12402_v37, %v4038_v45  ;;  %v3246_v9 = vpop.f32.mrb[25].mxu0  ;;  %v12580_v37 = vpack.c.bf16 %v4341_v2, %v4340_v58 }
 0x63b   : > { %v3935_v11 = vrot.slane %v3246_v9, 1  ;;  %v3248_v63 = vpop.f32.mrb[26].mxu0 }
 0x63c   : > { %v3249_v29 = vpop.f32.mrb[27].mxu0  ;;  %9445 = vmatpush3.bf16.msra.mxu1 %v12580_v37 }
 0x63d   : > { %v3936_v33 = vsel %vm3921_vm8, %v3933_v26, %v3935_v11  ;;  %9446 = vmatprep.subr.bf16.mxu1 %v14553_v13 }
 0x63e   : > { %v4039_v43 = vadd.f32 %v3936_v33, %v3239_v55  ;;  %v4342_v33 = vld [vmem:[#allocation6 + $0x30] sm:$0xff] }
 0x640   : > { %v12578_v39 = vadd.f32 %v12405_v27, %v4039_v43  ;;  %v4343_v43 = vld [vmem:[#allocation6 + $0x38] sm:$0xff] }
 0x641   : > { %v3252_v19 = vpop.f32.mrb[28].mxu0 }
 0x642   : > { %v3254_v40 = vpop.f32.mrb[29].mxu0 }
 0x643   : > { %v3256_v1 = vpop.f32.mrb[30].mxu0  ;;  %v3937_v41 = vrot.slane %v3254_v40, 1 }
 0x644   : > { %v3258_v34 = vpop.f32.mrb[31].mxu0 }
 0x645   : > { %v3938_v35 = vrot.slane %v3258_v34, 1 }
 0x647   : > { %v3939_v38 = vsel %vm3921_vm8, %v3937_v41, %v3938_v35 }
 0x648   : > { %v4040_v15 = vadd.f32 %v3939_v38, %v3252_v19 }
 0x649   : > { %v3262_v55 = vpop.f32.mrb[32].mxu0 }
 0x64a   : > { %v12586_v27 = vadd.f32 %v12410_v3, %v4040_v15  ;;  %v3263_v46 = vpop.f32.mrb[33].mxu0  ;;  %v12592_v3 = vpack.c.bf16 %v4343_v43, %v4342_v33 }
 0x64b   : > { %v3940_v8 = vrot.slane %v3263_v46, 1  ;;  %v3265_v26 = vpop.f32.mrb[34].mxu0 }
 0x64c   : > { %v3266_v7 = vpop.f32.mrb[35].mxu0  ;;  %9448 = vmatpush3.bf16.msra.mxu1 %v12592_v3 }
 0x64d   : > { %v3941_v21 = vsel %vm3921_vm8, %v3938_v35, %v3940_v8  ;;  %9449 = vmatprep.subr.bf16.mxu1 %v14553_v13 }
 0x64e   : > { %v4041_v45 = vadd.f32 %v3941_v21, %v3256_v1 }
 0x650   : > { %v12590_v59 = vadd.f32 %v12413_v20, %v4041_v45  ;;  %v4344_v45 = vld [vmem:[#allocation6 + $0x40] sm:$0xff] }
 0x651   : > { %v3269_v9 = vpop.f32.mrb[36].mxu0 }
 0x652   : > { %v3271_v11 = vpop.f32.mrb[37].mxu0 }
 0x653   : > { %v3273_v63 = vpop.f32.mrb[38].mxu0  ;;  %v3942_v19 = vrot.slane %v3271_v11, 1 }
 0x654   : > { %v3275_v29 = vpop.f32.mrb[39].mxu0 }
 0x655   : > { %v3943_v40 = vrot.slane %v3275_v29, 1 }
 0x657   : > { %v3944_v34 = vsel %vm3921_vm8, %v3942_v19, %v3943_v40 }
 0x658   : > { %v4042_v58 = vadd.f32 %v3944_v34, %v3269_v9  ;;  %v4345_v9 = vld [vmem:[#allocation6 + $0x48] sm:$0xff] }
 0x659   : > { %v3279_v1 = vpop.f32.mrb[40].mxu0 }
 0x65a   : > { %v12598_v20 = vadd.f32 %v12418_v30, %v4042_v58  ;;  %v3280_v2 = vpop.f32.mrb[41].mxu0  ;;  %v12604_v30 = vpack.c.bf16 %v4345_v9, %v4344_v45 }
 0x65b   : > { %v3945_v41 = vrot.slane %v3280_v2, 1  ;;  %v3282_v35 = vpop.f32.mrb[42].mxu0 }
 0x65c   : > { %v3283_v38 = vpop.f32.mrb[43].mxu0  ;;  %9451 = vmatpush3.bf16.msra.mxu1 %v12604_v30 }
 0x65d   : > { %v3946_v15 = vsel %vm3921_vm8, %v3943_v40, %v3945_v41  ;;  %9452 = vmatprep.subr.bf16.mxu1 %v14553_v13 }
 0x65e   : > { %v4043_v55 = vadd.f32 %v3946_v15, %v3273_v63 }
 0x660   : > { %v12602_v46 = vadd.f32 %v12421_v47, %v4043_v55 }
 0x661   : > { %v3286_v8 = vpop.f32.mrb[44].mxu0 }
 0x662   : > { %v3288_v26 = vpop.f32.mrb[45].mxu0 }
 0x663   : > { %v3290_v7 = vpop.f32.mrb[46].mxu0  ;;  %v3947_v11 = vrot.slane %v3288_v26, 1  ;;  %v4347_v26 = vld [vmem:[#allocation6 + $0x58] sm:$0xff] }
 0x664   : > { %v3292_v21 = vpop.f32.mrb[47].mxu0 }
 0x665   : > { %v3948_v29 = vrot.slane %v3292_v21, 1 }
 0x667   : > { %v3949_v33 = vsel %vm3921_vm8, %v3947_v11, %v3948_v29 }
 0x668   : > { %v4044_v43 = vadd.f32 %v3949_v33, %v3286_v8  ;;  %v4346_v8 = vld [vmem:[#allocation6 + $0x50] sm:$0xff] }
 0x669   : > { %v3296_v63 = vpop.f32.mrb[48].mxu0 }
 0x66a   : > { %v12610_v47 = vadd.f32 %v12426_v53, %v4044_v43  ;;  %v3297_v19 = vpop.f32.mrb[49].mxu0  ;;  %v12616_v53 = vpack.c.bf16 %v4347_v26, %v4346_v8 }
 0x66b   : > { %v3950_v40 = vrot.slane %v3297_v19, 1  ;;  %v3299_v34 = vpop.f32.mrb[50].mxu0 }
 0x66c   : > { %v3300_v58 = vpop.f32.mrb[51].mxu0  ;;  %9454 = vmatpush3.bf16.msra.mxu1 %v12616_v53 }
 0x66d   : > { %v3951_v1 = vsel %vm3921_vm8, %v3948_v29, %v3950_v40  ;;  %9455 = vmatprep.subr.bf16.mxu1 %v14553_v13 }
 0x66e   : > { %v4045_v2 = vadd.f32 %v3951_v1, %v3290_v7 }
 0x670   : > { %v12614_v41 = vadd.f32 %v12429_v17, %v4045_v2 }
 0x671   : > { %v3303_v35 = vpop.f32.mrb[52].mxu0 }
 0x672   : > { %v3305_v38 = vpop.f32.mrb[53].mxu0 }
 0x673   : > { %v3307_v15 = vpop.f32.mrb[54].mxu0  ;;  %v3952_v21 = vrot.slane %v3305_v38, 1  ;;  %v4348_v38 = vld [vmem:[#allocation6 + $0x60] sm:$0xff] }
 0x674   : > { %v3309_v55 = vpop.f32.mrb[55].mxu0 }
 0x675   : > { %v3953_v45 = vrot.slane %v3309_v55, 1  ;;  %v4349_v55 = vld [vmem:[#allocation6 + $0x68] sm:$0xff] }
 0x677   : > { %v3954_v9 = vsel %vm3921_vm8, %v3952_v21, %v3953_v45 }
 0x678   : > { %v4046_v11 = vadd.f32 %v3954_v9, %v3303_v35 }
 0x679   : > { %v3313_v7 = vpop.f32.mrb[56].mxu0 }
 0x67a   : > { %v12622_v17 = vadd.f32 %v12434_v14, %v4046_v11  ;;  %v3314_v29 = vpop.f32.mrb[57].mxu0  ;;  %v12628_v14 = vpack.c.bf16 %v4349_v55, %v4348_v38 }
 0x67b   : > { %v3955_v33 = vrot.slane %v3314_v29, 1  ;;  %v3316_v43 = vpop.f32.mrb[58].mxu0 }
 0x67c   : > { %v3317_v63 = vpop.f32.mrb[59].mxu0  ;;  %9457 = vmatpush3.bf16.msra.mxu1 %v12628_v14 }
 0x67d   : > { %v3956_v19 = vsel %vm3921_vm8, %v3953_v45, %v3955_v33  ;;  %9458 = vmatprep.subr.bf16.mxu1 %v14553_v13 }
 0x67e   : > { %v4047_v40 = vadd.f32 %v3956_v19, %v3307_v15 }
 0x680   : > { %v12626_v34 = vadd.f32 %v12437_v5, %v4047_v40 }
 0x681   : > { %v3320_v58 = vpop.f32.mrb[60].mxu0 }
 0x682   : > { %v3322_v1 = vpop.f32.mrb[61].mxu0 }
 0x683   : > { %v3324_v2 = vpop.f32.mrb[62].mxu0  ;;  %v3957_v8 = vrot.slane %v3322_v1, 1 }
 0x684   : > { %v3326_v35 = vpop.f32.mrb[63].mxu0 }
 0x685   : > { %v3958_v26 = vrot.slane %v3326_v35, 1 }
 0x687   : > { %v3959_v21 = vsel %vm3921_vm8, %v3957_v8, %v3958_v26  ;;  %v4350_v8 = vld [vmem:[#allocation6 + $0x70] sm:$0xff] }
 0x688   : > { %v4048_v9 = vadd.f32 %v3959_v21, %v3320_v58  ;;  %v4351_v21 = vld [vmem:[#allocation6 + $0x78] sm:$0xff] }
 0x689   : > { %v3330_v15 = vpop.f32.mrb[64].mxu0 }
 0x68a   : > { %v12634_v5 = vadd.f32 %v12442_v61, %v4048_v9  ;;  %v3331_v45 = vpop.f32.mrb[65].mxu0  ;;  %v12641_v15 = vpack.c.bf16 %v4351_v21, %v4350_v8 }
 0x68b   : > { %v3960_v11 = vrot.slane %v3331_v45, 1  ;;  %v3333_v7 = vpop.f32.mrb[66].mxu0 }
 0x68c   : > { %v3334_v29 = vpop.f32.mrb[67].mxu0  ;;  %9460 = vmatpush3.bf16.msra.mxu1 %v12641_v15 }
 0x68d   : > { %v3961_v33 = vsel %vm3921_vm8, %v3958_v26, %v3960_v11  ;;  %9461 = vmatprep.subr.bf16.mxu1 %v14553_v13 }
 0x68e   : > { %v4049_v43 = vadd.f32 %v3961_v33, %v3324_v2 }
 0x690   : > { %v12638_v63 = vadd.f32 %v12445_v51, %v4049_v43 }
 0x691   : > { %v3337_v19 = vpop.f32.mrb[68].mxu0 }
 0x692   : > { %v3339_v40 = vpop.f32.mrb[69].mxu0 }
 0x693   : > { %v3341_v1 = vpop.f32.mrb[70].mxu0  ;;  %v3962_v35 = vrot.slane %v3339_v40, 1 }
 0x694   : > { %v3343_v58 = vpop.f32.mrb[71].mxu0 }
 0x695   : > { %v3963_v38 = vrot.slane %v3343_v58, 1 }
 0x697   : > { %v3964_v55 = vsel %vm3921_vm8, %v3962_v35, %v3963_v38 }
 0x698   : > { %v4050_v61 = vadd.f32 %v3964_v55, %v3337_v19 }
 0x699   : > { %v3347_v9 = vpop.f32.mrb[72].mxu0 }
 0x69a   : > { %v12644_v26 = vadd.f32 %v12450_v60, %v4050_v61  ;;  %v3348_v2 = vpop.f32.mrb[73].mxu0 }
 0x69b   : > { %v3965_v51 = vrot.slane %v3348_v2, 1  ;;  %v3350_v45 = vpop.f32.mrb[74].mxu0 }
 0x69c   : > { %v3351_v11 = vpop.f32.mrb[75].mxu0 }
 0x69d   : > { %v3966_v7 = vsel %vm3921_vm8, %v3963_v38, %v3965_v51 }
 0x69e   : > { %v4051_v29 = vadd.f32 %v3966_v7, %v3341_v1 }
 0x6a0   : > { %v12650_v33 = vadd.f32 %v12453_v57, %v4051_v29 }
 0x6a1   : > { %v3354_v43 = vpop.f32.mrb[76].mxu0 }
 0x6a2   : > { %v3356_v19 = vpop.f32.mrb[77].mxu0 }
 0x6a3   : > { %v3358_v40 = vpop.f32.mrb[78].mxu0  ;;  %v3967_v60 = vrot.slane %v3356_v19, 1 }
 0x6a4   : > { %v3360_v58 = vpop.f32.mrb[79].mxu0 }
 0x6a5   : > { %v3968_v35 = vrot.slane %v3360_v58, 1 }
 0x6a7   : > { %v3969_v55 = vsel %vm3921_vm8, %v3967_v60, %v3968_v35 }
 0x6a8   : > { %v4052_v61 = vadd.f32 %v3969_v55, %v3354_v43 }
 0x6a9   : > { %v3364_v8 = vpop.f32.mrb[80].mxu0 }
 0x6aa   : > { %v12654_v21 = vadd.f32 %v12458_v28, %v4052_v61  ;;  %v3365_v9 = vpop.f32.mrb[81].mxu0 }
 0x6ab   : > { %v3970_v2 = vrot.slane %v3365_v9, 1  ;;  %v3367_v38 = vpop.f32.mrb[82].mxu0 }
 0x6ac   : > { %v3368_v1 = vpop.f32.mrb[83].mxu0 }
 0x6ad   : > { %v3971_v57 = vsel %vm3921_vm8, %v3968_v35, %v3970_v2 }
 0x6ae   : > { %v4053_v51 = vadd.f32 %v3971_v57, %v3358_v40 }
 0x6b0   : > { %v12658_v45 = vadd.f32 %v12461_v44, %v4053_v51 }
 0x6b1   : > { %v3371_v11 = vpop.f32.mrb[84].mxu0 }
 0x6b2   : > { %v3373_v7 = vpop.f32.mrb[85].mxu0 }
 0x6b3   : > { %v3375_v29 = vpop.f32.mrb[86].mxu0  ;;  %v3972_v58 = vrot.slane %v3373_v7, 1 }
 0x6b4   : > { %v3377_v19 = vpop.f32.mrb[87].mxu0 }
 0x6b5   : > { %v3973_v43 = vrot.slane %v3377_v19, 1 }
 0x6b7   : > { %v3974_v60 = vsel %vm3921_vm8, %v3972_v58, %v3973_v43 }
 0x6b8   : > { %v4054_v28 = vadd.f32 %v3974_v60, %v3371_v11 }
 0x6b9   : > { %v3381_v55 = vpop.f32.mrb[88].mxu0 }
 0x6ba   : > { %v12662_v61 = vadd.f32 %v12466_v42, %v4054_v28  ;;  %v3382_v8 = vpop.f32.mrb[89].mxu0 }
 0x6bb   : > { %v3975_v9 = vrot.slane %v3382_v8, 1  ;;  %v3384_v35 = vpop.f32.mrb[90].mxu0 }
 0x6bc   : > { %v3385_v40 = vpop.f32.mrb[91].mxu0 }
 0x6bd   : > { %v3976_v44 = vsel %vm3921_vm8, %v3973_v43, %v3975_v9 }
 0x6be   : > { %v4055_v2 = vadd.f32 %v3976_v44, %v3375_v29 }
 0x6c0   : > { %v12666_v38 = vadd.f32 %v12469_v50, %v4055_v2  ;;  %v12679_v2 = vld [vmem:[%s14485_s5] ss:$0 sm:$0xff] }
 0x6c1   : > { %v3388_v1 = vpop.f32.mrb[92].mxu0 }
 0x6c2   : > { %v3390_v57 = vpop.f32.mrb[93].mxu0 }
 0x6c3   : > { %v3392_v51 = vpop.f32.mrb[94].mxu0  ;;  %v3977_v19 = vrot.slane %v3390_v57, 1 }
 0x6c4   : > { %v3394_v7 = vpop.f32.mrb[95].mxu0 }
 0x6c5   : > { %v3978_v11 = vrot.slane %v3394_v7, 1 }
 0x6c7   : > { %v3979_v58 = vsel %vm3921_vm8, %v3977_v19, %v3978_v11 }
 0x6c8   : > { %v4056_v42 = vadd.f32 %v3979_v58, %v3388_v1 }
 0x6c9   : > { %v3398_v60 = vpop.f32.mrb[96].mxu0 }
 0x6ca   : > { %v12670_v28 = vadd.f32 %v12474_v18, %v4056_v42  ;;  %v3399_v55 = vpop.f32.mrb[97].mxu0  ;;  %v12683_v18 = vadd.f32 %v12679_v2, %v12549_v16  ;;  %v12698_v16 = vadd.f32 %v12679_v2, %v12565_v24  ;;  %v12711_v24 = vadd.f32 %v12679_v2, %v12578_v39 }
 0x6cb   : > { %v3980_v8 = vrot.slane %v3399_v55, 1  ;;  %v3401_v43 = vpop.f32.mrb[98].mxu0 }
 0x6cc   : > { %v3402_v29 = vpop.f32.mrb[99].mxu0 }
 0x6cd   : > { %v3981_v50 = vsel %vm3921_vm8, %v3978_v11, %v3980_v8 }
 0x6ce   : > { %v4057_v9 = vadd.f32 %v3981_v50, %v3392_v51  ;;  %v12687_v51 = vadd.f32 %v12679_v2, %v12543_v49  ;;  %v12703_v49 = vadd.f32 %v12679_v2, %v12574_v25  ;;  %v12717_v25 = vadd.f32 %v12679_v2, %v12586_v27 }
 0x6d0   : > { %v12674_v35 = vadd.f32 %v12477_v48, %v4057_v9  ;;  %v12691_v48 = vadd.f32 %v12679_v2, %v12559_v10  ;;  %v4299_v58 = vadd.f32 %v12683_v18, %v12687_v51 }
 0x6d1   : > { %v3405_v40 = vpop.f32.mrb[100].mxu0 }
 0x6d2   : > { %v3407_v44 = vpop.f32.mrb[101].mxu0  ;;  %v4300_v55 = vadd.f32 %v4299_v58, %v12691_v48 }
 0x6d3   : > { %v3409_v1 = vpop.f32.mrb[102].mxu0  ;;  %v3982_v7 = vrot.slane %v3407_v44, 1 }
 0x6d4   : > { %v3411_v57 = vpop.f32.mrb[103].mxu0  ;;  %v4301_v50 = vadd.f32 %v4300_v55, %v12698_v16 }
 0x6d5   : > { %v3983_v19 = vrot.slane %v3411_v57, 1 }
 0x6d6   : > { %v4302_v44 = vadd.f32 %v4301_v50, %v12703_v49  ;;  %v12746_v50 = vadd.f32 %v12679_v2, %v12614_v41 }
 0x6d7   : > { %v3984_v11 = vsel %vm3921_vm8, %v3982_v7, %v3983_v19  ;;  %v12722_v7 = vadd.f32 %v12679_v2, %v12590_v59 }
 0x6d8   : > { %v4058_v42 = vadd.f32 %v3984_v11, %v3405_v40  ;;  %v4303_v57 = vadd.f32 %v4302_v44, %v12711_v24  ;;  %v12751_v44 = vadd.f32 %v12679_v2, %v12622_v17  ;;  %v12763_v17 = vadd.f32 %v12679_v2, %v12634_v5 }
 0x6d9   : > { %v3415_v60 = vpop.f32.mrb[104].mxu0 }
 0x6da   : > { %v12706_v10 = vadd.f32 %v12482_v12, %v4058_v42  ;;  %v3416_v8 = vpop.f32.mrb[105].mxu0  ;;  %v4304_v58 = vadd.f32 %v4303_v57, %v12717_v25  ;;  %v12735_v60 = vadd.f32 %v12679_v2, %v12602_v46 }
 0x6db   : > { %v3985_v43 = vrot.slane %v3416_v8, 1  ;;  %v3418_v29 = vpop.f32.mrb[106].mxu0 }
 0x6dc   : > { %v3419_v9 = vpop.f32.mrb[107].mxu0 }
 0x6dd   : > { %v3986_v40 = vsel %vm3921_vm8, %v3983_v19, %v3985_v43  ;;  %v12730_v19 = vadd.f32 %v12679_v2, %v12598_v20  ;;  %v12740_v43 = vadd.f32 %v12679_v2, %v12610_v47 }
 0x6de   : > { %v4059_v12 = vadd.f32 %v3986_v40, %v3409_v1  ;;  %v4305_v1 = vadd.f32 %v4304_v58, %v12722_v7 }
 0x6e0   : > { %v12725_v11 = vadd.f32 %v12485_v0, %v4059_v12  ;;  %v4306_v0 = vadd.f32 %v4305_v1, %v12730_v19  ;;  %v12757_v1 = vadd.f32 %v12679_v2, %v12626_v34 }
 0x6e1   : > { %v3422_v39 = vpop.f32.mrb[108].mxu0 }
 0x6e2   : > { %v3424_v42 = vpop.f32.mrb[109].mxu0  ;;  %v4307_v29 = vadd.f32 %v4306_v0, %v12735_v60  ;;  %v12768_v0 = vadd.f32 %v12679_v2, %v12638_v63 }
 0x6e3   : > { %v3426_v27 = vpop.f32.mrb[110].mxu0  ;;  %v3987_v55 = vrot.slane %v3424_v42, 1 }
 0x6e4   : > { %v3428_v59 = vpop.f32.mrb[111].mxu0  ;;  %v4308_v40 = vadd.f32 %v4307_v29, %v12740_v43 }
 0x6e5   : > { %v3988_v8 = vrot.slane %v3428_v59, 1 }
 0x6e6   : > { %v4309_v42 = vadd.f32 %v4308_v40, %v12746_v50 }
 0x6e7   : > { %v3989_v20 = vsel %vm3921_vm8, %v3987_v55, %v3988_v8 }
 0x6e8   : > { %v4060_v9 = vadd.f32 %v3989_v20, %v3422_v39  ;;  %v4310_v59 = vadd.f32 %v4309_v42, %v12751_v44  ;;  %v12790_v42 = vadd.f32 %v12679_v2, %v12658_v45 }
 0x6e9   : > { %v3432_v46 = vpop.f32.mrb[112].mxu0 }
 0x6ea   : > { %v4253_v12 = vadd.f32 %v12490_v36, %v4060_v9  ;;  %v3433_v47 = vpop.f32.mrb[113].mxu0  ;;  %v4311_v36 = vadd.f32 %v4310_v59, %v12757_v1  ;;  %v12795_v59 = vadd.f32 %v12679_v2, %v12662_v61  ;;  %v12807_v61 = vadd.f32 %v12679_v2, %v12670_v28 }
 0x6eb   : > { %v3990_v57 = vrot.slane %v3433_v47, 1  ;;  %v3435_v58 = vpop.f32.mrb[114].mxu0 }
 0x6ec   : > { %v3436_v41 = vpop.f32.mrb[115].mxu0  ;;  %v4312_v29 = vadd.f32 %v4311_v36, %v12763_v17 }
 0x6ed   : > { %v3991_v39 = vsel %vm3921_vm8, %v3988_v8, %v3990_v57  ;;  %v12774_v8 = vadd.f32 %v12679_v2, %v12644_v26  ;;  %v12784_v57 = vadd.f32 %v12679_v2, %v12654_v21 }
 0x6ee   : > { %v4061_v55 = vadd.f32 %v3991_v39, %v3426_v27  ;;  %v4313_v5 = vadd.f32 %v4312_v29, %v12768_v0  ;;  %v12779_v27 = vadd.f32 %v12679_v2, %v12650_v33 }
 0x6f0   : > { %v4254_v20 = vadd.f32 %v12493_v4, %v4061_v55  ;;  %v4314_v4 = vadd.f32 %v4313_v5, %v12774_v8  ;;  %v12801_v5 = vadd.f32 %v12679_v2, %v12666_v38 }
 0x6f1   : > { %v3439_v34 = vpop.f32.mrb[116].mxu0 }
 0x6f2   : > { %v3441_v9 = vpop.f32.mrb[117].mxu0  ;;  %v4315_v58 = vadd.f32 %v4314_v4, %v12779_v27  ;;  %v12812_v4 = vadd.f32 %v12679_v2, %v12674_v35 }
 0x6f3   : > { %v3443_v46 = vpop.f32.mrb[118].mxu0  ;;  %v3992_v63 = vrot.slane %v3441_v9, 1 }
 0x6f4   : > { %v3445_v40 = vpop.f32.mrb[119].mxu0  ;;  %v4316_v39 = vadd.f32 %v4315_v58, %v12784_v57 }
 0x6f5   : > { %v3993_v47 = vrot.slane %v3445_v40, 1 }
 0x6f6   : > { %v4317_v9 = vadd.f32 %v4316_v39, %v12790_v42 }
 0x6f7   : > { %v3994_v26 = vsel %vm3921_vm8, %v3992_v63, %v3993_v47 }
 0x6f8   : > { %v4062_v41 = vadd.f32 %v3994_v26, %v3439_v34  ;;  %v4318_v40 = vadd.f32 %v4317_v9, %v12795_v59  ;;  %v12832_v9 = vadd.f32 %v12679_v2, %v4254_v20 }
 0x6f9   : > { %v3449_v33 = vpop.f32.mrb[120].mxu0 }
 0x6fa   : > { %v4255_v55 = vadd.f32 %v12498_v31, %v4062_v41  ;;  %v3450_v21 = vpop.f32.mrb[121].mxu0  ;;  %v4319_v31 = vadd.f32 %v4318_v40, %v12801_v5 }
 0x6fb   : > { %v3995_v36 = vrot.slane %v3450_v21, 1  ;;  %v3452_v29 = vpop.f32.mrb[122].mxu0 }
 0x6fc   : > { %v3453_v45 = vpop.f32.mrb[123].mxu0  ;;  %v4320_v58 = vadd.f32 %v4319_v31, %v12807_v61  ;;  %v12836_v40 = vadd.f32 %v12679_v2, %v4255_v55 }
 0x6fd   : > { %v3996_v34 = vsel %vm3921_vm8, %v3993_v47, %v3995_v36  ;;  %v12818_v47 = vadd.f32 %v12679_v2, %v12706_v10  ;;  %v12827_v36 = vadd.f32 %v12679_v2, %v4253_v12 }
 0x6fe   : > { %v4063_v63 = vadd.f32 %v3996_v34, %v3443_v46  ;;  %v4321_v28 = vadd.f32 %v4320_v58, %v12812_v4  ;;  %v12823_v46 = vadd.f32 %v12679_v2, %v12725_v11 }
 0x700   : > { %v4256_v26 = vadd.f32 %v12501_v52, %v4063_v63  ;;  %v4322_v52 = vadd.f32 %v4321_v28, %v12818_v47 }
 0x701   : > { %v3456_v38 = vpop.f32.mrb[124].mxu0 }
 0x702   : > { %v3458_v41 = vpop.f32.mrb[125].mxu0  ;;  %v4323_v10 = vadd.f32 %v4322_v52, %v12823_v46  ;;  %v12841_v28 = vadd.f32 %v12679_v2, %v4256_v26 }
 0x703   : > { %v3460_v33 = vpop.f32.mrb[126].mxu0  ;;  %v3997_v35 = vrot.slane %v3458_v41, 1 }
 0x704   : > { %v3462_v39 = vpop.f32.mrb[127].mxu0  ;;  %v4324_v11 = vadd.f32 %v4323_v10, %v12827_v36 }
 0x705   : > { %v3998_v21 = vrot.slane %v3462_v39, 1 }
 0x706   : > { %v4325_v41 = vadd.f32 %v4324_v11, %v12832_v9 }
 0x707   : > { %v3999_v29 = vsel %vm3921_vm8, %v3997_v35, %v3998_v21 }
 0x708   : > { %v4064_v45 = vadd.f32 %v3999_v29, %v3456_v38  ;;  %v4326_v38 = vadd.f32 %v4325_v41, %v12836_v40 }
 0x709   : > { %v3466_v34 = vpop.f32.mrb[128].mxu0 }
 0x70a   : > { %v4257_v63 = vadd.f32 %v12506_v62, %v4064_v45  ;;  %v3467_v31 = vpop.f32.mrb[129].mxu0  ;;  %v4327_v52 = vadd.f32 %v4326_v38, %v12841_v28 }
 0x70b   : > { %v4000_v58 = vrot.slane %v3467_v31, 1  ;;  %v3469_v12 = vpop.f32.mrb[130].mxu0 }
 0x70c   : > { %v3470_v39 = vpop.f32.mrb[131].mxu0  ;;  %v12846_v35 = vadd.f32 %v12679_v2, %v4257_v63 }
 0x70d   : > { %v4001_v20 = vsel %vm3921_vm8, %v3998_v21, %v4000_v58 }
 0x70e   : > { %v4065_v55 = vadd.f32 %v4001_v20, %v3460_v33  ;;  %v4328_v29 = vadd.f32 %v4327_v52, %v12846_v35 }
 0x710   : > { %v4258_v62 = vadd.f32 %v12509_v22, %v4065_v55 }
 0x712   : > { %v12852_v10 = vadd.f32 %v12679_v2, %v4258_v62 }
 0x714   : > { %v4329_v26 = vadd.f32 %v4328_v29, %v12852_v10 }
 0x716   : > { %v4330_v45 = vrot.slane %v4329_v26, 4 }
 0x718   : > { %v4331_v34 = vadd.f32 %v4330_v45, %v4329_v26 }
 0x71a   : > { %v4332_v21 = vrot.slane %v4331_v34, 2 }
 0x71c   : > { %v4333_v11 = vadd.f32 %v4332_v21, %v4331_v34 }
 0x71e   : > { %v4334_v31 = vrot.slane %v4333_v11, 1 }
 0x720   : > { %v4335_v58 = vadd.f32 %v4334_v31, %v4333_v11 }
 0x722   : > { %9112 = vmatmul.mubr.f32.vlgmr.msra.gmra.mrb[2].mxu1 %v4335_v58 }
 0x723   : > { %9463 = vmatpush3.bf16.msra.mxu1 %v12551_v23  ;;  %9146 = vmatprep.mubr.msk.f32.mxu1 %vm10984_vm0, %v14554_v54 }
 0x724   : > { %9464 = vmatprep.subr.bf16.mxu1 %v14553_v13 }
 0x727   : > { %9466 = vmatpush3.bf16.msra.mxu1 %v12567_v56 }
 0x728   : > { %9467 = vmatprep.subr.bf16.mxu1 %v14553_v13 }
 0x72b   : > { %9469 = vmatpush3.bf16.msra.mxu1 %v12580_v37 }
 0x72c   : > { %9470 = vmatprep.subr.bf16.mxu1 %v14553_v13 }
 0x72f   : > { %9472 = vmatpush3.bf16.msra.mxu1 %v12592_v3 }
 0x730   : > { %9473 = vmatprep.subr.bf16.mxu1 %v14553_v13 }
 0x733   : > { %9475 = vmatpush3.bf16.msra.mxu1 %v12604_v30 }
 0x734   : > { %9476 = vmatprep.subr.bf16.mxu1 %v14553_v13 }
 0x737   : > { %9478 = vmatpush3.bf16.msra.mxu1 %v12616_v53 }
 0x738   : > { %9479 = vmatprep.subr.bf16.mxu1 %v14553_v13 }
 0x73b   : > { %9481 = vmatpush3.bf16.msra.mxu1 %v12628_v14 }
 0x73c   : > { %9482 = vmatprep.subr.bf16.mxu1 %v14553_v13 }
 0x73f   : > { %9484 = vmatpush3.bf16.msra.mxu1 %v12641_v15 }
 0x7f5   : > { %v4418_v54 = vpop.f32.mrb[2].mxu1 }
 0x7f6   : > { %v9113_v22 = vpop.f32.mrb[3].mxu1  ;;  %v12873_v23 = vrot.slane %v4418_v54, %v11427_v6 }
 0x7f8   : > { %v12877_v56 = vsub.f32 %v12687_v51, %v12873_v23  ;;  %v12881_v37 = vsub.f32 %v12683_v18, %v12873_v23  ;;  %v12885_v3 = vsub.f32 %v12691_v48, %v12873_v23  ;;  %v12893_v53 = vsub.f32 %v12698_v16, %v12873_v23 }
 0x7f9   : > { %v12897_v14 = vsub.f32 %v12703_v49, %v12873_v23  ;;  %v12903_v18 = vsub.f32 %v12711_v24, %v12873_v23  ;;  %v12909_v16 = vsub.f32 %v12717_v25, %v12873_v23  ;;  %v12915_v63 = vsub.f32 %v12722_v7, %v12873_v23 }
 0x7fa   : > { %v4458_v13 = vmul.f32 %v12877_v56, %v12877_v56  ;;  %v4459_v30 = vmul.f32 %v12881_v37, %v12881_v37  ;;  %v4460_v15 = vmul.f32 %v12885_v3, %v12885_v3  ;;  %v4461_v51 = vmul.f32 %v12893_v53, %v12893_v53 }
 0x7fb   : > { %v4462_v49 = vmul.f32 %v12897_v14, %v12897_v14  ;;  %v4463_v24 = vmul.f32 %v12903_v18, %v12903_v18  ;;  %v12921_v41 = vsub.f32 %v12730_v19, %v12873_v23  ;;  %v4464_v25 = vmul.f32 %v12909_v16, %v12909_v16 }
 0x7fc   : > { %v4490_v2 = vadd.f32 %v4459_v30, %v4458_v13  ;;  %v12927_v20 = vsub.f32 %v12735_v60, %v12873_v23  ;;  %v4465_v7 = vmul.f32 %v12915_v63, %v12915_v63  ;;  %v12933_v55 = vsub.f32 %v12740_v43, %v12873_v23 }
 0x7fd   : > { %v4466_v19 = vmul.f32 %v12921_v41, %v12921_v41  ;;  %v12939_v62 = vsub.f32 %v12746_v50, %v12873_v23  ;;  %v12945_v26 = vsub.f32 %v12751_v44, %v12873_v23  ;;  %v12951_v34 = vsub.f32 %v12757_v1, %v12873_v23 }
 0x7fe   : > { %v4491_v48 = vadd.f32 %v4490_v2, %v4460_v15  ;;  %v4467_v60 = vmul.f32 %v12927_v20, %v12927_v20  ;;  %v4468_v43 = vmul.f32 %v12933_v55, %v12933_v55  ;;  %v12957_v11 = vsub.f32 %v12763_v17, %v12873_v23 }
 0x7ff   : > { %v4469_v50 = vmul.f32 %v12939_v62, %v12939_v62  ;;  %v4470_v44 = vmul.f32 %v12945_v26, %v12945_v26  ;;  %v12963_v58 = vsub.f32 %v12768_v0, %v12873_v23  ;;  %v4471_v1 = vmul.f32 %v12951_v34, %v12951_v34 }
 0x800   : > { %v4492_v33 = vadd.f32 %v4491_v48, %v4461_v51  ;;  %v12969_v22 = vsub.f32 %v12774_v8, %v12873_v23  ;;  %v4472_v17 = vmul.f32 %v12957_v11, %v12957_v11  ;;  %v12975_v30 = vsub.f32 %v12779_v27, %v12873_v23 }
 0x801   : > { %v4473_v0 = vmul.f32 %v12963_v58, %v12963_v58  ;;  %v12981_v2 = vsub.f32 %v12784_v57, %v12873_v23  ;;  %v12987_v48 = vsub.f32 %v12790_v42, %v12873_v23 }
 0x802   : > { %v4493_v12 = vadd.f32 %v4492_v33, %v4462_v49  ;;  %v4474_v8 = vmul.f32 %v12969_v22, %v12969_v22  ;;  %v4475_v27 = vmul.f32 %v12975_v30, %v12975_v30  ;;  %v12993_v33 = vsub.f32 %v12795_v59, %v12873_v23 }
 0x803   : > { %v4476_v57 = vmul.f32 %v12981_v2, %v12981_v2  ;;  %v4477_v42 = vmul.f32 %v12987_v48, %v12987_v48 }
 0x804   : > { %v4494_v39 = vadd.f32 %v4493_v12, %v4463_v24  ;;  %v12999_v12 = vsub.f32 %v12801_v5, %v12873_v23  ;;  %v4478_v59 = vmul.f32 %v12993_v33, %v12993_v33 }
 0x806   : > { %v4495_v38 = vadd.f32 %v4494_v39, %v4464_v25  ;;  %v13005_v39 = vsub.f32 %v12807_v61, %v12873_v23  ;;  %v4479_v5 = vmul.f32 %v12999_v12, %v12999_v12 }
 0x808   : > { %v4496_v52 = vadd.f32 %v4495_v38, %v4465_v7  ;;  %v13011_v38 = vsub.f32 %v12812_v4, %v12873_v23  ;;  %v4480_v61 = vmul.f32 %v13005_v39, %v13005_v39 }
 0x80a   : > { %v4497_v29 = vadd.f32 %v4496_v52, %v4466_v19  ;;  %v13017_v52 = vsub.f32 %v12818_v47, %v12873_v23  ;;  %v4481_v4 = vmul.f32 %v13011_v38, %v13011_v38 }
 0x80c   : > { %v4498_v45 = vadd.f32 %v4497_v29, %v4467_v60  ;;  %v13023_v29 = vsub.f32 %v12823_v46, %v12873_v23  ;;  %v4482_v47 = vmul.f32 %v13017_v52, %v13017_v52 }
 0x80e   : > { %v4499_v21 = vadd.f32 %v4498_v45, %v4468_v43  ;;  %v13029_v45 = vsub.f32 %v12827_v36, %v12873_v23  ;;  %v4483_v46 = vmul.f32 %v13023_v29, %v13023_v29 }
 0x810   : > { %v4500_v31 = vadd.f32 %v4499_v21, %v4469_v50  ;;  %v13035_v21 = vsub.f32 %v12832_v9, %v12873_v23  ;;  %v4484_v36 = vmul.f32 %v13029_v45, %v13029_v45 }
 0x812   : > { %v4501_v54 = vadd.f32 %v4500_v31, %v4470_v44  ;;  %v13041_v31 = vsub.f32 %v12836_v40, %v12873_v23  ;;  %v4485_v9 = vmul.f32 %v13035_v21, %v13035_v21 }
 0x814   : > { %v4502_v13 = vadd.f32 %v4501_v54, %v4471_v1  ;;  %v13047_v54 = vsub.f32 %v12841_v28, %v12873_v23  ;;  %v4486_v40 = vmul.f32 %v13041_v31, %v13041_v31 }
 0x816   : > { %v4503_v15 = vadd.f32 %v4502_v13, %v4472_v17  ;;  %v13053_v13 = vsub.f32 %v12846_v35, %v12873_v23  ;;  %v4487_v28 = vmul.f32 %v13047_v54, %v13047_v54 }
 0x818   : > { %v4504_v51 = vadd.f32 %v4503_v15, %v4473_v0  ;;  %v13059_v15 = vsub.f32 %v12852_v10, %v12873_v23  ;;  %v10406_v23 = vld [vmem:[#allocation9 + $0xc4] ss:$12 sps:$4 sm:$0xff]  }
 0x819   : > { %5410 = vmatprep.subr.bf16.mxu0 %v10406_v23 }
 0x81a   : > { %v4505_v49 = vadd.f32 %v4504_v51, %v4474_v8  ;;  %v4488_v51 = vmul.f32 %v13053_v13, %v13053_v13  ;;  %v4489_v35 = vmul.f32 %v13059_v15, %v13059_v15 }
 0x81c   : > { %v4506_v24 = vadd.f32 %v4505_v49, %v4475_v27 }
 0x81e   : > { %v4507_v25 = vadd.f32 %v4506_v24, %v4476_v57 }
 0x820   : > { %v4508_v7 = vadd.f32 %v4507_v25, %v4477_v42 }
 0x822   : > { %v4509_v19 = vadd.f32 %v4508_v7, %v4478_v59 }
 0x824   : > { %v4510_v60 = vadd.f32 %v4509_v19, %v4479_v5  ;;  %v10404_v5 = vld [vmem:[#allocation9 + $0xc0] ss:$12 sps:$4 sm:$0xff]   ;;  %v10410_v19 = vld [vmem:[#allocation9 + $0xdc] ss:$12 sps:$4 sm:$0xff]  }
 0x825   : > { %5411 = vmatpush1.bf16.msra.mxu0 %v10404_v5 }
 0x826   : > { %v4511_v43 = vadd.f32 %v4510_v60, %v4480_v61  ;;  %v10408_v61 = vld [vmem:[#allocation9 + $0xd8] ss:$12 sps:$4 sm:$0xff]   ;;  %v10407_v60 = vld [vmem:[#allocation9 + $0xc8] ss:$12 sps:$4 sm:$0xff]   ;;  %5412 = vmatprep.subr.bf16.mxu0 %v10410_v19 }
 0x827   : > { %9149 = vmatprep.subr.bf16.mxu1 %v10407_v60 }
 0x828   : > { %v4512_v50 = vadd.f32 %v4511_v43, %v4481_v4  ;;  %v10414_v4 = vld [vmem:[#allocation9 + $0xf4] ss:$12 sps:$4 sm:$0xff]   ;;  %v10412_v43 = vld [vmem:[#allocation9 + $0xf0] ss:$12 sps:$4 sm:$0xff]  }
 0x829   : > { %5413 = vmatpush1.bf16.msra.mxu0 %v10408_v61 }
 0x82a   : > { %v4513_v44 = vadd.f32 %v4512_v50, %v4482_v47  ;;  %v10411_v47 = vld [vmem:[#allocation9 + $0xe0] ss:$12 sps:$4 sm:$0xff]   ;;  %5414 = vmatprep.subr.bf16.mxu0 %v10414_v4 }
 0x82b   : > { %v10418_v50 = vld [vmem:[#allocation9 + $0x10c] ss:$12 sps:$4 sm:$0xff]   ;;  %v13082_v4 = vld [vmem:[%s14487_s7] ss:$0 sm:$0xff] }
 0x82c   : > { %v4514_v1 = vadd.f32 %v4513_v44, %v4483_v46  ;;  %v10416_v46 = vld [vmem:[#allocation9 + $0x108] ss:$12 sps:$4 sm:$0xff]   ;;  %v10415_v44 = vld [vmem:[#allocation9 + $0xf8] ss:$12 sps:$4 sm:$0xff]  }
 0x82d   : > { %5415 = vmatpush1.bf16.msra.mxu0 %v10412_v43 }
 0x82e   : > { %v4515_v17 = vadd.f32 %v4514_v1, %v4484_v36  ;;  %5416 = vmatprep.subr.bf16.mxu0 %v10418_v50  ;;  %v10422_v36 = vld [vmem:[#allocation9 + $0x124] ss:$12 sps:$4 sm:$0xff]   ;;  %v10420_v1 = vld [vmem:[#allocation9 + $0x120] ss:$12 sps:$4 sm:$0xff]  }
 0x830   : > { %v4516_v0 = vadd.f32 %v4515_v17, %v4485_v9  ;;  %v10419_v9 = vld [vmem:[#allocation9 + $0x110] ss:$12 sps:$4 sm:$0xff]  }
 0x831   : > { %5417 = vmatpush1.bf16.msra.mxu0 %v10416_v46  ;;  %v10426_v17 = vld [vmem:[#allocation9 + $0x13c] ss:$12 sps:$4 sm:$0xff]  }
 0x832   : > { %v4517_v8 = vadd.f32 %v4516_v0, %v4486_v40  ;;  %5418 = vmatprep.subr.bf16.mxu0 %v10422_v36  ;;  %v10424_v40 = vld [vmem:[#allocation9 + $0x138] ss:$12 sps:$4 sm:$0xff]   ;;  %v10423_v0 = vld [vmem:[#allocation9 + $0x128] ss:$12 sps:$4 sm:$0xff]  }
 0x834   : > { %v4518_v27 = vadd.f32 %v4517_v8, %v4487_v28  ;;  %v10430_v28 = vld [vmem:[#allocation9 + $0x154] ss:$12 sps:$4 sm:$0xff]   ;;  %v10428_v8 = vld [vmem:[#allocation9 + $0x150] ss:$12 sps:$4 sm:$0xff]  }
 0x835   : > { %5419 = vmatpush1.bf16.msra.mxu0 %v10420_v1 }
 0x836   : > { %v4519_v49 = vadd.f32 %v4518_v27, %v4488_v51  ;;  %5420 = vmatprep.subr.bf16.mxu0 %v10426_v17  ;;  %v10427_v51 = vld [vmem:[#allocation9 + $0x140] ss:$12 sps:$4 sm:$0xff]  }
 0x837   : > { %v10434_v27 = vld [vmem:[#allocation9 + $0x16c] ss:$12 sps:$4 sm:$0xff]  }
 0x838   : > { %v4520_v57 = vadd.f32 %v4519_v49, %v4489_v35  ;;  %v10432_v35 = vld [vmem:[#allocation9 + $0x168] ss:$12 sps:$4 sm:$0xff]   ;;  %v10431_v49 = vld [vmem:[#allocation9 + $0x158] ss:$12 sps:$4 sm:$0xff]  }
 0x839   : > { %5421 = vmatpush1.bf16.msra.mxu0 %v10424_v40 }
 0x83a   : > { %v4521_v24 = vrot.slane %v4520_v57, 4  ;;  %5422 = vmatprep.subr.bf16.mxu0 %v10430_v28 }
 0x83c   : > { %v4522_v42 = vadd.f32 %v4521_v24, %v4520_v57  ;;  %v10435_v57 = vld [vmem:[#allocation9 + $0x170] ss:$12 sps:$4 sm:$0xff]  }
 0x83d   : > { %5423 = vmatpush1.bf16.msra.mxu0 %v10428_v8  ;;  %v10438_v24 = vld [vmem:[#allocation9 + $0x4] ss:$12 sps:$4 sm:$0xff]  }
 0x83e   : > { %v4523_v25 = vrot.slane %v4522_v42, 2  ;;  %5424 = vmatprep.subr.bf16.mxu0 %v10434_v27 }
 0x840   : > { %v4524_v59 = vadd.f32 %v4523_v25, %v4522_v42 }
 0x841   : > { %5425 = vmatpush1.bf16.msra.mxu0 %v10432_v35 }
 0x842   : > { %v4525_v7 = vrot.slane %v4524_v59, 1  ;;  %6116 = vmatprep.subr.bf16.mxu0 %v10438_v24 }
 0x844   : > { %v4526_v10 = vadd.f32 %v4525_v7, %v4524_v59 }
 0x846   : > { %9147 = vmatmul.mubr.f32.vlgmr.msra.gmra.mrb[68].mxu1 %v4526_v10  ;;  %v4297_v10 = vld [vmem:[%s14486_s6] sm:$0x1] }
 0x847   : > { %9150 = vmatpush3.bf16.msra.mxu1 %v10407_v60 }
 0x848   : > { %9151 = vmatprep.subr.bf16.mxu1 %v10411_v47 }
 0x84b   : > { %9152 = vmatpush3.bf16.msra.mxu1 %v10411_v47 }
 0x84c   : > { %9153 = vmatprep.subr.bf16.mxu1 %v10415_v44 }
 0x84f   : > { %9154 = vmatpush3.bf16.msra.mxu1 %v10415_v44 }
 0x850   : > { %9155 = vmatprep.subr.bf16.mxu1 %v10419_v9 }
 0x853   : > { %9156 = vmatpush3.bf16.msra.mxu1 %v10419_v9 }
 0x854   : > { %9157 = vmatprep.subr.bf16.mxu1 %v10423_v0 }
 0x857   : > { %9158 = vmatpush3.bf16.msra.mxu1 %v10423_v0 }
 0x858   : > { %9159 = vmatprep.subr.bf16.mxu1 %v10427_v51 }
 0x85b   : > { %9160 = vmatpush3.bf16.msra.mxu1 %v10427_v51 }
 0x85c   : > { %9161 = vmatprep.subr.bf16.mxu1 %v10431_v49 }
 0x85f   : > { %9162 = vmatpush3.bf16.msra.mxu1 %v10431_v49 }
 0x860   : > { %9163 = vmatprep.subr.bf16.mxu1 %v10435_v57 }
 0x863   : > { %9164 = vmatpush3.bf16.msra.mxu1 %v10435_v57 }
 0x864   : > { %9485 = vmatprep.subr.bf16.mxu1 %v10438_v24 }
 0x919   : > { %v4593_v42 = vpop.f32.mrb[68].mxu1 }
 0x91a   : > { %v4594_v25 = vadd.f32 1e-06, %v4593_v42  ;;  %v9148_v59 = vpop.f32.mrb[69].mxu1 }
 0x91c   : > { %10630 = vrsqrt.f32 %v4594_v25 }
 0x926   : > { %v10631_v7 = vpop.eup %10630 }
 0x927   : > { %v4598_v23 = vmul.f32 %v10631_v7, %v4297_v10 }
 0x929   : > { %v13071_v5 = vrot.slane %v4598_v23, %v11427_v6 }
 0x92b   : > { %v4603_v19 = vmul.f32 %v13071_v5, %v12877_v56  ;;  %v4604_v61 = vmul.f32 %v13071_v5, %v12881_v37  ;;  %v4605_v60 = vmul.f32 %v13071_v5, %v12885_v3  ;;  %v4606_v43 = vmul.f32 %v13071_v5, %v12893_v53 }
 0x92c   : > { %v4607_v6 = vmul.f32 %v13071_v5, %v12897_v14  ;;  %v4608_v56 = vmul.f32 %v13071_v5, %v12903_v18  ;;  %v4609_v37 = vmul.f32 %v13071_v5, %v12909_v16  ;;  %v4610_v53 = vmul.f32 %v13071_v5, %v12915_v63 }
 0x92d   : > { %v13093_v47 = vadd.f32 %v13082_v4, %v4603_v19  ;;  %v13096_v3 = vadd.f32 %v13082_v4, %v4604_v61  ;;  %v13099_v50 = vadd.f32 %v13082_v4, %v4605_v60  ;;  %v13104_v14 = vadd.f32 %v13082_v4, %v4606_v43 }
 0x92e   : > { %v4611_v18 = vmul.f32 %v13071_v5, %v12921_v41  ;;  %v13109_v16 = vadd.f32 %v13082_v4, %v4607_v6  ;;  %v4612_v46 = vmul.f32 %v13071_v5, %v12927_v20  ;;  %v4613_v44 = vmul.f32 %v13071_v5, %v12933_v55 }
 0x92f   : > { %v13116_v36 = vadd.f32 %v13082_v4, %v4608_v56  ;;  %v13119_v63 = vadd.f32 %v13082_v4, %v4609_v37  ;;  %v8349_v1 = vmul.f32 -1.442695, %v13093_v47  ;;  %v8350_v9 = vmul.f32 -1.442695, %v13096_v3 }
 0x930   : > { %v8351_v41 = vmul.f32 -1.442695, %v13099_v50  ;;  %v4614_v17 = vmul.f32 %v13071_v5, %v12939_v62  ;;  %v13127_v20 = vadd.f32 %v13082_v4, %v4610_v53  ;;  %v8352_v55 = vmul.f32 -1.442695, %v13104_v14 }
 0x931   : > { %v4615_v40 = vmul.f32 %v13071_v5, %v12945_v26  ;;  %v13133_v0 = vadd.f32 %v13082_v4, %v4611_v18  ;;  %10632 = vpow2.f32 %v8349_v1  ;;  %v8353_v28 = vmul.f32 -1.442695, %v13109_v16 }
 0x932   : > { %v4616_v8 = vmul.f32 %v13071_v5, %v12951_v34  ;;  %v13139_v51 = vadd.f32 %v13082_v4, %v4612_v46  ;;  %10634 = vpow2.f32 %v8350_v9  ;;  %v8354_v62 = vmul.f32 -1.442695, %v13116_v36 }
 0x933   : > { %v4617_v27 = vmul.f32 %v13071_v5, %v12957_v11  ;;  %v13145_v26 = vadd.f32 %v13082_v4, %v4613_v44  ;;  %10636 = vpow2.f32 %v8351_v41  ;;  %v8355_v35 = vmul.f32 -1.442695, %v13119_v63 }
 0x934   : > { %v4618_v49 = vmul.f32 %v13071_v5, %v12963_v58  ;;  %v13151_v34 = vadd.f32 %v13082_v4, %v4614_v17  ;;  %10638 = vpow2.f32 %v8352_v55  ;;  %v8356_v57 = vmul.f32 -1.442695, %v13127_v20 }
 0x935   : > { %v4619_v24 = vmul.f32 %v13071_v5, %v12969_v22  ;;  %v13157_v11 = vadd.f32 %v13082_v4, %v4615_v40  ;;  %10640 = vpow2.f32 %v8353_v28  ;;  %v8357_v42 = vmul.f32 -1.442695, %v13133_v0 }
 0x936   : > { %v4620_v25 = vmul.f32 %v13071_v5, %v12975_v30  ;;  %v13163_v58 = vadd.f32 %v13082_v4, %v4616_v8  ;;  %10642 = vpow2.f32 %v8354_v62  ;;  %v8358_v59 = vmul.f32 -1.442695, %v13139_v51 }
 0x937   : > { %v4621_v7 = vmul.f32 %v13071_v5, %v12981_v2  ;;  %v13169_v22 = vadd.f32 %v13082_v4, %v4617_v27  ;;  %10644 = vpow2.f32 %v8355_v35  ;;  %v8359_v10 = vmul.f32 -1.442695, %v13145_v26 }
 0x938   : > { %v4622_v23 = vmul.f32 %v13071_v5, %v12987_v48  ;;  %v13175_v30 = vadd.f32 %v13082_v4, %v4618_v49  ;;  %10646 = vpow2.f32 %v8356_v57  ;;  %v8360_v19 = vmul.f32 -1.442695, %v13151_v34 }
 0x939   : > { %v4623_v61 = vmul.f32 %v13071_v5, %v12993_v33  ;;  %v13181_v2 = vadd.f32 %v13082_v4, %v4619_v24  ;;  %10648 = vpow2.f32 %v8357_v42  ;;  %v8361_v60 = vmul.f32 -1.442695, %v13157_v11 }
 0x93a   : > { %v4624_v43 = vmul.f32 %v13071_v5, %v12999_v12  ;;  %v13187_v48 = vadd.f32 %v13082_v4, %v4620_v25  ;;  %10650 = vpow2.f32 %v8358_v59  ;;  %v8362_v6 = vmul.f32 -1.442695, %v13163_v58 }
 0x93b   : > { %v13190_v56 = vpop.eup %10632  ;;  %v4625_v33 = vmul.f32 %v13071_v5, %v13005_v39  ;;  %v13195_v37 = vadd.f32 %v13082_v4, %v4621_v7  ;;  %10652 = vpow2.f32 %v8359_v10  ;;  %v8363_v53 = vmul.f32 -1.442695, %v13169_v22 }
 0x93c   : > { %v13198_v18 = vpop.eup %10634  ;;  %v4626_v12 = vmul.f32 %v13071_v5, %v13011_v38  ;;  %v13203_v46 = vadd.f32 %v13082_v4, %v4622_v23  ;;  %10654 = vpow2.f32 %v8360_v19  ;;  %v8364_v44 = vmul.f32 -1.442695, %v13175_v30 }
 0x93d   : > { %v13206_v1 = vpop.eup %10636  ;;  %v4627_v39 = vmul.f32 %v13071_v5, %v13017_v52  ;;  %v13211_v9 = vadd.f32 %v13082_v4, %v4623_v61  ;;  %10656 = vpow2.f32 %v8361_v60  ;;  %v8365_v41 = vmul.f32 -1.442695, %v13181_v2 }
 0x93e   : > { %v13214_v17 = vpop.eup %10638  ;;  %v4628_v38 = vmul.f32 %v13071_v5, %v13023_v29  ;;  %v13219_v55 = vadd.f32 %v13082_v4, %v4624_v43  ;;  %10658 = vpow2.f32 %v8362_v6  ;;  %v8366_v40 = vmul.f32 -1.442695, %v13187_v48 }
 0x93f   : > { %v13222_v28 = vpop.eup %10640  ;;  %v4629_v52 = vmul.f32 %v13071_v5, %v13029_v45  ;;  %v13227_v8 = vadd.f32 %v13082_v4, %v4625_v33  ;;  %10660 = vpow2.f32 %v8363_v53  ;;  %v8367_v62 = vmul.f32 -1.442695, %v13195_v37 }
 0x940   : > { %v13230_v27 = vpop.eup %10642  ;;  %v4630_v29 = vmul.f32 %v13071_v5, %v13035_v21  ;;  %v13235_v35 = vadd.f32 %v13082_v4, %v4626_v12  ;;  %10662 = vpow2.f32 %v8364_v44  ;;  %v8368_v49 = vmul.f32 -1.442695, %v13203_v46 }
 0x941   : > { %v13238_v57 = vpop.eup %10644  ;;  %v4631_v45 = vmul.f32 %v13071_v5, %v13041_v31  ;;  %v13243_v24 = vadd.f32 %v13082_v4, %v4627_v39  ;;  %10664 = vpow2.f32 %v8365_v41  ;;  %v8369_v42 = vmul.f32 -1.442695, %v13211_v9 }
 0x942   : > { %v13246_v25 = vpop.eup %10646  ;;  %v4632_v21 = vmul.f32 %v13071_v5, %v13047_v54  ;;  %v13251_v59 = vadd.f32 %v13082_v4, %v4628_v38  ;;  %10666 = vpow2.f32 %v8366_v40  ;;  %v8370_v7 = vmul.f32 -1.442695, %v13219_v55 }
 0x943   : > { %v10649_v10 = vpop.eup %10648  ;;  %v4633_v31 = vmul.f32 %v13071_v5, %v13053_v13  ;;  %v13257_v23 = vadd.f32 %v13082_v4, %v4629_v52  ;;  %10668 = vpow2.f32 %v8367_v62  ;;  %v8371_v19 = vmul.f32 -1.442695, %v13227_v8 }
 0x944   : > { %14555 = vst [vmem:[#allocation22_spill] sm:$0xff] %v13251_v59  ;;  %v10651_v61 = vpop.eup %10650  ;;  %v4634_v54 = vmul.f32 %v13071_v5, %v13059_v15  ;;  %v13263_v60 = vadd.f32 %v13082_v4, %v4630_v29  ;;  %10670 = vpow2.f32 %v8368_v49  ;;  %v8372_v43 = vmul.f32 -1.442695, %v13235_v35 }
 0x945   : > { %14556 = vst [vmem:[#allocation23_spill] sm:$0xff] %v13257_v23  ;;  %v10653_v6 = vpop.eup %10652  ;;  %v13267_v33 = vadd.f32 %v13082_v4, %v4631_v45  ;;  %10672 = vpow2.f32 %v8369_v42  ;;  %v8373_v13 = vmul.f32 -1.442695, %v13243_v24  ;;  %v13271_v12 = vadd.f32 %v13082_v4, %v4632_v21 }
 0x946   : > { %14557 = vst [vmem:[#allocation24_spill] sm:$0xff] %v13263_v60  ;;  %v10655_v53 = vpop.eup %10654  ;;  %10674 = vpow2.f32 %v8370_v7  ;;  %v8374_v15 = vmul.f32 -1.442695, %v13251_v59  ;;  %v13275_v44 = vadd.f32 %v13082_v4, %v4633_v31  ;;  %v8375_v39 = vmul.f32 -1.442695, %v13257_v23 }
 0x947   : > { %14558 = vst [vmem:[#allocation25_spill] sm:$0xff] %v13267_v33  ;;  %14559 = vst [vmem:[#allocation26_spill] sm:$0xff] %v13271_v12  ;;  %v10657_v5 = vpop.eup %10656  ;;  %10676 = vpow2.f32 %v8371_v19  ;;  %v13279_v38 = vadd.f32 %v13082_v4, %v4634_v54  ;;  %v8376_v40 = vmul.f32 -1.442695, %v13263_v60  ;;  %v8377_v62 = vmul.f32 -1.442695, %v13267_v33 }
 0x948   : > { %14560 = vst [vmem:[#allocation27_spill] sm:$0xff] %v13275_v44  ;;  %v10659_v41 = vpop.eup %10658  ;;  %10678 = vpow2.f32 %v8372_v43  ;;  %v8378_v49 = vmul.f32 -1.442695, %v13271_v12  ;;  %v8379_v42 = vmul.f32 -1.442695, %v13275_v44  ;;  %v4769_v31 = vadd.f32 1.0, %v13190_v56 }
 0x949   : > { %14561 = vst [vmem:[#allocation28_spill] sm:$0xff] %v13279_v38  ;;  %v10661_v52 = vpop.eup %10660  ;;  %10680 = vpow2.f32 %v8373_v13  ;;  %v8380_v4 = vmul.f32 -1.442695, %v13279_v38  ;;  %v4770_v54 = vadd.f32 1.0, %v13198_v18  ;;  %v4771_v13 = vadd.f32 1.0, %v13206_v1 }
 0x94a   : > { %v10663_v29 = vpop.eup %10662  ;;  %10682 = vpow2.f32 %v8374_v15  ;;  %v4778_v44 = vadd.f32 1.0, %v10651_v61 }
 0x94b   : > { %v10665_v45 = vpop.eup %10664  ;;  %10684 = vpow2.f32 %v8375_v39  ;;  %v4772_v39 = vadd.f32 1.0, %v13214_v17  ;;  %v4784_v60 = vadd.f32 1.0, %v10663_v29 }
 0x94c   : > { %v10667_v21 = vpop.eup %10666  ;;  %10686 = vpow2.f32 %v8376_v40  ;;  %v4773_v40 = vadd.f32 1.0, %v13222_v28 }
 0x94d   : > { %v10669_v7 = vpop.eup %10668  ;;  %10688 = vpow2.f32 %v8377_v62  ;;  %v4774_v62 = vadd.f32 1.0, %v13230_v27  ;;  %v4780_v27 = vadd.f32 1.0, %v10655_v53  ;;  %v4786_v23 = vadd.f32 1.0, %v10667_v21 }
 0x94e   : > { %v10671_v19 = vpop.eup %10670  ;;  %10690 = vpow2.f32 %v8378_v49  ;;  %v4775_v49 = vadd.f32 1.0, %v13238_v57  ;;  %v4782_v57 = vadd.f32 1.0, %v10659_v41 }
 0x94f   : > { %v10673_v43 = vpop.eup %10672  ;;  %10692 = vpow2.f32 %v8379_v42  ;;  %v4776_v42 = vadd.f32 1.0, %v13246_v25  ;;  %v4788_v61 = vadd.f32 1.0, %v10671_v19 }
 0x950   : > { %v10675_v15 = vpop.eup %10674  ;;  %10694 = vpow2.f32 %v8380_v4  ;;  %v4777_v4 = vadd.f32 1.0, %v10649_v10  ;;  %v4787_v10 = vadd.f32 1.0, %v10669_v7 }
 0x951   : > { %v10677_v32 = vpop.eup %10676  ;;  %10696 = vrcp.f32 %v4769_v31  ;;  %v4779_v31 = vadd.f32 1.0, %v10653_v6  ;;  %v4790_v59 = vadd.f32 1.0, %v10675_v15 }
 0x952   : > { %v10679_v38 = vpop.eup %10678  ;;  %10698 = vrcp.f32 %v4770_v54  ;;  %v4781_v54 = vadd.f32 1.0, %v10657_v5 }
 0x953   : > { %v10681_v56 = vpop.eup %10680  ;;  %10700 = vrcp.f32 %v4771_v13  ;;  %v4783_v13 = vadd.f32 1.0, %v10661_v52  ;;  %v4792_v53 = vadd.f32 1.0, %v10679_v38 }
 0x954   : > { %v10683_v18 = vpop.eup %10682  ;;  %10702 = vrcp.f32 %v4772_v39  ;;  %v4785_v39 = vadd.f32 1.0, %v10665_v45  ;;  %v4793_v52 = vadd.f32 1.0, %v10681_v56 }
 0x955   : > { %v10685_v1 = vpop.eup %10684  ;;  %10704 = vrcp.f32 %v4773_v40  ;;  %v13295_v29 = vadd.f32 1.0, %v10683_v18 }
 0x956   : > { %v10687_v17 = vpop.eup %10686  ;;  %10706 = vrcp.f32 %v4774_v62  ;;  %v4789_v62 = vadd.f32 1.0, %v10673_v43 }
 0x957   : > { %v10689_v28 = vpop.eup %10688  ;;  %10708 = vrcp.f32 %v4775_v49  ;;  %v4791_v49 = vadd.f32 1.0, %v10677_v32  ;;  %v13300_v7 = vadd.f32 1.0, %v10687_v17 }
 0x958   : > { %v10691_v12 = vpop.eup %10690  ;;  %10710 = vrcp.f32 %v4776_v42  ;;  %v13303_v38 = vadd.f32 1.0, %v10689_v28 }
 0x959   : > { %v10693_v33 = vpop.eup %10692  ;;  %10712 = vrcp.f32 %v4777_v4  ;;  %v13306_v56 = vadd.f32 1.0, %v10691_v12 }
 0x95a   : > { %v10695_v25 = vpop.eup %10694  ;;  %10714 = vrcp.f32 %v4778_v44  ;;  %v13298_v44 = vadd.f32 1.0, %v10685_v1  ;;  %v13308_v18 = vadd.f32 1.0, %v10693_v33 }
 0x95b   : > { %v10697_v40 = vpop.eup %10696  ;;  %10716 = vrcp.f32 %v4779_v31  ;;  %v13312_v28 = vadd.f32 1.0, %v10695_v25 }
 0x95c   : > { %v10699_v6 = vpop.eup %10698  ;;  %10718 = vrcp.f32 %v4780_v27  ;;  %v4865_v5 = vmul.f32 %v10697_v40, %v13093_v47 }
 0x95d   : > { %v10701_v41 = vpop.eup %10700  ;;  %10720 = vrcp.f32 %v4781_v54  ;;  %v4866_v45 = vmul.f32 %v10699_v6, %v13096_v3 }
 0x95e   : > { %v10703_v21 = vpop.eup %10702  ;;  %10722 = vrcp.f32 %v4782_v57  ;;  %v4867_v19 = vmul.f32 %v10701_v41, %v13099_v50 }
 0x95f   : > { %v10705_v32 = vpop.eup %10704  ;;  %10724 = vrcp.f32 %v4783_v13  ;;  %v4868_v47 = vmul.f32 %v10703_v21, %v13104_v14  ;;  %v4898_v43 = vpack.c.bf16 %v4866_v45, %v4865_v5 }
 0x960   : > { %v10707_v15 = vpop.eup %10706  ;;  %10726 = vrcp.f32 %v4784_v60  ;;  %v4869_v3 = vmul.f32 %v10705_v32, %v13109_v16 }
 0x961   : > { %v10709_v42 = vpop.eup %10708  ;;  %10728 = vrcp.f32 %v4785_v39  ;;  %v4870_v1 = vmul.f32 %v10707_v15, %v13116_v36  ;;  %v4899_v50 = vpack.c.bf16 %v4868_v47, %v4867_v19  ;;  %v4915_v4 = vshrl.u32 %v4898_v43, 16 }
 0x962   : > { %v10711_v17 = vpop.eup %10710  ;;  %10730 = vrcp.f32 %v4786_v23  ;;  %v4871_v14 = vmul.f32 %v10709_v42, %v13119_v63  ;;  %v4918_v31 = vshll.u32 %v4898_v43, 16 }
 0x963   : > { %v10713_v12 = vpop.eup %10712  ;;  %10732 = vrcp.f32 %v4787_v10  ;;  %v4872_v33 = vmul.f32 %v10711_v17, %v13127_v20  ;;  %v4900_v60 = vpack.c.bf16 %v4870_v1, %v4869_v3  ;;  %v13316_v27 = vrot.slane %v4915_v4, 7 }
 0x964   : > { %v10715_v16 = vpop.eup %10714  ;;  %10734 = vrcp.f32 %v4788_v61  ;;  %v4873_v36 = vmul.f32 %v10713_v12, %v13133_v0  ;;  %v4922_v54 = vshrl.u32 %v4899_v50, 16  ;;  %v4925_v57 = vshll.u32 %v4899_v50, 16 }
 0x965   : > { %v10717_v13 = vpop.eup %10716  ;;  %10736 = vrcp.f32 %v4789_v62  ;;  %v4874_v23 = vmul.f32 %v10715_v16, %v13139_v51  ;;  %v4901_v25 = vpack.c.bf16 %v4872_v33, %v4871_v14  ;;  %v13321_v63 = vor.u32 %v4918_v31, %v13316_v27 }
 0x966   : > { %v10719_v39 = vpop.eup %10718  ;;  %10738 = vrcp.f32 %v4790_v59  ;;  %v4875_v20 = vmul.f32 %v10717_v13, %v13145_v26  ;;  %v13324_v10 = vrot.slane %v4922_v54, 7  ;;  %v4929_v40 = vshrl.u32 %v4900_v60, 16 }
 0x967   : > { %v10721_v61 = vpop.eup %10720  ;;  %10740 = vrcp.f32 %v4791_v49  ;;  %v4876_v0 = vmul.f32 %v10719_v39, %v13151_v34  ;;  %v4902_v6 = vpack.c.bf16 %v4874_v23, %v4873_v36  ;;  %v4932_v5 = vshll.u32 %v4900_v60, 16 }
 0x968   : > { %v10723_v62 = vpop.eup %10722  ;;  %10742 = vrcp.f32 %v4792_v53  ;;  %v4877_v51 = vmul.f32 %v10721_v61, %v13157_v11  ;;  %v13329_v41 = vor.u32 %v4925_v57, %v13324_v10  ;;  %v13331_v45 = vrot.slane %v4929_v40, 7 }
 0x969   : > { %v10725_v59 = vpop.eup %10724  ;;  %10744 = vrcp.f32 %v4793_v52  ;;  %v4878_v26 = vmul.f32 %v10723_v62, %v13163_v58  ;;  %v4903_v21 = vpack.c.bf16 %v4876_v0, %v4875_v20  ;;  %v4936_v19 = vshrl.u32 %v4901_v25, 16 }
 0x96a   : > { %v10727_v49 = vpop.eup %10726  ;;  %10746 = vrcp.f32 %v13295_v29  ;;  %v4879_v34 = vmul.f32 %v10725_v59, %v13169_v22  ;;  %v13337_v53 = vor.u32 %v4932_v5, %v13331_v45  ;;  %v4939_v11 = vshll.u32 %v4901_v25, 16 }
 0x96b   : > { %v10729_v32 = vpop.eup %10728  ;;  %10748 = vrcp.f32 %v13298_v44  ;;  %v4880_v47 = vmul.f32 %v10727_v49, %v13175_v30  ;;  %v4904_v43 = vpack.c.bf16 %v4878_v26, %v4877_v51  ;;  %v13341_v52 = vrot.slane %v4936_v19, 7  ;;  %v14563_v26 = vld [vmem:[#allocation23_spill] sm:$0xff] }
 0x96c   : > { %v10731_v58 = vpop.eup %10730  ;;  %10750 = vrcp.f32 %v13300_v7  ;;  %v4881_v15 = vmul.f32 %v10729_v32, %v13181_v2  ;;  %v4943_v29 = vshrl.u32 %v4902_v6, 16  ;;  %v4946_v3 = vshll.u32 %v4902_v6, 16  ;;  %v14562_v6 = vld [vmem:[#allocation22_spill] sm:$0xff] }
 0x96d   : > { %v10733_v22 = vpop.eup %10732  ;;  %10752 = vrcp.f32 %v13303_v38  ;;  %v4882_v42 = vmul.f32 %v10731_v58, %v13187_v48  ;;  %v4905_v1 = vpack.c.bf16 %v4880_v47, %v4879_v34  ;;  %v13348_v44 = vor.u32 %v4939_v11, %v13341_v52  ;;  %v14564_v11 = vld [vmem:[#allocation24_spill] sm:$0xff] }
 0x96e   : > { %v10735_v30 = vpop.eup %10734  ;;  %10754 = vrcp.f32 %v13306_v56  ;;  %v4883_v50 = vmul.f32 %v10733_v22, %v13195_v37  ;;  %v13352_v4 = vrot.slane %v4943_v29, 7  ;;  %v4950_v7 = vshrl.u32 %v4903_v21, 16  ;;  %v14565_v29 = vld [vmem:[#allocation25_spill] sm:$0xff] }
 0x96f   : > { %v10737_v2 = vpop.eup %10736  ;;  %10756 = vrcp.f32 %v13308_v18  ;;  %v4884_v17 = vmul.f32 %v10735_v30, %v13203_v46  ;;  %v4906_v38 = vpack.c.bf16 %v4882_v42, %v4881_v15  ;;  %v4953_v14 = vshll.u32 %v4903_v21, 16 }
 0x970   : > { %v10739_v48 = vpop.eup %10738  ;;  %10758 = vrcp.f32 %v13312_v28  ;;  %v4885_v31 = vmul.f32 %v10737_v2, %v13211_v9  ;;  %v13359_v12 = vor.u32 %v4946_v3, %v13352_v4  ;;  %v13361_v56 = vrot.slane %v4950_v7, 7 }
 0x971   : > { %v10741_v37 = vpop.eup %10740  ;;  %v4886_v33 = vmul.f32 %v10739_v48, %v13219_v55  ;;  %v4907_v60 = vpack.c.bf16 %v4884_v17, %v4883_v50  ;;  %v4957_v16 = vshrl.u32 %v4904_v43, 16  ;;  %v4960_v18 = vshll.u32 %v4904_v43, 16  ;;  %v14566_v50 = vld [vmem:[#allocation26_spill] sm:$0xff]  ;;  %v14567_v48 = vld [vmem:[#allocation27_spill] sm:$0xff] }
 0x972   : > { %v10743_v36 = vpop.eup %10742  ;;  %v4887_v46 = vmul.f32 %v10741_v37, %v13227_v8  ;;  %v13366_v54 = vor.u32 %v4953_v14, %v13361_v56  ;;  %v4964_v28 = vshrl.u32 %v4905_v1, 16  ;;  %v4967_v57 = vshll.u32 %v4905_v1, 16 }
 0x973   : > { %v10745_v9 = vpop.eup %10744  ;;  %v4888_v13 = vmul.f32 %v10743_v36, %v13235_v35  ;;  %v4908_v23 = vpack.c.bf16 %v4886_v33, %v4885_v31  ;;  %v13369_v25 = vrot.slane %v4957_v16, 7  ;;  %v4971_v39 = vshrl.u32 %v4906_v38, 16  ;;  %v14568_v16 = vld [vmem:[#allocation28_spill] sm:$0xff] }
 0x974   : > { %v10747_v20 = vpop.eup %10746  ;;  %v4889_v55 = vmul.f32 %v10745_v9, %v13243_v24  ;;  %v13372_v40 = vrot.slane %v4964_v28, 7  ;;  %v4974_v61 = vshll.u32 %v4906_v38, 16  ;;  %v4978_v0 = vshrl.u32 %v4907_v60, 16  ;;  %v5066_v9 = vld [vmem:[#allocation2 + $0x28] sm:$0x1] }
 0x975   : > { %v10749_v8 = vpop.eup %10748  ;;  %v4890_v5 = vmul.f32 %v10747_v20, %v14562_v6  ;;  %v4909_v62 = vpack.c.bf16 %v4888_v13, %v4887_v46  ;;  %v13376_v51 = vor.u32 %v4960_v18, %v13369_v25  ;;  %v13378_v59 = vrot.slane %v4971_v39, 7  ;;  %v14569_v20 = vld [vmem:[#allocation20_spill] sm:$0xff] }
 0x976   : > { %v10751_v35 = vpop.eup %10750  ;;  %v4891_v21 = vmul.f32 %v10749_v8, %v14563_v26  ;;  %v13382_v19 = vor.u32 %v4967_v57, %v13372_v40  ;;  %v13384_v24 = vrot.slane %v4978_v0, 7  ;;  %v4981_v49 = vshll.u32 %v4907_v60, 16  ;;  %v5060_v57 = vld [vmem:[#allocation2 + $0x18] sm:$0x1]  ;;  %v5078_v26 = vld [vmem:[#allocation2 + $0x48] sm:$0x1] }
 0x977   : > { %v10753_v34 = vpop.eup %10752  ;;  %v4892_v32 = vmul.f32 %v10751_v35, %v14564_v11  ;;  %v4910_v47 = vpack.c.bf16 %v4890_v5, %v4889_v55  ;;  %v13388_v43 = vor.u32 %v4974_v61, %v13378_v59  ;;  %v4985_v58 = vshrl.u32 %v4908_v23, 16  ;;  %v5072_v35 = vld [vmem:[#allocation2 + $0x38] sm:$0x1]  ;;  %v10442_v55 = vld [vmem:[#allocation9 + $0x30] ss:$12 sps:$4 sm:$0xff]  }
 0x978   : > { %v10755_v15 = vpop.eup %10754  ;;  %v4893_v3 = vmul.f32 %v10753_v34, %v14565_v29  ;;  %v13392_v22 = vor.u32 %v4981_v49, %v13384_v24  ;;  %v4988_v42 = vshll.u32 %v4908_v23, 16  ;;  %v4992_v1 = vshrl.u32 %v4909_v62, 16  ;;  %v10768_v34 = vld [vmem:[#allocation2 + $0x20] sm:$0xff]  ;;  %v5084_v29 = vld [vmem:[#allocation2 + $0x58] sm:$0x1] }
 0x979   : > { %v10757_v30 = vpop.eup %10756  ;;  %v4894_v7 = vmul.f32 %v10755_v15, %v14566_v50  ;;  %v4911_v2 = vpack.c.bf16 %v4892_v32, %v4891_v21  ;;  %v13395_v17 = vrot.slane %v4985_v58, 7  ;;  %v4995_v38 = vshll.u32 %v4909_v62, 16  ;;  %v13422_v62 = vld [vmem:[#allocation9] ss:$12 sps:$4 sm:$0xff]   ;;  %v13439_v58 = vld [vmem:[#allocation9 + $0x1c] ss:$12 sps:$4 sm:$0xff]  }
 0x97a   : > { %v10759_v14 = vpop.eup %10758  ;;  %v4895_v31 = vmul.f32 %v10757_v30, %v14567_v48  ;;  %v13398_v37 = vrot.slane %v4992_v1, 7  ;;  %v4999_v33 = vshrl.u32 %v4910_v47, 16  ;;  %v5002_v60 = vshll.u32 %v4910_v47, 16  ;;  %v14572_v47 = vld [vmem:[#allocation21_spill] sm:$0xff]  ;;  %v5075_v15 = vld [vmem:[#allocation2 + $0x40] sm:$0xff] }
 0x97b   : > { %v4896_v18 = vmul.f32 %v10759_v14, %v14568_v16  ;;  %v4912_v36 = vpack.c.bf16 %v4894_v7, %v4893_v3  ;;  %v13402_v46 = vor.u32 %v4988_v42, %v13395_v17  ;;  %v5006_v28 = vshrl.u32 %v4911_v2, 16  ;;  %v5087_v1 = vld [vmem:[#allocation2 + $0x60] sm:$0xff]  ;;  %v5090_v30 = vld [vmem:[#allocation2 + $0x68] sm:$0x1]  ;;  %v5096_v16 = vld [vmem:[#allocation2 + $0x78] sm:$0x1] }
 0x97c   : > { %v13405_v13 = vor.u32 %v4995_v38, %v13398_v37  ;;  %v13407_v23 = vrot.slane %v4999_v33, 7  ;;  %v5009_v39 = vshll.u32 %v4911_v2, 16  ;;  %v13413_v61 = vsel %vm11272_vm6, %v13321_v63, %v14569_v20  ;;  %v5099_v50 = vld [vmem:[#allocation2 + $0x80] sm:$0xff]  ;;  %v5102_v7 = vld [vmem:[#allocation2 + $0x88] sm:$0x1]  ;;  %v5105_v2 = vld [vmem:[#allocation2 + $0x90] sm:$0xff] }
 0x97d   : > { %v13415_v0 = vpack.c.bf16 %v4896_v18, %v4895_v31  ;;  %v13417_v8 = vrot.slane %v5006_v28, 7  ;;  %v5013_v6 = vshrl.u32 %v4912_v36, 16  ;;  %v5016_v5 = vshll.u32 %v4912_v36, 16  ;;  %5059 = vst [vmem:[#allocation2 + $0x10] sm:$0xff] %v13413_v61  ;;  %5443 = vmatmul.mubr.bf16.vlgmr.msra.gmra.mrb[132].mxu0 %v13413_v61  ;;  %9165 = vmatprep.mubr.bf16.mxu1 %v13413_v61  ;;  %v10769_v38 = vld [vmem:[#allocation2 + $0x30] sm:$0xff] }
 0x97e   : > { %v13425_v21 = vor.u32 %v5002_v60, %v13407_v23  ;;  %v5061_v49 = vsel %vm11267_vm5, %v13316_v27, %v5060_v57  ;;  %v13433_v11 = vsel %vm11272_vm6, %v13329_v41, %v10768_v34  ;;  %v5067_v32 = vsel %vm11267_vm5, %v13324_v10, %v5066_v9  ;;  %5452 = vmatprep.mubr.bf16.mxu0 %v14572_v47  ;;  %v5081_v10 = vld [vmem:[#allocation2 + $0x50] sm:$0xff]  ;;  %v5108_v36 = vld [vmem:[#allocation2 + $0x98] sm:$0x1]  ;;  %v5114_v28 = vld [vmem:[#allocation2 + $0xa8] sm:$0x1] }
 0x97f   : > { %v13442_v3 = vor.u32 %v5009_v39, %v13417_v8  ;;  %v13444_v27 = vrot.slane %v5013_v6, 7  ;;  %v5020_v42 = vshrl.u32 %v13415_v0, 16  ;;  %v5023_v41 = vshll.u32 %v13415_v0, 16  ;;  %5062 = vst [vmem:[#allocation2 + $0x18] sm:$0x1] %v5061_v49  ;;  %5065 = vst [vmem:[#allocation2 + $0x20] sm:$0xff] %v13433_v11  ;;  %6117 = vmatpush1.bf16.msra.mxu0 %v13422_v62 }
 0x980   : > { %5068 = vst [vmem:[#allocation2 + $0x28] sm:$0x1] %v5067_v32  ;;  %v13453_v14 = vsel %vm11272_vm6, %v13337_v53, %v10769_v38  ;;  %v5073_v48 = vsel %vm11267_vm5, %v13331_v45, %v5072_v35  ;;  %v13461_v31 = vsel %vm11272_vm6, %v13348_v44, %v5075_v15  ;;  %v5079_v33 = vsel %vm11267_vm5, %v13341_v52, %v5078_v26  ;;  %v5093_v60 = vld [vmem:[#allocation2 + $0x70] sm:$0xff]  ;;  %v13480_v52 = vld [vmem:[#allocation9 + $0x18] ss:$12 sps:$4 sm:$0xff]  }
 0x981   : > { %6118 = vmatprep.subr.bf16.mxu0 %v13439_v58  ;;  %v5018_v53 = vor.u32 %v5016_v5, %v13444_v27  ;;  %v13468_v18 = vrot.slane %v5020_v42, 7  ;;  %v13473_v45 = vsel %vm11272_vm6, %v13359_v12, %v5081_v10  ;;  %v5085_v44 = vsel %vm11267_vm5, %v13352_v4, %v5084_v29  ;;  %5071 = vst [vmem:[#allocation2 + $0x30] sm:$0xff] %v13453_v14  ;;  %v13499_v39 = vld [vmem:[#allocation9 + $0x34] ss:$12 sps:$4 sm:$0xff]   ;;  %v5120_v0 = vld [vmem:[#allocation2 + $0xb8] sm:$0x1] }
 0x982   : > { %5074 = vst [vmem:[#allocation2 + $0x38] sm:$0x1] %v5073_v48  ;;  %5077 = vst [vmem:[#allocation2 + $0x40] sm:$0xff] %v13461_v31  ;;  %v13485_v57 = vsel %vm11272_vm6, %v13366_v54, %v5087_v1  ;;  %v5091_v12 = vsel %vm11267_vm5, %v13361_v56, %v5090_v30  ;;  %v13493_v4 = vsel %vm11272_vm6, %v13376_v51, %v5093_v60  ;;  %v5111_v54 = vld [vmem:[#allocation2 + $0xa0] sm:$0xff]  ;;  %v5117_v20 = vld [vmem:[#allocation2 + $0xb0] sm:$0xff] }
 0x983   : > { %5080 = vst [vmem:[#allocation2 + $0x48] sm:$0x1] %v5079_v33  ;;  %v5097_v9 = vsel %vm11267_vm5, %v13369_v25, %v5096_v16  ;;  %5083 = vst [vmem:[#allocation2 + $0x50] sm:$0xff] %v13473_v45  ;;  %v5135_v6 = vld [vmem:[#allocation2 + $0xe0] sm:$0xff]  ;;  %v5025_v56 = vor.u32 %v5023_v41, %v13468_v18  ;;  %v13505_v51 = vsel %vm11272_vm6, %v13382_v19, %v5099_v50  ;;  %6119 = vmatpush1.bf16.msra.mxu0 %v13480_v52  ;;  %v5126_v19 = vld [vmem:[#allocation2 + $0xc8] sm:$0x1] }
 0x984   : > { %5086 = vst [vmem:[#allocation2 + $0x58] sm:$0x1] %v5085_v44  ;;  %v5103_v25 = vsel %vm11267_vm5, %v13372_v40, %v5102_v7  ;;  %v13513_v5 = vsel %vm11272_vm6, %v13388_v43, %v5105_v2  ;;  %5089 = vst [vmem:[#allocation2 + $0x60] sm:$0xff] %v13485_v57  ;;  %v5123_v35 = vld [vmem:[#allocation2 + $0xc0] sm:$0xff]  ;;  %v5129_v26 = vld [vmem:[#allocation2 + $0xd0] sm:$0xff]  ;;  %v5109_v40 = vsel %vm11267_vm5, %v13378_v59, %v5108_v36  ;;  %6120 = vmatprep.subr.bf16.mxu0 %v13499_v39 }
 0x985   : > { %5092 = vst [vmem:[#allocation2 + $0x68] sm:$0x1] %v5091_v12  ;;  %5095 = vst [vmem:[#allocation2 + $0x70] sm:$0xff] %v13493_v4  ;;  %v5144_v49 = vld [vmem:[#allocation2 + $0xf8] sm:$0x1]  ;;  %v13524_v43 = vsel %vm11272_vm6, %v13392_v22, %v5111_v54  ;;  %v5115_v34 = vsel %vm11267_vm5, %v13384_v24, %v5114_v28  ;;  %v13532_v32 = vsel %vm11272_vm6, %v13402_v46, %v5117_v20  ;;  %v5141_v22 = vld [vmem:[#allocation2 + $0xf0] sm:$0xff] }
 0x986   : > { %5098 = vst [vmem:[#allocation2 + $0x78] sm:$0x1] %v5097_v9  ;;  %5101 = vst [vmem:[#allocation2 + $0x80] sm:$0xff] %v13505_v51  ;;  %v5132_v59 = vld [vmem:[#allocation2 + $0xd8] sm:$0x1]  ;;  %v5121_v29 = vsel %vm11267_vm5, %v13395_v17, %v5120_v0  ;;  %v13543_v24 = vsel %vm11272_vm6, %v13405_v13, %v5123_v35  ;;  %v5127_v46 = vsel %vm11267_vm5, %v13398_v37, %v5126_v19  ;;  %v5147_v17 = vld [vmem:[#allocation2 + $0x100] sm:$0xff] }
 0x987   : > { %5104 = vst [vmem:[#allocation2 + $0x88] sm:$0x1] %v5103_v25  ;;  %5107 = vst [vmem:[#allocation2 + $0x90] sm:$0xff] %v13513_v5  ;;  %v5138_v15 = vld [vmem:[#allocation2 + $0xe8] sm:$0x1]  ;;  %v13551_v42 = vsel %vm11272_vm6, %v13425_v21, %v5129_v26  ;;  %v5133_v13 = vsel %vm11267_vm5, %v13407_v23, %v5132_v59  ;;  %v13561_v37 = vsel %vm11272_vm6, %v13442_v3, %v5135_v6  ;;  %v13572_v23 = vld [vmem:[#allocation2 + $0x18] sm:$0xff]  ;;  %6121 = vmatpush1.bf16.msra.mxu0 %v10442_v55 }
 0x988   : > { %5110 = vst [vmem:[#allocation2 + $0x98] sm:$0x1] %v5109_v40  ;;  %5113 = vst [vmem:[#allocation2 + $0xa0] sm:$0xff] %v13524_v43  ;;  %v5150_v41 = vld [vmem:[#allocation2 + $0x108] sm:$0x1]  ;;  %v5139_v21 = vsel %vm11267_vm5, %v13417_v8, %v5138_v15  ;;  %v13568_v10 = vsel %vm11272_vm6, %v5018_v53, %v5141_v22  ;;  %v5145_v3 = vsel %vm11267_vm5, %v13444_v27, %v5144_v49  ;;  %9166 = vmatmul.mubr.bf16.vlgmr.msra.gmra.mrb[72].mxu1 %v13572_v23  ;;  %v5153_v59 = vld [vmem:[#allocation2] sm:$0xff] }
 0x989   : > { %5116 = vst [vmem:[#allocation2 + $0xa8] sm:$0x1] %v5115_v34  ;;  %5119 = vst [vmem:[#allocation2 + $0xb0] sm:$0xff] %v13532_v32  ;;  %v13579_v1 = vsel %vm11272_vm6, %v5025_v56, %v5147_v17  ;;  %v5151_v8 = vsel %vm11267_vm5, %v13468_v18, %v5150_v41  ;;  %5453 = vmatmul.mubr.bf16.gmra.mrb[136].mxu0 %v13572_v23  ;;  %9493 = vmatpush1.bf16.msra.mxu1 %v13422_v62  ;;  %v10447_v63 = vld [vmem:[#allocation9 + $0x4c] ss:$12 sps:$4 sm:$0xff]  }
 0x98a   : > { %5122 = vst [vmem:[#allocation2 + $0xb8] sm:$0x1] %v5121_v29  ;;  %5125 = vst [vmem:[#allocation2 + $0xc0] sm:$0xff] %v13543_v24  ;;  %9169 = vmatprep.mubr.bf16.mxu1 %v13433_v11  ;;  %5459 = vmatprep.mubr.bf16.mxu0 %v14572_v47  ;;  %v10445_v27 = vld [vmem:[#allocation9 + $0x48] ss:$12 sps:$4 sm:$0xff]   ;;  %v13601_v2 = vld [vmem:[#allocation2 + $0x38] sm:$0xff] }
 0x98b   : > { %5128 = vst [vmem:[#allocation2 + $0xc8] sm:$0x1] %v5127_v46  ;;  %5131 = vst [vmem:[#allocation2 + $0xd0] sm:$0xff] %v13551_v42  ;;  %9486 = vmatprep.subr.bf16.mxu1 %v13439_v58  ;;  %6122 = vmatprep.subr.bf16.mxu0 %v10447_v63  ;;  %v13595_v30 = vld [vmem:[#allocation2 + $0x28] sm:$0xff]  ;;  %v10450_v62 = vld [vmem:[#allocation9 + $0x64] ss:$12 sps:$4 sm:$0xff]  }
 0x98c   : > { %5134 = vst [vmem:[#allocation2 + $0xd8] sm:$0x1] %v5133_v13  ;;  %5137 = vst [vmem:[#allocation2 + $0xe0] sm:$0xff] %v13561_v37  ;;  %6123 = vmatpush1.bf16.msra.mxu0 %v10445_v27  ;;  %v10448_v58 = vld [vmem:[#allocation9 + $0x60] ss:$12 sps:$4 sm:$0xff]   ;;  %v13615_v18 = vld [vmem:[#allocation2 + $0x58] sm:$0xff] }
 0x98d   : > { %5140 = vst [vmem:[#allocation2 + $0xe8] sm:$0x1] %v5139_v21  ;;  %5143 = vst [vmem:[#allocation2 + $0xf0] sm:$0xff] %v13568_v10  ;;  %9494 = vmatpush1.bf16.msra.mxu1 %v13480_v52  ;;  %v10453_v50 = vld [vmem:[#allocation9 + $0x7c] ss:$12 sps:$4 sm:$0xff]   ;;  %6124 = vmatprep.subr.bf16.mxu0 %v10450_v62 }
 0x98e   : > { %5146 = vst [vmem:[#allocation2 + $0xf8] sm:$0x1] %v5145_v3  ;;  %5149 = vst [vmem:[#allocation2 + $0x100] sm:$0xff] %v13579_v1  ;;  %9487 = vmatprep.subr.bf16.mxu1 %v13499_v39  ;;  %v10451_v7 = vld [vmem:[#allocation9 + $0x78] ss:$12 sps:$4 sm:$0xff]   ;;  %v13607_v16 = vld [vmem:[#allocation2 + $0x48] sm:$0xff] }
 0x98f   : > { %5152 = vst [vmem:[#allocation2 + $0x108] sm:$0x1] %v5151_v8  ;;  %v10456_v38 = vld [vmem:[#allocation9 + $0x94] ss:$12 sps:$4 sm:$0xff]   ;;  %v10454_v48 = vld [vmem:[#allocation9 + $0x90] ss:$12 sps:$4 sm:$0xff]  }
 0x990   : > { %9170 = vmatmul.mubr.bf16.gmra.mrb[76].mxu1 %v13595_v30  ;;  %6125 = vmatpush1.bf16.msra.mxu0 %v10448_v58  ;;  %v10459_v33 = vld [vmem:[#allocation9 + $0xac] ss:$12 sps:$4 sm:$0xff]   ;;  %v10457_v60 = vld [vmem:[#allocation9 + $0xa8] ss:$12 sps:$4 sm:$0xff]   ;;  %v10463_v35 = vld [vmem:[#allocation9 + $0x50] ss:$12 sps:$4 sm:$0xff]  }
 0x991   : > { %5460 = vmatmul.mubr.bf16.gmra.mrb[140].mxu0 %v13433_v11  ;;  %9173 = vmatprep.mubr.bf16.mxu1 %v13453_v14  ;;  %v13613_v53 = vld [vmem:[#allocation9 + $0x8] ss:$12 sps:$4 sm:$0xff]   ;;  %v13628_v52 = vld [vmem:[#allocation2 + $0x78] sm:$0xff]  ;;  %v10461_v56 = vld [vmem:[#allocation9 + $0x20] ss:$12 sps:$4 sm:$0xff]  }
 0x992   : > { %5469 = vmatprep.mubr.bf16.mxu0 %v14572_v47  ;;  %9495 = vmatpush1.bf16.msra.mxu1 %v10442_v55  ;;  %v13622_v44 = vld [vmem:[#allocation2 + $0x68] sm:$0xff]  ;;  %v13640_v28 = vld [vmem:[#allocation2 + $0x98] sm:$0xff]  ;;  %v10470_v34 = vld [vmem:[#allocation9 + $0x184] ss:$12 sps:$4 sm:$0xff]  }
 0x993   : > { %9488 = vmatprep.subr.bf16.mxu1 %v10447_v63  ;;  %6126 = vmatprep.subr.bf16.mxu0 %v10453_v50  ;;  %v13634_v36 = vld [vmem:[#allocation2 + $0x88] sm:$0xff]  ;;  %v13652_v9 = vld [vmem:[#allocation2 + $0xb8] sm:$0xff]  ;;  %v10476_v17 = vld [vmem:[#allocation9 + $0x1b4] ss:$12 sps:$4 sm:$0xff]  }
 0x994   : > { %6127 = vmatpush1.bf16.msra.mxu0 %v10451_v7  ;;  %v13646_v12 = vld [vmem:[#allocation2 + $0xa8] sm:$0xff]  ;;  %v13664_v54 = vld [vmem:[#allocation2 + $0xd8] sm:$0xff]  ;;  %v10482_v3 = vld [vmem:[#allocation9 + $0x1e4] ss:$12 sps:$4 sm:$0xff]  }
 0x995   : > { %6128 = vmatprep.subr.bf16.mxu0 %v10456_v38  ;;  %v13658_v39 = vld [vmem:[#allocation2 + $0xc8] sm:$0xff]  ;;  %v13676_v0 = vld [vmem:[#allocation2 + $0xf8] sm:$0xff]  ;;  %v10488_v63 = vld [vmem:[#allocation9 + $0x214] ss:$12 sps:$4 sm:$0xff]  }
 0x996   : > { %9496 = vmatpush1.bf16.msra.mxu1 %v10445_v27  ;;  %v13670_v20 = vld [vmem:[#allocation2 + $0xe8] sm:$0xff]  ;;  %v10462_v25 = vld [vmem:[#allocation9 + $0x38] ss:$12 sps:$4 sm:$0xff]   ;;  %v10467_v40 = vld [vmem:[#allocation9 + $0xb0] ss:$12 sps:$4 sm:$0xff]  }
 0x997   : > { %9489 = vmatprep.subr.bf16.mxu1 %v10450_v62  ;;  %v13682_v6 = vld [vmem:[#allocation2 + $0x108] sm:$0xff]  ;;  %v10466_v49 = vld [vmem:[#allocation9 + $0x98] ss:$12 sps:$4 sm:$0xff]   ;;  %v10474_v41 = vld [vmem:[#allocation9 + $0x1b0] ss:$12 sps:$4 sm:$0xff]  }
 0x998   : > { %9174 = vmatmul.mubr.bf16.gmra.mrb[80].mxu1 %v13601_v2  ;;  %6129 = vmatpush1.bf16.msra.mxu0 %v10454_v48  ;;  %v10464_v19 = vld [vmem:[#allocation9 + $0x68] ss:$12 sps:$4 sm:$0xff]   ;;  %v10465_v26 = vld [vmem:[#allocation9 + $0x80] ss:$12 sps:$4 sm:$0xff]   ;;  %v10471_v46 = vld [vmem:[#allocation9 + $0x198] ss:$12 sps:$4 sm:$0xff]  }
 0x999   : > { %5470 = vmatmul.mubr.bf16.gmra.mrb[144].mxu0 %v13595_v30  ;;  %9177 = vmatprep.mubr.bf16.mxu1 %v13461_v31  ;;  %v10468_v15 = vld [vmem:[#allocation9 + $0x180] ss:$12 sps:$4 sm:$0xff]   ;;  %v10473_v29 = vld [vmem:[#allocation9 + $0x19c] ss:$12 sps:$4 sm:$0xff]  }
 0x99a   : > { %5476 = vmatprep.mubr.bf16.mxu0 %v14572_v47  ;;  %9497 = vmatpush1.bf16.msra.mxu1 %v10448_v58  ;;  %v5154_v22 = vld [vmem:[#allocation2 + $0x8] sm:$0xff]  ;;  %v10486_v27 = vld [vmem:[#allocation9 + $0x210] ss:$12 sps:$4 sm:$0xff]  }
 0x99b   : > { %9490 = vmatprep.subr.bf16.mxu1 %v10453_v50  ;;  %6130 = vmatprep.subr.bf16.mxu0 %v10459_v33  ;;  %v10479_v13 = vld [vmem:[#allocation9 + $0x1cc] ss:$12 sps:$4 sm:$0xff]   ;;  %v10477_v21 = vld [vmem:[#allocation9 + $0x1c8] ss:$12 sps:$4 sm:$0xff]  }
 0x99c   : > { %6131 = vmatpush1.bf16.msra.mxu0 %v10457_v60  ;;  %v10480_v8 = vld [vmem:[#allocation9 + $0x1e0] ss:$12 sps:$4 sm:$0xff]   ;;  %v10485_v55 = vld [vmem:[#allocation9 + $0x1fc] ss:$12 sps:$4 sm:$0xff]  }
 0x99d   : > { %v10491_v62 = vld [vmem:[#allocation9 + $0x22c] ss:$12 sps:$4 sm:$0xff]   ;;  %v10489_v58 = vld [vmem:[#allocation9 + $0x228] ss:$12 sps:$4 sm:$0xff]  }
 0x99e   : > { %9498 = vmatpush1.bf16.msra.mxu1 %v10451_v7  ;;  %v10492_v50 = vld [vmem:[#allocation9 + $0x188] ss:$12 sps:$4 sm:$0xff]  }
 0x99f   : > { %9491 = vmatprep.subr.bf16.mxu1 %v10456_v38 }
 0x9a0   : > { %9178 = vmatmul.mubr.bf16.gmra.mrb[84].mxu1 %v13607_v16 }
 0x9a1   : > { %5477 = vmatmul.mubr.bf16.gmra.mrb[148].mxu0 %v13453_v14  ;;  %9181 = vmatprep.mubr.bf16.mxu1 %v13473_v45 }
 0x9a2   : > { %5486 = vmatprep.mubr.bf16.mxu0 %v14572_v47  ;;  %9499 = vmatpush1.bf16.msra.mxu1 %v10454_v48 }
 0x9a3   : > { %9492 = vmatprep.subr.bf16.mxu1 %v10459_v33  ;;  %v13833_v33 = vld [vmem:[#allocation2 + $0x40] sm:$0xff] }
 0x9a6   : > { %9500 = vmatpush1.bf16.msra.mxu1 %v10457_v60 }
 0x9a7   : > { %9229 = vmatprep.subr.bf16.mxu1 %v13613_v53 }
 0x9a8   : > { %9182 = vmatmul.mubr.bf16.gmra.mrb[88].mxu1 %v13615_v18 }
 0x9a9   : > { %5487 = vmatmul.mubr.bf16.gmra.mrb[152].mxu0 %v13601_v2  ;;  %9185 = vmatprep.mubr.bf16.mxu1 %v13485_v57 }
 0x9aa   : > { %5493 = vmatprep.mubr.bf16.mxu0 %v14572_v47 }
 0x9b0   : > { %9186 = vmatmul.mubr.bf16.gmra.mrb[92].mxu1 %v13622_v44 }
 0x9b1   : > { %5494 = vmatmul.mubr.bf16.gmra.mrb[156].mxu0 %v13461_v31  ;;  %9189 = vmatprep.mubr.bf16.mxu1 %v13493_v4 }
 0x9b2   : > { %5503 = vmatprep.mubr.bf16.mxu0 %v14572_v47 }
 0x9b8   : > { %9190 = vmatmul.mubr.bf16.gmra.mrb[96].mxu1 %v13628_v52 }
 0x9b9   : > { %5504 = vmatmul.mubr.bf16.gmra.mrb[160].mxu0 %v13607_v16  ;;  %9193 = vmatprep.mubr.bf16.mxu1 %v13505_v51 }
 0x9ba   : > { %5510 = vmatprep.mubr.bf16.mxu0 %v14572_v47 }
 0x9c0   : > { %9194 = vmatmul.mubr.bf16.gmra.mrb[100].mxu1 %v13634_v36 }
 0x9c1   : > { %5511 = vmatmul.mubr.bf16.gmra.mrb[164].mxu0 %v13473_v45  ;;  %9197 = vmatprep.mubr.bf16.mxu1 %v13513_v5 }
 0x9c2   : > { %5520 = vmatprep.mubr.bf16.mxu0 %v14572_v47 }
 0x9c8   : > { %9198 = vmatmul.mubr.bf16.gmra.mrb[104].mxu1 %v13640_v28 }
 0x9c9   : > { %5521 = vmatmul.mubr.bf16.gmra.mrb[168].mxu0 %v13615_v18  ;;  %9201 = vmatprep.mubr.bf16.mxu1 %v13524_v43 }
 0x9ca   : > { %5527 = vmatprep.mubr.bf16.mxu0 %v14572_v47 }
 0x9d0   : > { %9202 = vmatmul.mubr.bf16.gmra.mrb[108].mxu1 %v13646_v12 }
 0x9d1   : > { %5528 = vmatmul.mubr.bf16.gmra.mrb[172].mxu0 %v13485_v57  ;;  %9205 = vmatprep.mubr.bf16.mxu1 %v13532_v32 }
 0x9d2   : > { %5537 = vmatprep.mubr.bf16.mxu0 %v14572_v47 }
 0x9d8   : > { %9206 = vmatmul.mubr.bf16.gmra.mrb[112].mxu1 %v13652_v9 }
 0x9d9   : > { %5538 = vmatmul.mubr.bf16.gmra.mrb[176].mxu0 %v13622_v44  ;;  %9209 = vmatprep.mubr.bf16.mxu1 %v13543_v24 }
 0x9da   : > { %5544 = vmatprep.mubr.bf16.mxu0 %v14572_v47 }
 0x9e0   : > { %9210 = vmatmul.mubr.bf16.gmra.mrb[116].mxu1 %v13658_v39 }
 0x9e1   : > { %5545 = vmatmul.mubr.bf16.gmra.mrb[180].mxu0 %v13493_v4  ;;  %9213 = vmatprep.mubr.bf16.mxu1 %v13551_v42 }
 0x9e2   : > { %5554 = vmatprep.mubr.bf16.mxu0 %v14572_v47 }
 0x9e8   : > { %9214 = vmatmul.mubr.bf16.gmra.mrb[120].mxu1 %v13664_v54 }
 0x9e9   : > { %5555 = vmatmul.mubr.bf16.gmra.mrb[184].mxu0 %v13628_v52  ;;  %9217 = vmatprep.mubr.bf16.mxu1 %v13561_v37 }
 0x9ea   : > { %5561 = vmatprep.mubr.bf16.mxu0 %v14572_v47 }
 0x9f0   : > { %9218 = vmatmul.mubr.bf16.gmra.mrb[124].mxu1 %v13670_v20 }
 0x9f1   : > { %5562 = vmatmul.mubr.bf16.gmra.mrb[188].mxu0 %v13505_v51  ;;  %9221 = vmatprep.mubr.bf16.mxu1 %v13568_v10 }
 0x9f2   : > { %5571 = vmatprep.mubr.bf16.mxu0 %v14572_v47 }
 0x9f8   : > { %9222 = vmatmul.mubr.bf16.gmra.mrb[128].mxu1 %v13676_v0 }
 0x9f9   : > { %5572 = vmatmul.mubr.bf16.gmra.mrb[192].mxu0 %v13634_v36  ;;  %9225 = vmatprep.mubr.bf16.mxu1 %v13579_v1 }
 0x9fa   : > { %5578 = vmatprep.mubr.bf16.mxu0 %v14572_v47 }
 0xa00   : > { %9226 = vmatmul.mubr.bf16.gmra.mrb[132].mxu1 %v13682_v6 }
 0xa01   : > { %5579 = vmatmul.mubr.bf16.gmra.mrb[196].mxu0 %v13513_v5  ;;  %6318 = vmatprep.mubr.bf16.mxu1 %v14572_v47 }
 0xa02   : > { %5588 = vmatprep.mubr.bf16.mxu0 %v14572_v47 }
 0xa08   : > { %6319 = vmatmul.mubr.bf16.vlgmr.msra.gmra.mrb[136].mxu1 %v13524_v43 }
 0xa09   : > { %5589 = vmatmul.mubr.bf16.gmra.mrb[200].mxu0 %v13640_v28  ;;  %9230 = vmatpush3.bf16.msra.mxu1 %v13613_v53 }
 0xa0a   : > { %6328 = vmatprep.mubr.bf16.mxu1 %v14572_v47  ;;  %9231 = vmatprep.subr.bf16.mxu1 %v10461_v56 }
 0xa0b   : > { %5595 = vmatprep.mubr.bf16.mxu0 %v14572_v47 }
 0xa0d   : > { %9232 = vmatpush3.bf16.msra.mxu1 %v10461_v56 }
 0xa0e   : > { %9233 = vmatprep.subr.bf16.mxu1 %v10462_v25 }
 0xa10   : > { %6329 = vmatmul.mubr.bf16.gmra.mrb[140].mxu1 %v13646_v12 }
 0xa11   : > { %5596 = vmatmul.mubr.bf16.gmra.mrb[204].mxu0 %v13524_v43  ;;  %6335 = vmatprep.mubr.bf16.mxu1 %v14572_v47 }
 0xa12   : > { %5605 = vmatprep.mubr.bf16.mxu0 %v14572_v47  ;;  %9234 = vmatpush3.bf16.msra.mxu1 %v10462_v25 }
 0xa13   : > { %9235 = vmatprep.subr.bf16.mxu1 %v10463_v35 }
 0xa16   : > { %9236 = vmatpush3.bf16.msra.mxu1 %v10463_v35 }
 0xa17   : > { %9237 = vmatprep.subr.bf16.mxu1 %v10464_v19 }
 0xa18   : > { %6336 = vmatmul.mubr.bf16.gmra.mrb[144].mxu1 %v13532_v32 }
 0xa19   : > { %5606 = vmatmul.mubr.bf16.gmra.mrb[208].mxu0 %v13646_v12  ;;  %6345 = vmatprep.mubr.bf16.mxu1 %v14572_v47 }
 0xa1a   : > { %5612 = vmatprep.mubr.bf16.mxu0 %v14572_v47  ;;  %9238 = vmatpush3.bf16.msra.mxu1 %v10464_v19  ;;  %v13853_v19 = vld [vmem:[#allocation2 + $0x50] sm:$0xff] }
 0xa1b   : > { %9239 = vmatprep.subr.bf16.mxu1 %v10465_v26 }
 0xa1e   : > { %9240 = vmatpush3.bf16.msra.mxu1 %v10465_v26 }
 0xa1f   : > { %9241 = vmatprep.subr.bf16.mxu1 %v10466_v49 }
 0xa20   : > { %6346 = vmatmul.mubr.bf16.gmra.mrb[148].mxu1 %v13652_v9 }
 0xa21   : > { %5613 = vmatmul.mubr.bf16.gmra.mrb[212].mxu0 %v13532_v32  ;;  %6352 = vmatprep.mubr.bf16.mxu1 %v14572_v47 }
 0xa22   : > { %5622 = vmatprep.mubr.bf16.mxu0 %v14572_v47  ;;  %9242 = vmatpush3.bf16.msra.mxu1 %v10466_v49 }
 0xa23   : > { %9243 = vmatprep.subr.bf16.mxu1 %v10467_v40 }
 0xa26   : > { %9244 = vmatpush3.bf16.msra.mxu1 %v10467_v40  ;;  %v10498_v40 = vld [vmem:[#allocation9 + $0x218] ss:$12 sps:$4 sm:$0xff]  }
 0xa27   : > { %6887 = vmatprep.subr.bf16.mxu1 %v10470_v34 }
 0xa28   : > { %6353 = vmatmul.mubr.bf16.gmra.mrb[152].mxu1 %v13543_v24 }
 0xa29   : > { %5623 = vmatmul.mubr.bf16.gmra.mrb[216].mxu0 %v13652_v9  ;;  %6362 = vmatprep.mubr.bf16.mxu1 %v14572_v47 }
 0xa2a   : > { %5629 = vmatprep.mubr.bf16.mxu0 %v14572_v47 }
 0xa30   : > { %6363 = vmatmul.mubr.bf16.gmra.mrb[156].mxu1 %v13658_v39 }
 0xa31   : > { %5630 = vmatmul.mubr.bf16.gmra.mrb[220].mxu0 %v13543_v24  ;;  %6369 = vmatprep.mubr.bf16.mxu1 %v14572_v47 }
 0xa32   : > { %5639 = vmatprep.mubr.bf16.mxu0 %v14572_v47 }
 0xa38   : > { %6370 = vmatmul.mubr.bf16.gmra.mrb[160].mxu1 %v13551_v42 }
 0xa39   : > { %5640 = vmatmul.mubr.bf16.gmra.mrb[224].mxu0 %v13658_v39  ;;  %6379 = vmatprep.mubr.bf16.mxu1 %v14572_v47 }
 0xa3a   : > { %5646 = vmatprep.mubr.bf16.mxu0 %v14572_v47 }
 0xa40   : > { %6380 = vmatmul.mubr.bf16.gmra.mrb[164].mxu1 %v13664_v54 }
 0xa41   : > { %5647 = vmatmul.mubr.bf16.gmra.mrb[228].mxu0 %v13551_v42  ;;  %6386 = vmatprep.mubr.bf16.mxu1 %v14572_v47 }
 0xa42   : > { %5656 = vmatprep.mubr.bf16.mxu0 %v14572_v47 }
 0xa48   : > { %6387 = vmatmul.mubr.bf16.gmra.mrb[168].mxu1 %v13561_v37 }
 0xa49   : > { %5657 = vmatmul.mubr.bf16.gmra.mrb[232].mxu0 %v13664_v54  ;;  %6396 = vmatprep.mubr.bf16.mxu1 %v14572_v47 }
 0xa4a   : > { %5663 = vmatprep.mubr.bf16.mxu0 %v14572_v47 }
 0xa50   : > { %6397 = vmatmul.mubr.bf16.gmra.mrb[172].mxu1 %v13670_v20 }
 0xa51   : > { %5664 = vmatmul.mubr.bf16.gmra.mrb[236].mxu0 %v13561_v37  ;;  %6403 = vmatprep.mubr.bf16.mxu1 %v14572_v47 }
 0xa52   : > { %5673 = vmatprep.mubr.bf16.mxu0 %v14572_v47 }
 0xa58   : > { %6404 = vmatmul.mubr.bf16.gmra.mrb[176].mxu1 %v13568_v10 }
 0xa59   : > { %5674 = vmatmul.mubr.bf16.gmra.mrb[240].mxu0 %v13670_v20  ;;  %6413 = vmatprep.mubr.bf16.mxu1 %v14572_v47 }
 0xa5a   : > { %5680 = vmatprep.mubr.bf16.mxu0 %v14572_v47 }
 0xa60   : > { %6414 = vmatmul.mubr.bf16.gmra.mrb[180].mxu1 %v13676_v0 }
 0xa61   : > { %5681 = vmatmul.mubr.bf16.gmra.mrb[244].mxu0 %v13568_v10  ;;  %9245 = vmatprep.mubr.bf16.mxu1 %v5153_v59 }
 0xa62   : > { %5690 = vmatprep.mubr.bf16.mxu0 %v14572_v47 }
 0xa68   : > { %9246 = vmatmul.mubr.bf16.vlgmr.msra.gmra.mrb[72].mxu1 %v5154_v22 }
 0xa69   : > { %5691 = vmatmul.mubr.bf16.gmra.mrb[248].mxu0 %v13676_v0  ;;  %6888 = vmatpush1.bf16.msra.mxu1 %v10468_v15 }
 0xa6a   : > { %9249 = vmatprep.mubr.bf16.mxu1 %v13413_v61  ;;  %5697 = vmatprep.mubr.bf16.mxu0 %v14572_v47 }
 0xa6b   : > { %6889 = vmatprep.subr.bf16.mxu1 %v10473_v29  ;;  %v13870_v29 = vld [vmem:[#allocation2 + $0x60] sm:$0xff] }
 0xa6d   : > { %6890 = vmatpush1.bf16.msra.mxu1 %v10471_v46 }
 0xa6e   : > { %6891 = vmatprep.subr.bf16.mxu1 %v10476_v17 }
 0xa70   : > { %9250 = vmatmul.mubr.bf16.gmra.mrb[76].mxu1 %v13572_v23 }
 0xa71   : > { %5698 = vmatmul.mubr.bf16.gmra.mrb[252].mxu0 %v13579_v1  ;;  %9253 = vmatprep.mubr.bf16.mxu1 %v13433_v11  ;;  %v10483_v1 = vld [vmem:[#allocation9 + $0x1f8] ss:$12 sps:$4 sm:$0xff]  }
 0xa72   : > { %5707 = vmatprep.mubr.bf16.mxu0 %v14572_v47  ;;  %6892 = vmatpush1.bf16.msra.mxu1 %v10474_v41 }
 0xa73   : > { %6893 = vmatprep.subr.bf16.mxu1 %v10479_v13 }
 0xa76   : > { %6894 = vmatpush1.bf16.msra.mxu1 %v10477_v21 }
 0xa77   : > { %6895 = vmatprep.subr.bf16.mxu1 %v10482_v3 }
 0xa78   : > { %9254 = vmatmul.mubr.bf16.gmra.mrb[80].mxu1 %v13595_v30 }
 0xa79   : > { %5708 = vmatmul.mubr.bf16.gmra.mrb[0].mxu0 %v13682_v6  ;;  %9257 = vmatprep.mubr.bf16.mxu1 %v13453_v14 }
 0xa7a   : > { %6148 = vmatprep.mubr.bf16.mxu0 %v14572_v47  ;;  %6896 = vmatpush1.bf16.msra.mxu1 %v10480_v8 }
 0xa7b   : > { %6897 = vmatprep.subr.bf16.mxu1 %v10485_v55  ;;  %v13886_v55 = vld [vmem:[#allocation2 + $0x70] sm:$0xff] }
 0xa7e   : > { %6898 = vmatpush1.bf16.msra.mxu1 %v10483_v1 }
 0xa7f   : > { %6899 = vmatprep.subr.bf16.mxu1 %v10488_v63 }
 0xa80   : > { %9258 = vmatmul.mubr.bf16.gmra.mrb[84].mxu1 %v13601_v2 }
 0xa81   : > { %6149 = vmatmul.mubr.bf16.vlgmr.msra.gmra.mrb[132].mxu0 %v5153_v59  ;;  %9261 = vmatprep.mubr.bf16.mxu1 %v13461_v31 }
 0xa82   : > { %6158 = vmatprep.mubr.bf16.mxu0 %v14572_v47  ;;  %6900 = vmatpush1.bf16.msra.mxu1 %v10486_v27 }
 0xa83   : > { %6901 = vmatprep.subr.bf16.mxu1 %v10491_v62 }
 0xa86   : > { %6902 = vmatpush1.bf16.msra.mxu1 %v10489_v58 }
 0xa87   : > { %9309 = vmatprep.subr.bf16.mxu1 %v10492_v50 }
 0xa88   : > { %9262 = vmatmul.mubr.bf16.gmra.mrb[88].mxu1 %v13607_v16 }
 0xa89   : > { %6159 = vmatmul.mubr.bf16.gmra.mrb[136].mxu0 %v5154_v22  ;;  %9265 = vmatprep.mubr.bf16.mxu1 %v13473_v45 }
 0xa8a   : > { %6165 = vmatprep.mubr.bf16.mxu0 %v14572_v47 }
 0xa90   : > { %9266 = vmatmul.mubr.bf16.gmra.mrb[92].mxu1 %v13615_v18 }
 0xa91   : > { %6166 = vmatmul.mubr.bf16.gmra.mrb[140].mxu0 %v13413_v61  ;;  %9269 = vmatprep.mubr.bf16.mxu1 %v13485_v57  ;;  %v10493_v61 = vld [vmem:[#allocation9 + $0x1a0] ss:$12 sps:$4 sm:$0xff]  }
 0xa92   : > { %6175 = vmatprep.mubr.bf16.mxu0 %v14572_v47 }
 0xa98   : > { %9270 = vmatmul.mubr.bf16.gmra.mrb[96].mxu1 %v13622_v44 }
 0xa99   : > { %6176 = vmatmul.mubr.bf16.gmra.mrb[144].mxu0 %v13572_v23  ;;  %9273 = vmatprep.mubr.bf16.mxu1 %v13493_v4  ;;  %v10497_v23 = vld [vmem:[#allocation9 + $0x200] ss:$12 sps:$4 sm:$0xff]  }
 0xa9a   : > { %6182 = vmatprep.mubr.bf16.mxu0 %v14572_v47 }
 0xaa0   : > { %9274 = vmatmul.mubr.bf16.gmra.mrb[100].mxu1 %v13628_v52 }
 0xaa1   : > { %6183 = vmatmul.mubr.bf16.gmra.mrb[148].mxu0 %v13433_v11  ;;  %9277 = vmatprep.mubr.bf16.mxu1 %v13505_v51 }
 0xaa2   : > { %6192 = vmatprep.mubr.bf16.mxu0 %v14572_v47 }
 0xaa8   : > { %9278 = vmatmul.mubr.bf16.gmra.mrb[104].mxu1 %v13634_v36 }
 0xaa9   : > { %6193 = vmatmul.mubr.bf16.gmra.mrb[152].mxu0 %v13595_v30  ;;  %9281 = vmatprep.mubr.bf16.mxu1 %v13513_v5 }
 0xaaa   : > { %6199 = vmatprep.mubr.bf16.mxu0 %v14572_v47 }
 0xab0   : > { %9282 = vmatmul.mubr.bf16.gmra.mrb[108].mxu1 %v13640_v28 }
 0xab1   : > { %6200 = vmatmul.mubr.bf16.gmra.mrb[156].mxu0 %v13453_v14  ;;  %9285 = vmatprep.mubr.bf16.mxu1 %v13524_v43  ;;  %v10494_v14 = vld [vmem:[#allocation9 + $0x1b8] ss:$12 sps:$4 sm:$0xff]  }
 0xab2   : > { %6209 = vmatprep.mubr.bf16.mxu0 %v14572_v47 }
 0xab8   : > { %9286 = vmatmul.mubr.bf16.gmra.mrb[112].mxu1 %v13646_v12 }
 0xab9   : > { %6210 = vmatmul.mubr.bf16.gmra.mrb[160].mxu0 %v13601_v2  ;;  %9289 = vmatprep.mubr.bf16.mxu1 %v13532_v32 }
 0xaba   : > { %6216 = vmatprep.mubr.bf16.mxu0 %v14572_v47 }
 0xac0   : > { %9290 = vmatmul.mubr.bf16.gmra.mrb[116].mxu1 %v13652_v9 }
 0xac1   : > { %6217 = vmatmul.mubr.bf16.gmra.mrb[164].mxu0 %v13461_v31  ;;  %9293 = vmatprep.mubr.bf16.mxu1 %v13543_v24  ;;  %v10495_v31 = vld [vmem:[#allocation9 + $0x1d0] ss:$12 sps:$4 sm:$0xff]  }
 0xac2   : > { %6226 = vmatprep.mubr.bf16.mxu0 %v14572_v47  ;;  %v13813_v24 = vld [vmem:[#allocation2 + $0x30] sm:$0xff] }
 0xac8   : > { %9294 = vmatmul.mubr.bf16.gmra.mrb[120].mxu1 %v13658_v39 }
 0xac9   : > { %6227 = vmatmul.mubr.bf16.gmra.mrb[168].mxu0 %v13607_v16  ;;  %9297 = vmatprep.mubr.bf16.mxu1 %v13551_v42 }
 0xaca   : > { %6233 = vmatprep.mubr.bf16.mxu0 %v14572_v47 }
 0xad0   : > { %9298 = vmatmul.mubr.bf16.gmra.mrb[124].mxu1 %v13664_v54 }
 0xad1   : > { %6234 = vmatmul.mubr.bf16.gmra.mrb[172].mxu0 %v13473_v45  ;;  %9301 = vmatprep.mubr.bf16.mxu1 %v13561_v37  ;;  %v10496_v45 = vld [vmem:[#allocation9 + $0x1e8] ss:$12 sps:$4 sm:$0xff]  }
 0xad2   : > { %6243 = vmatprep.mubr.bf16.mxu0 %v14572_v47 }
 0xad8   : > { %9302 = vmatmul.mubr.bf16.gmra.mrb[128].mxu1 %v13670_v20 }
 0xad9   : > { %6244 = vmatmul.mubr.bf16.gmra.mrb[176].mxu0 %v13615_v18  ;;  %9305 = vmatprep.mubr.bf16.mxu1 %v13568_v10 }
 0xada   : > { %6250 = vmatprep.mubr.bf16.mxu0 %v14572_v47 }
 0xae0   : > { %9306 = vmatmul.mubr.bf16.gmra.mrb[132].mxu1 %v13676_v0 }
 0xae1   : > { %6251 = vmatmul.mubr.bf16.gmra.mrb[180].mxu0 %v13485_v57  ;;  %6919 = vmatprep.mubr.bf16.mxu1 %v14572_v47 }
 0xae2   : > { %6260 = vmatprep.mubr.bf16.mxu0 %v14572_v47 }
 0xae8   : > { %6920 = vmatmul.mubr.bf16.vlgmr.msra.gmra.mrb[184].mxu1 %v13433_v11 }
 0xae9   : > { %6261 = vmatmul.mubr.bf16.gmra.mrb[184].mxu0 %v13622_v44  ;;  %9310 = vmatpush3.bf16.msra.mxu1 %v10492_v50 }
 0xaea   : > { %6929 = vmatprep.mubr.bf16.mxu1 %v14572_v47  ;;  %6267 = vmatprep.mubr.bf16.mxu0 %v14572_v47 }
 0xaeb   : > { %9311 = vmatprep.subr.bf16.mxu1 %v10493_v61 }
 0xaed   : > { %9312 = vmatpush3.bf16.msra.mxu1 %v10493_v61 }
 0xaee   : > { %9313 = vmatprep.subr.bf16.mxu1 %v10494_v14 }
 0xaf0   : > { %6930 = vmatmul.mubr.bf16.gmra.mrb[188].mxu1 %v13595_v30 }
 0xaf1   : > { %6268 = vmatmul.mubr.bf16.gmra.mrb[188].mxu0 %v13493_v4  ;;  %6936 = vmatprep.mubr.bf16.mxu1 %v14572_v47 }
 0xaf2   : > { %6277 = vmatprep.mubr.bf16.mxu0 %v14572_v47  ;;  %9314 = vmatpush3.bf16.msra.mxu1 %v10494_v14  ;;  %v13902_v14 = vld [vmem:[#allocation2 + $0x80] sm:$0xff] }
 0xaf3   : > { %9315 = vmatprep.subr.bf16.mxu1 %v10495_v31 }
 0xaf4   : > { %v13805_v11 = vpop.f32.mrb[212].mxu0 }
 0xaf5   : > { %14573 = vst [vmem:[#allocation22_spill] sm:$0xff] %v13805_v11  ;;  %v13807_v57 = vpop.f32.mrb[213].mxu0 }
 0xaf6   : > { %14574 = vst [vmem:[#allocation23_spill] sm:$0xff] %v13807_v57  ;;  %v13809_v43 = vpop.f32.mrb[214].mxu0  ;;  %9316 = vmatpush3.bf16.msra.mxu1 %v10495_v31  ;;  %v10499_v31 = vld [vmem:[#allocation9 + $0x230] ss:$12 sps:$4 sm:$0xff]  }
 0xaf7   : > { %14575 = vst [vmem:[#allocation24_spill] sm:$0xff] %v13809_v43  ;;  %v13811_v32 = vpop.f32.mrb[215].mxu0  ;;  %9317 = vmatprep.subr.bf16.mxu1 %v10496_v45 }
 0xaf8   : > { %14576 = vst [vmem:[#allocation25_spill] sm:$0xff] %v13811_v32  ;;  %6937 = vmatmul.mubr.bf16.gmra.mrb[192].mxu1 %v13813_v24 }
 0xaf9   : > { %6278 = vmatmul.mubr.bf16.gmra.mrb[192].mxu0 %v13628_v52  ;;  %6946 = vmatprep.mubr.bf16.mxu1 %v14572_v47 }
 0xafa   : > { %6284 = vmatprep.mubr.bf16.mxu0 %v14572_v47  ;;  %9318 = vmatpush3.bf16.msra.mxu1 %v10496_v45 }
 0xafb   : > { %9319 = vmatprep.subr.bf16.mxu1 %v10497_v23 }
 0xafc   : > { %v5624_v4 = vpop.f32.mrb[216].mxu0 }
 0xafd   : > { %v13819_v42 = vpop.f32.mrb[217].mxu0 }
 0xafe   : > { %14577 = vst [vmem:[#allocation26_spill] sm:$0xff] %v13819_v42  ;;  %v5627_v37 = vpop.f32.mrb[218].mxu0  ;;  %9320 = vmatpush3.bf16.msra.mxu1 %v10497_v23 }
 0xaff   : > { %v5628_v10 = vpop.f32.mrb[219].mxu0  ;;  %9321 = vmatprep.subr.bf16.mxu1 %v10498_v40 }
 0xb00   : > { %6947 = vmatmul.mubr.bf16.gmra.mrb[196].mxu1 %v13601_v2 }
 0xb01   : > { %6285 = vmatmul.mubr.bf16.gmra.mrb[196].mxu0 %v13505_v51  ;;  %6953 = vmatprep.mubr.bf16.mxu1 %v14572_v47 }
 0xb02   : > { %6294 = vmatprep.mubr.bf16.mxu0 %v14572_v47  ;;  %9322 = vmatpush3.bf16.msra.mxu1 %v10498_v40 }
 0xb03   : > { %9323 = vmatprep.subr.bf16.mxu1 %v10499_v31 }
 0xb04   : > { %v13825_v30 = vpop.f32.mrb[220].mxu0 }
 0xb05   : > { %14578 = vst [vmem:[#allocation27_spill] sm:$0xff] %v13825_v30  ;;  %v13827_v7 = vpop.f32.mrb[221].mxu0 }
 0xb06   : > { %14579 = vst [vmem:[#allocation28_spill] sm:$0xff] %v13827_v7  ;;  %v13829_v38 = vpop.f32.mrb[222].mxu0  ;;  %9324 = vmatpush3.bf16.msra.mxu1 %v10499_v31 }
 0xb07   : > { %14580 = vst [vmem:[#allocation20_spill] sm:$0xff] %v13829_v38  ;;  %v13831_v48 = vpop.f32.mrb[223].mxu0 }
 0xb08   : > { %14581 = vst [vmem:[#allocation19_spill] sm:$0xff] %v13831_v48  ;;  %6954 = vmatmul.mubr.bf16.gmra.mrb[200].mxu1 %v13833_v33 }
 0xb09   : > { %6295 = vmatmul.mubr.bf16.gmra.mrb[200].mxu0 %v13634_v36  ;;  %6963 = vmatprep.mubr.bf16.mxu1 %v14572_v47 }
 0xb0a   : > { %6301 = vmatprep.mubr.bf16.mxu0 %v14572_v47 }
 0xb0c   : > { %v5641_v51 = vpop.f32.mrb[224].mxu0 }
 0xb0d   : > { %v13839_v2 = vpop.f32.mrb[225].mxu0 }
 0xb0e   : > { %14582 = vst [vmem:[#allocation18_spill] sm:$0xff] %v13839_v2  ;;  %v5644_v60 = vpop.f32.mrb[226].mxu0 }
 0xb0f   : > { %v5645_v53 = vpop.f32.mrb[227].mxu0 }
 0xb10   : > { %6964 = vmatmul.mubr.bf16.gmra.mrb[204].mxu1 %v13607_v16  ;;  %v13918_v53 = vld [vmem:[#allocation2 + $0x90] sm:$0xff] }
 0xb11   : > { %6302 = vmatmul.mubr.bf16.gmra.mrb[204].mxu0 %v13513_v5  ;;  %6970 = vmatprep.mubr.bf16.mxu1 %v14572_v47 }
 0xb12   : > { %6311 = vmatprep.mubr.bf16.mxu0 %v14572_v47 }
 0xb14   : > { %v13845_v6 = vpop.f32.mrb[228].mxu0 }
 0xb15   : > { %14583 = vst [vmem:[#allocation21_spill] sm:$0xff] %v13845_v6  ;;  %v13847_v56 = vpop.f32.mrb[229].mxu0 }
 0xb16   : > { %14584 = vst [vmem:[#allocation29_spill] sm:$0xff] %v13847_v56  ;;  %v13849_v25 = vpop.f32.mrb[230].mxu0  ;;  %v14014_v56 = vld [vmem:[#allocation2 + $0xf0] sm:$0xff] }
 0xb17   : > { %14585 = vst [vmem:[#allocation30_spill] sm:$0xff] %v13849_v25  ;;  %v13851_v35 = vpop.f32.mrb[231].mxu0 }
 0xb18   : > { %14586 = vst [vmem:[#allocation31_spill] sm:$0xff] %v13851_v35  ;;  %6971 = vmatmul.mubr.bf16.gmra.mrb[208].mxu1 %v13853_v19 }
 0xb19   : > { %6312 = vmatmul.mubr.bf16.gmra.mrb[208].mxu0 %v13640_v28  ;;  %6980 = vmatprep.mubr.bf16.mxu1 %v14572_v47 }
 0xb1c   : > { %v5658_v5 = vpop.f32.mrb[232].mxu0 }
 0xb1d   : > { %v13858_v16 = vpop.f32.mrb[233].mxu0 }
 0xb1e   : > { %14587 = vst [vmem:[#allocation32_spill] sm:$0xff] %v13858_v16  ;;  %v5661_v26 = vpop.f32.mrb[234].mxu0 }
 0xb1f   : > { %v5662_v49 = vpop.f32.mrb[235].mxu0 }
 0xb20   : > { %6981 = vmatmul.mubr.bf16.gmra.mrb[212].mxu1 %v13615_v18 }
 0xb21   : > { %6987 = vmatprep.mubr.bf16.mxu1 %v14572_v47 }
 0xb24   : > { %v13862_v34 = vpop.f32.mrb[236].mxu0 }
 0xb25   : > { %14588 = vst [vmem:[#allocation33_spill] sm:$0xff] %v13862_v34  ;;  %v13864_v59 = vpop.f32.mrb[237].mxu0 }
 0xb26   : > { %14589 = vst [vmem:[#allocation34_spill] sm:$0xff] %v13864_v59  ;;  %v13866_v15 = vpop.f32.mrb[238].mxu0  ;;  %v13998_v59 = vld [vmem:[#allocation2 + $0xe0] sm:$0xff] }
 0xb27   : > { %14590 = vst [vmem:[#allocation35_spill] sm:$0xff] %v13866_v15  ;;  %v13868_v22 = vpop.f32.mrb[239].mxu0 }
 0xb28   : > { %14591 = vst [vmem:[#allocation36_spill] sm:$0xff] %v13868_v22  ;;  %6988 = vmatmul.mubr.bf16.gmra.mrb[216].mxu1 %v13870_v29 }
 0xb29   : > { %6997 = vmatprep.mubr.bf16.mxu1 %v14572_v47 }
 0xb2c   : > { %v5675_v18 = vpop.f32.mrb[240].mxu0 }
 0xb2d   : > { %v13874_v46 = vpop.f32.mrb[241].mxu0 }
 0xb2e   : > { %14592 = vst [vmem:[#allocation37_spill] sm:$0xff] %v13874_v46  ;;  %v5678_v17 = vpop.f32.mrb[242].mxu0 }
 0xb2f   : > { %v5679_v41 = vpop.f32.mrb[243].mxu0 }
 0xb30   : > { %6998 = vmatmul.mubr.bf16.gmra.mrb[220].mxu1 %v13622_v44 }
 0xb31   : > { %7004 = vmatprep.mubr.bf16.mxu1 %v14572_v47 }
 0xb34   : > { %v13878_v13 = vpop.f32.mrb[244].mxu0 }
 0xb35   : > { %14593 = vst [vmem:[#allocation38_spill] sm:$0xff] %v13878_v13  ;;  %v13880_v21 = vpop.f32.mrb[245].mxu0 }
 0xb36   : > { %14594 = vst [vmem:[#allocation39_spill] sm:$0xff] %v13880_v21  ;;  %v13882_v3 = vpop.f32.mrb[246].mxu0  ;;  %v13982_v21 = vld [vmem:[#allocation2 + $0xd0] sm:$0xff] }
 0xb37   : > { %14595 = vst [vmem:[#allocation40_spill] sm:$0xff] %v13882_v3  ;;  %v13884_v8 = vpop.f32.mrb[247].mxu0 }
 0xb38   : > { %14596 = vst [vmem:[#allocation41_spill] sm:$0xff] %v13884_v8  ;;  %7005 = vmatmul.mubr.bf16.gmra.mrb[224].mxu1 %v13886_v55 }
 0xb39   : > { %7014 = vmatprep.mubr.bf16.mxu1 %v14572_v47 }
 0xb3c   : > { %v5692_v1 = vpop.f32.mrb[248].mxu0 }
 0xb3d   : > { %v13890_v63 = vpop.f32.mrb[249].mxu0  ;;  %v13934_v1 = vld [vmem:[#allocation2 + $0xa0] sm:$0xff] }
 0xb3e   : > { %14597 = vst [vmem:[#allocation42_spill] sm:$0xff] %v13890_v63  ;;  %v5695_v44 = vpop.f32.mrb[250].mxu0 }
 0xb3f   : > { %v5696_v27 = vpop.f32.mrb[251].mxu0 }
 0xb40   : > { %7015 = vmatmul.mubr.bf16.gmra.mrb[228].mxu1 %v13628_v52 }
 0xb41   : > { %7021 = vmatprep.mubr.bf16.mxu1 %v14572_v47 }
 0xb44   : > { %v13894_v62 = vpop.f32.mrb[252].mxu0 }
 0xb45   : > { %14598 = vst [vmem:[#allocation43_spill] sm:$0xff] %v13894_v62  ;;  %v13896_v58 = vpop.f32.mrb[253].mxu0 }
 0xb46   : > { %14599 = vst [vmem:[#allocation44_spill] sm:$0xff] %v13896_v58  ;;  %v13898_v50 = vpop.f32.mrb[254].mxu0  ;;  %v13966_v58 = vld [vmem:[#allocation2 + $0xc0] sm:$0xff] }
 0xb47   : > { %14600 = vst [vmem:[#allocation45_spill] sm:$0xff] %v13898_v50  ;;  %v13900_v61 = vpop.f32.mrb[255].mxu0 }
 0xb48   : > { %14601 = vst [vmem:[#allocation46_spill] sm:$0xff] %v13900_v61  ;;  %7022 = vmatmul.mubr.bf16.gmra.mrb[232].mxu1 %v13902_v14 }
 0xb49   : > { %7031 = vmatprep.mubr.bf16.mxu1 %v14572_v47 }
 0xb4c   : > { %v5709_v45 = vpop.f32.mrb[0].mxu0 }
 0xb4d   : > { %v13906_v4 = vpop.f32.mrb[1].mxu0 }
 0xb4e   : > { %14602 = vst [vmem:[#allocation47_spill] sm:$0xff] %v13906_v4  ;;  %v5712_v52 = vpop.f32.mrb[2].mxu0 }
 0xb4f   : > { %v5713_v37 = vpop.f32.mrb[3].mxu0 }
 0xb50   : > { %7032 = vmatmul.mubr.bf16.gmra.mrb[236].mxu1 %v13634_v36 }
 0xb51   : > { %7038 = vmatprep.mubr.bf16.mxu1 %v14572_v47 }
 0xb54   : > { %v13910_v10 = vpop.f32.mrb[132].mxu0 }
 0xb55   : > { %v13912_v23 = vpop.f32.mrb[133].mxu0 }
 0xb56   : > { %v13914_v51 = vpop.f32.mrb[134].mxu0 }
 0xb57   : > { %v13916_v60 = vpop.f32.mrb[135].mxu0 }
 0xb58   : > { %7039 = vmatmul.mubr.bf16.gmra.mrb[240].mxu1 %v13918_v53 }
 0xb59   : > { %7048 = vmatprep.mubr.bf16.mxu1 %v14572_v47 }
 0xb5c   : > { %v6160_v5 = vpop.f32.mrb[136].mxu0 }
 0xb5d   : > { %v13922_v26 = vpop.f32.mrb[137].mxu0 }
 0xb5e   : > { %v6163_v36 = vpop.f32.mrb[138].mxu0 }
 0xb5f   : > { %v6164_v49 = vpop.f32.mrb[139].mxu0  ;;  %v13950_v36 = vld [vmem:[#allocation2 + $0xb0] sm:$0xff] }
 0xb60   : > { %7049 = vmatmul.mubr.bf16.gmra.mrb[244].mxu1 %v13640_v28 }
 0xb61   : > { %7055 = vmatprep.mubr.bf16.mxu1 %v14572_v47 }
 0xb64   : > { %v13926_v40 = vpop.f32.mrb[140].mxu0 }
 0xb65   : > { %v13928_v18 = vpop.f32.mrb[141].mxu0 }
 0xb66   : > { %v13930_v17 = vpop.f32.mrb[142].mxu0 }
 0xb67   : > { %v13932_v41 = vpop.f32.mrb[143].mxu0 }
 0xb68   : > { %7056 = vmatmul.mubr.bf16.gmra.mrb[248].mxu1 %v13934_v1 }
 0xb69   : > { %7065 = vmatprep.mubr.bf16.mxu1 %v14572_v47 }
 0xb6c   : > { %v6177_v44 = vpop.f32.mrb[144].mxu0 }
 0xb6d   : > { %v13938_v27 = vpop.f32.mrb[145].mxu0 }
 0xb6e   : > { %v6180_v28 = vpop.f32.mrb[146].mxu0 }
 0xb6f   : > { %v6181_v31 = vpop.f32.mrb[147].mxu0 }
 0xb70   : > { %7066 = vmatmul.mubr.bf16.gmra.mrb[252].mxu1 %v13646_v12 }
 0xb71   : > { %7072 = vmatprep.mubr.bf16.mxu1 %v14572_v47 }
 0xb74   : > { %v13942_v45 = vpop.f32.mrb[148].mxu0 }
 0xb75   : > { %v13944_v52 = vpop.f32.mrb[149].mxu0 }
 0xb76   : > { %v13946_v37 = vpop.f32.mrb[150].mxu0 }
 0xb77   : > { %v13948_v5 = vpop.f32.mrb[151].mxu0 }
 0xb78   : > { %7073 = vmatmul.mubr.bf16.gmra.mrb[4].mxu1 %v13950_v36 }
 0xb79   : > { %7082 = vmatprep.mubr.bf16.mxu1 %v14572_v47 }
 0xb7c   : > { %v6194_v49 = vpop.f32.mrb[152].mxu0 }
 0xb7d   : > { %v13954_v44 = vpop.f32.mrb[153].mxu0 }
 0xb7e   : > { %v6197_v12 = vpop.f32.mrb[154].mxu0 }
 0xb7f   : > { %v6198_v28 = vpop.f32.mrb[155].mxu0 }
 0xb80   : > { %7083 = vmatmul.mubr.bf16.gmra.mrb[8].mxu1 %v13652_v9 }
 0xb81   : > { %7089 = vmatprep.mubr.bf16.mxu1 %v14572_v47 }
 0xb84   : > { %v13958_v31 = vpop.f32.mrb[156].mxu0 }
 0xb85   : > { %v13960_v4 = vpop.f32.mrb[157].mxu0 }
 0xb86   : > { %v13962_v61 = vpop.f32.mrb[158].mxu0 }
 0xb87   : > { %v13964_v50 = vpop.f32.mrb[159].mxu0 }
 0xb88   : > { %7090 = vmatmul.mubr.bf16.gmra.mrb[136].mxu1 %v13966_v58 }
 0xb89   : > { %7099 = vmatprep.mubr.bf16.mxu1 %v14572_v47 }
 0xb8c   : > { %v6211_v49 = vpop.f32.mrb[160].mxu0 }
 0xb8d   : > { %v13970_v12 = vpop.f32.mrb[161].mxu0 }
 0xb8e   : > { %v6214_v9 = vpop.f32.mrb[162].mxu0 }
 0xb8f   : > { %v6215_v28 = vpop.f32.mrb[163].mxu0 }
 0xb90   : > { %7100 = vmatmul.mubr.bf16.gmra.mrb[140].mxu1 %v13658_v39 }
 0xb91   : > { %7106 = vmatprep.mubr.bf16.mxu1 %v14572_v47 }
 0xb94   : > { %v13974_v62 = vpop.f32.mrb[164].mxu0 }
 0xb95   : > { %v13976_v63 = vpop.f32.mrb[165].mxu0 }
 0xb96   : > { %v13978_v8 = vpop.f32.mrb[166].mxu0 }
 0xb97   : > { %v13980_v3 = vpop.f32.mrb[167].mxu0 }
 0xb98   : > { %7107 = vmatmul.mubr.bf16.gmra.mrb[144].mxu1 %v13982_v21 }
 0xb99   : > { %7116 = vmatprep.mubr.bf16.mxu1 %v14572_v47 }
 0xb9c   : > { %v6228_v49 = vpop.f32.mrb[168].mxu0 }
 0xb9d   : > { %v13986_v9 = vpop.f32.mrb[169].mxu0 }
 0xb9e   : > { %v6231_v39 = vpop.f32.mrb[170].mxu0 }
 0xb9f   : > { %v6232_v28 = vpop.f32.mrb[171].mxu0 }
 0xba0   : > { %7117 = vmatmul.mubr.bf16.gmra.mrb[148].mxu1 %v13664_v54 }
 0xba1   : > { %7123 = vmatprep.mubr.bf16.mxu1 %v14572_v47 }
 0xba4   : > { %v13990_v13 = vpop.f32.mrb[172].mxu0 }
 0xba5   : > { %v13992_v46 = vpop.f32.mrb[173].mxu0 }
 0xba6   : > { %v13994_v22 = vpop.f32.mrb[174].mxu0 }
 0xba7   : > { %v13996_v15 = vpop.f32.mrb[175].mxu0 }
 0xba8   : > { %7124 = vmatmul.mubr.bf16.gmra.mrb[152].mxu1 %v13998_v59 }
 0xba9   : > { %7133 = vmatprep.mubr.bf16.mxu1 %v14572_v47 }
 0xbac   : > { %v6245_v49 = vpop.f32.mrb[176].mxu0 }
 0xbad   : > { %v14002_v39 = vpop.f32.mrb[177].mxu0 }
 0xbae   : > { %v6248_v54 = vpop.f32.mrb[178].mxu0 }
 0xbaf   : > { %v6249_v28 = vpop.f32.mrb[179].mxu0 }
 0xbb0   : > { %7134 = vmatmul.mubr.bf16.gmra.mrb[156].mxu1 %v13670_v20 }
 0xbb1   : > { %7140 = vmatprep.mubr.bf16.mxu1 %v14572_v47 }
 0xbb4   : > { %v14006_v34 = vpop.f32.mrb[180].mxu0 }
 0xbb5   : > { %v14008_v16 = vpop.f32.mrb[181].mxu0 }
 0xbb6   : > { %v14010_v35 = vpop.f32.mrb[182].mxu0 }
 0xbb7   : > { %v14012_v25 = vpop.f32.mrb[183].mxu0 }
 0xbb8   : > { %7141 = vmatmul.mubr.bf16.gmra.mrb[160].mxu1 %v14014_v56 }
 0xbb9   : > { %7150 = vmatprep.mubr.bf16.mxu1 %v14572_v47 }
 0xbbb   : > { %v6921_v49 = vpop.f32.mrb[184].mxu1 }
 0xbbc   : > { %v6262_v54 = vpop.f32.mrb[184].mxu0  ;;  %v9501_v20 = vadd.f32 %v6921_v49, %v13910_v10  ;;  %v6923_v28 = vpop.f32.mrb[185].mxu1 }
 0xbbd   : > { %v14019_v6 = vpop.f32.mrb[185].mxu0  ;;  %v9502_v2 = vadd.f32 %v6923_v28, %v13912_v23  ;;  %v6925_v48 = vpop.f32.mrb[186].mxu1 }
 0xbbe   : > { %v6265_v38 = vpop.f32.mrb[186].mxu0  ;;  %v9503_v7 = vadd.f32 %v6925_v48, %v13914_v51  ;;  %v6927_v30 = vpop.f32.mrb[187].mxu1  ;;  %v14038_v51 = vld [vmem:[#allocation2 + $0x100] sm:$0xff] }
 0xbbf   : > { %v6266_v42 = vpop.f32.mrb[187].mxu0  ;;  %v9504_v32 = vadd.f32 %v6927_v30, %v13916_v60  ;;  %v7641_v43 = vrot.slane %v9502_v2, 1  ;;  %14604 = vst [vmem:[#allocation49_spill] sm:$0xff] %v14038_v51 }
 0xbc0   : > { %7151 = vmatmul.mubr.bf16.gmra.mrb[164].mxu1 %v13676_v0 }
 0xbc1   : > { %v7642_v57 = vrot.slane %v9504_v32, 1  ;;  %7157 = vmatprep.mubr.bf16.mxu1 %v14572_v47 }
 0xbc3   : > { %v7643_v10 = vsel %vm3921_vm8, %v7641_v43, %v7642_v57  ;;  %v6931_v49 = vpop.f32.mrb[188].mxu1 }
 0xbc4   : > { %v14027_v54 = vpop.f32.mrb[188].mxu0  ;;  %v14029_v23 = vadd.f32 %v9501_v20, %v7643_v10  ;;  %v6932_v38 = vpop.f32.mrb[189].mxu1 }
 0xbc5   : > { %v14031_v28 = vpop.f32.mrb[189].mxu0  ;;  %v9505_v42 = vadd.f32 %v6932_v38, %v13922_v26  ;;  %v6934_v48 = vpop.f32.mrb[190].mxu1 }
 0xbc6   : > { %14603 = vst [vmem:[#allocation48_spill] sm:$0xff] %v14029_v23  ;;  %v14034_v30 = vpop.f32.mrb[190].mxu0  ;;  %v6935_v0 = vpop.f32.mrb[191].mxu1 }
 0xbc7   : > { %v14036_v2 = vpop.f32.mrb[191].mxu0  ;;  %v7644_v32 = vrot.slane %v9505_v42, 1 }
 0xbc8   : > { %7158 = vmatmul.mubr.bf16.gmra.mrb[168].mxu1 %v14038_v51 }
 0xbc9   : > { %v7645_v43 = vsel %vm3921_vm8, %v7642_v57, %v7644_v32  ;;  %7167 = vmatprep.mubr.bf16.mxu1 %v14572_v47  ;;  %v14051_v32 = vld [vmem:[#allocation2 + $0x108] sm:$0xff] }
 0xbca   : > { %v14043_v60 = vadd.f32 %v9503_v7, %v7645_v43 }
 0xbcb   : > { %v6938_v20 = vpop.f32.mrb[192].mxu1 }
 0xbcc   : > { %14605 = vst [vmem:[#allocation50_spill] sm:$0xff] %v14043_v60  ;;  %v6279_v10 = vpop.f32.mrb[192].mxu0  ;;  %v9506_v26 = vadd.f32 %v6938_v20, %v13926_v40  ;;  %v6940_v49 = vpop.f32.mrb[193].mxu1  ;;  %v14078_v60 = vld [vmem:[#allocation2 + $0x118] sm:$0xff] }
 0xbcd   : > { %v14046_v38 = vpop.f32.mrb[193].mxu0  ;;  %v9507_v48 = vadd.f32 %v6940_v49, %v13928_v18  ;;  %v6942_v42 = vpop.f32.mrb[194].mxu1  ;;  %14609 = vst [vmem:[#allocation54_spill] sm:$0xff] %v14078_v60 }
 0xbce   : > { %v6282_v0 = vpop.f32.mrb[194].mxu0  ;;  %v9508_v23 = vadd.f32 %v6942_v42, %v13930_v17  ;;  %v6944_v11 = vpop.f32.mrb[195].mxu1 }
 0xbcf   : > { %v6283_v51 = vpop.f32.mrb[195].mxu0  ;;  %v9509_v57 = vadd.f32 %v6944_v11, %v13932_v41  ;;  %v7646_v7 = vrot.slane %v9507_v48, 1 }
 0xbd0   : > { %7168 = vmatmul.mubr.bf16.gmra.mrb[172].mxu1 %v14051_v32  ;;  %v14063_v51 = vld [vmem:[#allocation2 + $0x110] sm:$0xff] }
 0xbd1   : > { %v7647_v43 = vrot.slane %v9509_v57, 1  ;;  %7174 = vmatprep.mubr.bf16.mxu1 %v14572_v47  ;;  %14607 = vst [vmem:[#allocation52_spill] sm:$0xff] %v14063_v51 }
 0xbd3   : > { %v7648_v40 = vsel %vm3921_vm8, %v7646_v7, %v7647_v43  ;;  %v6948_v20 = vpop.f32.mrb[196].mxu1 }
 0xbd4   : > { %v14056_v18 = vpop.f32.mrb[196].mxu0  ;;  %v14058_v10 = vadd.f32 %v9506_v26, %v7648_v40  ;;  %v6949_v17 = vpop.f32.mrb[197].mxu1 }
 0xbd5   : > { %v14060_v49 = vpop.f32.mrb[197].mxu0  ;;  %v9510_v11 = vadd.f32 %v6949_v17, %v13938_v27  ;;  %v6951_v41 = vpop.f32.mrb[198].mxu1 }
 0xbd6   : > { %14606 = vst [vmem:[#allocation51_spill] sm:$0xff] %v14058_v10  ;;  %v14065_v42 = vpop.f32.mrb[198].mxu0  ;;  %v6952_v48 = vpop.f32.mrb[199].mxu1 }
 0xbd7   : > { %v14067_v0 = vpop.f32.mrb[199].mxu0  ;;  %v7649_v57 = vrot.slane %v9510_v11, 1 }
 0xbd8   : > { %7175 = vmatmul.mubr.bf16.gmra.mrb[176].mxu1 %v14063_v51 }
 0xbd9   : > { %v7650_v7 = vsel %vm3921_vm8, %v7647_v43, %v7649_v57  ;;  %7184 = vmatprep.mubr.bf16.mxu1 %v14572_v47 }
 0xbda   : > { %v14072_v26 = vadd.f32 %v9508_v23, %v7650_v7 }
 0xbdb   : > { %v6955_v40 = vpop.f32.mrb[200].mxu1 }
 0xbdc   : > { %14608 = vst [vmem:[#allocation53_spill] sm:$0xff] %v14072_v26  ;;  %v6296_v20 = vpop.f32.mrb[200].mxu0  ;;  %v9511_v27 = vadd.f32 %v6955_v40, %v13942_v45  ;;  %v6957_v17 = vpop.f32.mrb[201].mxu1  ;;  %v10770_v45 = vld [vmem:[#allocation2 + $0x20] sm:$0xff] }
 0xbdd   : > { %v14075_v41 = vpop.f32.mrb[201].mxu0  ;;  %v9512_v48 = vadd.f32 %v6957_v17, %v13944_v52  ;;  %v6959_v10 = vpop.f32.mrb[202].mxu1 }
 0xbde   : > { %v6299_v11 = vpop.f32.mrb[202].mxu0  ;;  %v9513_v51 = vadd.f32 %v6959_v10, %v13946_v37  ;;  %v6961_v43 = vpop.f32.mrb[203].mxu1 }
 0xbdf   : > { %v6300_v57 = vpop.f32.mrb[203].mxu0  ;;  %v9514_v47 = vadd.f32 %v6961_v43, %v13948_v5  ;;  %v7651_v23 = vrot.slane %v9512_v48, 1 }
 0xbe0   : > { %7185 = vmatmul.mubr.bf16.gmra.mrb[180].mxu1 %v14078_v60 }
 0xbe1   : > { %v7652_v7 = vrot.slane %v9514_v47, 1  ;;  %9325 = vmatprep.mubr.bf16.mxu1 %v10770_v45  ;;  %v10771_v47 = vld [vmem:[#allocation2 + $0x28] sm:$0xff] }
 0xbe3   : > { %v7653_v40 = vsel %vm3921_vm8, %v7651_v23, %v7652_v7  ;;  %v6965_v20 = vpop.f32.mrb[204].mxu1 }
 0xbe4   : > { %v14084_v52 = vpop.f32.mrb[204].mxu0  ;;  %v14086_v17 = vadd.f32 %v9511_v27, %v7653_v40  ;;  %v6966_v11 = vpop.f32.mrb[205].mxu1 }
 0xbe5   : > { %v14088_v26 = vpop.f32.mrb[205].mxu0  ;;  %v9515_v37 = vadd.f32 %v6966_v11, %v13954_v44  ;;  %v6968_v10 = vpop.f32.mrb[206].mxu1 }
 0xbe6   : > { %14610 = vst [vmem:[#allocation55_spill] sm:$0xff] %v14086_v17  ;;  %v14091_v5 = vpop.f32.mrb[206].mxu0  ;;  %v6969_v43 = vpop.f32.mrb[207].mxu1 }
 0xbe7   : > { %v14093_v48 = vpop.f32.mrb[207].mxu0  ;;  %v7654_v57 = vrot.slane %v9515_v37, 1 }
 0xbe8   : > { %9326 = vmatmul.mubr.bf16.vlgmr.msra.gmra.mrb[72].mxu1 %v10771_v47 }
 0xbe9   : > { %v7655_v23 = vsel %vm3921_vm8, %v7652_v7, %v7654_v57  ;;  %9329 = vmatprep.mubr.bf16.mxu1 %v13813_v24  ;;  %v10772_v24 = vld [vmem:[#allocation2 + $0x38] sm:$0xff] }
 0xbea   : > { %v14097_v27 = vadd.f32 %v9513_v51, %v7655_v23 }
 0xbeb   : > { %v6972_v45 = vpop.f32.mrb[208].mxu1 }
 0xbec   : > { %v6313_v40 = vpop.f32.mrb[208].mxu0  ;;  %v9516_v20 = vadd.f32 %v6972_v45, %v13958_v31  ;;  %v6974_v44 = vpop.f32.mrb[209].mxu1 }
 0xbed   : > { %v14100_v11 = vpop.f32.mrb[209].mxu0  ;;  %v9517_v10 = vadd.f32 %v6974_v44, %v13960_v4  ;;  %v6976_v43 = vpop.f32.mrb[210].mxu1 }
 0xbee   : > { %v6316_v17 = vpop.f32.mrb[210].mxu0  ;;  %v9518_v37 = vadd.f32 %v6976_v43, %v13962_v61  ;;  %v6978_v47 = vpop.f32.mrb[211].mxu1 }
 0xbef   : > { %v6317_v60 = vpop.f32.mrb[211].mxu0  ;;  %v9519_v7 = vadd.f32 %v6978_v47, %v13964_v50  ;;  %v7656_v51 = vrot.slane %v9517_v10, 1 }
 0xbf0   : > { %9330 = vmatmul.mubr.bf16.gmra.mrb[76].mxu1 %v10772_v24  ;;  %v10773_v60 = vld [vmem:[#allocation2 + $0x48] sm:$0xff] }
 0xbf1   : > { %v7657_v57 = vrot.slane %v9519_v7, 1  ;;  %9333 = vmatprep.mubr.bf16.mxu1 %v13833_v33 }
 0xbf3   : > { %v7658_v31 = vsel %vm3921_vm8, %v7656_v51, %v7657_v57  ;;  %v6982_v23 = vpop.f32.mrb[212].mxu1 }
 0xbf4   : > { %v14107_v45 = vadd.f32 %v9516_v20, %v7658_v31  ;;  %v6983_v4 = vpop.f32.mrb[213].mxu1  ;;  %v10774_v31 = vld [vmem:[#allocation2 + $0x58] sm:$0xff] }
 0xbf5   : > { %v9520_v17 = vadd.f32 %v6983_v4, %v13970_v12  ;;  %v6985_v40 = vpop.f32.mrb[214].mxu1 }
 0xbf6   : > { %v6986_v61 = vpop.f32.mrb[215].mxu1 }
 0xbf7   : > { %v7659_v44 = vrot.slane %v9520_v17, 1  ;;  %v10775_v61 = vld [vmem:[#allocation2 + $0x68] sm:$0xff] }
 0xbf8   : > { %9334 = vmatmul.mubr.bf16.gmra.mrb[80].mxu1 %v10773_v60 }
 0xbf9   : > { %v7660_v50 = vsel %vm3921_vm8, %v7657_v57, %v7659_v44  ;;  %9337 = vmatprep.mubr.bf16.mxu1 %v13853_v19 }
 0xbfa   : > { %v14112_v10 = vadd.f32 %v9518_v37, %v7660_v50 }
 0xbfb   : > { %v6989_v33 = vpop.f32.mrb[216].mxu1 }
 0xbfc   : > { %v9521_v43 = vadd.f32 %v6989_v33, %v13974_v62  ;;  %v6991_v47 = vpop.f32.mrb[217].mxu1 }
 0xbfd   : > { %v9522_v20 = vadd.f32 %v6991_v47, %v13976_v63  ;;  %v6993_v7 = vpop.f32.mrb[218].mxu1 }
 0xbfe   : > { %v9523_v12 = vadd.f32 %v6993_v7, %v13978_v8  ;;  %v6995_v24 = vpop.f32.mrb[219].mxu1  ;;  %v10776_v7 = vld [vmem:[#allocation2 + $0x78] sm:$0xff] }
 0xbff   : > { %v9524_v51 = vadd.f32 %v6995_v24, %v13980_v3  ;;  %v7661_v23 = vrot.slane %v9522_v20, 1 }
 0xc00   : > { %9338 = vmatmul.mubr.bf16.gmra.mrb[84].mxu1 %v10774_v31 }
 0xc01   : > { %v7662_v57 = vrot.slane %v9524_v51, 1  ;;  %9341 = vmatprep.mubr.bf16.mxu1 %v13870_v29 }
 0xc03   : > { %v7663_v19 = vsel %vm3921_vm8, %v7661_v23, %v7662_v57  ;;  %v6999_v37 = vpop.f32.mrb[220].mxu1 }
 0xc04   : > { %v14120_v4 = vadd.f32 %v9521_v43, %v7663_v19  ;;  %v7000_v62 = vpop.f32.mrb[221].mxu1  ;;  %v10777_v19 = vld [vmem:[#allocation2 + $0x88] sm:$0xff] }
 0xc05   : > { %v9525_v63 = vadd.f32 %v7000_v62, %v13986_v9  ;;  %v7002_v17 = vpop.f32.mrb[222].mxu1 }
 0xc06   : > { %v7003_v40 = vpop.f32.mrb[223].mxu1 }
 0xc07   : > { %v7664_v8 = vrot.slane %v9525_v63, 1 }
 0xc08   : > { %9342 = vmatmul.mubr.bf16.gmra.mrb[88].mxu1 %v10775_v61 }
 0xc09   : > { %v7665_v3 = vsel %vm3921_vm8, %v7662_v57, %v7664_v8  ;;  %9345 = vmatprep.mubr.bf16.mxu1 %v13886_v55 }
 0xc0a   : > { %v14125_v44 = vadd.f32 %v9523_v12, %v7665_v3  ;;  %v10778_v3 = vld [vmem:[#allocation2 + $0x98] sm:$0xff] }
 0xc0b   : > { %v7006_v29 = vpop.f32.mrb[224].mxu1 }
 0xc0c   : > { %v9526_v60 = vadd.f32 %v7006_v29, %v13990_v13  ;;  %v7008_v50 = vpop.f32.mrb[225].mxu1 }
 0xc0d   : > { %v9527_v33 = vadd.f32 %v7008_v50, %v13992_v46  ;;  %v7010_v43 = vpop.f32.mrb[226].mxu1 }
 0xc0e   : > { %v9528_v9 = vadd.f32 %v7010_v43, %v13994_v22  ;;  %v7012_v47 = vpop.f32.mrb[227].mxu1 }
 0xc0f   : > { %v9529_v20 = vadd.f32 %v7012_v47, %v13996_v15  ;;  %v7666_v24 = vrot.slane %v9527_v33, 1  ;;  %v10779_v47 = vld [vmem:[#allocation2 + $0xa8] sm:$0xff] }
 0xc10   : > { %9346 = vmatmul.mubr.bf16.gmra.mrb[92].mxu1 %v10776_v7 }
 0xc11   : > { %v7667_v51 = vrot.slane %v9529_v20, 1  ;;  %9349 = vmatprep.mubr.bf16.mxu1 %v13902_v14 }
 0xc13   : > { %v7668_v55 = vsel %vm3921_vm8, %v7666_v24, %v7667_v51  ;;  %v7016_v12 = vpop.f32.mrb[228].mxu1 }
 0xc14   : > { %v14133_v31 = vadd.f32 %v9526_v60, %v7668_v55  ;;  %v7017_v13 = vpop.f32.mrb[229].mxu1 }
 0xc15   : > { %v9530_v46 = vadd.f32 %v7017_v13, %v14002_v39  ;;  %v7019_v23 = vpop.f32.mrb[230].mxu1 }
 0xc16   : > { %v7020_v57 = vpop.f32.mrb[231].mxu1 }
 0xc17   : > { %v7669_v22 = vrot.slane %v9530_v46, 1  ;;  %v10780_v46 = vld [vmem:[#allocation2 + $0xb8] sm:$0xff] }
 0xc18   : > { %9350 = vmatmul.mubr.bf16.gmra.mrb[96].mxu1 %v10777_v19 }
 0xc19   : > { %v7670_v15 = vsel %vm3921_vm8, %v7667_v51, %v7669_v22  ;;  %9353 = vmatprep.mubr.bf16.mxu1 %v13918_v53 }
 0xc1a   : > { %v14138_v37 = vadd.f32 %v9528_v9, %v7670_v15 }
 0xc1b   : > { %v7023_v14 = vpop.f32.mrb[232].mxu1 }
 0xc1c   : > { %v9531_v62 = vadd.f32 %v7023_v14, %v14006_v34  ;;  %v7025_v63 = vpop.f32.mrb[233].mxu1 }
 0xc1d   : > { %v9532_v17 = vadd.f32 %v7025_v63, %v14008_v16  ;;  %v7027_v40 = vpop.f32.mrb[234].mxu1 }
 0xc1e   : > { %v9533_v39 = vadd.f32 %v7027_v40, %v14010_v35  ;;  %v7029_v8 = vpop.f32.mrb[235].mxu1 }
 0xc1f   : > { %v9534_v61 = vadd.f32 %v7029_v8, %v14012_v25  ;;  %v7671_v29 = vrot.slane %v9532_v17, 1 }
 0xc20   : > { %9354 = vmatmul.mubr.bf16.gmra.mrb[100].mxu1 %v10778_v3 }
 0xc21   : > { %v7672_v60 = vrot.slane %v9534_v61, 1  ;;  %9357 = vmatprep.mubr.bf16.mxu1 %v13934_v1 }
 0xc23   : > { %v7673_v53 = vsel %vm3921_vm8, %v7671_v29, %v7672_v60  ;;  %v7033_v50 = vpop.f32.mrb[236].mxu1  ;;  %v10782_v29 = vld [vmem:[#allocation2 + $0xd8] sm:$0xff] }
 0xc24   : > { %v14146_v33 = vadd.f32 %v9531_v62, %v7673_v53  ;;  %v7034_v34 = vpop.f32.mrb[237].mxu1  ;;  %v10781_v62 = vld [vmem:[#allocation2 + $0xc8] sm:$0xff] }
 0xc25   : > { %v9535_v16 = vadd.f32 %v7034_v34, %v14019_v6  ;;  %v7036_v43 = vpop.f32.mrb[238].mxu1 }
 0xc26   : > { %v7037_v9 = vpop.f32.mrb[239].mxu1 }
 0xc27   : > { %v7674_v35 = vrot.slane %v9535_v16, 1  ;;  %v10783_v9 = vld [vmem:[#allocation2 + $0xe8] sm:$0xff] }
 0xc28   : > { %9358 = vmatmul.mubr.bf16.gmra.mrb[104].mxu1 %v10779_v47 }
 0xc29   : > { %v7675_v25 = vsel %vm3921_vm8, %v7672_v60, %v7674_v35  ;;  %9361 = vmatprep.mubr.bf16.mxu1 %v13950_v36 }
 0xc2a   : > { %v14151_v20 = vadd.f32 %v9533_v39, %v7675_v25 }
 0xc2b   : > { %v7040_v1 = vpop.f32.mrb[240].mxu1 }
 0xc2c   : > { %v9536_v7 = vadd.f32 %v7040_v1, %v14027_v54  ;;  %v7042_v24 = vpop.f32.mrb[241].mxu1 }
 0xc2d   : > { %v9537_v51 = vadd.f32 %v7042_v24, %v14031_v28  ;;  %v7044_v55 = vpop.f32.mrb[242].mxu1 }
 0xc2e   : > { %v9538_v6 = vadd.f32 %v7044_v55, %v14034_v30  ;;  %v7046_v12 = vpop.f32.mrb[243].mxu1  ;;  %v10784_v55 = vld [vmem:[#allocation2 + $0xf8] sm:$0xff] }
 0xc2f   : > { %v9539_v13 = vadd.f32 %v7046_v12, %v14036_v2  ;;  %v7676_v23 = vrot.slane %v9537_v51, 1 }
 0xc30   : > { %9362 = vmatmul.mubr.bf16.gmra.mrb[108].mxu1 %v10780_v46 }
 0xc31   : > { %v7677_v57 = vrot.slane %v9539_v13, 1  ;;  %9365 = vmatprep.mubr.bf16.mxu1 %v13966_v58  ;;  %v14611_v13 = vld [vmem:[#allocation49_spill] sm:$0xff] }
 0xc33   : > { %v7678_v36 = vsel %vm3921_vm8, %v7676_v23, %v7677_v57  ;;  %v7050_v22 = vpop.f32.mrb[244].mxu1 }
 0xc34   : > { %v14159_v19 = vadd.f32 %v9536_v7, %v7678_v36  ;;  %v7051_v54 = vpop.f32.mrb[245].mxu1  ;;  %v14612_v22 = vld [vmem:[#allocation52_spill] sm:$0xff] }
 0xc35   : > { %v9540_v28 = vadd.f32 %v7051_v54, %v14046_v38  ;;  %v7053_v15 = vpop.f32.mrb[246].mxu1 }
 0xc36   : > { %v7054_v14 = vpop.f32.mrb[247].mxu1  ;;  %v14613_v15 = vld [vmem:[#allocation22_spill] sm:$0xff] }
 0xc37   : > { %v7679_v30 = vrot.slane %v9540_v28, 1 }
 0xc38   : > { %9366 = vmatmul.mubr.bf16.gmra.mrb[112].mxu1 %v10781_v62  ;;  %v14614_v62 = vld [vmem:[#allocation23_spill] sm:$0xff] }
 0xc39   : > { %v7680_v2 = vsel %vm3921_vm8, %v7677_v57, %v7679_v30  ;;  %9369 = vmatprep.mubr.bf16.mxu1 %v13982_v21 }
 0xc3a   : > { %v14164_v63 = vadd.f32 %v9538_v6, %v7680_v2 }
 0xc3b   : > { %v7057_v58 = vpop.f32.mrb[248].mxu1 }
 0xc3c   : > { %v9541_v17 = vadd.f32 %v7057_v58, %v14056_v18  ;;  %v7059_v40 = vpop.f32.mrb[249].mxu1 }
 0xc3d   : > { %v9542_v39 = vadd.f32 %v7059_v40, %v14060_v49  ;;  %v7061_v8 = vpop.f32.mrb[250].mxu1 }
 0xc3e   : > { %v9543_v38 = vadd.f32 %v7061_v8, %v14065_v42  ;;  %v7063_v61 = vpop.f32.mrb[251].mxu1 }
 0xc3f   : > { %v9544_v3 = vadd.f32 %v7063_v61, %v14067_v0  ;;  %v7681_v60 = vrot.slane %v9542_v39, 1  ;;  %v14616_v39 = vld [vmem:[#allocation25_spill] sm:$0xff] }
 0xc40   : > { %9370 = vmatmul.mubr.bf16.gmra.mrb[116].mxu1 %v10782_v29 }
 0xc41   : > { %v7682_v53 = vrot.slane %v9544_v3, 1  ;;  %9373 = vmatprep.mubr.bf16.mxu1 %v13998_v59 }
 0xc43   : > { %v7683_v21 = vsel %vm3921_vm8, %v7681_v60, %v7682_v53  ;;  %v7067_v50 = vpop.f32.mrb[252].mxu1 }
 0xc44   : > { %v14172_v34 = vadd.f32 %v9541_v17, %v7683_v21  ;;  %v7068_v18 = vpop.f32.mrb[253].mxu1  ;;  %v14615_v17 = vld [vmem:[#allocation24_spill] sm:$0xff]  ;;  %v14618_v21 = vld [vmem:[#allocation26_spill] sm:$0xff] }
 0xc45   : > { %v9545_v49 = vadd.f32 %v7068_v18, %v14075_v41  ;;  %v7070_v16 = vpop.f32.mrb[254].mxu1 }
 0xc46   : > { %v7071_v43 = vpop.f32.mrb[255].mxu1 }
 0xc47   : > { %v7684_v42 = vrot.slane %v9545_v49, 1 }
 0xc48   : > { %9374 = vmatmul.mubr.bf16.gmra.mrb[120].mxu1 %v10783_v9 }
 0xc49   : > { %v7685_v0 = vsel %vm3921_vm8, %v7682_v53, %v7684_v42  ;;  %9377 = vmatprep.mubr.bf16.mxu1 %v14014_v56 }
 0xc4a   : > { %v14177_v35 = vadd.f32 %v9543_v38, %v7685_v0  ;;  %v14617_v38 = vld [vmem:[#allocation54_spill] sm:$0xff]  ;;  %v14619_v0 = vld [vmem:[#allocation27_spill] sm:$0xff] }
 0xc4b   : > { %v7074_v59 = vpop.f32.mrb[4].mxu1 }
 0xc4c   : > { %v9546_v47 = vadd.f32 %v7074_v59, %v14084_v52  ;;  %v7076_v25 = vpop.f32.mrb[5].mxu1 }
 0xc4d   : > { %v9547_v1 = vadd.f32 %v7076_v25, %v14088_v26  ;;  %v7078_v7 = vpop.f32.mrb[6].mxu1  ;;  %v14620_v25 = vld [vmem:[#allocation28_spill] sm:$0xff] }
 0xc4e   : > { %v9548_v41 = vadd.f32 %v7078_v7, %v14091_v5  ;;  %v7080_v24 = vpop.f32.mrb[7].mxu1 }
 0xc4f   : > { %v9549_v51 = vadd.f32 %v7080_v24, %v14093_v48  ;;  %v7686_v6 = vrot.slane %v9547_v1, 1 }
 0xc50   : > { %9378 = vmatmul.mubr.bf16.gmra.mrb[124].mxu1 %v10784_v55  ;;  %v14622_v55 = vld [vmem:[#allocation19_spill] sm:$0xff] }
 0xc51   : > { %v7687_v12 = vrot.slane %v9549_v51, 1  ;;  %9381 = vmatprep.mubr.bf16.mxu1 %v14611_v13 }
 0xc53   : > { %v7688_v56 = vsel %vm3921_vm8, %v7686_v6, %v7687_v12  ;;  %v7084_v46 = vpop.f32.mrb[8].mxu1 }
 0xc54   : > { %v14185_v23 = vadd.f32 %v9546_v47, %v7688_v56  ;;  %v7085_v52 = vpop.f32.mrb[9].mxu1 }
 0xc55   : > { %v9550_v26 = vadd.f32 %v7085_v52, %v14100_v11  ;;  %v7087_v57 = vpop.f32.mrb[10].mxu1 }
 0xc56   : > { %v7088_v36 = vpop.f32.mrb[11].mxu1  ;;  %v14623_v57 = vld [vmem:[#allocation18_spill] sm:$0xff] }
 0xc57   : > { %v7689_v5 = vrot.slane %v9550_v26, 1 }
 0xc58   : > { %9382 = vmatmul.mubr.bf16.gmra.mrb[128].mxu1 %v14051_v32 }
 0xc59   : > { %v7690_v48 = vsel %vm3921_vm8, %v7687_v12, %v7689_v5  ;;  %9385 = vmatprep.mubr.bf16.mxu1 %v14612_v22 }
 0xc5a   : > { %v14191_v54 = vadd.f32 %v9548_v41, %v7690_v48  ;;  %v14621_v41 = vld [vmem:[#allocation20_spill] sm:$0xff] }
 0xc5b   : > { %v7091_v28 = vpop.f32.mrb[136].mxu1 }
 0xc5c   : > { %v9551_v14 = vadd.f32 %v7091_v28, %v14613_v15  ;;  %v7093_v30 = vpop.f32.mrb[137].mxu1 }
 0xc5d   : > { %v9552_v2 = vadd.f32 %v7093_v30, %v14614_v62  ;;  %v7095_v58 = vpop.f32.mrb[138].mxu1  ;;  %v14624_v30 = vld [vmem:[#allocation21_spill] sm:$0xff] }
 0xc5e   : > { %v9553_v11 = vadd.f32 %v7095_v58, %v14615_v17  ;;  %v7097_v40 = vpop.f32.mrb[139].mxu1  ;;  %v14625_v58 = vld [vmem:[#allocation29_spill] sm:$0xff] }
 0xc5f   : > { %v9554_v8 = vadd.f32 %v7097_v40, %v14616_v39  ;;  %v7691_v32 = vrot.slane %v9552_v2, 1  ;;  %v14626_v40 = vld [vmem:[#allocation30_spill] sm:$0xff] }
 0xc60   : > { %9386 = vmatmul.mubr.bf16.gmra.mrb[132].mxu1 %v14617_v38  ;;  %v14627_v38 = vld [vmem:[#allocation31_spill] sm:$0xff] }
 0xc61   : > { %v7692_v61 = vrot.slane %v9554_v8, 1 }
 0xc63   : > { %v7693_v3 = vsel %vm3921_vm8, %v7691_v32, %v7692_v61  ;;  %v7101_v29 = vpop.f32.mrb[140].mxu1 }
 0xc64   : > { %v14199_v60 = vadd.f32 %v9551_v14, %v7693_v3  ;;  %v7102_v53 = vpop.f32.mrb[141].mxu1 }
 0xc65   : > { %v9555_v50 = vadd.f32 %v7102_v53, %v14618_v21  ;;  %v7104_v18 = vpop.f32.mrb[142].mxu1 }
 0xc66   : > { %v7105_v49 = vpop.f32.mrb[143].mxu1  ;;  %v14628_v18 = vld [vmem:[#allocation32_spill] sm:$0xff] }
 0xc67   : > { %v7694_v16 = vrot.slane %v9555_v50, 1 }
 0xc69   : > { %v7695_v43 = vsel %vm3921_vm8, %v7692_v61, %v7694_v16 }
 0xc6a   : > { %v14203_v42 = vadd.f32 %v9553_v11, %v7695_v43 }
 0xc6b   : > { %v7108_v9 = vpop.f32.mrb[144].mxu1 }
 0xc6c   : > { %v9556_v59 = vadd.f32 %v7108_v9, %v14619_v0  ;;  %v7110_v47 = vpop.f32.mrb[145].mxu1 }
 0xc6d   : > { %v9557_v1 = vadd.f32 %v7110_v47, %v14620_v25  ;;  %v7112_v7 = vpop.f32.mrb[146].mxu1  ;;  %v14629_v25 = vld [vmem:[#allocation33_spill] sm:$0xff] }
 0xc6e   : > { %v9558_v24 = vadd.f32 %v7112_v7, %v14621_v41  ;;  %v7114_v51 = vpop.f32.mrb[147].mxu1  ;;  %v14630_v41 = vld [vmem:[#allocation34_spill] sm:$0xff] }
 0xc6f   : > { %v9559_v6 = vadd.f32 %v7114_v51, %v14622_v55  ;;  %v7696_v12 = vrot.slane %v9557_v1, 1  ;;  %v14631_v55 = vld [vmem:[#allocation35_spill] sm:$0xff] }
 0xc71   : > { %v7697_v13 = vrot.slane %v9559_v6, 1 }
 0xc73   : > { %v7698_v56 = vsel %vm3921_vm8, %v7696_v12, %v7697_v13  ;;  %v7118_v46 = vpop.f32.mrb[148].mxu1 }
 0xc74   : > { %v14210_v52 = vadd.f32 %v9556_v59, %v7698_v56  ;;  %v7119_v26 = vpop.f32.mrb[149].mxu1 }
 0xc75   : > { %v9560_v36 = vadd.f32 %v7119_v26, %v14623_v57  ;;  %v7121_v5 = vpop.f32.mrb[150].mxu1 }
 0xc76   : > { %v7122_v48 = vpop.f32.mrb[151].mxu1 }
 0xc77   : > { %v7699_v22 = vrot.slane %v9560_v36, 1 }
 0xc79   : > { %v7700_v28 = vsel %vm3921_vm8, %v7697_v13, %v7699_v22  ;;  %v14632_v13 = vld [vmem:[#allocation36_spill] sm:$0xff]  ;;  %v14633_v22 = vld [vmem:[#allocation37_spill] sm:$0xff] }
 0xc7a   : > { %v14214_v15 = vadd.f32 %v9558_v24, %v7700_v28 }
 0xc7b   : > { %v7125_v14 = vpop.f32.mrb[152].mxu1 }
 0xc7c   : > { %v9561_v62 = vadd.f32 %v7125_v14, %v14624_v30  ;;  %v7127_v2 = vpop.f32.mrb[153].mxu1 }
 0xc7d   : > { %v9562_v17 = vadd.f32 %v7127_v2, %v14625_v58  ;;  %v7129_v11 = vpop.f32.mrb[154].mxu1 }
 0xc7e   : > { %v9563_v39 = vadd.f32 %v7129_v11, %v14626_v40  ;;  %v7131_v8 = vpop.f32.mrb[155].mxu1  ;;  %v14634_v11 = vld [vmem:[#allocation38_spill] sm:$0xff] }
 0xc7f   : > { %v9564_v32 = vadd.f32 %v7131_v8, %v14627_v38  ;;  %v7701_v61 = vrot.slane %v9562_v17, 1  ;;  %v14635_v8 = vld [vmem:[#allocation39_spill] sm:$0xff] }
 0xc81   : > { %v7702_v3 = vrot.slane %v9564_v32, 1 }
 0xc83   : > { %v7703_v29 = vsel %vm3921_vm8, %v7701_v61, %v7702_v3  ;;  %v7135_v53 = vpop.f32.mrb[156].mxu1  ;;  %v14636_v61 = vld [vmem:[#allocation40_spill] sm:$0xff] }
 0xc84   : > { %v14221_v21 = vadd.f32 %v9561_v62, %v7703_v29  ;;  %v7136_v50 = vpop.f32.mrb[157].mxu1  ;;  %v14637_v53 = vld [vmem:[#allocation41_spill] sm:$0xff] }
 0xc85   : > { %v9565_v49 = vadd.f32 %v7136_v50, %v14628_v18  ;;  %v7138_v16 = vpop.f32.mrb[158].mxu1 }
 0xc86   : > { %v7139_v43 = vpop.f32.mrb[159].mxu1 }
 0xc87   : > { %v7704_v9 = vrot.slane %v9565_v49, 1 }
 0xc89   : > { %v7705_v0 = vsel %vm3921_vm8, %v7702_v3, %v7704_v9 }
 0xc8a   : > { %v14225_v59 = vadd.f32 %v9563_v39, %v7705_v0 }
 0xc8b   : > { %v7142_v47 = vpop.f32.mrb[160].mxu1 }
 0xc8c   : > { %v9566_v1 = vadd.f32 %v7142_v47, %v14629_v25  ;;  %v7144_v7 = vpop.f32.mrb[161].mxu1  ;;  %v14638_v47 = vld [vmem:[#allocation42_spill] sm:$0xff] }
 0xc8d   : > { %v9567_v24 = vadd.f32 %v7144_v7, %v14630_v41  ;;  %v7146_v51 = vpop.f32.mrb[162].mxu1 }
 0xc8e   : > { %v9568_v6 = vadd.f32 %v7146_v51, %v14631_v55  ;;  %v7148_v12 = vpop.f32.mrb[163].mxu1 }
 0xc8f   : > { %v9569_v56 = vadd.f32 %v7148_v12, %v14632_v13  ;;  %v7706_v46 = vrot.slane %v9567_v24, 1 }
 0xc91   : > { %v7707_v26 = vrot.slane %v9569_v56, 1  ;;  %v14640_v56 = vld [vmem:[#allocation44_spill] sm:$0xff] }
 0xc93   : > { %v7708_v57 = vsel %vm3921_vm8, %v7706_v46, %v7707_v26  ;;  %v7152_v36 = vpop.f32.mrb[164].mxu1 }
 0xc94   : > { %v14232_v5 = vadd.f32 %v9566_v1, %v7708_v57  ;;  %v7153_v48 = vpop.f32.mrb[165].mxu1  ;;  %v14641_v57 = vld [vmem:[#allocation45_spill] sm:$0xff] }
 0xc95   : > { %v9570_v28 = vadd.f32 %v7153_v48, %v14633_v22  ;;  %v7155_v14 = vpop.f32.mrb[166].mxu1  ;;  %v14642_v22 = vld [vmem:[#allocation46_spill] sm:$0xff] }
 0xc96   : > { %v7156_v30 = vpop.f32.mrb[167].mxu1 }
 0xc97   : > { %v7709_v62 = vrot.slane %v9570_v28, 1 }
 0xc99   : > { %v7710_v2 = vsel %vm3921_vm8, %v7707_v26, %v7709_v62 }
 0xc9a   : > { %v14236_v58 = vadd.f32 %v9568_v6, %v7710_v2  ;;  %v14639_v6 = vld [vmem:[#allocation43_spill] sm:$0xff] }
 0xc9b   : > { %v7159_v17 = vpop.f32.mrb[168].mxu1 }
 0xc9c   : > { %v9571_v40 = vadd.f32 %v7159_v17, %v14634_v11  ;;  %v7161_v39 = vpop.f32.mrb[169].mxu1 }
 0xc9d   : > { %v9572_v38 = vadd.f32 %v7161_v39, %v14635_v8  ;;  %v7163_v32 = vpop.f32.mrb[170].mxu1 }
 0xc9e   : > { %v9573_v3 = vadd.f32 %v7163_v32, %v14636_v61  ;;  %v7165_v29 = vpop.f32.mrb[171].mxu1 }
 0xc9f   : > { %v9574_v50 = vadd.f32 %v7165_v29, %v14637_v53  ;;  %v7711_v18 = vrot.slane %v9572_v38, 1 }
 0xca1   : > { %v7712_v49 = vrot.slane %v9574_v50, 1 }
 0xca3   : > { %v7713_v16 = vsel %vm3921_vm8, %v7711_v18, %v7712_v49  ;;  %v7169_v43 = vpop.f32.mrb[172].mxu1 }
 0xca4   : > { %v14243_v9 = vadd.f32 %v9571_v40, %v7713_v16  ;;  %v7170_v0 = vpop.f32.mrb[173].mxu1  ;;  %v14643_v40 = vld [vmem:[#allocation47_spill] sm:$0xff] }
 0xca5   : > { %v9575_v25 = vadd.f32 %v7170_v0, %v14638_v47  ;;  %v7172_v1 = vpop.f32.mrb[174].mxu1  ;;  %v14263_v0 = vld [vmem:[%s14644_s29] ss:$0 sm:$0xff] }
 0xca6   : > { %v7173_v7 = vpop.f32.mrb[175].mxu1  ;;  %v14645_v1 = vld [vmem:[#allocation48_spill] sm:$0xff] }
 0xca7   : > { %v7714_v41 = vrot.slane %v9575_v25, 1 }
 0xca9   : > { %v7715_v24 = vsel %vm3921_vm8, %v7712_v49, %v7714_v41  ;;  %v14646_v41 = vld [vmem:[#allocation50_spill] sm:$0xff] }
 0xcaa   : > { %v14247_v51 = vadd.f32 %v9573_v3, %v7715_v24 }
 0xcab   : > { %v7176_v55 = vpop.f32.mrb[176].mxu1 }
 0xcac   : > { %v9576_v12 = vadd.f32 %v7176_v55, %v14639_v6  ;;  %v7178_v13 = vpop.f32.mrb[177].mxu1  ;;  %v8015_v55 = vld [vmem:[%s11247_s23] sm:$0xff]  ;;  %v8016_v6 = vld [vmem:[%s11247_s23 + $0x8] sm:$0xff] }
 0xcad   : > { %v9577_v46 = vadd.f32 %v7178_v13, %v14640_v56  ;;  %v7180_v26 = vpop.f32.mrb[178].mxu1 }
 0xcae   : > { %v9578_v36 = vadd.f32 %v7180_v26, %v14641_v57  ;;  %v7182_v48 = vpop.f32.mrb[179].mxu1 }
 0xcaf   : > { %v9579_v28 = vadd.f32 %v7182_v48, %v14642_v22  ;;  %v7716_v14 = vrot.slane %v9577_v46, 1 }
 0xcb1   : > { %v7717_v30 = vrot.slane %v9579_v28, 1 }
 0xcb3   : > { %v7718_v62 = vsel %vm3921_vm8, %v7716_v14, %v7717_v30  ;;  %v7186_v2 = vpop.f32.mrb[180].mxu1 }
 0xcb4   : > { %v14254_v17 = vadd.f32 %v9576_v12, %v7718_v62  ;;  %v7187_v11 = vpop.f32.mrb[181].mxu1  ;;  %v14647_v2 = vld [vmem:[#allocation51_spill] sm:$0xff] }
 0xcb5   : > { %v9580_v39 = vadd.f32 %v7187_v11, %v14643_v40  ;;  %v7189_v8 = vpop.f32.mrb[182].mxu1  ;;  %v14648_v40 = vld [vmem:[#allocation53_spill] sm:$0xff] }
 0xcb6   : > { %v7190_v38 = vpop.f32.mrb[183].mxu1  ;;  %v8017_v8 = vld [vmem:[%s11247_s23 + $0x10] sm:$0xff] }
 0xcb7   : > { %v7719_v32 = vrot.slane %v9580_v39, 1  ;;  %v8018_v38 = vld [vmem:[%s11247_s23 + $0x18] sm:$0xff] }
 0xcb9   : > { %v7720_v61 = vsel %vm3921_vm8, %v7717_v30, %v7719_v32 }
 0xcba   : > { %v14258_v3 = vadd.f32 %v9578_v36, %v7720_v61 }
 0xcbb   : > { %v9327_v29 = vpop.f32.mrb[72].mxu1 }
 0xcbc   : > { %v7226_v53 = vpop.f32.mrb[73].mxu1  ;;  %v7836_v49 = vrot.slane %v9327_v29, 2 }
 0xcbd   : > { %v9328_v50 = vpop.f32.mrb[74].mxu1  ;;  %v7833_v16 = vrot.slane %v7226_v53, 2 }
 0xcbe   : > { %v7229_v18 = vpop.f32.mrb[75].mxu1 }
 0xcbf   : > { %v7834_v43 = vrot.slane %v7229_v18, 2 }
 0xcc1   : > { %v7835_v47 = vsel %vm4114_vm7, %v7833_v16, %v7834_v43  ;;  %v7837_v25 = vsel %vm4114_vm7, %v7834_v43, %v7836_v49 }
 0xcc2   : > { %v7945_v7 = vadd.f32 %v7835_v47, %v14645_v1  ;;  %v7946_v24 = vadd.f32 %v7837_v25, %v14646_v41  ;;  %v14649_v41 = vld [vmem:[#allocation55_spill] sm:$0xff] }
 0xcc3   : > { %v9331_v12 = vpop.f32.mrb[76].mxu1 }
 0xcc4   : > { %v7983_v13 = vadd.f32 %v14263_v0, %v7945_v7  ;;  %v7984_v56 = vadd.f32 %v14263_v0, %v7946_v24  ;;  %v7241_v46 = vpop.f32.mrb[77].mxu1  ;;  %v7841_v22 = vrot.slane %v9331_v12, 2  ;;  %v8020_v12 = vld [vmem:[%s11247_s23 + $0x28] sm:$0xff] }
 0xcc5   : > { %v9332_v26 = vpop.f32.mrb[78].mxu1  ;;  %v7838_v28 = vrot.slane %v7241_v46, 2 }
 0xcc6   : > { %v8047_v57 = vadd.f32 %v8015_v55, %v7983_v13  ;;  %v8048_v36 = vadd.f32 %v8016_v6, %v7984_v56  ;;  %v7244_v48 = vpop.f32.mrb[79].mxu1  ;;  %v8019_v6 = vld [vmem:[%s11247_s23 + $0x20] sm:$0xff] }
 0xcc7   : > { %v7839_v14 = vrot.slane %v7244_v48, 2 }
 0xcc8   : > { %8079 = vst [vmem:[%s14275_s19] sm:$0xff] %v8047_v57  ;;  %8080 = vst [vmem:[%s14275_s19 + $0x8] sm:$0xff] %v8048_v36 }
 0xcc9   : > { %v7840_v30 = vsel %vm4114_vm7, %v7838_v28, %v7839_v14  ;;  %v7842_v62 = vsel %vm4114_vm7, %v7839_v14, %v7841_v22 }
 0xcca   : > { %v7947_v11 = vadd.f32 %v7840_v30, %v14647_v2  ;;  %v7948_v39 = vadd.f32 %v7842_v62, %v14648_v40  ;;  %v8021_v40 = vld [vmem:[%s11247_s23 + $0x30] sm:$0xff] }
 0xccb   : > { %v9335_v32 = vpop.f32.mrb[80].mxu1 }
 0xccc   : > { %v7985_v61 = vadd.f32 %v14263_v0, %v7947_v11  ;;  %v7986_v29 = vadd.f32 %v14263_v0, %v7948_v39  ;;  %v7256_v53 = vpop.f32.mrb[81].mxu1  ;;  %v7846_v43 = vrot.slane %v9335_v32, 2  ;;  %v8022_v39 = vld [vmem:[%s11247_s23 + $0x38] sm:$0xff] }
 0xccd   : > { %v9336_v50 = vpop.f32.mrb[82].mxu1  ;;  %v7843_v47 = vrot.slane %v7256_v53, 2 }
 0xcce   : > { %v8049_v18 = vadd.f32 %v8017_v8, %v7985_v61  ;;  %v8050_v49 = vadd.f32 %v8018_v38, %v7986_v29  ;;  %v7259_v16 = vpop.f32.mrb[83].mxu1 }
 0xccf   : > { %v7844_v25 = vrot.slane %v7259_v16, 2 }
 0xcd0   : > { %8081 = vst [vmem:[%s14275_s19 + $0x10] sm:$0xff] %v8049_v18  ;;  %8082 = vst [vmem:[%s14275_s19 + $0x18] sm:$0xff] %v8050_v49 }
 0xcd1   : > { %v7845_v1 = vsel %vm4114_vm7, %v7843_v47, %v7844_v25  ;;  %v7847_v7 = vsel %vm4114_vm7, %v7844_v25, %v7846_v43 }
 0xcd2   : > { %v7949_v24 = vadd.f32 %v7845_v1, %v14649_v41  ;;  %v7950_v55 = vadd.f32 %v7847_v7, %v14097_v27  ;;  %v8023_v1 = vld [vmem:[%s11247_s23 + $0x40] sm:$0xff]  ;;  %v8024_v7 = vld [vmem:[%s11247_s23 + $0x48] sm:$0xff] }
 0xcd3   : > { %v9339_v13 = vpop.f32.mrb[84].mxu1 }
 0xcd4   : > { %v7987_v56 = vadd.f32 %v14263_v0, %v7949_v24  ;;  %v7988_v46 = vadd.f32 %v14263_v0, %v7950_v55  ;;  %v7271_v26 = vpop.f32.mrb[85].mxu1  ;;  %v7851_v28 = vrot.slane %v9339_v13, 2 }
 0xcd5   : > { %v9340_v57 = vpop.f32.mrb[86].mxu1  ;;  %v7848_v14 = vrot.slane %v7271_v26, 2 }
 0xcd6   : > { %v8051_v36 = vadd.f32 %v8019_v6, %v7987_v56  ;;  %v8052_v48 = vadd.f32 %v8020_v12, %v7988_v46  ;;  %v7274_v22 = vpop.f32.mrb[87].mxu1 }
 0xcd7   : > { %v7849_v30 = vrot.slane %v7274_v22, 2 }
 0xcd8   : > { %8083 = vst [vmem:[%s14275_s19 + $0x20] sm:$0xff] %v8051_v36  ;;  %8084 = vst [vmem:[%s14275_s19 + $0x28] sm:$0xff] %v8052_v48 }
 0xcd9   : > { %v7850_v27 = vsel %vm4114_vm7, %v7848_v14, %v7849_v30  ;;  %v7852_v62 = vsel %vm4114_vm7, %v7849_v30, %v7851_v28  ;;  %v8025_v28 = vld [vmem:[%s11247_s23 + $0x50] sm:$0xff]  ;;  %v8026_v14 = vld [vmem:[%s11247_s23 + $0x58] sm:$0xff] }
 0xcda   : > { %v7951_v2 = vadd.f32 %v7850_v27, %v14107_v45  ;;  %v7952_v11 = vadd.f32 %v7852_v62, %v14112_v10 }
 0xcdb   : > { %v9343_v8 = vpop.f32.mrb[88].mxu1 }
 0xcdc   : > { %v7989_v38 = vadd.f32 %v14263_v0, %v7951_v2  ;;  %v7990_v32 = vadd.f32 %v14263_v0, %v7952_v11  ;;  %v7286_v61 = vpop.f32.mrb[89].mxu1  ;;  %v7856_v49 = vrot.slane %v9343_v8, 2 }
 0xcdd   : > { %v9344_v29 = vpop.f32.mrb[90].mxu1  ;;  %v7853_v16 = vrot.slane %v7286_v61, 2 }
 0xcde   : > { %v8053_v53 = vadd.f32 %v8021_v40, %v7989_v38  ;;  %v8054_v50 = vadd.f32 %v8022_v39, %v7990_v32  ;;  %v7289_v18 = vpop.f32.mrb[91].mxu1 }
 0xcdf   : > { %v7854_v45 = vrot.slane %v7289_v18, 2  ;;  %v8028_v18 = vld [vmem:[%s11247_s23 + $0x68] sm:$0xff] }
 0xce0   : > { %8085 = vst [vmem:[%s14275_s19 + $0x30] sm:$0xff] %v8053_v53  ;;  %8086 = vst [vmem:[%s14275_s19 + $0x38] sm:$0xff] %v8054_v50  ;;  %v8027_v50 = vld [vmem:[%s11247_s23 + $0x60] sm:$0xff] }
 0xce1   : > { %v7855_v10 = vsel %vm4114_vm7, %v7853_v16, %v7854_v45  ;;  %v7857_v43 = vsel %vm4114_vm7, %v7854_v45, %v7856_v49 }
 0xce2   : > { %v7953_v47 = vadd.f32 %v7855_v10, %v14120_v4  ;;  %v7954_v25 = vadd.f32 %v7857_v43, %v14125_v44 }
 0xce3   : > { %v9347_v41 = vpop.f32.mrb[92].mxu1 }
 0xce4   : > { %v7991_v24 = vadd.f32 %v14263_v0, %v7953_v47  ;;  %v7992_v55 = vadd.f32 %v14263_v0, %v7954_v25  ;;  %v7301_v6 = vpop.f32.mrb[93].mxu1  ;;  %v7861_v26 = vrot.slane %v9347_v41, 2 }
 0xce5   : > { %v9348_v12 = vpop.f32.mrb[94].mxu1  ;;  %v7858_v57 = vrot.slane %v7301_v6, 2 }
 0xce6   : > { %v8055_v13 = vadd.f32 %v8023_v1, %v7991_v24  ;;  %v8056_v56 = vadd.f32 %v8024_v7, %v7992_v55  ;;  %v7304_v46 = vpop.f32.mrb[95].mxu1  ;;  %v8029_v12 = vld [vmem:[%s11247_s23 + $0x70] sm:$0xff] }
 0xce7   : > { %v7859_v4 = vrot.slane %v7304_v46, 2 }
 0xce8   : > { %8087 = vst [vmem:[%s14275_s19 + $0x40] sm:$0xff] %v8055_v13  ;;  %8088 = vst [vmem:[%s14275_s19 + $0x48] sm:$0xff] %v8056_v56  ;;  %v8030_v13 = vld [vmem:[%s11247_s23 + $0x78] sm:$0xff] }
 0xce9   : > { %v7860_v44 = vsel %vm4114_vm7, %v7858_v57, %v7859_v4  ;;  %v7862_v36 = vsel %vm4114_vm7, %v7859_v4, %v7861_v26 }
 0xcea   : > { %v7955_v48 = vadd.f32 %v7860_v44, %v14133_v31  ;;  %v7956_v22 = vadd.f32 %v7862_v36, %v14138_v37 }
 0xceb   : > { %v9351_v30 = vpop.f32.mrb[96].mxu1 }
 0xcec   : > { %v7993_v27 = vadd.f32 %v14263_v0, %v7955_v48  ;;  %v7994_v62 = vadd.f32 %v14263_v0, %v7956_v22  ;;  %v7316_v2 = vpop.f32.mrb[97].mxu1  ;;  %v7866_v38 = vrot.slane %v9351_v30, 2 }
 0xced   : > { %v9352_v11 = vpop.f32.mrb[98].mxu1  ;;  %v7863_v32 = vrot.slane %v7316_v2, 2  ;;  %v8032_v2 = vld [vmem:[%s11247_s23 + $0x88] sm:$0xff] }
 0xcee   : > { %v8057_v40 = vadd.f32 %v8025_v28, %v7993_v27  ;;  %v8058_v39 = vadd.f32 %v8026_v14, %v7994_v62  ;;  %v7319_v8 = vpop.f32.mrb[99].mxu1  ;;  %v8031_v62 = vld [vmem:[%s11247_s23 + $0x80] sm:$0xff] }
 0xcef   : > { %v7864_v31 = vrot.slane %v7319_v8, 2 }
 0xcf0   : > { %8089 = vst [vmem:[%s14275_s19 + $0x50] sm:$0xff] %v8057_v40  ;;  %8090 = vst [vmem:[%s14275_s19 + $0x58] sm:$0xff] %v8058_v39 }
 0xcf1   : > { %v7865_v37 = vsel %vm4114_vm7, %v7863_v32, %v7864_v31  ;;  %v7867_v61 = vsel %vm4114_vm7, %v7864_v31, %v7866_v38 }
 0xcf2   : > { %v7957_v29 = vadd.f32 %v7865_v37, %v14146_v33  ;;  %v7958_v53 = vadd.f32 %v7867_v61, %v14151_v20 }
 0xcf3   : > { %v9355_v49 = vpop.f32.mrb[100].mxu1 }
 0xcf4   : > { %v7995_v16 = vadd.f32 %v14263_v0, %v7957_v29  ;;  %v7996_v45 = vadd.f32 %v14263_v0, %v7958_v53  ;;  %v7331_v10 = vpop.f32.mrb[101].mxu1  ;;  %v7871_v7 = vrot.slane %v9355_v49, 2  ;;  %v8033_v49 = vld [vmem:[%s11247_s23 + $0x90] sm:$0xff] }
 0xcf5   : > { %v9356_v43 = vpop.f32.mrb[102].mxu1  ;;  %v7868_v41 = vrot.slane %v7331_v10, 2 }
 0xcf6   : > { %v8059_v47 = vadd.f32 %v8027_v50, %v7995_v16  ;;  %v8060_v25 = vadd.f32 %v8028_v18, %v7996_v45  ;;  %v7334_v1 = vpop.f32.mrb[103].mxu1  ;;  %v8034_v16 = vld [vmem:[%s11247_s23 + $0x98] sm:$0xff] }
 0xcf7   : > { %v7869_v33 = vrot.slane %v7334_v1, 2 }
 0xcf8   : > { %8091 = vst [vmem:[%s14275_s19 + $0x60] sm:$0xff] %v8059_v47  ;;  %8092 = vst [vmem:[%s14275_s19 + $0x68] sm:$0xff] %v8060_v25 }
 0xcf9   : > { %v7870_v20 = vsel %vm4114_vm7, %v7868_v41, %v7869_v33  ;;  %v7872_v24 = vsel %vm4114_vm7, %v7869_v33, %v7871_v7 }
 0xcfa   : > { %v7959_v55 = vadd.f32 %v7870_v20, %v14159_v19  ;;  %v7960_v6 = vadd.f32 %v7872_v24, %v14164_v63 }
 0xcfb   : > { %v9359_v56 = vpop.f32.mrb[104].mxu1 }
 0xcfc   : > { %v7997_v46 = vadd.f32 %v14263_v0, %v7959_v55  ;;  %v7998_v26 = vadd.f32 %v14263_v0, %v7960_v6  ;;  %v7346_v57 = vpop.f32.mrb[105].mxu1  ;;  %v7876_v22 = vrot.slane %v9359_v56, 2 }
 0xcfd   : > { %v9360_v4 = vpop.f32.mrb[106].mxu1  ;;  %v7873_v28 = vrot.slane %v7346_v57, 2 }
 0xcfe   : > { %v8061_v44 = vadd.f32 %v8029_v12, %v7997_v46  ;;  %v8062_v36 = vadd.f32 %v8030_v13, %v7998_v26  ;;  %v7349_v48 = vpop.f32.mrb[107].mxu1  ;;  %v8035_v12 = vld [vmem:[%s11247_s23 + $0xa0] sm:$0xff]  ;;  %v8036_v13 = vld [vmem:[%s11247_s23 + $0xa8] sm:$0xff] }
 0xcff   : > { %v7874_v19 = vrot.slane %v7349_v48, 2 }
 0xd00   : > { %8093 = vst [vmem:[%s14275_s19 + $0x70] sm:$0xff] %v8061_v44  ;;  %8094 = vst [vmem:[%s14275_s19 + $0x78] sm:$0xff] %v8062_v36 }
 0xd01   : > { %v7875_v63 = vsel %vm4114_vm7, %v7873_v28, %v7874_v19  ;;  %v7877_v14 = vsel %vm4114_vm7, %v7874_v19, %v7876_v22 }
 0xd02   : > { %v7961_v30 = vadd.f32 %v7875_v63, %v14172_v34  ;;  %v7962_v27 = vadd.f32 %v7877_v14, %v14177_v35 }
 0xd03   : > { %v9363_v11 = vpop.f32.mrb[108].mxu1 }
 0xd04   : > { %v7999_v40 = vadd.f32 %v14263_v0, %v7961_v30  ;;  %v8000_v39 = vadd.f32 %v14263_v0, %v7962_v27  ;;  %v7361_v8 = vpop.f32.mrb[109].mxu1  ;;  %v7881_v61 = vrot.slane %v9363_v11, 2  ;;  %v8037_v30 = vld [vmem:[%s11247_s23 + $0xb0] sm:$0xff]  ;;  %v8038_v27 = vld [vmem:[%s11247_s23 + $0xb8] sm:$0xff] }
 0xd05   : > { %v9364_v38 = vpop.f32.mrb[110].mxu1  ;;  %v7878_v29 = vrot.slane %v7361_v8, 2 }
 0xd06   : > { %v8063_v32 = vadd.f32 %v8031_v62, %v7999_v40  ;;  %v8064_v31 = vadd.f32 %v8032_v2, %v8000_v39  ;;  %v7364_v37 = vpop.f32.mrb[111].mxu1 }
 0xd07   : > { %v7879_v34 = vrot.slane %v7364_v37, 2 }
 0xd08   : > { %8095 = vst [vmem:[%s14275_s19 + $0x80] sm:$0xff] %v8063_v32  ;;  %8096 = vst [vmem:[%s14275_s19 + $0x88] sm:$0xff] %v8064_v31 }
 0xd09   : > { %v7880_v35 = vsel %vm4114_vm7, %v7878_v29, %v7879_v34  ;;  %v7882_v53 = vsel %vm4114_vm7, %v7879_v34, %v7881_v61 }
 0xd0a   : > { %v7963_v50 = vadd.f32 %v7880_v35, %v14185_v23  ;;  %v7964_v18 = vadd.f32 %v7882_v53, %v14191_v54  ;;  %v8039_v35 = vld [vmem:[%s11247_s23 + $0xc0] sm:$0xff]  ;;  %v8040_v53 = vld [vmem:[%s11247_s23 + $0xc8] sm:$0xff] }
 0xd0b   : > { %v9367_v45 = vpop.f32.mrb[112].mxu1 }
 0xd0c   : > { %v8001_v10 = vadd.f32 %v14263_v0, %v7963_v50  ;;  %v8002_v43 = vadd.f32 %v14263_v0, %v7964_v18  ;;  %v7376_v47 = vpop.f32.mrb[113].mxu1  ;;  %v7886_v33 = vrot.slane %v9367_v45, 2 }
 0xd0d   : > { %v9368_v25 = vpop.f32.mrb[114].mxu1  ;;  %v7883_v20 = vrot.slane %v7376_v47, 2 }
 0xd0e   : > { %v8065_v1 = vadd.f32 %v8033_v49, %v8001_v10  ;;  %v8066_v7 = vadd.f32 %v8034_v16, %v8002_v43  ;;  %v7379_v41 = vpop.f32.mrb[115].mxu1 }
 0xd0f   : > { %v7884_v23 = vrot.slane %v7379_v41, 2 }
 0xd10   : > { %8097 = vst [vmem:[%s14275_s19 + $0x90] sm:$0xff] %v8065_v1  ;;  %8098 = vst [vmem:[%s14275_s19 + $0x98] sm:$0xff] %v8066_v7 }
 0xd11   : > { %v7885_v54 = vsel %vm4114_vm7, %v7883_v20, %v7884_v23  ;;  %v7887_v24 = vsel %vm4114_vm7, %v7884_v23, %v7886_v33  ;;  %v8041_v20 = vld [vmem:[%s11247_s23 + $0xd0] sm:$0xff]  ;;  %v8042_v23 = vld [vmem:[%s11247_s23 + $0xd8] sm:$0xff] }
 0xd12   : > { %v7965_v55 = vadd.f32 %v7885_v54, %v14199_v60  ;;  %v7966_v6 = vadd.f32 %v7887_v24, %v14203_v42 }
 0xd13   : > { %v9371_v56 = vpop.f32.mrb[116].mxu1 }
 0xd14   : > { %v8003_v46 = vadd.f32 %v14263_v0, %v7965_v55  ;;  %v8004_v26 = vadd.f32 %v14263_v0, %v7966_v6  ;;  %v7391_v57 = vpop.f32.mrb[117].mxu1  ;;  %v7891_v22 = vrot.slane %v9371_v56, 2 }
 0xd15   : > { %v9372_v4 = vpop.f32.mrb[118].mxu1  ;;  %v7888_v28 = vrot.slane %v7391_v57, 2 }
 0xd16   : > { %v8067_v44 = vadd.f32 %v8035_v12, %v8003_v46  ;;  %v8068_v36 = vadd.f32 %v8036_v13, %v8004_v26  ;;  %v7394_v48 = vpop.f32.mrb[119].mxu1 }
 0xd17   : > { %v7889_v60 = vrot.slane %v7394_v48, 2  ;;  %v8043_v48 = vld [vmem:[%s11247_s23 + $0xe0] sm:$0xff] }
 0xd18   : > { %8099 = vst [vmem:[%s14275_s19 + $0xa0] sm:$0xff] %v8067_v44  ;;  %8100 = vst [vmem:[%s14275_s19 + $0xa8] sm:$0xff] %v8068_v36 }
 0xd19   : > { %v7890_v42 = vsel %vm4114_vm7, %v7888_v28, %v7889_v60  ;;  %v7892_v19 = vsel %vm4114_vm7, %v7889_v60, %v7891_v22  ;;  %v8044_v22 = vld [vmem:[%s11247_s23 + $0xe8] sm:$0xff] }
 0xd1a   : > { %v7967_v63 = vadd.f32 %v7890_v42, %v14210_v52  ;;  %v7968_v14 = vadd.f32 %v7892_v19, %v14214_v15 }
 0xd1b   : > { %v9375_v62 = vpop.f32.mrb[120].mxu1 }
 0xd1c   : > { %v8005_v2 = vadd.f32 %v14263_v0, %v7967_v63  ;;  %v8006_v11 = vadd.f32 %v14263_v0, %v7968_v14  ;;  %v7406_v40 = vpop.f32.mrb[121].mxu1  ;;  %v7896_v31 = vrot.slane %v9375_v62, 2 }
 0xd1d   : > { %v9376_v39 = vpop.f32.mrb[122].mxu1  ;;  %v7893_v37 = vrot.slane %v7406_v40, 2 }
 0xd1e   : > { %v8069_v8 = vadd.f32 %v8037_v30, %v8005_v2  ;;  %v8070_v38 = vadd.f32 %v8038_v27, %v8006_v11  ;;  %v7409_v32 = vpop.f32.mrb[123].mxu1 }
 0xd1f   : > { %v7894_v52 = vrot.slane %v7409_v32, 2 }
 0xd20   : > { %8101 = vst [vmem:[%s14275_s19 + $0xb0] sm:$0xff] %v8069_v8  ;;  %8102 = vst [vmem:[%s14275_s19 + $0xb8] sm:$0xff] %v8070_v38  ;;  %v8045_v8 = vld [vmem:[%s11247_s23 + $0xf0] sm:$0xff]  ;;  %v8046_v38 = vld [vmem:[%s11247_s23 + $0xf8] sm:$0xff]  ;;  %s10899_s23 = scalar_lea.vmem %s14434_s21, 4096 }
 0xd21   : > { %v7895_v15 = vsel %vm4114_vm7, %v7893_v37, %v7894_v52  ;;  %v7897_v61 = vsel %vm4114_vm7, %v7894_v52, %v7896_v31  ;;  %p10900_p10 = scmp.ne.s32.totalorder %s14434_s21, %s10899_s23  ;;  %p10907_p1 = scmp.lt.s32.totalorder %s10905_s25, %s10899_s23 }
 0xd22   : > { %v7969_v29 = vadd.f32 %v7895_v15, %v14221_v21  ;;  %v7970_v34 = vadd.f32 %v7897_v61, %v14225_v59 }
 0xd23   : > { %v9379_v50 = vpop.f32.mrb[124].mxu1  ;;  %p10901_p3 = pnand %p10900_p10, %p11190_p5  ;;  %p10908_p2 = por %p10907_p1, %p10906_p12 }
 0xd24   : > { %v8007_v18 = vadd.f32 %v14263_v0, %v7969_v29  ;;  %v8008_v49 = vadd.f32 %v14263_v0, %v7970_v34  ;;  %v7421_v16 = vpop.f32.mrb[125].mxu1  ;;  %v7901_v25 = vrot.slane %v9379_v50, 2 }
 0xd25   : > { %v9380_v45 = vpop.f32.mrb[126].mxu1  ;;  %v7898_v1 = vrot.slane %v7421_v16, 2  ;;  %p10902_p7 = pneg %p10901_p3 }
 0xd26   : > { %v8071_v10 = vadd.f32 %v8039_v35, %v8007_v18  ;;  %v8072_v43 = vadd.f32 %v8040_v53, %v8008_v49  ;;  %v7424_v47 = vpop.f32.mrb[127].mxu1 }
 0xd27   : > { %v7899_v21 = vrot.slane %v7424_v47, 2  ;;  %p10909_p4 = pnand %p10908_p2, %p10902_p7 }
 0xd28   : > { %8103 = vst [vmem:[%s14275_s19 + $0xc0] sm:$0xff] %v8071_v10  ;;  %8104 = vst [vmem:[%s14275_s19 + $0xc8] sm:$0xff] %v8072_v43 }
 0xd29   : > { %v7900_v59 = vsel %vm4114_vm7, %v7898_v1, %v7899_v21  ;;  %v7902_v7 = vsel %vm4114_vm7, %v7899_v21, %v7901_v25 }
 0xd2a   : > { %v7971_v41 = vadd.f32 %v7900_v59, %v14232_v5  ;;  %v7972_v33 = vadd.f32 %v7902_v7, %v14236_v58 }
 0xd2b   : > { %v9383_v54 = vpop.f32.mrb[128].mxu1 }
 0xd2c   : > { %v8009_v24 = vadd.f32 %v14263_v0, %v7971_v41  ;;  %v8010_v55 = vadd.f32 %v14263_v0, %v7972_v33  ;;  %v7436_v6 = vpop.f32.mrb[129].mxu1  ;;  %v7906_v26 = vrot.slane %v9383_v54, 2 }
 0xd2d   : > { %v9384_v12 = vpop.f32.mrb[130].mxu1  ;;  %v7903_v57 = vrot.slane %v7436_v6, 2 }
 0xd2e   : > { %v8073_v13 = vadd.f32 %v8041_v20, %v8009_v24  ;;  %v8074_v56 = vadd.f32 %v8042_v23, %v8010_v55  ;;  %v7439_v46 = vpop.f32.mrb[131].mxu1 }
 0xd2f   : > { %v7904_v5 = vrot.slane %v7439_v46, 2 }
 0xd30   : > { %8105 = vst [vmem:[%s14275_s19 + $0xd0] sm:$0xff] %v8073_v13  ;;  %8106 = vst [vmem:[%s14275_s19 + $0xd8] sm:$0xff] %v8074_v56 }
 0xd31   : > { %v7905_v58 = vsel %vm4114_vm7, %v7903_v57, %v7904_v5  ;;  %v7907_v4 = vsel %vm4114_vm7, %v7904_v5, %v7906_v26 }
 0xd32   : > { %v7973_v44 = vadd.f32 %v7905_v58, %v14243_v9  ;;  %v7974_v36 = vadd.f32 %v7907_v4, %v14247_v51 }
 0xd33   : > { %v9387_v28 = vpop.f32.mrb[132].mxu1 }
 0xd34   : > { %v8011_v60 = vadd.f32 %v14263_v0, %v7973_v44  ;;  %v8012_v42 = vadd.f32 %v14263_v0, %v7974_v36  ;;  %v7451_v19 = vpop.f32.mrb[133].mxu1  ;;  %v7911_v9 = vrot.slane %v9387_v28, 2 }
 0xd35   : > { %v9388_v63 = vpop.f32.mrb[134].mxu1  ;;  %v7908_v62 = vrot.slane %v7451_v19, 2 }
 0xd36   : > { %v8075_v14 = vadd.f32 %v8043_v48, %v8011_v60  ;;  %v8076_v30 = vadd.f32 %v8044_v22, %v8012_v42  ;;  %v7454_v27 = vpop.f32.mrb[135].mxu1 }
 0xd37   : > { %v7909_v2 = vrot.slane %v7454_v27, 2 }
 0xd38   : > { %8107 = vst [vmem:[%s14275_s19 + $0xe0] sm:$0xff] %v8075_v14  ;;  %8108 = vst [vmem:[%s14275_s19 + $0xe8] sm:$0xff] %v8076_v30 }
 0xd39   : > { %v7910_v51 = vsel %vm4114_vm7, %v7908_v62, %v7909_v2  ;;  %v7912_v11 = vsel %vm4114_vm7, %v7909_v2, %v7911_v9 }
 0xd3a   : > { %v7975_v40 = vadd.f32 %v7910_v51, %v14254_v17  ;;  %v7976_v39 = vadd.f32 %v7912_v11, %v14258_v3 }
 0xd3c   : > { %v8013_v32 = vadd.f32 %v14263_v0, %v7975_v40  ;;  %v8014_v31 = vadd.f32 %v14263_v0, %v7976_v39 }
 0xd3e   : > { %v8077_v17 = vadd.f32 %v8045_v8, %v8013_v32  ;;  %v8078_v3 = vadd.f32 %v8046_v38, %v8014_v31 }
 0xd40   : > { %8109 = vst [vmem:[%s14275_s19 + $0xf0] sm:$0xff] %v8077_v17  ;;  %8110 = vst [vmem:[%s14275_s19 + $0xf8] sm:$0xff] %v8078_v3 }
 0xd41   : > { %10912 = shalt.err (!%p10909_p4)
}
 0xd42   : > { %s10913_s10 = scalar_lea.hbm %s14432_s30, 4096  ;;  %s10917_s29 = scalar_lea.hbm %s14650_s26, 8192 }
 0xd43   : > { %p10914_p9 = scmp.ne.s32.totalorder %s14432_s30, %s10913_s10  ;;  %p10918_p8 = scmp.lt.u32.totalorder %s14432_s30, %s14650_s26 }
 0xd44   : > { %p10919_p13 = scmp.lt.u32.totalorder %s10917_s29, %s10913_s10  ;;  %p10921_p10 = scmp.lt.u32.totalorder %s10913_s10, %s14432_s30 }
 0xd45   : > { %p10915_p0 = pnand %p10914_p9, %p11190_p5 }
 0xd46   : > { %p10920_p6 = por %p10919_p13, %p10918_p8 }
 0xd47   : > { %p10916_p11 = pneg %p10915_p0 }
 0xd48   : > { %p10922_p3 = por %p10921_p10, %p10920_p6 }
 0xd4a   : > { %p10923_p7 = pnand %p10922_p3, %p10916_p11 }
 0xd4c   : > { %10926 = shalt.err (!%p10923_p7)
}
 0xd4d   : > { %s10988_s20 = smov 128   ;;  %s10989_s11 = smov 8  }
 0xd4e   : > { %10235 = dma.vmem_to_hbm [thread:$0]  (%p11190_p5), %s14434_s21, 4096, %s14432_s30, %s8112_s17, %s10988_s20, %s10988_s20, %s10989_s11  }
 0xd4f PF: > { %s14651_s23 = sld [smem:[#allocation16_spill]]  ;;  %s14652_s13 = sld [smem:[#allocation17_spill]] }
 0xd50   : > { %p14654_p1 = scmp.ge.s32.totalorder %s10973_s16, 2 }
 0xd55   : > { %s8140_s22 = sand.u32 1, %s14651_s23   ;;  %p14653_p12 = scmp.ne.s32.totalorder %s14652_s13, 0 }
 0xd56   : > { %s8141_s25 = scalar_lea.sflag [#allocation5], %s8140_s22 }
 0xd57   : > { %p10252_p2 = pnand %p14654_p1, %p14653_p12 }
 0xd59   : > { %10956 = dma.done.wait (!%p10252_p2), %s8141_s25, 4096  }
 0xd5a   : > { %10958 = vsyncadd (!%p10252_p2), %s8141_s25, 4294963200  ;;  %p25_p4 = scmp.ge.s32.totalorder %s11158_s18, 4   ;;  %s14655_s13 = smov %s10965_s14 }
 0xd5b   : > { %s14656_s14 = smov %s10969_s15  ;;  %s14657_s15 = smov %s11186_s24 }
 0xd5c   : > { %s14658_s16 = smov %s11158_s18  ;;  %27 = sbr.rel (!%p25_p4) target bundleno = 11 (0xb), region = 124 }
 0xd63   :  { %8146 = vsyncpa [#allocation4], 1 }
 0xd64   :  { %8148 = vsyncpa [#allocation4 + $0x1], 1 }
 0xd65   :  { %8149 = vsyncpa [#allocation7], 1 }
 0xd66   :  { %8150 = vsyncpa [#allocation10], 1 }
 0xd67   :  { %8151 = vsyncpa [#allocation5], 1 }
 0xd68   :  { %8153 = vsyncpa [#allocation5 + $0x1], 1 }

</bundles_post_ra>
